<compile_context>
chip_gen: v7x
topology: tpu7x:2x2x1
jax: 0.10.0
libtpu: 0.0.40
codegen_flags: <defaults>
</compile_context>

<pallas_src>
from functools import partial

import jax
import jax.numpy as jnp
from jax.experimental import pallas as pl
from jax.experimental.pallas import tpu as pltpu

BN_EPS = 1e-5


def _round_up(x, m):
    return (x + m - 1) // m * m


# ---------------------------------------------------------------------------
# Fused Pallas kernel: conv3x3+BN+ReLU -> conv3x3+BN+residual+ReLU
# ---------------------------------------------------------------------------
def _basic_block_kernel(w_pad, guard, mp, tr,
                        x_ref, mask_ref, w1_ref, s1_ref, b1_ref,
                        w2_ref, s2_ref, b2_ref, out_ref, mid_ref):
    """One batch sample per grid step.

    x_ref:    (Mg, Cin)  bf16  zero-padded sample: (H+2)*w_pad flattened rows
                               (w_pad = W+2 rounded up to the sublane size),
                               plus `guard` zero rows on each end.
    mask_ref: (Mp, 1)    bf16  1 on interior rows, 0 on padding/alignment rows.
    w*_ref:   (9, C, P)  bf16  one (C, P) matrix per 3x3 tap (k = kh*3 + kw).
    s*/b*:    (1, P)     f32   folded BN scale / bias.
    out_ref:  (Mp, P)    bf16  conv output at every padded row position (the
                               wrapper discards the padding ring afterwards).
    mid_ref:  (Mg, P)    bf16  VMEM scratch: zero-padded conv1 output.
    """
    p = out_ref.shape[1]
    # Flattened-row offset of each 3x3 tap relative to the output row.  w_pad
    # and guard are multiples of 8, so only the kw=+-1 taps are row-misaligned.
    offs = [(kh - 1) * w_pad + (kw - 1) for kh in range(3) for kw in range(3)]

    # Only the guard bands of the conv1 scratch must be zero; the interior Mp
    # rows are fully overwritten below (the mask keeps the ring rows zero).
    # This is unconditional (tiny: 2*guard rows) so it stays correct when the
    # batch axis is split across TensorCores on v7x.
    zero_band = jnp.zeros((guard, p), mid_ref.dtype)
    mid_ref[:guard, :] = zero_band
    mid_ref[guard + mp:, :] = zero_band

    # Hoist broadcast operands / weight taps out of the row-block loops.
    s1, b1 = s1_ref[...], b1_ref[...]
    s2, b2 = s2_ref[...], b2_ref[...]
    w1 = [w1_ref[k] for k in range(9)]
    w2 = [w2_ref[k] for k in range(9)]

    def conv3x3(src_ref, w_taps, rb, blk):
        # TODO(synk): stack the 9 taps into a (blk, 9*C) slab and issue ONE
        # K=9*C matmul per block (better MXU fill for small C); gated on
        # Mosaic's unaligned lane-dim concatenate being available.
        acc = jnp.zeros((blk, p), jnp.float32)
        for k, d in enumerate(offs):          # static unroll: 9 MXU matmuls
            tap = src_ref[guard + rb + d: guard + rb + d + blk, :]
            acc = acc + jnp.dot(tap, w_taps[k],
                                preferred_element_type=jnp.float32)
        return acc

    # ---- Phase 1: conv1 -> BN1 -> ReLU -> mask -> mid scratch (row-tiled).
    for rb in range(0, mp, tr):
        blk = min(tr, mp - rb)
        y1 = jnp.maximum(conv3x3(x_ref, w1, rb, blk) * s1 + b1, 0.0)
        y1 = y1 * mask_ref[rb:rb + blk, :].astype(jnp.float32)
        mid_ref[guard + rb: guard + rb + blk, :] = y1.astype(mid_ref.dtype)

    # ---- Phase 2: conv2 -> BN2 -> (+ residual) -> ReLU -> out (row-tiled).
    # Residual == x (stride=1, downsample=None): the center tap of x_ref.
    # Note: the skip path is bf16-quantized (x was cast once in the wrapper).
    for rb in range(0, mp, tr):
        blk = min(tr, mp - rb)
        y2 = conv3x3(mid_ref, w2, rb, blk) * s2 + b2
        res = x_ref[guard + rb: guard + rb + blk, :].astype(jnp.float32)
        out_ref[rb:rb + blk, :] = jnp.maximum(y2 + res, 0.0).astype(out_ref.dtype)


# ---------------------------------------------------------------------------
# BasicBlock forward (NCHW in / NCHW out, like the PyTorch module)
# ---------------------------------------------------------------------------
def basic_block_forward(x_nchw, params, *, compute_dtype=jnp.bfloat16,
                        row_tile=256):
    # TODO(synk): stride>1 / downsample branch of BasicBlock is not implemented
    # (the module's constructor defaults are stride=1, downsample=None).
    N, C, H, W = x_nchw.shape
    P = params["scale1"].shape[0]
    assert P == C, "identity residual requires planes == inplanes"

    SUB = 8                               # sublane alignment (16 also aligns bf16 pairs)
    Hp = H + 2
    Wp = _round_up(W + 2, SUB)            # aligned flattened-row pitch
    Mp = _round_up(Hp * Wp, SUB)          # rows per padded sample (+ align slack)
    G = _round_up(Wp + 1, SUB)            # halo guard >= max tap shift, aligned
    Mg = Mp + 2 * G
    TR = min(_round_up(row_tile, SUB), Mp)

    # ---- XLA glue: layout only (pad + reshape + transpose); no 9x im2col ----
    # TODO(synk): when chaining blocks in a stage, keep activations in this
    # padded/flattened bf16 layout between blocks instead of NCHW round trips.
    x_nhwc = jnp.transpose(x_nchw, (0, 2, 3, 1))
    xp = jnp.pad(x_nhwc, ((0, 0), (1, 1), (1, Wp - W - 1), (0, 0)))
    xflat = xp.reshape(N, Hp * Wp, C)
    xg = jnp.pad(xflat, ((0, 0), (G, G + Mp - Hp * Wp), (0, 0))).astype(compute_dtype)

    ridx = jnp.arange(Mp, dtype=jnp.int32)
    hh, ww = ridx // Wp, ridx % Wp
    mask = (((hh >= 1) & (hh <= H) & (ww >= 1) & (ww <= W))
            .astype(compute_dtype).reshape(Mp, 1))

    w1 = params["w1"].astype(compute_dtype)
    w2 = params["w2"].astype(compute_dtype)
    s1 = params["scale1"].reshape(1, P).astype(jnp.float32)
    b1 = params["bias1"].reshape(1, P).astype(jnp.float32)
    s2 = params["scale2"].reshape(1, P).astype(jnp.float32)
    b2 = params["bias2"].reshape(1, P).astype(jnp.float32)

    flops = 2 * N * Mp * 9 * P * (C + P)
    bytes_accessed = ((xg.size + mask.size + w1.size + w2.size) * 2
                      + (s1.size + b1.size + s2.size + b2.size) * 4
                      + N * Mp * P * 2)

    out = pl.pallas_call(
        partial(_basic_block_kernel, Wp, G, Mp, TR),
        grid=(N,),
        out_shape=jax.ShapeDtypeStruct((N, Mp, P), compute_dtype),
        in_specs=[
            pl.BlockSpec((None, Mg, C), lambda n: (n, 0, 0)),   # x (per sample)
            pl.BlockSpec((Mp, 1), lambda n: (0, 0)),            # validity mask
            pl.BlockSpec((9, C, P), lambda n: (0, 0, 0)),       # w1 (pinned)
            pl.BlockSpec((1, P), lambda n: (0, 0)),             # scale1
            pl.BlockSpec((1, P), lambda n: (0, 0)),             # bias1
            pl.BlockSpec((9, P, P), lambda n: (0, 0, 0)),       # w2 (pinned)
            pl.BlockSpec((1, P), lambda n: (0, 0)),             # scale2
            pl.BlockSpec((1, P), lambda n: (0, 0)),             # bias2
        ],
        out_specs=pl.BlockSpec((None, Mp, P), lambda n: (n, 0, 0)),
        scratch_shapes=[pltpu.VMEM((Mg, P), compute_dtype)],
        compiler_params=pltpu.CompilerParams(
            dimension_semantics=("parallel",),
            vmem_limit_bytes=32 * 1024 * 1024),
        cost_estimate=pl.CostEstimate(flops=flops, transcendentals=0,
                                      bytes_accessed=bytes_accessed),
    )(xg, mask, w1, s1, b1, w2, s2, b2)

    out_nhwc = out[:, :Hp * Wp, :].reshape(N, Hp, Wp, P)[:, 1:H + 1, 1:W + 1, :]
    return jnp.transpose(out_nhwc, (0, 3, 1, 2)).astype(x_nchw.dtype)


# ---------------------------------------------------------------------------
# Deterministic parameter construction
# ---------------------------------------------------------------------------
def _fold_bn(gamma, beta, mean, var):
    scale = gamma / jnp.sqrt(var + BN_EPS)
    bias = beta - mean * scale
    return scale, bias


def _oihw_to_k9(w_oihw):
    # (Cout, Cin, 3, 3) -> (kh*3+kw, Cin, Cout)
    Cout, Cin = w_oihw.shape[0], w_oihw.shape[1]
    return jnp.transpose(w_oihw, (2, 3, 1, 0)).reshape(9, Cin, Cout)


def make_params(key, inplanes, planes):
    ks = jax.random.split(key, 10)
    w1 = jax.random.normal(ks[0], (planes, inplanes, 3, 3), jnp.float32) * 0.1
    w2 = jax.random.normal(ks[1], (planes, planes, 3, 3), jnp.float32) * 0.1
    g1 = 1.0 + 0.1 * jax.random.normal(ks[2], (planes,), jnp.float32)
    b1 = 0.1 * jax.random.normal(ks[3], (planes,), jnp.float32)
    m1 = 0.1 * jax.random.normal(ks[4], (planes,), jnp.float32)
    v1 = 0.5 + jnp.abs(jax.random.normal(ks[5], (planes,), jnp.float32))
    g2 = 1.0 + 0.1 * jax.random.normal(ks[6], (planes,), jnp.float32)
    b2 = 0.1 * jax.random.normal(ks[7], (planes,), jnp.float32)
    m2 = 0.1 * jax.random.normal(ks[8], (planes,), jnp.float32)
    v2 = 0.5 + jnp.abs(jax.random.normal(ks[9], (planes,), jnp.float32))

    s1, bi1 = _fold_bn(g1, b1, m1, v1)
    s2, bi2 = _fold_bn(g2, b2, m2, v2)
    params = dict(
        w1=_oihw_to_k9(w1), scale1=s1, bias1=bi1,
        w2=_oihw_to_k9(w2), scale2=s2, bias2=bi2,
    )
    raw = dict(w1=w1, g1=g1, b1=b1, m1=m1, v1=v1, w2=w2, g2=g2, b2=b2, m2=m2, v2=v2)
    return params, raw


# ---------------------------------------------------------------------------
# Pure-JAX reference (mirrors the PyTorch forward, NCHW / OIHW, f32)
# ---------------------------------------------------------------------------
def reference_forward(x, raw):
    def conv(x, w):
        return jax.lax.conv_general_dilated(
            x, w, window_strides=(1, 1), padding=((1, 1), (1, 1)),
            dimension_numbers=("NCHW", "OIHW", "NCHW"))

    def bn(x, g, b, m, v):
        g, b, m, v = (t[None, :, None, None] for t in (g, b, m, v))
        return (x - m) / jnp.sqrt(v + BN_EPS) * g + b

    out = jax.nn.relu(bn(conv(x, raw["w1"]), raw["g1"], raw["b1"], raw["m1"], raw["v1"]))
    out = bn(conv(out, raw["w2"]), raw["g2"], raw["b2"], raw["m2"], raw["v2"])
    return jax.nn.relu(out + x)


if __name__ == "__main__":
    key = jax.random.PRNGKey(0)
    k_x, k_p = jax.random.split(key)

    N, C, H, W = 2, 4, 16, 16          # inplanes == planes == 4, stride=1, no downsample
    x = jax.random.normal(k_x, (N, C, H, W), jnp.float32)

    params, raw = make_params(k_p, inplanes=C, planes=C)

    fwd = jax.jit(basic_block_forward)
    out = jax.block_until_ready(fwd(x, params))

    ref = jax.block_until_ready(reference_forward(x, raw))
    assert out.shape == (N, C, H, W)
    # bf16 matmul inputs/outputs with f32 accumulation -> loose-but-meaningful
    # tolerance.
    assert jnp.allclose(out, ref, atol=5e-2, rtol=5e-2), "mismatch vs reference"

    print("KERNEL_OK")
</pallas_src>

<mosaic_0001>
module attributes {stable_mosaic.version = 11 : i64} {
  func.func @_basic_block_kernel(%arg0: i32, %arg1: memref<1x496x4xbf16, #tpu.memory_space<vmem>>, %arg2: memref<432x1xbf16, #tpu.memory_space<vmem>>, %arg3: memref<9x4x4xbf16, #tpu.memory_space<vmem>>, %arg4: memref<1x4xf32, #tpu.memory_space<vmem>>, %arg5: memref<1x4xf32, #tpu.memory_space<vmem>>, %arg6: memref<9x4x4xbf16, #tpu.memory_space<vmem>>, %arg7: memref<1x4xf32, #tpu.memory_space<vmem>>, %arg8: memref<1x4xf32, #tpu.memory_space<vmem>>, %arg9: memref<1x432x4xbf16, #tpu.memory_space<vmem>>, %arg10: memref<496x4xbf16, #tpu.memory_space<vmem>>) attributes {dimension_semantics = [#tpu.dimension_semantics<parallel>], iteration_bounds = array<i64: 2>, scalar_prefetch = 0 : i64, scratch_operands = 1 : i64, tpu.core_type = #tpu.core_type<tc>, window_params = [{transform_indices = @transform_0, window_bounds = array<i64: 1, 496, 4>}, {pipeline_mode = #tpu.pipeline_mode<synchronous>, transform_indices = @transform_1, window_bounds = array<i64: 432, 1>}, {pipeline_mode = #tpu.pipeline_mode<synchronous>, transform_indices = @transform_2, window_bounds = array<i64: 9, 4, 4>}, {pipeline_mode = #tpu.pipeline_mode<synchronous>, transform_indices = @transform_3, window_bounds = array<i64: 1, 4>}, {pipeline_mode = #tpu.pipeline_mode<synchronous>, transform_indices = @transform_4, window_bounds = array<i64: 1, 4>}, {pipeline_mode = #tpu.pipeline_mode<synchronous>, transform_indices = @transform_5, window_bounds = array<i64: 9, 4, 4>}, {pipeline_mode = #tpu.pipeline_mode<synchronous>, transform_indices = @transform_6, window_bounds = array<i64: 1, 4>}, {pipeline_mode = #tpu.pipeline_mode<synchronous>, transform_indices = @transform_7, window_bounds = array<i64: 1, 4>}, {transform_indices = @transform_8, window_bounds = array<i64: 1, 432, 4>}]} {
    %cst = arith.constant 0.000000e+00 : bf16
    %0 = vector.broadcast %cst : bf16 to vector<32x4xbf16>
    %c0 = arith.constant 0 : index
    %c0_0 = arith.constant 0 : index
    %1 = vector.load %arg10[%c0, %c0_0] : memref<496x4xbf16, #tpu.memory_space<vmem>>, vector<32x4xbf16>
    tpu.vector_store %arg10[%c0, %c0_0], %0 {strides = array<i32>} : memref<496x4xbf16, #tpu.memory_space<vmem>>, vector<32x4xbf16>,
    %c464 = arith.constant 464 : index
    %c0_1 = arith.constant 0 : index
    %2 = vector.load %arg10[%c464, %c0_1] : memref<496x4xbf16, #tpu.memory_space<vmem>>, vector<32x4xbf16>
    tpu.vector_store %arg10[%c464, %c0_1], %0 {strides = array<i32>} : memref<496x4xbf16, #tpu.memory_space<vmem>>, vector<32x4xbf16>,
    %c0_2 = arith.constant 0 : index
    %c0_3 = arith.constant 0 : index
    %3 = vector.load %arg4[%c0_2, %c0_3] : memref<1x4xf32, #tpu.memory_space<vmem>>, vector<1x4xf32>
    %c0_4 = arith.constant 0 : index
    %c0_5 = arith.constant 0 : index
    %4 = vector.load %arg5[%c0_4, %c0_5] : memref<1x4xf32, #tpu.memory_space<vmem>>, vector<1x4xf32>
    %c0_6 = arith.constant 0 : index
    %c0_7 = arith.constant 0 : index
    %5 = vector.load %arg7[%c0_6, %c0_7] : memref<1x4xf32, #tpu.memory_space<vmem>>, vector<1x4xf32>
    %c0_8 = arith.constant 0 : index
    %c0_9 = arith.constant 0 : index
    %6 = vector.load %arg8[%c0_8, %c0_9] : memref<1x4xf32, #tpu.memory_space<vmem>>, vector<1x4xf32>
    %c0_10 = arith.constant 0 : index
    %c0_11 = arith.constant 0 : index
    %c0_12 = arith.constant 0 : index
    %7 = vector.load %arg3[%c0_10, %c0_11, %c0_12] : memref<9x4x4xbf16, #tpu.memory_space<vmem>>, vector<1x4x4xbf16>
    %8 = vector.shape_cast %7 : vector<1x4x4xbf16> to vector<4x4xbf16>
    %c1 = arith.constant 1 : index
    %c0_13 = arith.constant 0 : index
    %c0_14 = arith.constant 0 : index
    %9 = vector.load %arg3[%c1, %c0_13, %c0_14] : memref<9x4x4xbf16, #tpu.memory_space<vmem>>, vector<1x4x4xbf16>
    %10 = vector.shape_cast %9 : vector<1x4x4xbf16> to vector<4x4xbf16>
    %c2 = arith.constant 2 : index
    %c0_15 = arith.constant 0 : index
    %c0_16 = arith.constant 0 : index
    %11 = vector.load %arg3[%c2, %c0_15, %c0_16] : memref<9x4x4xbf16, #tpu.memory_space<vmem>>, vector<1x4x4xbf16>
    %12 = vector.shape_cast %11 : vector<1x4x4xbf16> to vector<4x4xbf16>
    %c3 = arith.constant 3 : index
    %c0_17 = arith.constant 0 : index
    %c0_18 = arith.constant 0 : index
    %13 = vector.load %arg3[%c3, %c0_17, %c0_18] : memref<9x4x4xbf16, #tpu.memory_space<vmem>>, vector<1x4x4xbf16>
    %14 = vector.shape_cast %13 : vector<1x4x4xbf16> to vector<4x4xbf16>
    %c4 = arith.constant 4 : index
    %c0_19 = arith.constant 0 : index
    %c0_20 = arith.constant 0 : index
    %15 = vector.load %arg3[%c4, %c0_19, %c0_20] : memref<9x4x4xbf16, #tpu.memory_space<vmem>>, vector<1x4x4xbf16>
    %16 = vector.shape_cast %15 : vector<1x4x4xbf16> to vector<4x4xbf16>
    %c5 = arith.constant 5 : index
    %c0_21 = arith.constant 0 : index
    %c0_22 = arith.constant 0 : index
    %17 = vector.load %arg3[%c5, %c0_21, %c0_22] : memref<9x4x4xbf16, #tpu.memory_space<vmem>>, vector<1x4x4xbf16>
    %18 = vector.shape_cast %17 : vector<1x4x4xbf16> to vector<4x4xbf16>
    %c6 = arith.constant 6 : index
    %c0_23 = arith.constant 0 : index
    %c0_24 = arith.constant 0 : index
    %19 = vector.load %arg3[%c6, %c0_23, %c0_24] : memref<9x4x4xbf16, #tpu.memory_space<vmem>>, vector<1x4x4xbf16>
    %20 = vector.shape_cast %19 : vector<1x4x4xbf16> to vector<4x4xbf16>
    %c7 = arith.constant 7 : index
    %c0_25 = arith.constant 0 : index
    %c0_26 = arith.constant 0 : index
    %21 = vector.load %arg3[%c7, %c0_25, %c0_26] : memref<9x4x4xbf16, #tpu.memory_space<vmem>>, vector<1x4x4xbf16>
    %22 = vector.shape_cast %21 : vector<1x4x4xbf16> to vector<4x4xbf16>
    %c8 = arith.constant 8 : index
    %c0_27 = arith.constant 0 : index
    %c0_28 = arith.constant 0 : index
    %23 = vector.load %arg3[%c8, %c0_27, %c0_28] : memref<9x4x4xbf16, #tpu.memory_space<vmem>>, vector<1x4x4xbf16>
    %24 = vector.shape_cast %23 : vector<1x4x4xbf16> to vector<4x4xbf16>
    %c0_29 = arith.constant 0 : index
    %c0_30 = arith.constant 0 : index
    %c0_31 = arith.constant 0 : index
    %25 = vector.load %arg6[%c0_29, %c0_30, %c0_31] : memref<9x4x4xbf16, #tpu.memory_space<vmem>>, vector<1x4x4xbf16>
    %26 = vector.shape_cast %25 : vector<1x4x4xbf16> to vector<4x4xbf16>
    %c1_32 = arith.constant 1 : index
    %c0_33 = arith.constant 0 : index
    %c0_34 = arith.constant 0 : index
    %27 = vector.load %arg6[%c1_32, %c0_33, %c0_34] : memref<9x4x4xbf16, #tpu.memory_space<vmem>>, vector<1x4x4xbf16>
    %28 = vector.shape_cast %27 : vector<1x4x4xbf16> to vector<4x4xbf16>
    %c2_35 = arith.constant 2 : index
    %c0_36 = arith.constant 0 : index
    %c0_37 = arith.constant 0 : index
    %29 = vector.load %arg6[%c2_35, %c0_36, %c0_37] : memref<9x4x4xbf16, #tpu.memory_space<vmem>>, vector<1x4x4xbf16>
    %30 = vector.shape_cast %29 : vector<1x4x4xbf16> to vector<4x4xbf16>
    %c3_38 = arith.constant 3 : index
    %c0_39 = arith.constant 0 : index
    %c0_40 = arith.constant 0 : index
    %31 = vector.load %arg6[%c3_38, %c0_39, %c0_40] : memref<9x4x4xbf16, #tpu.memory_space<vmem>>, vector<1x4x4xbf16>
    %32 = vector.shape_cast %31 : vector<1x4x4xbf16> to vector<4x4xbf16>
    %c4_41 = arith.constant 4 : index
    %c0_42 = arith.constant 0 : index
    %c0_43 = arith.constant 0 : index
    %33 = vector.load %arg6[%c4_41, %c0_42, %c0_43] : memref<9x4x4xbf16, #tpu.memory_space<vmem>>, vector<1x4x4xbf16>
    %34 = vector.shape_cast %33 : vector<1x4x4xbf16> to vector<4x4xbf16>
    %c5_44 = arith.constant 5 : index
    %c0_45 = arith.constant 0 : index
    %c0_46 = arith.constant 0 : index
    %35 = vector.load %arg6[%c5_44, %c0_45, %c0_46] : memref<9x4x4xbf16, #tpu.memory_space<vmem>>, vector<1x4x4xbf16>
    %36 = vector.shape_cast %35 : vector<1x4x4xbf16> to vector<4x4xbf16>
    %c6_47 = arith.constant 6 : index
    %c0_48 = arith.constant 0 : index
    %c0_49 = arith.constant 0 : index
    %37 = vector.load %arg6[%c6_47, %c0_48, %c0_49] : memref<9x4x4xbf16, #tpu.memory_space<vmem>>, vector<1x4x4xbf16>
    %38 = vector.shape_cast %37 : vector<1x4x4xbf16> to vector<4x4xbf16>
    %c7_50 = arith.constant 7 : index
    %c0_51 = arith.constant 0 : index
    %c0_52 = arith.constant 0 : index
    %39 = vector.load %arg6[%c7_50, %c0_51, %c0_52] : memref<9x4x4xbf16, #tpu.memory_space<vmem>>, vector<1x4x4xbf16>
    %40 = vector.shape_cast %39 : vector<1x4x4xbf16> to vector<4x4xbf16>
    %c8_53 = arith.constant 8 : index
    %c0_54 = arith.constant 0 : index
    %c0_55 = arith.constant 0 : index
    %41 = vector.load %arg6[%c8_53, %c0_54, %c0_55] : memref<9x4x4xbf16, #tpu.memory_space<vmem>>, vector<1x4x4xbf16>
    %42 = vector.shape_cast %41 : vector<1x4x4xbf16> to vector<4x4xbf16>
    %cst_56 = arith.constant 0.000000e+00 : f32
    %43 = vector.broadcast %cst_56 : f32 to vector<256x4xf32>
    %c0_57 = arith.constant 0 : index
    %c7_58 = arith.constant 7 : index
    %c0_59 = arith.constant 0 : index
    %44 = vector.load %arg1[%c0_57, %c7_58, %c0_59] : memref<1x496x4xbf16, #tpu.memory_space<vmem>>, vector<1x256x4xbf16>
    %45 = vector.shape_cast %44 : vector<1x256x4xbf16> to vector<256x4xbf16>
    %cst_60 = arith.constant dense<0.000000e+00> : vector<256x4xf32>
    %46 = tpu.matmul %45, %8, %cst_60 {dimension_numbers = #tpu.dot_dimension_numbers<[1], [0], [0], [1], [0, 0, 1, 1], [], []>} : vector<256x4xbf16>, vector<4x4xbf16>, vector<256x4xf32> -> vector<256x4xf32>
    %47 = arith.addf %43, %46 : vector<256x4xf32>
    %c0_61 = arith.constant 0 : index
    %c8_62 = arith.constant 8 : index
    %c0_63 = arith.constant 0 : index
    %48 = vector.load %arg1[%c0_61, %c8_62, %c0_63] : memref<1x496x4xbf16, #tpu.memory_space<vmem>>, vector<1x256x4xbf16>
    %49 = vector.shape_cast %48 : vector<1x256x4xbf16> to vector<256x4xbf16>
    %cst_64 = arith.constant dense<0.000000e+00> : vector<256x4xf32>
    %50 = tpu.matmul %49, %10, %cst_64 {dimension_numbers = #tpu.dot_dimension_numbers<[1], [0], [0], [1], [0, 0, 1, 1], [], []>} : vector<256x4xbf16>, vector<4x4xbf16>, vector<256x4xf32> -> vector<256x4xf32>
    %51 = arith.addf %47, %50 : vector<256x4xf32>
    %c0_65 = arith.constant 0 : index
    %c9 = arith.constant 9 : index
    %c0_66 = arith.constant 0 : index
    %52 = vector.load %arg1[%c0_65, %c9, %c0_66] : memref<1x496x4xbf16, #tpu.memory_space<vmem>>, vector<1x256x4xbf16>
    %53 = vector.shape_cast %52 : vector<1x256x4xbf16> to vector<256x4xbf16>
    %cst_67 = arith.constant dense<0.000000e+00> : vector<256x4xf32>
    %54 = tpu.matmul %53, %12, %cst_67 {dimension_numbers = #tpu.dot_dimension_numbers<[1], [0], [0], [1], [0, 0, 1, 1], [], []>} : vector<256x4xbf16>, vector<4x4xbf16>, vector<256x4xf32> -> vector<256x4xf32>
    %55 = arith.addf %51, %54 : vector<256x4xf32>
    %c0_68 = arith.constant 0 : index
    %c31 = arith.constant 31 : index
    %c0_69 = arith.constant 0 : index
    %56 = vector.load %arg1[%c0_68, %c31, %c0_69] : memref<1x496x4xbf16, #tpu.memory_space<vmem>>, vector<1x256x4xbf16>
    %57 = vector.shape_cast %56 : vector<1x256x4xbf16> to vector<256x4xbf16>
    %cst_70 = arith.constant dense<0.000000e+00> : vector<256x4xf32>
    %58 = tpu.matmul %57, %14, %cst_70 {dimension_numbers = #tpu.dot_dimension_numbers<[1], [0], [0], [1], [0, 0, 1, 1], [], []>} : vector<256x4xbf16>, vector<4x4xbf16>, vector<256x4xf32> -> vector<256x4xf32>
    %59 = arith.addf %55, %58 : vector<256x4xf32>
    %c0_71 = arith.constant 0 : index
    %c32 = arith.constant 32 : index
    %c0_72 = arith.constant 0 : index
    %60 = vector.load %arg1[%c0_71, %c32, %c0_72] : memref<1x496x4xbf16, #tpu.memory_space<vmem>>, vector<1x256x4xbf16>
    %61 = vector.shape_cast %60 : vector<1x256x4xbf16> to vector<256x4xbf16>
    %cst_73 = arith.constant dense<0.000000e+00> : vector<256x4xf32>
    %62 = tpu.matmul %61, %16, %cst_73 {dimension_numbers = #tpu.dot_dimension_numbers<[1], [0], [0], [1], [0, 0, 1, 1], [], []>} : vector<256x4xbf16>, vector<4x4xbf16>, vector<256x4xf32> -> vector<256x4xf32>
    %63 = arith.addf %59, %62 : vector<256x4xf32>
    %c0_74 = arith.constant 0 : index
    %c33 = arith.constant 33 : index
    %c0_75 = arith.constant 0 : index
    %64 = vector.load %arg1[%c0_74, %c33, %c0_75] : memref<1x496x4xbf16, #tpu.memory_space<vmem>>, vector<1x256x4xbf16>
    %65 = vector.shape_cast %64 : vector<1x256x4xbf16> to vector<256x4xbf16>
    %cst_76 = arith.constant dense<0.000000e+00> : vector<256x4xf32>
    %66 = tpu.matmul %65, %18, %cst_76 {dimension_numbers = #tpu.dot_dimension_numbers<[1], [0], [0], [1], [0, 0, 1, 1], [], []>} : vector<256x4xbf16>, vector<4x4xbf16>, vector<256x4xf32> -> vector<256x4xf32>
    %67 = arith.addf %63, %66 : vector<256x4xf32>
    %c0_77 = arith.constant 0 : index
    %c55 = arith.constant 55 : index
    %c0_78 = arith.constant 0 : index
    %68 = vector.load %arg1[%c0_77, %c55, %c0_78] : memref<1x496x4xbf16, #tpu.memory_space<vmem>>, vector<1x256x4xbf16>
    %69 = vector.shape_cast %68 : vector<1x256x4xbf16> to vector<256x4xbf16>
    %cst_79 = arith.constant dense<0.000000e+00> : vector<256x4xf32>
    %70 = tpu.matmul %69, %20, %cst_79 {dimension_numbers = #tpu.dot_dimension_numbers<[1], [0], [0], [1], [0, 0, 1, 1], [], []>} : vector<256x4xbf16>, vector<4x4xbf16>, vector<256x4xf32> -> vector<256x4xf32>
    %71 = arith.addf %67, %70 : vector<256x4xf32>
    %c0_80 = arith.constant 0 : index
    %c56 = arith.constant 56 : index
    %c0_81 = arith.constant 0 : index
    %72 = vector.load %arg1[%c0_80, %c56, %c0_81] : memref<1x496x4xbf16, #tpu.memory_space<vmem>>, vector<1x256x4xbf16>
    %73 = vector.shape_cast %72 : vector<1x256x4xbf16> to vector<256x4xbf16>
    %cst_82 = arith.constant dense<0.000000e+00> : vector<256x4xf32>
    %74 = tpu.matmul %73, %22, %cst_82 {dimension_numbers = #tpu.dot_dimension_numbers<[1], [0], [0], [1], [0, 0, 1, 1], [], []>} : vector<256x4xbf16>, vector<4x4xbf16>, vector<256x4xf32> -> vector<256x4xf32>
    %75 = arith.addf %71, %74 : vector<256x4xf32>
    %c0_83 = arith.constant 0 : index
    %c57 = arith.constant 57 : index
    %c0_84 = arith.constant 0 : index
    %76 = vector.load %arg1[%c0_83, %c57, %c0_84] : memref<1x496x4xbf16, #tpu.memory_space<vmem>>, vector<1x256x4xbf16>
    %77 = vector.shape_cast %76 : vector<1x256x4xbf16> to vector<256x4xbf16>
    %cst_85 = arith.constant dense<0.000000e+00> : vector<256x4xf32>
    %78 = tpu.matmul %77, %24, %cst_85 {dimension_numbers = #tpu.dot_dimension_numbers<[1], [0], [0], [1], [0, 0, 1, 1], [], []>} : vector<256x4xbf16>, vector<4x4xbf16>, vector<256x4xf32> -> vector<256x4xf32>
    %79 = arith.addf %75, %78 : vector<256x4xf32>
    %80 = vector.broadcast %3 : vector<1x4xf32> to vector<256x4xf32>
    %81 = arith.mulf %79, %80 : vector<256x4xf32>
    %82 = vector.broadcast %4 : vector<1x4xf32> to vector<256x4xf32>
    %83 = arith.addf %81, %82 : vector<256x4xf32>
    %cst_86 = arith.constant 0.000000e+00 : f32
    %84 = vector.broadcast %cst_86 : f32 to vector<256x4xf32>
    %85 = arith.maximumf %83, %84 : vector<256x4xf32>
    %c0_87 = arith.constant 0 : index
    %c0_88 = arith.constant 0 : index
    %86 = vector.load %arg2[%c0_87, %c0_88] : memref<432x1xbf16, #tpu.memory_space<vmem>>, vector<256x1xbf16>
    %87 = arith.extf %86 : vector<256x1xbf16> to vector<256x1xf32>
    %88 = vector.broadcast %87 : vector<256x1xf32> to vector<256x4xf32>
    %89 = arith.mulf %85, %88 : vector<256x4xf32>
    %90 = arith.truncf %89 : vector<256x4xf32> to vector<256x4xbf16>
    %c32_89 = arith.constant 32 : index
    %c0_90 = arith.constant 0 : index
    %91 = vector.load %arg10[%c32_89, %c0_90] : memref<496x4xbf16, #tpu.memory_space<vmem>>, vector<256x4xbf16>
    tpu.vector_store %arg10[%c32_89, %c0_90], %90 {strides = array<i32>} : memref<496x4xbf16, #tpu.memory_space<vmem>>, vector<256x4xbf16>,
    %cst_91 = arith.constant 0.000000e+00 : f32
    %92 = vector.broadcast %cst_91 : f32 to vector<176x4xf32>
    %c0_92 = arith.constant 0 : index
    %c263 = arith.constant 263 : index
    %c0_93 = arith.constant 0 : index
    %93 = vector.load %arg1[%c0_92, %c263, %c0_93] : memref<1x496x4xbf16, #tpu.memory_space<vmem>>, vector<1x176x4xbf16>
    %94 = vector.shape_cast %93 : vector<1x176x4xbf16> to vector<176x4xbf16>
    %cst_94 = arith.constant dense<0.000000e+00> : vector<176x4xf32>
    %95 = tpu.matmul %94, %8, %cst_94 {dimension_numbers = #tpu.dot_dimension_numbers<[1], [0], [0], [1], [0, 0, 1, 1], [], []>} : vector<176x4xbf16>, vector<4x4xbf16>, vector<176x4xf32> -> vector<176x4xf32>
    %96 = arith.addf %92, %95 : vector<176x4xf32>
    %c0_95 = arith.constant 0 : index
    %c264 = arith.constant 264 : index
    %c0_96 = arith.constant 0 : index
    %97 = vector.load %arg1[%c0_95, %c264, %c0_96] : memref<1x496x4xbf16, #tpu.memory_space<vmem>>, vector<1x176x4xbf16>
    %98 = vector.shape_cast %97 : vector<1x176x4xbf16> to vector<176x4xbf16>
    %cst_97 = arith.constant dense<0.000000e+00> : vector<176x4xf32>
    %99 = tpu.matmul %98, %10, %cst_97 {dimension_numbers = #tpu.dot_dimension_numbers<[1], [0], [0], [1], [0, 0, 1, 1], [], []>} : vector<176x4xbf16>, vector<4x4xbf16>, vector<176x4xf32> -> vector<176x4xf32>
    %100 = arith.addf %96, %99 : vector<176x4xf32>
    %c0_98 = arith.constant 0 : index
    %c265 = arith.constant 265 : index
    %c0_99 = arith.constant 0 : index
    %101 = vector.load %arg1[%c0_98, %c265, %c0_99] : memref<1x496x4xbf16, #tpu.memory_space<vmem>>, vector<1x176x4xbf16>
    %102 = vector.shape_cast %101 : vector<1x176x4xbf16> to vector<176x4xbf16>
    %cst_100 = arith.constant dense<0.000000e+00> : vector<176x4xf32>
    %103 = tpu.matmul %102, %12, %cst_100 {dimension_numbers = #tpu.dot_dimension_numbers<[1], [0], [0], [1], [0, 0, 1, 1], [], []>} : vector<176x4xbf16>, vector<4x4xbf16>, vector<176x4xf32> -> vector<176x4xf32>
    %104 = arith.addf %100, %103 : vector<176x4xf32>
    %c0_101 = arith.constant 0 : index
    %c287 = arith.constant 287 : index
    %c0_102 = arith.constant 0 : index
    %105 = vector.load %arg1[%c0_101, %c287, %c0_102] : memref<1x496x4xbf16, #tpu.memory_space<vmem>>, vector<1x176x4xbf16>
    %106 = vector.shape_cast %105 : vector<1x176x4xbf16> to vector<176x4xbf16>
    %cst_103 = arith.constant dense<0.000000e+00> : vector<176x4xf32>
    %107 = tpu.matmul %106, %14, %cst_103 {dimension_numbers = #tpu.dot_dimension_numbers<[1], [0], [0], [1], [0, 0, 1, 1], [], []>} : vector<176x4xbf16>, vector<4x4xbf16>, vector<176x4xf32> -> vector<176x4xf32>
    %108 = arith.addf %104, %107 : vector<176x4xf32>
    %c0_104 = arith.constant 0 : index
    %c288 = arith.constant 288 : index
    %c0_105 = arith.constant 0 : index
    %109 = vector.load %arg1[%c0_104, %c288, %c0_105] : memref<1x496x4xbf16, #tpu.memory_space<vmem>>, vector<1x176x4xbf16>
    %110 = vector.shape_cast %109 : vector<1x176x4xbf16> to vector<176x4xbf16>
    %cst_106 = arith.constant dense<0.000000e+00> : vector<176x4xf32>
    %111 = tpu.matmul %110, %16, %cst_106 {dimension_numbers = #tpu.dot_dimension_numbers<[1], [0], [0], [1], [0, 0, 1, 1], [], []>} : vector<176x4xbf16>, vector<4x4xbf16>, vector<176x4xf32> -> vector<176x4xf32>
    %112 = arith.addf %108, %111 : vector<176x4xf32>
    %c0_107 = arith.constant 0 : index
    %c289 = arith.constant 289 : index
    %c0_108 = arith.constant 0 : index
    %113 = vector.load %arg1[%c0_107, %c289, %c0_108] : memref<1x496x4xbf16, #tpu.memory_space<vmem>>, vector<1x176x4xbf16>
    %114 = vector.shape_cast %113 : vector<1x176x4xbf16> to vector<176x4xbf16>
    %cst_109 = arith.constant dense<0.000000e+00> : vector<176x4xf32>
    %115 = tpu.matmul %114, %18, %cst_109 {dimension_numbers = #tpu.dot_dimension_numbers<[1], [0], [0], [1], [0, 0, 1, 1], [], []>} : vector<176x4xbf16>, vector<4x4xbf16>, vector<176x4xf32> -> vector<176x4xf32>
    %116 = arith.addf %112, %115 : vector<176x4xf32>
    %c0_110 = arith.constant 0 : index
    %c311 = arith.constant 311 : index
    %c0_111 = arith.constant 0 : index
    %117 = vector.load %arg1[%c0_110, %c311, %c0_111] : memref<1x496x4xbf16, #tpu.memory_space<vmem>>, vector<1x176x4xbf16>
    %118 = vector.shape_cast %117 : vector<1x176x4xbf16> to vector<176x4xbf16>
    %cst_112 = arith.constant dense<0.000000e+00> : vector<176x4xf32>
    %119 = tpu.matmul %118, %20, %cst_112 {dimension_numbers = #tpu.dot_dimension_numbers<[1], [0], [0], [1], [0, 0, 1, 1], [], []>} : vector<176x4xbf16>, vector<4x4xbf16>, vector<176x4xf32> -> vector<176x4xf32>
    %120 = arith.addf %116, %119 : vector<176x4xf32>
    %c0_113 = arith.constant 0 : index
    %c312 = arith.constant 312 : index
    %c0_114 = arith.constant 0 : index
    %121 = vector.load %arg1[%c0_113, %c312, %c0_114] : memref<1x496x4xbf16, #tpu.memory_space<vmem>>, vector<1x176x4xbf16>
    %122 = vector.shape_cast %121 : vector<1x176x4xbf16> to vector<176x4xbf16>
    %cst_115 = arith.constant dense<0.000000e+00> : vector<176x4xf32>
    %123 = tpu.matmul %122, %22, %cst_115 {dimension_numbers = #tpu.dot_dimension_numbers<[1], [0], [0], [1], [0, 0, 1, 1], [], []>} : vector<176x4xbf16>, vector<4x4xbf16>, vector<176x4xf32> -> vector<176x4xf32>
    %124 = arith.addf %120, %123 : vector<176x4xf32>
    %c0_116 = arith.constant 0 : index
    %c313 = arith.constant 313 : index
    %c0_117 = arith.constant 0 : index
    %125 = vector.load %arg1[%c0_116, %c313, %c0_117] : memref<1x496x4xbf16, #tpu.memory_space<vmem>>, vector<1x176x4xbf16>
    %126 = vector.shape_cast %125 : vector<1x176x4xbf16> to vector<176x4xbf16>
    %cst_118 = arith.constant dense<0.000000e+00> : vector<176x4xf32>
    %127 = tpu.matmul %126, %24, %cst_118 {dimension_numbers = #tpu.dot_dimension_numbers<[1], [0], [0], [1], [0, 0, 1, 1], [], []>} : vector<176x4xbf16>, vector<4x4xbf16>, vector<176x4xf32> -> vector<176x4xf32>
    %128 = arith.addf %124, %127 : vector<176x4xf32>
    %129 = vector.broadcast %3 : vector<1x4xf32> to vector<176x4xf32>
    %130 = arith.mulf %128, %129 : vector<176x4xf32>
    %131 = vector.broadcast %4 : vector<1x4xf32> to vector<176x4xf32>
    %132 = arith.addf %130, %131 : vector<176x4xf32>
    %cst_119 = arith.constant 0.000000e+00 : f32
    %133 = vector.broadcast %cst_119 : f32 to vector<176x4xf32>
    %134 = arith.maximumf %132, %133 : vector<176x4xf32>
    %c256 = arith.constant 256 : index
    %c0_120 = arith.constant 0 : index
    %135 = vector.load %arg2[%c256, %c0_120] : memref<432x1xbf16, #tpu.memory_space<vmem>>, vector<176x1xbf16>
    %136 = arith.extf %135 : vector<176x1xbf16> to vector<176x1xf32>
    %137 = vector.broadcast %136 : vector<176x1xf32> to vector<176x4xf32>
    %138 = arith.mulf %134, %137 : vector<176x4xf32>
    %139 = arith.truncf %138 : vector<176x4xf32> to vector<176x4xbf16>
    %c288_121 = arith.constant 288 : index
    %c0_122 = arith.constant 0 : index
    %140 = vector.load %arg10[%c288_121, %c0_122] : memref<496x4xbf16, #tpu.memory_space<vmem>>, vector<176x4xbf16>
    tpu.vector_store %arg10[%c288_121, %c0_122], %139 {strides = array<i32>} : memref<496x4xbf16, #tpu.memory_space<vmem>>, vector<176x4xbf16>,
    %cst_123 = arith.constant 0.000000e+00 : f32
    %141 = vector.broadcast %cst_123 : f32 to vector<256x4xf32>
    %c7_124 = arith.constant 7 : index
    %c0_125 = arith.constant 0 : index
    %142 = vector.load %arg10[%c7_124, %c0_125] : memref<496x4xbf16, #tpu.memory_space<vmem>>, vector<256x4xbf16>
    %cst_126 = arith.constant dense<0.000000e+00> : vector<256x4xf32>
    %143 = tpu.matmul %142, %26, %cst_126 {dimension_numbers = #tpu.dot_dimension_numbers<[1], [0], [0], [1], [0, 0, 1, 1], [], []>} : vector<256x4xbf16>, vector<4x4xbf16>, vector<256x4xf32> -> vector<256x4xf32>
    %144 = arith.addf %141, %143 : vector<256x4xf32>
    %c8_127 = arith.constant 8 : index
    %c0_128 = arith.constant 0 : index
    %145 = vector.load %arg10[%c8_127, %c0_128] : memref<496x4xbf16, #tpu.memory_space<vmem>>, vector<256x4xbf16>
    %cst_129 = arith.constant dense<0.000000e+00> : vector<256x4xf32>
    %146 = tpu.matmul %145, %28, %cst_129 {dimension_numbers = #tpu.dot_dimension_numbers<[1], [0], [0], [1], [0, 0, 1, 1], [], []>} : vector<256x4xbf16>, vector<4x4xbf16>, vector<256x4xf32> -> vector<256x4xf32>
    %147 = arith.addf %144, %146 : vector<256x4xf32>
    %c9_130 = arith.constant 9 : index
    %c0_131 = arith.constant 0 : index
    %148 = vector.load %arg10[%c9_130, %c0_131] : memref<496x4xbf16, #tpu.memory_space<vmem>>, vector<256x4xbf16>
    %cst_132 = arith.constant dense<0.000000e+00> : vector<256x4xf32>
    %149 = tpu.matmul %148, %30, %cst_132 {dimension_numbers = #tpu.dot_dimension_numbers<[1], [0], [0], [1], [0, 0, 1, 1], [], []>} : vector<256x4xbf16>, vector<4x4xbf16>, vector<256x4xf32> -> vector<256x4xf32>
    %150 = arith.addf %147, %149 : vector<256x4xf32>
    %c31_133 = arith.constant 31 : index
    %c0_134 = arith.constant 0 : index
    %151 = vector.load %arg10[%c31_133, %c0_134] : memref<496x4xbf16, #tpu.memory_space<vmem>>, vector<256x4xbf16>
    %cst_135 = arith.constant dense<0.000000e+00> : vector<256x4xf32>
    %152 = tpu.matmul %151, %32, %cst_135 {dimension_numbers = #tpu.dot_dimension_numbers<[1], [0], [0], [1], [0, 0, 1, 1], [], []>} : vector<256x4xbf16>, vector<4x4xbf16>, vector<256x4xf32> -> vector<256x4xf32>
    %153 = arith.addf %150, %152 : vector<256x4xf32>
    %c32_136 = arith.constant 32 : index
    %c0_137 = arith.constant 0 : index
    %154 = vector.load %arg10[%c32_136, %c0_137] : memref<496x4xbf16, #tpu.memory_space<vmem>>, vector<256x4xbf16>
    %cst_138 = arith.constant dense<0.000000e+00> : vector<256x4xf32>
    %155 = tpu.matmul %154, %34, %cst_138 {dimension_numbers = #tpu.dot_dimension_numbers<[1], [0], [0], [1], [0, 0, 1, 1], [], []>} : vector<256x4xbf16>, vector<4x4xbf16>, vector<256x4xf32> -> vector<256x4xf32>
    %156 = arith.addf %153, %155 : vector<256x4xf32>
    %c33_139 = arith.constant 33 : index
    %c0_140 = arith.constant 0 : index
    %157 = vector.load %arg10[%c33_139, %c0_140] : memref<496x4xbf16, #tpu.memory_space<vmem>>, vector<256x4xbf16>
    %cst_141 = arith.constant dense<0.000000e+00> : vector<256x4xf32>
    %158 = tpu.matmul %157, %36, %cst_141 {dimension_numbers = #tpu.dot_dimension_numbers<[1], [0], [0], [1], [0, 0, 1, 1], [], []>} : vector<256x4xbf16>, vector<4x4xbf16>, vector<256x4xf32> -> vector<256x4xf32>
    %159 = arith.addf %156, %158 : vector<256x4xf32>
    %c55_142 = arith.constant 55 : index
    %c0_143 = arith.constant 0 : index
    %160 = vector.load %arg10[%c55_142, %c0_143] : memref<496x4xbf16, #tpu.memory_space<vmem>>, vector<256x4xbf16>
    %cst_144 = arith.constant dense<0.000000e+00> : vector<256x4xf32>
    %161 = tpu.matmul %160, %38, %cst_144 {dimension_numbers = #tpu.dot_dimension_numbers<[1], [0], [0], [1], [0, 0, 1, 1], [], []>} : vector<256x4xbf16>, vector<4x4xbf16>, vector<256x4xf32> -> vector<256x4xf32>
    %162 = arith.addf %159, %161 : vector<256x4xf32>
    %c56_145 = arith.constant 56 : index
    %c0_146 = arith.constant 0 : index
    %163 = vector.load %arg10[%c56_145, %c0_146] : memref<496x4xbf16, #tpu.memory_space<vmem>>, vector<256x4xbf16>
    %cst_147 = arith.constant dense<0.000000e+00> : vector<256x4xf32>
    %164 = tpu.matmul %163, %40, %cst_147 {dimension_numbers = #tpu.dot_dimension_numbers<[1], [0], [0], [1], [0, 0, 1, 1], [], []>} : vector<256x4xbf16>, vector<4x4xbf16>, vector<256x4xf32> -> vector<256x4xf32>
    %165 = arith.addf %162, %164 : vector<256x4xf32>
    %c57_148 = arith.constant 57 : index
    %c0_149 = arith.constant 0 : index
    %166 = vector.load %arg10[%c57_148, %c0_149] : memref<496x4xbf16, #tpu.memory_space<vmem>>, vector<256x4xbf16>
    %cst_150 = arith.constant dense<0.000000e+00> : vector<256x4xf32>
    %167 = tpu.matmul %166, %42, %cst_150 {dimension_numbers = #tpu.dot_dimension_numbers<[1], [0], [0], [1], [0, 0, 1, 1], [], []>} : vector<256x4xbf16>, vector<4x4xbf16>, vector<256x4xf32> -> vector<256x4xf32>
    %168 = arith.addf %165, %167 : vector<256x4xf32>
    %169 = vector.broadcast %5 : vector<1x4xf32> to vector<256x4xf32>
    %170 = arith.mulf %168, %169 : vector<256x4xf32>
    %171 = vector.broadcast %6 : vector<1x4xf32> to vector<256x4xf32>
    %172 = arith.addf %170, %171 : vector<256x4xf32>
    %c0_151 = arith.constant 0 : index
    %c32_152 = arith.constant 32 : index
    %c0_153 = arith.constant 0 : index
    %173 = vector.load %arg1[%c0_151, %c32_152, %c0_153] : memref<1x496x4xbf16, #tpu.memory_space<vmem>>, vector<1x256x4xbf16>
    %174 = vector.shape_cast %173 : vector<1x256x4xbf16> to vector<256x4xbf16>
    %175 = arith.extf %174 : vector<256x4xbf16> to vector<256x4xf32>
    %176 = arith.addf %172, %175 : vector<256x4xf32>
    %cst_154 = arith.constant 0.000000e+00 : f32
    %177 = vector.broadcast %cst_154 : f32 to vector<256x4xf32>
    %178 = arith.maximumf %176, %177 : vector<256x4xf32>
    %179 = arith.truncf %178 : vector<256x4xf32> to vector<256x4xbf16>
    %c0_155 = arith.constant 0 : index
    %c0_156 = arith.constant 0 : index
    %c0_157 = arith.constant 0 : index
    %180 = vector.load %arg9[%c0_155, %c0_156, %c0_157] : memref<1x432x4xbf16, #tpu.memory_space<vmem>>, vector<1x256x4xbf16>
    %181 = vector.shape_cast %180 : vector<1x256x4xbf16> to vector<256x4xbf16>
    %182 = vector.shape_cast %179 : vector<256x4xbf16> to vector<1x256x4xbf16>
    tpu.vector_store %arg9[%c0_155, %c0_156, %c0_157], %182 {strides = array<i32>} : memref<1x432x4xbf16, #tpu.memory_space<vmem>>, vector<1x256x4xbf16>,
    %cst_158 = arith.constant 0.000000e+00 : f32
    %183 = vector.broadcast %cst_158 : f32 to vector<176x4xf32>
    %c263_159 = arith.constant 263 : index
    %c0_160 = arith.constant 0 : index
    %184 = vector.load %arg10[%c263_159, %c0_160] : memref<496x4xbf16, #tpu.memory_space<vmem>>, vector<176x4xbf16>
    %cst_161 = arith.constant dense<0.000000e+00> : vector<176x4xf32>
    %185 = tpu.matmul %184, %26, %cst_161 {dimension_numbers = #tpu.dot_dimension_numbers<[1], [0], [0], [1], [0, 0, 1, 1], [], []>} : vector<176x4xbf16>, vector<4x4xbf16>, vector<176x4xf32> -> vector<176x4xf32>
    %186 = arith.addf %183, %185 : vector<176x4xf32>
    %c264_162 = arith.constant 264 : index
    %c0_163 = arith.constant 0 : index
    %187 = vector.load %arg10[%c264_162, %c0_163] : memref<496x4xbf16, #tpu.memory_space<vmem>>, vector<176x4xbf16>
    %cst_164 = arith.constant dense<0.000000e+00> : vector<176x4xf32>
    %188 = tpu.matmul %187, %28, %cst_164 {dimension_numbers = #tpu.dot_dimension_numbers<[1], [0], [0], [1], [0, 0, 1, 1], [], []>} : vector<176x4xbf16>, vector<4x4xbf16>, vector<176x4xf32> -> vector<176x4xf32>
    %189 = arith.addf %186, %188 : vector<176x4xf32>
    %c265_165 = arith.constant 265 : index
    %c0_166 = arith.constant 0 : index
    %190 = vector.load %arg10[%c265_165, %c0_166] : memref<496x4xbf16, #tpu.memory_space<vmem>>, vector<176x4xbf16>
    %cst_167 = arith.constant dense<0.000000e+00> : vector<176x4xf32>
    %191 = tpu.matmul %190, %30, %cst_167 {dimension_numbers = #tpu.dot_dimension_numbers<[1], [0], [0], [1], [0, 0, 1, 1], [], []>} : vector<176x4xbf16>, vector<4x4xbf16>, vector<176x4xf32> -> vector<176x4xf32>
    %192 = arith.addf %189, %191 : vector<176x4xf32>
    %c287_168 = arith.constant 287 : index
    %c0_169 = arith.constant 0 : index
    %193 = vector.load %arg10[%c287_168, %c0_169] : memref<496x4xbf16, #tpu.memory_space<vmem>>, vector<176x4xbf16>
    %cst_170 = arith.constant dense<0.000000e+00> : vector<176x4xf32>
    %194 = tpu.matmul %193, %32, %cst_170 {dimension_numbers = #tpu.dot_dimension_numbers<[1], [0], [0], [1], [0, 0, 1, 1], [], []>} : vector<176x4xbf16>, vector<4x4xbf16>, vector<176x4xf32> -> vector<176x4xf32>
    %195 = arith.addf %192, %194 : vector<176x4xf32>
    %c288_171 = arith.constant 288 : index
    %c0_172 = arith.constant 0 : index
    %196 = vector.load %arg10[%c288_171, %c0_172] : memref<496x4xbf16, #tpu.memory_space<vmem>>, vector<176x4xbf16>
    %cst_173 = arith.constant dense<0.000000e+00> : vector<176x4xf32>
    %197 = tpu.matmul %196, %34, %cst_173 {dimension_numbers = #tpu.dot_dimension_numbers<[1], [0], [0], [1], [0, 0, 1, 1], [], []>} : vector<176x4xbf16>, vector<4x4xbf16>, vector<176x4xf32> -> vector<176x4xf32>
    %198 = arith.addf %195, %197 : vector<176x4xf32>
    %c289_174 = arith.constant 289 : index
    %c0_175 = arith.constant 0 : index
    %199 = vector.load %arg10[%c289_174, %c0_175] : memref<496x4xbf16, #tpu.memory_space<vmem>>, vector<176x4xbf16>
    %cst_176 = arith.constant dense<0.000000e+00> : vector<176x4xf32>
    %200 = tpu.matmul %199, %36, %cst_176 {dimension_numbers = #tpu.dot_dimension_numbers<[1], [0], [0], [1], [0, 0, 1, 1], [], []>} : vector<176x4xbf16>, vector<4x4xbf16>, vector<176x4xf32> -> vector<176x4xf32>
    %201 = arith.addf %198, %200 : vector<176x4xf32>
    %c311_177 = arith.constant 311 : index
    %c0_178 = arith.constant 0 : index
    %202 = vector.load %arg10[%c311_177, %c0_178] : memref<496x4xbf16, #tpu.memory_space<vmem>>, vector<176x4xbf16>
    %cst_179 = arith.constant dense<0.000000e+00> : vector<176x4xf32>
    %203 = tpu.matmul %202, %38, %cst_179 {dimension_numbers = #tpu.dot_dimension_numbers<[1], [0], [0], [1], [0, 0, 1, 1], [], []>} : vector<176x4xbf16>, vector<4x4xbf16>, vector<176x4xf32> -> vector<176x4xf32>
    %204 = arith.addf %201, %203 : vector<176x4xf32>
    %c312_180 = arith.constant 312 : index
    %c0_181 = arith.constant 0 : index
    %205 = vector.load %arg10[%c312_180, %c0_181] : memref<496x4xbf16, #tpu.memory_space<vmem>>, vector<176x4xbf16>
    %cst_182 = arith.constant dense<0.000000e+00> : vector<176x4xf32>
    %206 = tpu.matmul %205, %40, %cst_182 {dimension_numbers = #tpu.dot_dimension_numbers<[1], [0], [0], [1], [0, 0, 1, 1], [], []>} : vector<176x4xbf16>, vector<4x4xbf16>, vector<176x4xf32> -> vector<176x4xf32>
    %207 = arith.addf %204, %206 : vector<176x4xf32>
    %c313_183 = arith.constant 313 : index
    %c0_184 = arith.constant 0 : index
    %208 = vector.load %arg10[%c313_183, %c0_184] : memref<496x4xbf16, #tpu.memory_space<vmem>>, vector<176x4xbf16>
    %cst_185 = arith.constant dense<0.000000e+00> : vector<176x4xf32>
    %209 = tpu.matmul %208, %42, %cst_185 {dimension_numbers = #tpu.dot_dimension_numbers<[1], [0], [0], [1], [0, 0, 1, 1], [], []>} : vector<176x4xbf16>, vector<4x4xbf16>, vector<176x4xf32> -> vector<176x4xf32>
    %210 = arith.addf %207, %209 : vector<176x4xf32>
    %211 = vector.broadcast %5 : vector<1x4xf32> to vector<176x4xf32>
    %212 = arith.mulf %210, %211 : vector<176x4xf32>
    %213 = vector.broadcast %6 : vector<1x4xf32> to vector<176x4xf32>
    %214 = arith.addf %212, %213 : vector<176x4xf32>
    %c0_186 = arith.constant 0 : index
    %c288_187 = arith.constant 288 : index
    %c0_188 = arith.constant 0 : index
    %215 = vector.load %arg1[%c0_186, %c288_187, %c0_188] : memref<1x496x4xbf16, #tpu.memory_space<vmem>>, vector<1x176x4xbf16>
    %216 = vector.shape_cast %215 : vector<1x176x4xbf16> to vector<176x4xbf16>
    %217 = arith.extf %216 : vector<176x4xbf16> to vector<176x4xf32>
    %218 = arith.addf %214, %217 : vector<176x4xf32>
    %cst_189 = arith.constant 0.000000e+00 : f32
    %219 = vector.broadcast %cst_189 : f32 to vector<176x4xf32>
    %220 = arith.maximumf %218, %219 : vector<176x4xf32>
    %221 = arith.truncf %220 : vector<176x4xf32> to vector<176x4xbf16>
    %c0_190 = arith.constant 0 : index
    %c256_191 = arith.constant 256 : index
    %c0_192 = arith.constant 0 : index
    %222 = vector.load %arg9[%c0_190, %c256_191, %c0_192] : memref<1x432x4xbf16, #tpu.memory_space<vmem>>, vector<1x176x4xbf16>
    %223 = vector.shape_cast %222 : vector<1x176x4xbf16> to vector<176x4xbf16>
    %224 = vector.shape_cast %221 : vector<176x4xbf16> to vector<1x176x4xbf16>
    tpu.vector_store %arg9[%c0_190, %c256_191, %c0_192], %224 {strides = array<i32>} : memref<1x432x4xbf16, #tpu.memory_space<vmem>>, vector<1x176x4xbf16>,
    return
  }
  func.func @transform_0(%arg0: i32) -> (i32, i32, i32) {
    %c0_i32 = arith.constant 0 : i32
    %c0_i32_0 = arith.constant 0 : i32
    %c0_i32_1 = arith.constant 0 : i32
    return %arg0, %c0_i32, %c0_i32_0 : i32, i32, i32
  }
  func.func @transform_1(%arg0: i32) -> (i32, i32) {
    %c0_i32 = arith.constant 0 : i32
    %c0_i32_0 = arith.constant 0 : i32
    %c0_i32_1 = arith.constant 0 : i32
    return %c0_i32, %c0_i32_0 : i32, i32
  }
  func.func @transform_2(%arg0: i32) -> (i32, i32, i32) {
    %c0_i32 = arith.constant 0 : i32
    %c0_i32_0 = arith.constant 0 : i32
    %c0_i32_1 = arith.constant 0 : i32
    %c0_i32_2 = arith.constant 0 : i32
    return %c0_i32, %c0_i32_0, %c0_i32_1 : i32, i32, i32
  }
  func.func @transform_3(%arg0: i32) -> (i32, i32) {
    %c0_i32 = arith.constant 0 : i32
    %c0_i32_0 = arith.constant 0 : i32
    %c0_i32_1 = arith.constant 0 : i32
    return %c0_i32, %c0_i32_0 : i32, i32
  }
  func.func @transform_4(%arg0: i32) -> (i32, i32) {
    %c0_i32 = arith.constant 0 : i32
    %c0_i32_0 = arith.constant 0 : i32
    %c0_i32_1 = arith.constant 0 : i32
    return %c0_i32, %c0_i32_0 : i32, i32
  }
  func.func @transform_5(%arg0: i32) -> (i32, i32, i32) {
    %c0_i32 = arith.constant 0 : i32
    %c0_i32_0 = arith.constant 0 : i32
    %c0_i32_1 = arith.constant 0 : i32
    %c0_i32_2 = arith.constant 0 : i32
    return %c0_i32, %c0_i32_0, %c0_i32_1 : i32, i32, i32
  }
  func.func @transform_6(%arg0: i32) -> (i32, i32) {
    %c0_i32 = arith.constant 0 : i32
    %c0_i32_0 = arith.constant 0 : i32
    %c0_i32_1 = arith.constant 0 : i32
    return %c0_i32, %c0_i32_0 : i32, i32
  }
  func.func @transform_7(%arg0: i32) -> (i32, i32) {
    %c0_i32 = arith.constant 0 : i32
    %c0_i32_0 = arith.constant 0 : i32
    %c0_i32_1 = arith.constant 0 : i32
    return %c0_i32, %c0_i32_0 : i32, i32
  }
  func.func @transform_8(%arg0: i32) -> (i32, i32, i32) {
    %c0_i32 = arith.constant 0 : i32
    %c0_i32_0 = arith.constant 0 : i32
    %c0_i32_1 = arith.constant 0 : i32
    return %arg0, %c0_i32, %c0_i32_0 : i32, i32, i32
  }
}

</mosaic_0001>

<bundles_post_ra>
// kernel: basic_block_forward.1
= control target key start
LH: loop header
LB: loop body
LE: loop exit
PB: predicated region body
PF: predicated region fallthrough
CT: control target
= control target key end

     0   :  { %s18046_s27 = smov 0   ;;  %s22366_s0 = inlined_call_operand.vmem [shape: bf16[2,496,4], index: 0, kind: input, shape index: {}]   ;;  %s22367_s1 = inlined_call_operand.vmem [shape: bf16[432,1], index: 1, kind: input, shape index: {}]   ;;  %s22368_s2 = inlined_call_operand.vmem [shape: bf16[9,4,4], index: 2, kind: input, shape index: {}]   ;;  %s22369_s3 = inlined_call_operand.vmem [shape: f32[1,4], index: 3, kind: input, shape index: {}]   ;;  %s22370_s4 = inlined_call_operand.vmem [shape: f32[1,4], index: 4, kind: input, shape index: {}]   ;;  %s22371_s5 = inlined_call_operand.vmem [shape: bf16[9,4,4], index: 5, kind: input, shape index: {}]   ;;  %s22372_s6 = inlined_call_operand.vmem [shape: f32[1,4], index: 6, kind: input, shape index: {}]   ;;  %s22373_s7 = inlined_call_operand.vmem [shape: f32[1,4], index: 7, kind: input, shape index: {}]   ;;  %s22374_s8 = inlined_call_operand.vmem [shape: bf16[2,432,4], index: 8, kind: output, shape index: {}]  }
   0x1 LB: > { %s13235_s28 = sadd.s32 4294967295, %s17996_s27   ;;  %p13239_p0 = scmp.ge.s32.totalorder %s17996_s27, 1  ;;  %s17996_s27 = sphi %s18046_s27, %s18_s27  }
   0x2   : > { %p262_p1 = scmp.lt.s32.totalorder %s17996_s27, 3 }
   0x4   : > { %p263_p2 = pnand %p13239_p0, %p262_p1 }
   0x6   : > { %266 = sbr.rel (%p263_p2) target bundleno = 2013 (0x7dd), region = 52 }
   0xd   : > { %v13242_v0 = vld [vmem:[%s22368_s2 + $0x2] sm:$0x3]  ;;  %vm511_vm0 = vcmask 1041408   ;;  %p296_p3 = scmp.lt.s32.totalorder %s13235_s28, 1  ;;  %v316_v2 = vld [vmem:[%s22368_s2] sm:$0x3] }
   0xe   : > { %17540 = vmatprep.subr.msk.bf16.mxu0 %vm511_vm0, %v13242_v0  ;;  %v18059_v1 = vsel %vm511_vm0, %v13242_v0, 0  ;;  %v22375_v3 = vmov 0.0   ;;  %v13243_v4 = vld [vmem:[%s22368_s2 + $0x4] sm:$0x3]  ;;  %vm17999_vm1 = vmmov 0   ;;  %vm307_vm2 = vcmask 31744  }
   0xf   : > { %22465 = vst [vmem:[#allocation3_spill] sm:$0xff] %v18059_v1  ;;  %16344 = vmatprep.subr.bf16.mxu1 %v22375_v3  ;;  %14905 = vmatpush3.bf16.msra.mxu0 %v18059_v1  ;;  %s22825_s28 = smov (!%p296_p3, %s13235_s28), 1  ;;  %v18072_v5 = vsel %vm511_vm0, %v13243_v4, 0  ;;  %v18100_v11 = vsel %vm511_vm0, %v316_v2, 0  ;;  %vm1176_vm3 = vsmask.f32 7424 }
  0x10   : > { %22466 = vst [vmem:[#allocation4_spill] sm:$0xff] %v18072_v5  ;;  %15324 = vmatprep.mubr.msk.bf16.mxu1 %vm17999_vm1, %v22375_v3  ;;  %17541 = vmatprep.subr.msk.bf16.mxu0 %vm511_vm0, %v316_v2  ;;  %s17558_s13 = smul.u32 248, %s22825_s28  ;;  %22467 = vst [vmem:[#allocation5_spill] sm:$0xff] %v18100_v11  ;;  %v18124_v21 = vld [vmem:[%s22368_s2 + $0x6] sm:$0x3]  ;;  %vm7432_vm5 = vcmask 1043456  }
  0x11   : > { %16345 = vmatpush3.bf16.msra.mxu1 %v18072_v5  ;;  %v18147_v35 = vsel %vm511_vm0, %v18124_v21, 0  ;;  %vm695_vm4 = vsmask.f32 4352  ;;  %vm8043_vm6 = vsmask.f32 3328  ;;  %s17559_s18 = smul.u32 216, %s22825_s28 }
  0x12   : > { %15348 = vmatprep.subr.bf16.mxu1 %v22375_v3  ;;  %s18083_s16 = scalar_lea.vmem %s22366_s0, %s17558_s13  ;;  %vm8382_vm7 = vsmask.f32 256  ;;  %vm10742_vm8 = vcmask 27648  }
  0x13   : > { %v18086_v6 = vld [vmem:[%s18083_s16 + $0x4] sm:$0xf]  ;;  %v18089_v7 = vld [vmem:[%s18083_s16 + $0x8] sm:$0xf]  ;;  %v18092_v8 = vld [vmem:[%s18083_s16 + $0xc] sm:$0xf]  ;;  %s21936_s20 = scalar_lea.vmem %s22374_s8, %s17559_s18 }
  0x14   : > { %v18095_v9 = vld [vmem:[%s18083_s16 + $0x10] sm:$0xf]  ;;  %v13258_v10 = vcombine.low %v18086_v6, %v18089_v7  ;;  %v17714_v14 = vld [vmem:[%s18083_s16 + $0xb4] sm:$0xff]   ;;  %v18116_v19 = vld [vmem:[%s18083_s16 + $0x1c] sm:$0xf] }
  0x15   : > { %v13259_v12 = vcombine.low %v18092_v8, %v18095_v9  ;;  %v17713_v13 = vld [vmem:[%s18083_s16 + $0xac] sm:$0xff]   ;;  %v18108_v15 = vld [vmem:[%s18083_s16 + $0x14] sm:$0xf]  ;;  %v18112_v16 = vld [vmem:[%s18083_s16 + $0x18] sm:$0xf]  ;;  %v5113_v23 = vshll.u32 %v17714_v14, 16 }
  0x16   : > { %14906 = vmatprep.mubr.msk.bf16.mxu0 %vm307_vm2, %v13258_v10  ;;  %v5105_v17 = vshll.u32 %v17713_v13, 16  ;;  %v5109_v18 = vshrl.u32 %v17713_v13, 16  ;;  %v18119_v20 = vld [vmem:[%s18083_s16 + $0x20] sm:$0xf]  ;;  %v13260_v24 = vcombine.low %v18108_v15, %v18112_v16  ;;  %v18135_v27 = vld [vmem:[%s18083_s16 + $0x24] sm:$0xf] }
  0x17   : > { %14907 = vmatmul.mubr.msk.bf16.vlgmr.msra.gmra.mrb[0].mxu0 %vm307_vm2, %v13259_v12  ;;  %v13261_v25 = vcombine.low %v18116_v19, %v18119_v20  ;;  %v17718_v26 = vld [vmem:[%s18083_s16 + $0xbc] sm:$0xff]   ;;  %v18138_v28 = vld [vmem:[%s18083_s16 + $0x28] sm:$0xf]  ;;  %v5115_v30 = vrot.slane %v5113_v23, 1  ;;  %v5117_v31 = vshrl.u32 %v17714_v14, 16  ;;  %v17728_v52 = vld [vmem:[%s18083_s16 + $0xcc] sm:$0xff]  }
  0x18   : > { %14939 = vmatpush3.bf16.msra.mxu0 %v18100_v11  ;;  %v18127_v22 = vrot.slane %v5105_v17, 1  ;;  %14910 = vmatprep.mubr.msk.bf16.mxu0 %vm307_vm2, %v13260_v24  ;;  %v13262_v32 = vcombine.low %v18135_v27, %v18138_v28  ;;  %v5121_v33 = vshll.u32 %v17718_v26, 16  ;;  %v18152_v36 = vld [vmem:[%s18083_s16 + $0x2c] sm:$0xf]  ;;  %v18155_v37 = vld [vmem:[%s18083_s16 + $0x30] sm:$0xf] }
  0x19   : > { %17542 = vmatprep.subr.msk.bf16.mxu0 %vm511_vm0, %v13243_v4  ;;  %v5119_v38 = vor.u32 %v5117_v31, %v5115_v30  ;;  %v17723_v40 = vld [vmem:[%s18083_s16 + $0xc4] sm:$0xff]   ;;  %v18162_v41 = vld [vmem:[%s18083_s16 + $0x34] sm:$0xf]  ;;  %v18165_v42 = vld [vmem:[%s18083_s16 + $0x38] sm:$0xf]  ;;  %v13263_v43 = vcombine.low %v18152_v36, %v18155_v37  ;;  %v5125_v45 = vshrl.u32 %v17718_v26, 16 }
  0x1a   : > { %22468 = vst [vmem:[#allocation6_spill] sm:$0xff] %v18127_v22  ;;  %v5111_v29 = vor.u32 %v5109_v18, %v18127_v22  ;;  %v5123_v39 = vrot.slane %v5121_v33, 1  ;;  %v5129_v46 = vshll.u32 %v17723_v40, 16  ;;  %v13264_v47 = vcombine.low %v18162_v41, %v18165_v42  ;;  %v18177_v48 = vld [vmem:[%s18083_s16 + $0x3c] sm:$0xf]  ;;  %v17733_v63 = vld [vmem:[%s18083_s16 + $0xd4] sm:$0xff]  }
  0x1b   : > { %v18180_v49 = vld [vmem:[%s18083_s16 + $0x40] sm:$0xf]  ;;  %v18187_v53 = vld [vmem:[%s18083_s16 + $0x90] sm:$0xf]  ;;  %v18190_v54 = vld [vmem:[%s18083_s16 + $0x94] sm:$0xf] }
  0x1c   : > { %v5116_v34 = vsel %vm1176_vm3, %v5111_v29, %v5115_v30  ;;  %v5124_v44 = vsel %vm1176_vm3, %v5119_v38, %v5123_v39  ;;  %v5127_v50 = vor.u32 %v5125_v45, %v5123_v39  ;;  %v5131_v51 = vrot.slane %v5129_v46, 1  ;;  %v18193_v55 = vld [vmem:[%s18083_s16 + $0x44] sm:$0xf]  ;;  %v18196_v56 = vld [vmem:[%s18083_s16 + $0x48] sm:$0xf] }
  0x1d   : > { %15325 = vmatmul.mubr.msk.bf16.vlgmr.msra.gmra.mrb[0].mxu1 %vm307_vm2, %v5116_v34  ;;  %v13645_v57 = vcombine.low %v18187_v53, %v18190_v54  ;;  %v13265_v58 = vcombine.low %v18177_v48, %v18180_v49  ;;  %v5133_v60 = vshrl.u32 %v17723_v40, 16  ;;  %v5137_v61 = vshll.u32 %v17728_v52, 16  ;;  %v18212_v4 = vld [vmem:[%s18083_s16 + $0x4c] sm:$0xf]  ;;  %v18215_v10 = vld [vmem:[%s18083_s16 + $0x50] sm:$0xf] }
  0x1e   : > { %15328 = vmatprep.mubr.msk.bf16.mxu1 %vm17999_vm1, %v22375_v3  ;;  %15349 = vmatpush3.bf16.msra.mxu1 %v18147_v35  ;;  %v5132_v59 = vsel %vm1176_vm3, %v5127_v50, %v5131_v51  ;;  %v13266_v62 = vcombine.low %v18193_v55, %v18196_v56  ;;  %v18218_v12 = vld [vmem:[%s18083_s16 + $0x54] sm:$0xf]  ;;  %v18221_v13 = vld [vmem:[%s18083_s16 + $0x58] sm:$0xf]  ;;  %v13267_v14 = vcombine.low %v18212_v4, %v18215_v10  ;;  %v5145_v17 = vshll.u32 %v17733_v63, 16 }
  0x1f   : > { %14911 = vmatmul.mubr.msk.bf16.gmra.mrb[4].mxu0 %vm307_vm2, %v13261_v25  ;;  %15394 = vmatprep.subr.bf16.mxu1 %v22375_v3  ;;  %v5135_v0 = vor.u32 %v5133_v60, %v5131_v51  ;;  %v5139_v2 = vrot.slane %v5137_v61, 1  ;;  %v5141_v23 = vshrl.u32 %v17728_v52, 16  ;;  %v13268_v24 = vcombine.low %v18218_v12, %v18221_v13  ;;  %v350_v25 = vld [vmem:[%s18083_s16] sm:$0x8]  ;;  %v18230_v26 = vld [vmem:[%s18083_s16 + $0x5c] sm:$0xf] }
  0x20   : > { %14914 = vmatprep.mubr.msk.bf16.mxu0 %vm307_vm2, %v13262_v32  ;;  %v18233_v29 = vld [vmem:[%s18083_s16 + $0x60] sm:$0xf]  ;;  %v17738_v30 = vld [vmem:[%s18083_s16 + $0xdc] ss:$0 sps:$4 sm:$0x11]   ;;  %v5147_v31 = vrot.slane %v5145_v17, 1  ;;  %v13290_v33 = vcombine.low %v350_v25, %v18086_v6  ;;  %v13291_v39 = vcombine.low %v18089_v7, %v18092_v8 }
  0x21   : > { %v5140_v18 = vsel %vm1176_vm3, %v5135_v0, %v5139_v2  ;;  %v18239_v32 = vld [vmem:[%s18083_s16 + $0x64] sm:$0xf]  ;;  %v5143_v34 = vor.u32 %v5141_v23, %v5139_v2  ;;  %v5333_v38 = vld [vmem:[%s18083_s16 + $0x8c] sm:$0x8]  ;;  %v18249_v40 = vld [vmem:[%s18083_s16 + $0x68] sm:$0xf]  ;;  %v13269_v6 = vcombine.low %v18230_v26, %v18233_v29 }
  0x22   : > { %v5149_v45 = vshrl.u32 %v17733_v63, 16  ;;  %v13622_v46 = vcombine.low %v5333_v38, %v18187_v53  ;;  %v13270_v7 = vcombine.low %v18239_v32, %v18249_v40  ;;  %v700_v51 = vshll.u32 %v13290_v33, 16  ;;  %v18265_v61 = vld [vmem:[%s18083_s16 + $0x6c] sm:$0xf]  ;;  %v18271_v63 = vld [vmem:[%s18083_s16 + $0x74] sm:$0xf] }
  0x23   : > { %v5148_v50 = vsel %vm1176_vm3, %v5143_v34, %v5147_v31  ;;  %v705_v52 = vshrl.u32 %v13291_v39, 16  ;;  %v18274_v0 = vld [vmem:[%s18083_s16 + $0x78] sm:$0xf]  ;;  %v18285_v23 = vld [vmem:[%s18083_s16 + $0xa0] sm:$0xf] }
  0x24   : > { %v5151_v2 = vor.u32 %v5149_v45, %v5147_v31  ;;  %v5418_v17 = vshll.u32 %v13622_v46, 16  ;;  %v13272_v34 = vcombine.low %v18271_v63, %v18274_v0 }
  0x25   : > { %15329 = vmatmul.mubr.msk.bf16.gmra.mrb[4].mxu1 %vm307_vm2, %v5124_v44  ;;  %v5153_v44 = vshll.u32 %v17738_v30, 16 }
  0x26   : > { %15332 = vmatprep.mubr.msk.bf16.mxu1 %vm17999_vm1, %v22375_v3  ;;  %v5420_v38 = vrot.slane %v5418_v17, 4 }
  0x27   : > { %14915 = vmatmul.mubr.msk.bf16.gmra.mrb[8].mxu0 %vm307_vm2, %v13263_v43  ;;  %v18252_v43 = vld [vmem:[%s18083_s16 + $0x98] sm:$0xf]  ;;  %v5155_v60 = vrot.slane %v5153_v44, 1 }
  0x28   : > { %14918 = vmatprep.mubr.msk.bf16.mxu0 %vm307_vm2, %v13264_v47  ;;  %v697_v47 = vshrl.u32 %v13290_v33, 16  ;;  %v13623_v8 = vcombine.low %v18190_v54, %v18252_v43 }
  0x29   : > { %v5156_v30 = vsel %vm1176_vm3, %v5151_v2, %v5155_v60  ;;  %v18300_v60 = vld [vmem:[%s18083_s16 + $0x80] sm:$0xf]  ;;  %v18305_v2 = vld [vmem:[%s18083_s16 + $0xa4] sm:$0xf] }
  0x2a   : > { %v699_v45 = vrot.slane %v697_v47, 3 }
  0x2d   : > { %15333 = vmatmul.mubr.msk.bf16.gmra.mrb[8].mxu1 %vm307_vm2, %v5132_v59  ;;  %v708_v59 = vshll.u32 %v13291_v39, 16 }
  0x2e   : > { %15336 = vmatprep.mubr.msk.bf16.mxu1 %vm17999_vm1, %v22375_v3 }
  0x2f   : > { %14919 = vmatmul.mubr.msk.bf16.gmra.mrb[12].mxu0 %vm307_vm2, %v13265_v58  ;;  %v13292_v58 = vcombine.low %v18095_v9, %v18108_v15  ;;  %v5423_v9 = vshrl.u32 %v13623_v8, 16  ;;  %v5426_v15 = vshll.u32 %v13623_v8, 16  ;;  %v13293_v8 = vcombine.low %v18112_v16, %v18116_v19  ;;  %v18311_v16 = vld [vmem:[%s18083_s16 + $0xa8] sm:$0xf] }
  0x30   : > { %14922 = vmatprep.mubr.msk.bf16.mxu0 %vm307_vm2, %v13266_v62  ;;  %v18268_v62 = vld [vmem:[%s18083_s16 + $0x70] sm:$0xf] }
  0x31   : > { %v717_v25 = vshll.u32 %v13292_v58, 16  ;;  %v13271_v31 = vcombine.low %v18265_v61, %v18268_v62  ;;  %v5425_v39 = vrot.slane %v5423_v9, 3  ;;  %v5428_v44 = vrot.slane %v5426_v15, 4 }
  0x32   : > { %v723_v17 = vshrl.u32 %v13293_v8, 16  ;;  %v726_v9 = vshll.u32 %v13293_v8, 16 }
  0x35   : > { %15337 = vmatmul.mubr.msk.bf16.gmra.mrb[12].mxu1 %vm307_vm2, %v5140_v18  ;;  %v18279_v18 = vld [vmem:[%s18083_s16 + $0x9c] sm:$0xf] }
  0x36   : > { %15340 = vmatprep.mubr.msk.bf16.mxu1 %vm17999_vm1, %v22375_v3 }
  0x37   : > { %14923 = vmatmul.mubr.msk.bf16.gmra.mrb[16].mxu0 %vm307_vm2, %v13267_v14  ;;  %v5415_v14 = vshrl.u32 %v13622_v46, 16  ;;  %v702_v46 = vrot.slane %v700_v51, 4  ;;  %v5429_v51 = vor.u32 %v5428_v44, %v5425_v39 }
  0x38   : > { %14926 = vmatprep.mubr.msk.bf16.mxu0 %vm307_vm2, %v13268_v24  ;;  %v714_v24 = vshrl.u32 %v13292_v58, 16  ;;  %v18297_v58 = vld [vmem:[%s18083_s16 + $0x7c] sm:$0xf] }
  0x39   : > { %v5417_v33 = vrot.slane %v5415_v14, 3  ;;  %v703_v19 = vor.u32 %v702_v46, %v699_v45  ;;  %v728_v45 = vrot.slane %v726_v9, 4 }
  0x3a   : > { %v716_v15 = vrot.slane %v714_v24, 3 }
  0x3b   : > { %v5421_v47 = vor.u32 %v5420_v38, %v5417_v33  ;;  %v13625_v33 = vcombine.low %v18305_v2, %v18311_v16 }
  0x3d   : > { %15341 = vmatmul.mubr.msk.bf16.gmra.mrb[16].mxu1 %vm307_vm2, %v5148_v50  ;;  %v707_v50 = vrot.slane %v705_v52, 3  ;;  %v5430_v38 = vsel %vm695_vm4, %v5421_v47, %v5429_v51  ;;  %v5441_v46 = vshrl.u32 %v13625_v33, 16 }
  0x3e   : > { %15344 = vmatprep.mubr.msk.bf16.mxu1 %vm17999_vm1, %v22375_v3 }
  0x3f   : > { %14927 = vmatmul.mubr.msk.bf16.gmra.mrb[20].mxu0 %vm307_vm2, %v13269_v6  ;;  %v13624_v6 = vcombine.low %v18279_v18, %v18285_v23 }
  0x40   : > { %14930 = vmatprep.mubr.msk.bf16.mxu0 %vm307_vm2, %v13270_v7  ;;  %v710_v7 = vrot.slane %v708_v59, 4 }
  0x41   : > { %v5432_v52 = vshrl.u32 %v13624_v6, 16  ;;  %v5435_v59 = vshll.u32 %v13624_v6, 16  ;;  %v13295_v6 = vcombine.low %v18138_v28, %v18152_v36  ;;  %v18329_v28 = vld [vmem:[%s18083_s16 + $0xac] sm:$0xf]  ;;  %v18332_v36 = vld [vmem:[%s18083_s16 + $0xb0] sm:$0xf] }
  0x42   : > { %v711_v14 = vor.u32 %v710_v7, %v707_v50  ;;  %v5444_v50 = vshll.u32 %v13625_v33, 16 }
  0x43   : > { %v5434_v39 = vrot.slane %v5432_v52, 3  ;;  %v5437_v44 = vrot.slane %v5435_v59, 4  ;;  %v741_v47 = vshrl.u32 %v13295_v6, 16  ;;  %v744_v52 = vshll.u32 %v13295_v6, 16  ;;  %v18351_v6 = vld [vmem:[%s18083_s16 + $0xb4] sm:$0xf] }
  0x44   : > { %v712_v24 = vsel %vm695_vm4, %v703_v19, %v711_v14  ;;  %v13296_v19 = vcombine.low %v18155_v37, %v18162_v41  ;;  %v5446_v9 = vrot.slane %v5444_v50, 4  ;;  %v18346_v41 = vld [vmem:[%s22368_s2 + $0x8] sm:$0x3] }
  0x45   : > { %15345 = vmatmul.mubr.msk.bf16.gmra.mrb[20].mxu1 %vm307_vm2, %v5156_v30  ;;  %v719_v30 = vrot.slane %v717_v25, 4  ;;  %v725_v25 = vrot.slane %v723_v17, 3  ;;  %v5443_v17 = vrot.slane %v5441_v46, 3 }
  0x46   : > { %15350 = vmatprep.mubr.msk.bf16.mxu1 %vm17999_vm1, %v22375_v3 }
  0x47   : > { %14931 = vmatmul.mubr.msk.bf16.gmra.mrb[24].mxu0 %vm307_vm2, %v13271_v31  ;;  %v13273_v31 = vcombine.low %v18297_v58, %v18300_v60  ;;  %v729_v59 = vor.u32 %v728_v45, %v725_v25  ;;  %v750_v25 = vshrl.u32 %v13296_v19, 16  ;;  %v753_v45 = vshll.u32 %v13296_v19, 16 }
  0x48   : > { %14934 = vmatprep.mubr.msk.bf16.mxu0 %vm307_vm2, %v13272_v34  ;;  %v13294_v34 = vcombine.low %v18119_v20, %v18135_v27  ;;  %v720_v20 = vor.u32 %v719_v30, %v716_v15  ;;  %v5438_v27 = vor.u32 %v5437_v44, %v5434_v39  ;;  %v13626_v15 = vcombine.low %v18329_v28, %v18332_v36 }
  0x49   : > { %v743_v39 = vrot.slane %v741_v47, 3  ;;  %v746_v44 = vrot.slane %v744_v52, 4  ;;  %v13298_v47 = vcombine.low %v18180_v49, %v18193_v55 }
  0x4a   : > { %v732_v7 = vshrl.u32 %v13294_v34, 16  ;;  %v735_v8 = vshll.u32 %v13294_v34, 16  ;;  %v5439_v30 = vsel %vm695_vm4, %v5429_v51, %v5438_v27  ;;  %v730_v37 = vsel %vm695_vm4, %v720_v20, %v729_v59 }
  0x4b   : > { %v5450_v51 = vshrl.u32 %v13626_v15, 16  ;;  %v747_v46 = vor.u32 %v746_v44, %v743_v39 }
  0x4c   : > { %v734_v33 = vrot.slane %v732_v7, 3  ;;  %v737_v34 = vrot.slane %v735_v8, 4  ;;  %v18364_v7 = vsel %vm511_vm0, %v18346_v41, 0 }
  0x4d   : > { %15351 = vmatmul.mubr.msk.bf16.vlgmr.msra.gmra.mrb[24].mxu1 %vm307_vm2, %v5430_v38  ;;  %v13297_v38 = vcombine.low %v18165_v42, %v18177_v48  ;;  %v5447_v42 = vor.u32 %v5446_v9, %v5443_v17  ;;  %v5452_v52 = vrot.slane %v5450_v51, 3  ;;  %v18372_v17 = vld [vmem:[%s18083_s16 + $0xbc] sm:$0xf]  ;;  %v771_v51 = vshll.u32 %v13298_v47, 16 }
  0x4e   : > { %15354 = vmatprep.mubr.msk.bf16.mxu1 %vm17999_vm1, %v22375_v3  ;;  %v738_v48 = vor.u32 %v737_v34, %v734_v33  ;;  %15395 = vmatpush3.bf16.msra.mxu1 %v18364_v7  ;;  %v13299_v33 = vcombine.low %v18196_v56, %v18212_v4 }
  0x4f   : > { %14935 = vmatmul.mubr.msk.bf16.gmra.mrb[28].mxu0 %vm307_vm2, %v13273_v31  ;;  %v721_v31 = vsel %vm695_vm4, %v711_v14, %v720_v20  ;;  %v5453_v14 = vshll.u32 %v13626_v15, 16  ;;  %v759_v50 = vshrl.u32 %v13297_v38, 16  ;;  %v762_v20 = vshll.u32 %v13297_v38, 16  ;;  %15440 = vmatprep.subr.bf16.mxu1 %v22375_v3  ;;  %v18383_v38 = vld [vmem:[%s18083_s16 + $0xc0] sm:$0xf] }
  0x50   : > { %14940 = vmatprep.mubr.msk.bf16.mxu0 %vm307_vm2, %v712_v24  ;;  %v18354_v24 = vld [vmem:[%s18083_s16 + $0xb8] sm:$0xf]  ;;  %v5448_v9 = vsel %vm695_vm4, %v5438_v27, %v5447_v42  ;;  %v739_v15 = vsel %vm695_vm4, %v729_v59, %v738_v48  ;;  %v748_v49 = vsel %vm695_vm4, %v738_v48, %v747_v46  ;;  %v768_v59 = vshrl.u32 %v13298_v47, 16 }
  0x51   : > { %v13627_v8 = vcombine.low %v18351_v6, %v18354_v24  ;;  %v5455_v19 = vrot.slane %v5453_v14, 4  ;;  %v761_v55 = vrot.slane %v759_v50, 3  ;;  %v764_v34 = vrot.slane %v762_v20, 4 }
  0x52   : > { %v13628_v4 = vcombine.low %v18372_v17, %v18383_v38  ;;  %v777_v48 = vshrl.u32 %v13299_v33, 16 }
  0x53   : > { %v5459_v39 = vshrl.u32 %v13627_v8, 16  ;;  %v5462_v44 = vshll.u32 %v13627_v8, 16  ;;  %v5456_v27 = vor.u32 %v5455_v19, %v5452_v52  ;;  %v765_v14 = vor.u32 %v764_v34, %v761_v55  ;;  %v18410_v34 = vld [vmem:[%s18083_s16 + $0xc4] sm:$0xf] }
  0x54   : > { %v13300_v8 = vcombine.low %v18215_v10, %v18218_v12  ;;  %v770_v52 = vrot.slane %v768_v59, 3  ;;  %v773_v19 = vrot.slane %v771_v51, 4  ;;  %v779_v55 = vrot.slane %v777_v48, 3  ;;  %v18416_v59 = vld [vmem:[%s18083_s16 + $0xc8] sm:$0xf]  ;;  %v17761_v48 = vld [vmem:[%s18083_s16 + $0x14] sm:$0xff]  }
  0x55   : > { %15355 = vmatmul.mubr.msk.bf16.gmra.mrb[28].mxu1 %vm307_vm2, %v5439_v30  ;;  %v752_v30 = vrot.slane %v750_v25, 3  ;;  %v780_v25 = vshll.u32 %v13299_v33, 16  ;;  %v5461_v50 = vrot.slane %v5459_v39, 3  ;;  %v5464_v20 = vrot.slane %v5462_v44, 4 }
  0x56   : > { %15358 = vmatprep.mubr.msk.bf16.mxu1 %vm17999_vm1, %v22375_v3  ;;  %v5457_v47 = vsel %vm695_vm4, %v5447_v42, %v5456_v27  ;;  %v13301_v33 = vcombine.low %v18221_v13, %v18230_v26  ;;  %v774_v13 = vor.u32 %v773_v19, %v770_v52  ;;  %v789_v44 = vshll.u32 %v13300_v8, 16 }
  0x57   : > { %14941 = vmatmul.mubr.msk.bf16.vlgmr.msra.gmra.mrb[0].mxu0 %vm307_vm2, %v721_v31  ;;  %v755_v31 = vrot.slane %v753_v45, 4  ;;  %v782_v10 = vrot.slane %v780_v25, 4  ;;  %v5465_v42 = vor.u32 %v5464_v20, %v5461_v50  ;;  %v18421_v25 = vld [vmem:[%s18083_s16 + $0x18] sm:$0xf]  ;;  %v18424_v50 = vld [vmem:[%s18083_s16 + $0x1c] sm:$0xf]  ;;  %v13302_v20 = vcombine.low %v18233_v29, %v18239_v32 }
  0x58   : > { %14973 = vmatpush3.bf16.msra.mxu0 %v18072_v5  ;;  %14944 = vmatprep.mubr.msk.bf16.mxu0 %vm307_vm2, %v730_v37  ;;  %v13647_v37 = vcombine.low %v18285_v23, %v18305_v2  ;;  %v775_v19 = vsel %vm695_vm4, %v765_v14, %v774_v13  ;;  %v18644_v45 = vld [vmem:[%s18083_s16 + $0x54] sm:$0xf]  ;;  %v17781_v23 = vld [vmem:[%s18083_s16 + $0x7c] sm:$0xff]  }
  0x59   : > { %17543 = vmatprep.subr.msk.bf16.mxu0 %vm511_vm0, %v18124_v21  ;;  %v13646_v21 = vcombine.low %v18252_v43, %v18279_v18  ;;  %v756_v56 = vor.u32 %v755_v31, %v752_v30  ;;  %v5471_v30 = vshll.u32 %v13628_v4, 16  ;;  %v783_v51 = vor.u32 %v782_v10, %v779_v55 }
  0x5a   : > { %v5466_v52 = vsel %vm695_vm4, %v5456_v27, %v5465_v42  ;;  %v1197_v31 = vshrl.u32 %v17761_v48, 16 }
  0x5b   : > { %v5473_v39 = vrot.slane %v5471_v30, 4  ;;  %v13303_v30 = vcombine.low %v18249_v40, %v18265_v61  ;;  %v18448_v40 = vld [vmem:[%s18083_s16 + $0xd4] sm:$0xf] }
  0x5d   : > { %15359 = vmatmul.mubr.msk.bf16.gmra.mrb[32].mxu1 %vm307_vm2, %v5448_v9  ;;  %v757_v9 = vsel %vm695_vm4, %v747_v46, %v756_v56  ;;  %v786_v46 = vshrl.u32 %v13300_v8, 16 }
  0x5e   : > { %15362 = vmatprep.mubr.msk.bf16.mxu1 %vm17999_vm1, %v22375_v3 }
  0x5f   : > { %14945 = vmatmul.mubr.msk.bf16.gmra.mrb[4].mxu0 %vm307_vm2, %v739_v15  ;;  %v5468_v15 = vshrl.u32 %v13628_v4, 16  ;;  %v798_v4 = vshll.u32 %v13301_v33, 16 }
  0x60   : > { %14948 = vmatprep.mubr.msk.bf16.mxu0 %vm307_vm2, %v748_v49  ;;  %v766_v49 = vsel %vm695_vm4, %v756_v56, %v765_v14  ;;  %v795_v56 = vshrl.u32 %v13301_v33, 16  ;;  %v784_v33 = vsel %vm695_vm4, %v774_v13, %v783_v51  ;;  %v804_v13 = vshrl.u32 %v13302_v20, 16 }
  0x61   : > { %v5470_v26 = vrot.slane %v5468_v15, 3  ;;  %v791_v15 = vrot.slane %v789_v44, 4  ;;  %v800_v32 = vrot.slane %v798_v4, 4  ;;  %v807_v44 = vshll.u32 %v13302_v20, 16 }
  0x62   : > { %v797_v29 = vrot.slane %v795_v56, 3 }
  0x63   : > { %v5474_v27 = vor.u32 %v5473_v39, %v5470_v26  ;;  %v813_v26 = vshrl.u32 %v13303_v30, 16  ;;  %v816_v39 = vshll.u32 %v13303_v30, 16  ;;  %v809_v30 = vrot.slane %v807_v44, 4  ;;  %v18481_v44 = vld [vmem:[%s18083_s16 + $0xe4] sm:$0xf] }
  0x64   : > { %v801_v4 = vor.u32 %v800_v32, %v797_v29  ;;  %v806_v29 = vrot.slane %v804_v13, 3  ;;  %v18467_v32 = vld [vmem:[%s18083_s16 + $0xdc] sm:$0xf] }
  0x65   : > { %15363 = vmatmul.mubr.msk.bf16.gmra.mrb[36].mxu1 %vm307_vm2, %v5457_v47  ;;  %v13629_v47 = vcombine.low %v18410_v34, %v18416_v59  ;;  %v818_v56 = vrot.slane %v816_v39, 4 }
  0x66   : > { %15366 = vmatprep.mubr.msk.bf16.mxu1 %vm17999_vm1, %v22375_v3 }
  0x67   : > { %14949 = vmatmul.mubr.msk.bf16.gmra.mrb[8].mxu0 %vm307_vm2, %v757_v9  ;;  %v788_v9 = vrot.slane %v786_v46, 3  ;;  %v5477_v14 = vshrl.u32 %v13629_v47, 16  ;;  %v5480_v10 = vshll.u32 %v13629_v47, 16  ;;  %v18445_v46 = vld [vmem:[%s18083_s16 + $0xd0] sm:$0xf]  ;;  %v13304_v47 = vcombine.low %v18268_v62, %v18271_v63 }
  0x68   : > { %14952 = vmatprep.mubr.msk.bf16.mxu0 %vm307_vm2, %v766_v49  ;;  %v18438_v49 = vld [vmem:[%s18083_s16 + $0xcc] sm:$0xf]  ;;  %v815_v63 = vrot.slane %v813_v26, 3 }
  0x69   : > { %v792_v61 = vor.u32 %v791_v15, %v788_v9  ;;  %v5479_v8 = vrot.slane %v5477_v14, 3  ;;  %v5482_v9 = vrot.slane %v5480_v10, 4  ;;  %v13630_v20 = vcombine.low %v18438_v49, %v18445_v46  ;;  %v18475_v14 = vld [vmem:[%s18083_s16 + $0xe0] sm:$0xf] }
  0x6a   : > { %v5475_v15 = vsel %vm695_vm4, %v5465_v42, %v5474_v27  ;;  %v825_v13 = vshll.u32 %v13304_v47, 16  ;;  %v819_v26 = vor.u32 %v818_v56, %v815_v63 }
  0x6b   : > { %v802_v62 = vsel %vm695_vm4, %v792_v61, %v801_v4  ;;  %v5486_v42 = vshrl.u32 %v13630_v20, 16  ;;  %v5489_v10 = vshll.u32 %v13630_v20, 16 }
  0x6d   : > { %15367 = vmatmul.mubr.msk.bf16.gmra.mrb[40].mxu1 %vm307_vm2, %v5466_v52  ;;  %v18458_v52 = vld [vmem:[%s18083_s16 + $0xd8] sm:$0xf] }
  0x6e   : > { %15370 = vmatprep.mubr.msk.bf16.mxu1 %vm17999_vm1, %v22375_v3  ;;  %v13631_v20 = vcombine.low %v18448_v40, %v18458_v52 }
  0x6f   : > { %14953 = vmatmul.mubr.msk.bf16.gmra.mrb[12].mxu0 %vm307_vm2, %v775_v19  ;;  %v13305_v19 = vcombine.low %v18274_v0, %v18297_v58  ;;  %v5483_v58 = vor.u32 %v5482_v9, %v5479_v8  ;;  %v13306_v9 = vcombine.low %v18300_v60, %v18300_v60  ;;  %v5488_v0 = vrot.slane %v5486_v42, 3  ;;  %v17759_v8 = vld [vmem:[%s18083_s16 + $0x4] sm:$0xff]  }
  0x70   : > { %14956 = vmatprep.mubr.msk.bf16.mxu0 %vm307_vm2, %v784_v33  ;;  %v793_v33 = vsel %vm695_vm4, %v783_v51, %v792_v61  ;;  %v810_v51 = vor.u32 %v809_v30, %v806_v29  ;;  %v822_v61 = vshrl.u32 %v13304_v47, 16  ;;  %v5491_v29 = vrot.slane %v5489_v10, 4 }
  0x71   : > { %v831_v39 = vshrl.u32 %v13305_v19, 16  ;;  %v5495_v60 = vshrl.u32 %v13631_v20, 16  ;;  %v840_v10 = vshrl.u32 %v13306_v9, 16 }
  0x72   : > { %v811_v47 = vsel %vm695_vm4, %v801_v4, %v810_v51  ;;  %v824_v30 = vrot.slane %v822_v61, 3  ;;  %v820_v56 = vsel %vm695_vm4, %v810_v51, %v819_v26  ;;  %v5492_v42 = vor.u32 %v5491_v29, %v5488_v0 }
  0x73   : > { %v843_v61 = vshll.u32 %v13306_v9, 16  ;;  %v842_v0 = vrot.slane %v840_v10, 3  ;;  %v1193_v10 = vshll.u32 %v17761_v48, 16 }
  0x75   : > { %15371 = vmatmul.mubr.msk.bf16.gmra.mrb[0].mxu1 %vm307_vm2, %v5475_v15  ;;  %v834_v15 = vshll.u32 %v13305_v19, 16  ;;  %v833_v19 = vrot.slane %v831_v39, 3  ;;  %v1180_v39 = vshll.u32 %v17759_v8, 16  ;;  %v845_v29 = vrot.slane %v843_v61, 4 }
  0x76   : > { %15374 = vmatprep.mubr.msk.bf16.mxu1 %vm17999_vm1, %v22375_v3 }
  0x77   : > { %14957 = vmatmul.mubr.msk.bf16.gmra.mrb[16].mxu0 %vm307_vm2, %v793_v33  ;;  %v5484_v33 = vsel %vm695_vm4, %v5474_v27, %v5483_v58  ;;  %v836_v63 = vrot.slane %v834_v15, 4  ;;  %v5498_v27 = vshll.u32 %v13631_v20, 16  ;;  %v5497_v15 = vrot.slane %v5495_v60, 3 }
  0x78   : > { %14960 = vmatprep.mubr.msk.bf16.mxu0 %vm307_vm2, %v802_v62  ;;  %v827_v62 = vrot.slane %v825_v13, 4  ;;  %v17760_v13 = vld [vmem:[%s18083_s16 + $0xc] sm:$0xff]   ;;  %v5493_v20 = vsel %vm695_vm4, %v5483_v58, %v5492_v42  ;;  %v846_v58 = vor.u32 %v845_v29, %v842_v0  ;;  %v1195_v0 = vrot.slane %v1193_v10, 1 }
  0x79   : > { %v837_v51 = vor.u32 %v836_v63, %v833_v19  ;;  %v1185_v9 = vshll.u32 %v17760_v13, 16  ;;  %v17763_v19 = vld [vmem:[%s18083_s16 + $0x1c] sm:$0xff]  }
  0x7a   : > { %v828_v4 = vor.u32 %v827_v62, %v824_v30  ;;  %v1178_v62 = vshrl.u32 %v17759_v8, 16  ;;  %v13633_v8 = vcombine.low %v18481_v44, %v18481_v44  ;;  %v1201_v61 = vshll.u32 %v17763_v19, 16 }
  0x7c   : > { %v829_v55 = vsel %vm695_vm4, %v819_v26, %v828_v4  ;;  %v838_v30 = vsel %vm695_vm4, %v828_v4, %v837_v51  ;;  %v1187_v4 = vrot.slane %v1185_v9, 1  ;;  %v5513_v12 = vshrl.u32 %v13633_v8, 16  ;;  %v17766_v9 = vld [vmem:[%s18083_s16 + $0x2c] sm:$0xff]  }
  0x7d   : > { %15375 = vmatmul.mubr.msk.bf16.gmra.mrb[4].mxu1 %vm307_vm2, %v5484_v33  ;;  %v5500_v33 = vrot.slane %v5498_v27, 4  ;;  %v5516_v29 = vshll.u32 %v13633_v8, 16 }
  0x7e   : > { %15378 = vmatprep.mubr.msk.bf16.mxu1 %vm17999_vm1, %v22375_v3 }
  0x7f   : > { %14961 = vmatmul.mubr.msk.bf16.gmra.mrb[20].mxu0 %vm307_vm2, %v811_v47  ;;  %v13632_v47 = vcombine.low %v18467_v32, %v18475_v14  ;;  %v5501_v63 = vor.u32 %v5500_v33, %v5497_v15  ;;  %v1189_v15 = vshrl.u32 %v17760_v13, 16  ;;  %v847_v33 = vsel %vm695_vm4, %v837_v51, %v846_v58 }
  0x80   : > { %14964 = vmatprep.mubr.msk.bf16.mxu0 %vm307_vm2, %v820_v56  ;;  %v1182_v56 = vrot.slane %v1180_v39, 1  ;;  %v5515_v51 = vrot.slane %v5513_v12, 3  ;;  %v1199_v58 = vor.u32 %v1197_v31, %v1195_v0  ;;  %v18641_v31 = vld [vmem:[%s18083_s16 + $0x50] sm:$0xf] }
  0x81   : > { %v5504_v60 = vshrl.u32 %v13632_v47, 16  ;;  %v5507_v26 = vshll.u32 %v13632_v47, 16  ;;  %v1191_v48 = vor.u32 %v1189_v15, %v1187_v4 }
  0x82   : > { %v1183_v27 = vor.u32 %v1182_v56, %v1178_v62  ;;  %v1203_v62 = vrot.slane %v1201_v61, 1  ;;  %v1205_v56 = vshrl.u32 %v17763_v19, 16  ;;  %v1217_v61 = vshll.u32 %v17766_v9, 16 }
  0x83   : > { %v5506_v39 = vrot.slane %v5504_v60, 3  ;;  %v5518_v60 = vrot.slane %v5516_v29, 4 }
  0x84   : > { %v1188_v47 = vsel %vm1176_vm3, %v1183_v27, %v1187_v4  ;;  %v1196_v27 = vsel %vm1176_vm3, %v1191_v48, %v1195_v0  ;;  %v1204_v4 = vsel %vm1176_vm3, %v1199_v58, %v1203_v62  ;;  %v1219_v15 = vrot.slane %v1217_v61, 1  ;;  %v18557_v58 = vld [vmem:[%s18083_s16 + $0x2c] sm:$0xf]  ;;  %v18573_v61 = vld [vmem:[%s22368_s2 + $0xa] sm:$0x3] }
  0x85   : > { %15379 = vmatmul.mubr.msk.bf16.gmra.mrb[8].mxu1 %vm307_vm2, %v5493_v20  ;;  %v5509_v20 = vrot.slane %v5507_v26, 4  ;;  %v17767_v26 = vld [vmem:[%s18083_s16 + $0x34] sm:$0xff]   ;;  %v5519_v12 = vor.u32 %v5518_v60, %v5515_v51  ;;  %v18554_v60 = vld [vmem:[%s18083_s16 + $0x28] sm:$0xf] }
  0x86   : > { %15382 = vmatprep.mubr.msk.bf16.mxu1 %vm17999_vm1, %v22375_v3  ;;  %v1229_v0 = vshrl.u32 %v17767_v26, 16 }
  0x87   : > { %14965 = vmatmul.mubr.msk.bf16.gmra.mrb[24].mxu0 %vm307_vm2, %v829_v55  ;;  %v5502_v55 = vsel %vm695_vm4, %v5492_v42, %v5501_v63  ;;  %v5510_v42 = vor.u32 %v5509_v20, %v5506_v39  ;;  %v17769_v39 = vld [vmem:[%s18083_s16 + $0x3c] sm:$0xff]   ;;  %v1225_v20 = vshll.u32 %v17767_v26, 16 }
  0x88   : > { %14968 = vmatprep.mubr.msk.bf16.mxu0 %vm307_vm2, %v838_v30  ;;  %v17764_v30 = vld [vmem:[%s18083_s16 + $0x24] sm:$0xff]   ;;  %v1233_v51 = vshll.u32 %v17769_v39, 16 }
  0x89   : > { %v1209_v13 = vshll.u32 %v17764_v30, 16  ;;  %v1213_v19 = vshrl.u32 %v17764_v30, 16  ;;  %v5511_v8 = vsel %vm695_vm4, %v5501_v63, %v5510_v42  ;;  %v1207_v63 = vor.u32 %v1205_v56, %v1203_v62  ;;  %v18548_v62 = vld [vmem:[%s18083_s16 + $0x20] sm:$0xf]  ;;  %v18551_v56 = vld [vmem:[%s18083_s16 + $0x24] sm:$0xf] }
  0x8a   : > { %v1227_v48 = vrot.slane %v1225_v20, 1  ;;  %v1235_v26 = vrot.slane %v1233_v51, 1 }
  0x8b   : > { %v1211_v10 = vrot.slane %v1209_v13, 1  ;;  %v17770_v13 = vld [vmem:[%s18083_s16 + $0x44] sm:$0xff]  }
  0x8c   : > { %v1245_v20 = vshrl.u32 %v17770_v13, 16 }
  0x8d   : > { %15383 = vmatmul.mubr.msk.bf16.gmra.mrb[12].mxu1 %vm307_vm2, %v5502_v55  ;;  %v18527_v55 = vld [vmem:[%s18083_s16 + $0x10] sm:$0xf]  ;;  %v1215_v30 = vor.u32 %v1213_v19, %v1211_v10  ;;  %v1212_v29 = vsel %vm1176_vm3, %v1207_v63, %v1211_v10  ;;  %v1241_v10 = vshll.u32 %v17770_v13, 16 }
  0x8e   : > { %15386 = vmatprep.mubr.msk.bf16.mxu1 %vm17999_vm1, %v22375_v3 }
  0x8f   : > { %14969 = vmatmul.mubr.msk.bf16.gmra.mrb[28].mxu0 %vm307_vm2, %v847_v33  ;;  %v18530_v33 = vld [vmem:[%s18083_s16 + $0x14] sm:$0xf] }
  0x90   : > { %14974 = vmatprep.mubr.msk.bf16.mxu0 %vm307_vm2, %v1188_v47  ;;  %v1221_v47 = vshrl.u32 %v17766_v9, 16  ;;  %v17779_v9 = vld [vmem:[%s18083_s16 + $0x74] sm:$0xff]  }
  0x92   : > { %v1223_v19 = vor.u32 %v1221_v47, %v1219_v15  ;;  %v18584_v47 = vld [vmem:[%s18083_s16 + $0x38] sm:$0xf] }
  0x95   : > { %15387 = vmatmul.mubr.msk.bf16.gmra.mrb[16].mxu1 %vm307_vm2, %v5511_v8  ;;  %v17772_v8 = vld [vmem:[%s18083_s16 + $0x4c] sm:$0xff]  }
  0x96   : > { %15390 = vmatprep.mubr.msk.bf16.mxu1 %vm17999_vm1, %v22375_v3 }
  0x97   : > { %14975 = vmatmul.mubr.msk.bf16.vlgmr.msra.gmra.mrb[0].mxu0 %vm307_vm2, %v1196_v27  ;;  %v1231_v27 = vor.u32 %v1229_v0, %v1227_v48  ;;  %v18587_v0 = vld [vmem:[%s18083_s16 + $0x3c] sm:$0xf] }
  0x98   : > { %15007 = vmatpush3.bf16.msra.mxu0 %v18147_v35  ;;  %14978 = vmatprep.mubr.msk.bf16.mxu0 %vm307_vm2, %v1204_v4  ;;  %v5520_v35 = vsel %vm695_vm4, %v5510_v42, %v5519_v12  ;;  %v1228_v4 = vsel %vm1176_vm3, %v1223_v19, %v1227_v48  ;;  %v1237_v12 = vshrl.u32 %v17769_v39, 16  ;;  %v1243_v39 = vrot.slane %v1241_v10, 1  ;;  %v17773_v48 = vld [vmem:[%s18083_s16 + $0x54] sm:$0xff]  }
  0x99   : > { %17544 = vmatprep.subr.msk.bf16.mxu0 %vm511_vm0, %v18346_v41  ;;  %v1220_v41 = vsel %vm1176_vm3, %v1215_v30, %v1219_v15  ;;  %v1236_v63 = vsel %vm1176_vm3, %v1231_v27, %v1235_v26  ;;  %v1249_v30 = vshll.u32 %v17772_v8, 16  ;;  %v18581_v15 = vld [vmem:[%s18083_s16 + $0x34] sm:$0xf]  ;;  %v1257_v19 = vshll.u32 %v17773_v48, 16 }
  0x9a   : > { %v1239_v53 = vor.u32 %v1237_v12, %v1235_v26  ;;  %v1247_v54 = vor.u32 %v1245_v20, %v1243_v39  ;;  %v1253_v10 = vshrl.u32 %v17772_v8, 16  ;;  %v1261_v13 = vshrl.u32 %v17773_v48, 16  ;;  %v18615_v26 = vld [vmem:[%s18083_s16 + $0x44] sm:$0xf]  ;;  %v18618_v12 = vld [vmem:[%s18083_s16 + $0x48] sm:$0xf] }
  0x9b   : > { %v18621_v20 = vld [vmem:[%s18083_s16 + $0x4c] sm:$0xf]  ;;  %v1259_v8 = vrot.slane %v1257_v19, 1 }
  0x9c   : > { %v1244_v27 = vsel %vm1176_vm3, %v1239_v53, %v1243_v39  ;;  %v17778_v53 = vld [vmem:[%s18083_s16 + $0x6c] sm:$0xff]  }
  0x9d   : > { %15391 = vmatmul.mubr.msk.bf16.gmra.mrb[20].mxu1 %vm307_vm2, %v5520_v35  ;;  %v18578_v35 = vld [vmem:[%s18083_s16 + $0x30] sm:$0xf]  ;;  %v1263_v18 = vor.u32 %v1261_v13, %v1259_v8  ;;  %v1281_v48 = vshll.u32 %v17778_v53, 16  ;;  %v18650_v13 = vld [vmem:[%s18083_s16 + $0x5c] sm:$0xf] }
  0x9e   : > { %15396 = vmatprep.mubr.msk.bf16.mxu1 %vm17999_vm1, %v22375_v3 }
  0x9f   : > { %14979 = vmatmul.mubr.msk.bf16.gmra.mrb[4].mxu0 %vm307_vm2, %v1212_v29  ;;  %v18591_v29 = vsel %vm511_vm0, %v18573_v61, 0 }
  0xa0   : > { %14982 = vmatprep.mubr.msk.bf16.mxu0 %vm307_vm2, %v1220_v41  ;;  %v17775_v41 = vld [vmem:[%s18083_s16 + $0x5c] sm:$0xff]  }
  0xa1   : > { %v1265_v51 = vshll.u32 %v17775_v41, 16 }
  0xa5   : > { %15397 = vmatmul.mubr.msk.bf16.vlgmr.msra.gmra.mrb[24].mxu1 %vm307_vm2, %v13645_v57  ;;  %v1251_v57 = vrot.slane %v1249_v30, 1  ;;  %v17776_v30 = vld [vmem:[%s18083_s16 + $0x64] sm:$0xff]  }
  0xa6   : > { %15400 = vmatprep.mubr.msk.bf16.mxu1 %vm17999_vm1, %v22375_v3  ;;  %15441 = vmatpush3.bf16.msra.mxu1 %v18591_v29  ;;  %v1277_v42 = vshrl.u32 %v17776_v30, 16 }
  0xa7   : > { %14983 = vmatmul.mubr.msk.bf16.gmra.mrb[8].mxu0 %vm307_vm2, %v1228_v4  ;;  %15486 = vmatprep.subr.bf16.mxu1 %v22375_v3  ;;  %v1252_v4 = vsel %vm1176_vm3, %v1247_v54, %v1251_v57  ;;  %v1255_v43 = vor.u32 %v1253_v10, %v1251_v57  ;;  %v1273_v54 = vshll.u32 %v17776_v30, 16  ;;  %v1553_v30 = vld [vmem:[%s18083_s16 + $0xc] sm:$0x8] }
  0xa8   : > { %14986 = vmatprep.mubr.msk.bf16.mxu0 %vm307_vm2, %v1236_v63  ;;  %v18612_v63 = vld [vmem:[%s18083_s16 + $0x40] sm:$0xf]  ;;  %v13356_v57 = vcombine.low %v1553_v30, %v18527_v55 }
  0xa9   : > { %v1260_v19 = vsel %vm1176_vm3, %v1255_v43, %v1259_v8  ;;  %v1289_v8 = vshll.u32 %v17779_v9, 16 }
  0xaa   : > { %v1673_v30 = vshll.u32 %v13356_v57, 16 }
  0xac   : > { %v1675_v1 = vrot.slane %v1673_v30, 4 }
  0xad   : > { %15401 = vmatmul.mubr.msk.bf16.gmra.mrb[28].mxu1 %vm307_vm2, %v13646_v21  ;;  %v1267_v21 = vrot.slane %v1265_v51, 1  ;;  %v1275_v51 = vrot.slane %v1273_v54, 1  ;;  %v1293_v54 = vshrl.u32 %v17779_v9, 16  ;;  %v13358_v9 = vcombine.low %v18424_v50, %v18548_v62 }
  0xae   : > { %15404 = vmatprep.mubr.msk.bf16.mxu1 %vm17999_vm1, %v22375_v3 }
  0xaf   : > { %14987 = vmatmul.mubr.msk.bf16.gmra.mrb[12].mxu0 %vm307_vm2, %v1244_v27  ;;  %v1269_v27 = vshrl.u32 %v17775_v41, 16  ;;  %v1268_v39 = vsel %vm1176_vm3, %v1263_v18, %v1267_v21  ;;  %v1279_v2 = vor.u32 %v1277_v42, %v1275_v51  ;;  %v1285_v18 = vshrl.u32 %v17778_v53, 16  ;;  %v18675_v42 = vld [vmem:[%s18083_s16 + $0x6c] sm:$0xf] }
  0xb0   : > { %14990 = vmatprep.mubr.msk.bf16.mxu0 %vm307_vm2, %v1252_v4  ;;  %v18647_v4 = vld [vmem:[%s18083_s16 + $0x58] sm:$0xf]  ;;  %v22470_v53 = vmov 0.0  }
  0xb1   : > { %v1271_v10 = vor.u32 %v1269_v27, %v1267_v21  ;;  %v18672_v21 = vld [vmem:[%s18083_s16 + $0x68] sm:$0xf] }
  0xb3   : > { %v1276_v43 = vsel %vm1176_vm3, %v1271_v10, %v1275_v51 }
  0xb5   : > { %15405 = vmatmul.mubr.msk.bf16.gmra.mrb[32].mxu1 %vm307_vm2, %v13647_v37  ;;  %v1283_v37 = vrot.slane %v1281_v48, 1  ;;  %v22469_v48 = vcombine.low %v18311_v16, %v18329_v28  ;;  %v1301_v28 = vshrl.u32 %v17781_v23, 16 }
  0xb6   : > { %15408 = vmatprep.mubr.msk.bf16.mxu1 %vm17999_vm1, %v22375_v3  ;;  %v1291_v3 = vrot.slane %v1289_v8, 1  ;;  %v1670_v8 = vshrl.u32 %v13356_v57, 16  ;;  %v22471_v57 = vcombine.low %v18332_v36, %v18351_v6 }
  0xb7   : > { %14991 = vmatmul.mubr.msk.bf16.gmra.mrb[16].mxu0 %vm307_vm2, %v1260_v19  ;;  %v1297_v19 = vshll.u32 %v17781_v23, 16  ;;  %v1284_v41 = vsel %vm1176_vm3, %v1279_v2, %v1283_v37  ;;  %v1287_v27 = vor.u32 %v1285_v18, %v1283_v37  ;;  %v17782_v2 = vld [vmem:[%s18083_s16 + $0x84] ss:$0 sps:$4 sm:$0x11]   ;;  %v13359_v18 = vcombine.low %v18551_v56, %v18554_v60 }
  0xb8   : > { %14994 = vmatprep.mubr.msk.bf16.mxu0 %vm307_vm2, %v1268_v39  ;;  %v13357_v39 = vcombine.low %v18530_v33, %v18421_v25  ;;  %v1295_v51 = vor.u32 %v1293_v54, %v1291_v3  ;;  %v1305_v5 = vshll.u32 %v17782_v2, 16  ;;  %v1672_v11 = vrot.slane %v1670_v8, 3 }
  0xb9   : > { %v1299_v10 = vrot.slane %v1297_v19, 1  ;;  %v1687_v54 = vshrl.u32 %v13358_v9, 16  ;;  %v13360_v8 = vcombine.low %v18557_v58, %v18578_v35 }
  0xba   : > { %v1678_v22 = vshrl.u32 %v13357_v39, 16  ;;  %v1681_v16 = vshll.u32 %v13357_v39, 16  ;;  %v1307_v23 = vrot.slane %v1305_v5, 1  ;;  %v1676_v19 = vor.u32 %v1675_v1, %v1672_v11 }
  0xbb   : > { %v1689_v36 = vrot.slane %v1687_v54, 3  ;;  %v22472_v1 = vcombine.low %v18354_v24, %v18372_v17  ;;  %v13362_v24 = vcombine.low %v18587_v0, %v18612_v63 }
  0xbc   : > { %v1683_v37 = vrot.slane %v1681_v16, 4  ;;  %v13361_v16 = vcombine.low %v18581_v15, %v18584_v47 }
  0xbd   : > { %15409 = vmatmul.mubr.msk.bf16.gmra.mrb[36].mxu1 %vm307_vm2, %v22469_v48  ;;  %v1292_v48 = vsel %vm1176_vm3, %v1287_v27, %v1291_v3  ;;  %v1303_v3 = vor.u32 %v1301_v28, %v1299_v10  ;;  %v1696_v27 = vshrl.u32 %v13359_v18, 16  ;;  %v1708_v28 = vshll.u32 %v13360_v8, 16 }
  0xbe   : > { %15412 = vmatprep.mubr.msk.bf16.mxu1 %vm17999_vm1, %v22470_v53 }
  0xbf   : > { %14995 = vmatmul.mubr.msk.bf16.gmra.mrb[20].mxu0 %vm307_vm2, %v1276_v43  ;;  %v1300_v43 = vsel %vm1176_vm3, %v1295_v51, %v1299_v10  ;;  %v1699_v51 = vshll.u32 %v13359_v18, 16  ;;  %v1308_v2 = vsel %vm1176_vm3, %v1303_v3, %v1307_v23  ;;  %v1698_v10 = vrot.slane %v1696_v27, 3 }
  0xc0   : > { %14998 = vmatprep.mubr.msk.bf16.mxu0 %vm307_vm2, %v1284_v41  ;;  %v1680_v41 = vrot.slane %v1678_v22, 3  ;;  %v1690_v22 = vshll.u32 %v13358_v9, 16  ;;  %v1705_v9 = vshrl.u32 %v13360_v8, 16  ;;  %v13363_v23 = vcombine.low %v18615_v26, %v18618_v12 }
  0xc1   : > { %v1701_v5 = vrot.slane %v1699_v51, 4  ;;  %v1726_v27 = vshll.u32 %v13362_v24, 16 }
  0xc2   : > { %v1684_v39 = vor.u32 %v1683_v37, %v1680_v41  ;;  %v1692_v6 = vrot.slane %v1690_v22, 4  ;;  %v1707_v18 = vrot.slane %v1705_v9, 3  ;;  %v22473_v22 = vcombine.low %v18383_v38, %v18410_v34 }
  0xc3   : > { %v1702_v41 = vor.u32 %v1701_v5, %v1698_v10  ;;  %v13365_v10 = vcombine.low %v18644_v45, %v18647_v4  ;;  %v22474_v5 = vcombine.low %v18416_v59, %v18438_v49 }
  0xc4   : > { %v1685_v30 = vsel %vm695_vm4, %v1676_v19, %v1684_v39  ;;  %v1693_v11 = vor.u32 %v1692_v6, %v1689_v36  ;;  %v1735_v36 = vshll.u32 %v13363_v23, 16  ;;  %v1728_v6 = vrot.slane %v1726_v27, 4 }
  0xc5   : > { %15413 = vmatmul.mubr.msk.bf16.gmra.mrb[40].mxu1 %vm307_vm2, %v22471_v57  ;;  %v1710_v57 = vrot.slane %v1708_v28, 4  ;;  %v1750_v28 = vshrl.u32 %v13365_v10, 16 }
  0xc6   : > { %15416 = vmatprep.mubr.msk.bf16.mxu1 %vm17999_vm1, %v22470_v53  ;;  %v1694_v37 = vsel %vm695_vm4, %v1684_v39, %v1693_v11  ;;  %v1703_v54 = vsel %vm695_vm4, %v1693_v11, %v1702_v41  ;;  %v1723_v39 = vshrl.u32 %v13362_v24, 16 }
  0xc7   : > { %14999 = vmatmul.mubr.msk.bf16.gmra.mrb[24].mxu0 %vm307_vm2, %v1292_v48  ;;  %v1714_v48 = vshrl.u32 %v13361_v16, 16  ;;  %v1711_v19 = vor.u32 %v1710_v57, %v1707_v18  ;;  %v1752_v24 = vrot.slane %v1750_v28, 3 }
  0xc8   : > { %15002 = vmatprep.mubr.msk.bf16.mxu0 %vm307_vm2, %v1300_v43  ;;  %v1717_v43 = vshll.u32 %v13361_v16, 16  ;;  %v1725_v34 = vrot.slane %v1723_v39, 3  ;;  %v1737_v16 = vrot.slane %v1735_v36, 4  ;;  %v18771_v36 = vld [vmem:[%s18083_s16 + $0x74] sm:$0xf] }
  0xc9   : > { %v1716_v17 = vrot.slane %v1714_v48, 3  ;;  %v1712_v38 = vsel %vm695_vm4, %v1702_v41, %v1711_v19  ;;  %v1753_v48 = vshll.u32 %v13365_v10, 16  ;;  %v18751_v41 = vld [vmem:[%s18083_s16 + $0x64] sm:$0xf] }
  0xca   : > { %v1719_v3 = vrot.slane %v1717_v43, 4  ;;  %v18748_v43 = vld [vmem:[%s18083_s16 + $0x60] sm:$0xf] }
  0xcb   : > { %v13366_v18 = vcombine.low %v18650_v13, %v18748_v43 }
  0xcc   : > { %v1720_v51 = vor.u32 %v1719_v3, %v1716_v17  ;;  %v1755_v17 = vrot.slane %v1753_v48, 4  ;;  %v13367_v3 = vcombine.low %v18751_v41, %v18672_v21 }
  0xcd   : > { %15417 = vmatmul.mubr.msk.bf16.gmra.mrb[0].mxu1 %vm307_vm2, %v22472_v1 }
  0xce   : > { %15420 = vmatprep.mubr.msk.bf16.mxu1 %vm17999_vm1, %v22470_v53  ;;  %v1721_v8 = vsel %vm695_vm4, %v1711_v19, %v1720_v51  ;;  %v1762_v19 = vshll.u32 %v13366_v18, 16  ;;  %v1756_v39 = vor.u32 %v1755_v17, %v1752_v24  ;;  %v1768_v27 = vshrl.u32 %v13367_v3, 16 }
  0xcf   : > { %15003 = vmatmul.mubr.msk.bf16.gmra.mrb[28].mxu0 %vm307_vm2, %v1308_v2  ;;  %v1732_v2 = vshrl.u32 %v13363_v23, 16  ;;  %v22475_v23 = vcombine.low %v18445_v46, %v18448_v40  ;;  %v18774_v46 = vld [vmem:[%s18083_s16 + $0x78] sm:$0xf]  ;;  %v17800_v40 = vld [vmem:[%s18083_s16 + $0x90] sm:$0xff]  }
  0xd0   : > { %15008 = vmatprep.mubr.msk.bf16.mxu0 %vm307_vm2, %v1685_v30  ;;  %v13369_v10 = vcombine.low %v18771_v36, %v18774_v46 }
  0xd1   : > { %v1734_v30 = vrot.slane %v1732_v2, 3  ;;  %v18768_v2 = vld [vmem:[%s18083_s16 + $0x70] sm:$0xf] }
  0xd3   : > { %v1738_v9 = vor.u32 %v1737_v16, %v1734_v30  ;;  %v1770_v30 = vrot.slane %v1768_v27, 3 }
  0xd5   : > { %15421 = vmatmul.mubr.msk.bf16.gmra.mrb[4].mxu1 %vm307_vm2, %v22473_v22  ;;  %v1759_v22 = vshrl.u32 %v13366_v18, 16  ;;  %v18802_v18 = vld [vmem:[%s18083_s16 + $0x88] sm:$0xf] }
  0xd6   : > { %15424 = vmatprep.mubr.msk.bf16.mxu1 %vm17999_vm1, %v22470_v53 }
  0xd7   : > { %15009 = vmatmul.mubr.msk.bf16.vlgmr.msra.gmra.mrb[0].mxu0 %vm307_vm2, %v1694_v37 }
  0xd8   : > { %15041 = vmatpush3.bf16.msra.mxu0 %v18364_v7  ;;  %15012 = vmatprep.mubr.msk.bf16.mxu0 %vm307_vm2, %v1703_v54  ;;  %v13364_v7 = vcombine.low %v18621_v20, %v18641_v31 }
  0xd9   : > { %17545 = vmatprep.subr.msk.bf16.mxu0 %vm511_vm0, %v18573_v61  ;;  %v1729_v61 = vor.u32 %v1728_v6, %v1725_v34  ;;  %v1761_v34 = vrot.slane %v1759_v22, 3  ;;  %v1764_v6 = vrot.slane %v1762_v19, 4 }
  0xda   : > { %v1741_v1 = vshrl.u32 %v13364_v7, 16  ;;  %v1744_v11 = vshll.u32 %v13364_v7, 16  ;;  %v13368_v7 = vcombine.low %v18675_v42, %v18768_v2 }
  0xdb   : > { %v1730_v59 = vsel %vm695_vm4, %v1720_v51, %v1729_v61  ;;  %v1739_v57 = vsel %vm695_vm4, %v1729_v61, %v1738_v9  ;;  %v1771_v51 = vshll.u32 %v13367_v3, 16  ;;  %v17801_v61 = vld [vmem:[%s18083_s16 + $0x98] sm:$0xff]  }
  0xdc   : > { %v1743_v49 = vrot.slane %v1741_v1, 3  ;;  %v1746_v37 = vrot.slane %v1744_v11, 4  ;;  %v5968_v1 = vshll.u32 %v17800_v40, 16  ;;  %v1765_v11 = vor.u32 %v1764_v6, %v1761_v34  ;;  %v17804_v6 = vld [vmem:[%s18083_s16 + $0xa0] sm:$0xff]  }
  0xdd   : > { %15425 = vmatmul.mubr.msk.bf16.gmra.mrb[8].mxu1 %vm307_vm2, %v22474_v5  ;;  %v1773_v16 = vrot.slane %v1771_v51, 4  ;;  %v22476_v5 = vcombine.low %v18458_v52, %v18467_v32  ;;  %v1780_v28 = vshll.u32 %v13368_v7, 16  ;;  %v18796_v52 = vld [vmem:[%s18083_s16 + $0x80] sm:$0xf]  ;;  %v18799_v32 = vld [vmem:[%s18083_s16 + $0x84] sm:$0xf] }
  0xde   : > { %15428 = vmatprep.mubr.msk.bf16.mxu1 %vm17999_vm1, %v22470_v53  ;;  %v1747_v54 = vor.u32 %v1746_v37, %v1743_v49  ;;  %v1789_v49 = vshll.u32 %v13369_v10, 16  ;;  %v18793_v37 = vld [vmem:[%s18083_s16 + $0x7c] sm:$0xf]  ;;  %v5970_v24 = vrot.slane %v5968_v1, 1  ;;  %v5973_v17 = vshll.u32 %v17801_v61, 16 }
  0xdf   : > { %15013 = vmatmul.mubr.msk.bf16.gmra.mrb[4].mxu0 %vm307_vm2, %v1712_v38  ;;  %v1774_v48 = vor.u32 %v1773_v16, %v1770_v30  ;;  %v1766_v3 = vsel %vm695_vm4, %v1756_v39, %v1765_v11  ;;  %v13370_v22 = vcombine.low %v18793_v37, %v18796_v52  ;;  %v18820_v1 = vld [vmem:[%s18083_s16 + $0x8c] sm:$0xf] }
  0xe0   : > { %15016 = vmatprep.mubr.msk.bf16.mxu0 %vm307_vm2, %v1721_v8  ;;  %v1748_v38 = vsel %vm695_vm4, %v1738_v9, %v1747_v54  ;;  %v1757_v8 = vsel %vm695_vm4, %v1747_v54, %v1756_v39  ;;  %v1777_v9 = vshrl.u32 %v13368_v7, 16  ;;  %v1782_v54 = vrot.slane %v1780_v28, 4 }
  0xe1   : > { %v1775_v19 = vsel %vm695_vm4, %v1765_v11, %v1774_v48  ;;  %v1791_v51 = vrot.slane %v1789_v49, 4  ;;  %v5975_v34 = vrot.slane %v5973_v17, 1  ;;  %v1798_v30 = vshll.u32 %v13370_v22, 16 }
  0xe2   : > { %v5981_v11 = vshll.u32 %v17804_v6, 16 }
  0xe3   : > { %v1800_v49 = vrot.slane %v1798_v30, 4 }
  0xe5   : > { %15429 = vmatmul.mubr.msk.bf16.gmra.mrb[12].mxu1 %vm307_vm2, %v22475_v23  ;;  %v1779_v23 = vrot.slane %v1777_v9, 3  ;;  %v13247_v9 = vld [vmem:[%s22368_s2 + $0xc] sm:$0x3] }
  0xe6   : > { %15432 = vmatprep.mubr.msk.bf16.mxu1 %vm17999_vm1, %v22470_v53 }
  0xe7   : > { %15017 = vmatmul.mubr.msk.bf16.gmra.mrb[8].mxu0 %vm307_vm2, %v1730_v59  ;;  %v1786_v59 = vshrl.u32 %v13369_v10, 16  ;;  %v1783_v7 = vor.u32 %v1782_v54, %v1779_v23  ;;  %v18831_v23 = vsel %vm511_vm0, %v13247_v9, 0  ;;  %v5983_v54 = vrot.slane %v5981_v11, 1 }
  0xe8   : > { %15020 = vmatprep.mubr.msk.bf16.mxu0 %vm307_vm2, %v1739_v57  ;;  %v5966_v57 = vshrl.u32 %v17800_v40, 16  ;;  %v22477_v40 = vcombine.low %v18475_v14, %v18481_v44  ;;  %v5977_v44 = vshrl.u32 %v17801_v61, 16 }
  0xe9   : > { %v1788_v27 = vrot.slane %v1786_v59, 3  ;;  %v1784_v28 = vsel %vm695_vm4, %v1774_v48, %v1783_v7 }
  0xea   : > { %v5971_v39 = vor.u32 %v5970_v24, %v5966_v57  ;;  %v13372_v57 = vcombine.low %v18820_v1, %v18820_v1  ;;  %v5979_v61 = vor.u32 %v5977_v44, %v5975_v34 }
  0xeb   : > { %v1792_v16 = vor.u32 %v1791_v51, %v1788_v27 }
  0xec   : > { %v5976_v14 = vsel %vm1176_vm3, %v5971_v39, %v5975_v34  ;;  %v1816_v27 = vshll.u32 %v13372_v57, 16 }
  0xed   : > { %15433 = vmatmul.mubr.msk.bf16.gmra.mrb[16].mxu1 %vm307_vm2, %v22476_v5  ;;  %v1793_v24 = vsel %vm695_vm4, %v1783_v7, %v1792_v16 }
  0xee   : > { %15436 = vmatprep.mubr.msk.bf16.mxu1 %vm17999_vm1, %v22470_v53 }
  0xef   : > { %15021 = vmatmul.mubr.msk.bf16.gmra.mrb[12].mxu0 %vm307_vm2, %v1748_v38  ;;  %v13371_v38 = vcombine.low %v18799_v32, %v18802_v18 }
  0xf0   : > { %15024 = vmatprep.mubr.msk.bf16.mxu0 %vm307_vm2, %v1757_v8  ;;  %v1795_v8 = vshrl.u32 %v13370_v22, 16  ;;  %v17807_v22 = vld [vmem:[%s18083_s16 + $0xa8] sm:$0xff]  }
  0xf1   : > { %v1804_v10 = vshrl.u32 %v13371_v38, 16  ;;  %v1807_v5 = vshll.u32 %v13371_v38, 16  ;;  %v5984_v38 = vsel %vm1176_vm3, %v5979_v61, %v5983_v54  ;;  %v5989_v34 = vshll.u32 %v17807_v22, 16 }
  0xf2   : > { %v1797_v59 = vrot.slane %v1795_v8, 3  ;;  %v1818_v8 = vrot.slane %v1816_v27, 4  ;;  %v5993_v11 = vshrl.u32 %v17807_v22, 16  ;;  %v22479_v22 = vcombine.low %v18421_v25, %v18424_v50  ;;  %v17815_v27 = vld [vmem:[%s18083_s16 + $0xc0] sm:$0xff]  }
  0xf3   : > { %v1806_v17 = vrot.slane %v1804_v10, 3 }
  0xf4   : > { %v1801_v48 = vor.u32 %v1800_v49, %v1797_v59 }
  0xf5   : > { %15437 = vmatmul.mubr.msk.bf16.gmra.mrb[20].mxu1 %vm307_vm2, %v22477_v40  ;;  %v5985_v40 = vshrl.u32 %v17804_v6, 16 }
  0xf6   : > { %15442 = vmatprep.mubr.msk.bf16.mxu1 %vm17999_vm1, %v22470_v53  ;;  %v1802_v39 = vsel %vm695_vm4, %v1792_v16, %v1801_v48  ;;  %v17810_v16 = vld [vmem:[%s18083_s16 + $0xb0] sm:$0xff]  }
  0xf7   : > { %15025 = vmatmul.mubr.msk.bf16.gmra.mrb[16].mxu0 %vm307_vm2, %v1766_v3  ;;  %v1809_v3 = vrot.slane %v1807_v5, 4  ;;  %v5987_v10 = vor.u32 %v5985_v40, %v5983_v54  ;;  %v5991_v5 = vrot.slane %v5989_v34, 1  ;;  %v18863_v54 = vld [vmem:[%s18083_s16 + $0x24] sm:$0xf]  ;;  %v17818_v40 = vld [vmem:[%s18083_s16 + $0xc8] sm:$0xff]   ;;  %v6017_v34 = vshrl.u32 %v17815_v27, 16 }
  0xf8   : > { %15028 = vmatprep.mubr.msk.bf16.mxu0 %vm307_vm2, %v1775_v19  ;;  %v1813_v19 = vshrl.u32 %v13372_v57, 16  ;;  %v22478_v57 = vcombine.low %v18527_v55, %v18530_v33 }
  0xf9   : > { %v1810_v51 = vor.u32 %v1809_v3, %v1806_v17  ;;  %v5995_v59 = vor.u32 %v5993_v11, %v5991_v5  ;;  %v6001_v3 = vshrl.u32 %v17810_v16, 16 }
  0xfa   : > { %v1815_v7 = vrot.slane %v1813_v19, 3 }
  0xfb   : > { %v1811_v30 = vsel %vm695_vm4, %v1801_v48, %v1810_v51  ;;  %v18866_v48 = vld [vmem:[%s18083_s16 + $0x28] sm:$0xf] }
  0xfc   : > { %v1819_v6 = vor.u32 %v1818_v8, %v1815_v7  ;;  %v6021_v7 = vshll.u32 %v17818_v40, 16  ;;  %v17821_v8 = vld [vmem:[%s18083_s16 + $0xd0] sm:$0xff]  }
  0xfd   : > { %15443 = vmatmul.mubr.msk.bf16.vlgmr.msra.gmra.mrb[24].mxu1 %vm307_vm2, %v5976_v14  ;;  %v5992_v14 = vsel %vm1176_vm3, %v5987_v10, %v5991_v5  ;;  %v6025_v10 = vshrl.u32 %v17818_v40, 16  ;;  %v6029_v5 = vshll.u32 %v17821_v8, 16  ;;  %v18974_v40 = vld [vmem:[%s18083_s16 + $0xa8] sm:$0xf] }
  0xfe   : > { %15446 = vmatprep.mubr.msk.bf16.mxu1 %vm17999_vm1, %v22470_v53  ;;  %15487 = vmatpush3.bf16.msra.mxu1 %v18831_v23  ;;  %v1820_v44 = vsel %vm695_vm4, %v1810_v51, %v1819_v6  ;;  %v22480_v51 = vcombine.low %v18548_v62, %v18551_v56  ;;  %v17824_v6 = vld [vmem:[%s18083_s16 + $0xd8] sm:$0xff]  }
  0xff   : > { %15029 = vmatmul.mubr.msk.bf16.gmra.mrb[20].mxu0 %vm307_vm2, %v1784_v28  ;;  %15532 = vmatprep.subr.bf16.mxu1 %v22470_v53  ;;  %v5997_v28 = vshll.u32 %v17810_v16, 16 }
 0x100   : > { %15032 = vmatprep.mubr.msk.bf16.mxu0 %vm307_vm2, %v1793_v24  ;;  %v17812_v24 = vld [vmem:[%s18083_s16 + $0xb8] sm:$0xff]  }
 0x101   : > { %v5999_v49 = vrot.slane %v5997_v28, 1  ;;  %v6005_v61 = vshll.u32 %v17812_v24, 16  ;;  %v6009_v50 = vshrl.u32 %v17812_v24, 16  ;;  %v6041_v28 = vshrl.u32 %v17824_v6, 16  ;;  %v6233_v24 = vld [vmem:[%s18083_s16 + $0x98] sm:$0x8] }
 0x103   : > { %v6000_v17 = vsel %vm1176_vm3, %v5995_v59, %v5999_v49  ;;  %v6003_v33 = vor.u32 %v6001_v3, %v5999_v49  ;;  %v6007_v19 = vrot.slane %v6005_v61, 1  ;;  %v17830_v59 = vld [vmem:[%s18083_s16 + $0xe8] ss:$0 sps:$4 sm:$0x11]   ;;  %v22488_v49 = vcombine.low %v18672_v21, %v18675_v42  ;;  %v18950_v3 = vld [vmem:[%s18083_s16 + $0x9c] sm:$0xf] }
 0x104   : > { %v17836_v61 = vld [vmem:[%s18083_s16 + $0x18] sm:$0xff]   ;;  %v6053_v21 = vshll.u32 %v17830_v59, 16  ;;  %v13402_v42 = vcombine.low %v18774_v46, %v18793_v37 }
 0x105   : > { %15447 = vmatmul.mubr.msk.bf16.gmra.mrb[28].mxu1 %vm307_vm2, %v5984_v38  ;;  %v6008_v25 = vsel %vm1176_vm3, %v6003_v33, %v6007_v19  ;;  %v6013_v38 = vshll.u32 %v17815_v27, 16  ;;  %v6011_v62 = vor.u32 %v6009_v50, %v6007_v19  ;;  %v13690_v19 = vcombine.low %v6233_v24, %v18950_v3 }
 0x106   : > { %15450 = vmatprep.mubr.msk.bf16.mxu1 %vm17999_vm1, %v22470_v53 }
 0x107   : > { %15033 = vmatmul.mubr.msk.bf16.gmra.mrb[24].mxu0 %vm307_vm2, %v1802_v39  ;;  %v6015_v56 = vrot.slane %v6013_v38, 1  ;;  %v6315_v46 = vshrl.u32 %v13690_v19, 16  ;;  %v6318_v37 = vshll.u32 %v13690_v19, 16  ;;  %v17843_v19 = vld [vmem:[%s18083_s16 + $0x40] sm:$0xff]  }
 0x108   : > { %15036 = vmatprep.mubr.msk.bf16.mxu0 %vm307_vm2, %v1811_v30 }
 0x109   : > { %v6016_v39 = vsel %vm1176_vm3, %v6011_v62, %v6015_v56 }
 0x10d   : > { %15451 = vmatmul.mubr.msk.bf16.gmra.mrb[32].mxu1 %vm307_vm2, %v5992_v14  ;;  %v6033_v14 = vshrl.u32 %v17821_v8, 16  ;;  %v6320_v8 = vrot.slane %v6318_v37, 4  ;;  %v2489_v37 = vshll.u32 %v17843_v19, 16 }
 0x10e   : > { %15454 = vmatprep.mubr.msk.bf16.mxu1 %vm17999_vm1, %v22470_v53 }
 0x10f   : > { %15037 = vmatmul.mubr.msk.bf16.gmra.mrb[28].mxu0 %vm307_vm2, %v1820_v44  ;;  %v6037_v44 = vshll.u32 %v17824_v6, 16 }
 0x110   : > { %15042 = vmatprep.mubr.msk.bf16.mxu0 %vm307_vm2, %v22478_v57 }
 0x111   : > { %v6039_v11 = vrot.slane %v6037_v44, 1 }
 0x115   : > { %15455 = vmatmul.mubr.msk.bf16.gmra.mrb[36].mxu1 %vm307_vm2, %v6000_v17  ;;  %v6043_v17 = vor.u32 %v6041_v28, %v6039_v11 }
 0x116   : > { %15458 = vmatprep.mubr.msk.bf16.mxu1 %vm17999_vm1, %v22470_v53 }
 0x117   : > { %15043 = vmatmul.mubr.msk.bf16.vlgmr.msra.gmra.mrb[0].mxu0 %vm307_vm2, %v22479_v22 }
 0x118   : > { %15075 = vmatpush3.bf16.msra.mxu0 %v18591_v29  ;;  %15046 = vmatprep.mubr.msk.bf16.mxu0 %vm307_vm2, %v22480_v51  ;;  %v22481_v29 = vcombine.low %v18554_v60, %v18557_v58  ;;  %v22483_v60 = vcombine.low %v18584_v47, %v18587_v0  ;;  %v6019_v58 = vor.u32 %v6017_v34, %v6015_v56  ;;  %v6055_v56 = vrot.slane %v6053_v21, 1 }
 0x119   : > { %17546 = vmatprep.subr.msk.bf16.mxu0 %vm511_vm0, %v13247_v9  ;;  %v22482_v9 = vcombine.low %v18578_v35, %v18581_v15  ;;  %v6023_v35 = vrot.slane %v6021_v7, 1  ;;  %v22484_v15 = vcombine.low %v18612_v63, %v18615_v26  ;;  %v22485_v47 = vcombine.low %v18618_v12, %v18621_v20 }
 0x11a   : > { %v6031_v63 = vrot.slane %v6029_v5, 1  ;;  %v22486_v26 = vcombine.low %v18641_v31, %v18644_v45  ;;  %v13399_v12 = vcombine.low %v18748_v43, %v18751_v41  ;;  %v22487_v20 = vcombine.low %v18647_v4, %v18650_v13  ;;  %v17827_v45 = vld [vmem:[%s18083_s16 + $0xe0] sm:$0xff]   ;;  %v17835_v13 = vld [vmem:[%s18083_s16 + $0x10] sm:$0xff]  }
 0x11b   : > { %v6024_v30 = vsel %vm1176_vm3, %v6019_v58, %v6023_v35  ;;  %v6027_v0 = vor.u32 %v6025_v10, %v6023_v35  ;;  %v6045_v43 = vshll.u32 %v17827_v45, 16  ;;  %v13401_v4 = vcombine.low %v18768_v2, %v18771_v36  ;;  %v18953_v2 = vld [vmem:[%s18083_s16 + $0xa0] sm:$0xf]  ;;  %v18956_v36 = vld [vmem:[%s18083_s16 + $0xa4] sm:$0xf]  ;;  %v17839_v58 = vld [vmem:[%s18083_s16 + $0x28] sm:$0xff]  }
 0x11c   : > { %v6035_v31 = vor.u32 %v6033_v14, %v6031_v63  ;;  %v2444_v22 = vshll.u32 %v17835_v13, 16  ;;  %v6049_v33 = vshrl.u32 %v17827_v45, 16  ;;  %v13691_v27 = vcombine.low %v18953_v2, %v18956_v36  ;;  %v18993_v45 = vld [vmem:[%s18083_s16 + $0xb0] sm:$0xf] }
 0x11d   : > { %15459 = vmatmul.mubr.msk.bf16.gmra.mrb[40].mxu1 %vm307_vm2, %v6008_v25  ;;  %v6032_v16 = vsel %vm1176_vm3, %v6027_v0, %v6031_v63  ;;  %v6047_v57 = vrot.slane %v6045_v43, 1  ;;  %v13403_v25 = vcombine.low %v18796_v52, %v18799_v32  ;;  %v2442_v50 = vshrl.u32 %v17835_v13, 16  ;;  %v17837_v32 = vld [vmem:[%s18083_s16 + $0x20] sm:$0xff]  }
 0x11e   : > { %15462 = vmatprep.mubr.msk.bf16.mxu1 %vm17999_vm1, %v22470_v53  ;;  %v6040_v41 = vsel %vm1176_vm3, %v6035_v31, %v6039_v11  ;;  %v2446_v38 = vrot.slane %v2444_v22, 1  ;;  %v6326_v52 = vshll.u32 %v13691_v27, 16  ;;  %v13404_v35 = vcombine.low %v18802_v18, %v18820_v1  ;;  %v18996_v31 = vld [vmem:[%s18083_s16 + $0xb4] sm:$0xf]  ;;  %v17842_v11 = vld [vmem:[%s18083_s16 + $0x38] sm:$0xff]  }
 0x11f   : > { %15047 = vmatmul.mubr.msk.bf16.gmra.mrb[4].mxu0 %vm307_vm2, %v22481_v29  ;;  %v6048_v51 = vsel %vm1176_vm3, %v6043_v17, %v6047_v57  ;;  %v2449_v29 = vshll.u32 %v17836_v61, 16  ;;  %v6051_v62 = vor.u32 %v6049_v33, %v6047_v57  ;;  %v2457_v0 = vshll.u32 %v17837_v32, 16  ;;  %v13248_v17 = vld [vmem:[%s22368_s2 + $0xe] sm:$0x3] }
 0x120   : > { %15050 = vmatprep.mubr.msk.bf16.mxu0 %vm307_vm2, %v22482_v9  ;;  %v6323_v9 = vshrl.u32 %v13691_v27, 16  ;;  %v2447_v34 = vor.u32 %v2446_v38, %v2442_v50  ;;  %v6328_v5 = vrot.slane %v6326_v52, 4  ;;  %v2465_v6 = vshll.u32 %v17839_v58, 16  ;;  %v19017_v38 = vld [vmem:[%s18083_s16 + $0xb8] sm:$0xf] }
 0x121   : > { %v2451_v7 = vrot.slane %v2449_v29, 1  ;;  %v2469_v57 = vshrl.u32 %v17839_v58, 16  ;;  %v13693_v24 = vcombine.low %v18993_v45, %v18996_v31  ;;  %v2481_v22 = vshll.u32 %v17842_v11, 16  ;;  %v19020_v29 = vld [vmem:[%s18083_s16 + $0xbc] sm:$0xf] }
 0x122   : > { %v6325_v10 = vrot.slane %v6323_v9, 3  ;;  %v19011_v27 = vsel %vm511_vm0, %v13248_v17, 0  ;;  %v13694_v9 = vcombine.low %v19017_v38, %v19020_v29  ;;  %v2493_v58 = vshrl.u32 %v17843_v19, 16 }
 0x123   : > { %v2452_v63 = vsel %vm1176_vm3, %v2447_v34, %v2451_v7  ;;  %v6344_v50 = vshll.u32 %v13693_v24, 16 }
 0x124   : > { %v6329_v44 = vor.u32 %v6328_v5, %v6325_v10  ;;  %v17846_v10 = vld [vmem:[%s18083_s16 + $0x50] sm:$0xff]  }
 0x125   : > { %15463 = vmatmul.mubr.msk.bf16.gmra.mrb[0].mxu1 %vm307_vm2, %v6016_v39  ;;  %v18977_v39 = vld [vmem:[%s18083_s16 + $0xac] sm:$0xf]  ;;  %v6346_v34 = vrot.slane %v6344_v50, 4 }
 0x126   : > { %15466 = vmatprep.mubr.msk.bf16.mxu1 %vm17999_vm1, %v22470_v53 }
 0x127   : > { %15051 = vmatmul.mubr.msk.bf16.gmra.mrb[8].mxu0 %vm307_vm2, %v22483_v60  ;;  %v6056_v60 = vsel %vm1176_vm3, %v6051_v62, %v6055_v56  ;;  %v2483_v56 = vrot.slane %v2481_v22, 1 }
 0x128   : > { %15054 = vmatprep.mubr.msk.bf16.mxu0 %vm307_vm2, %v22484_v15  ;;  %v6317_v15 = vrot.slane %v6315_v46, 3  ;;  %v17845_v46 = vld [vmem:[%s18083_s16 + $0x48] sm:$0xff]  }
 0x12a   : > { %v6321_v14 = vor.u32 %v6320_v8, %v6317_v15  ;;  %v2491_v15 = vrot.slane %v2489_v37, 1  ;;  %v6350_v8 = vshrl.u32 %v13694_v9, 16 }
 0x12c   : > { %v6330_v59 = vsel %vm695_vm4, %v6321_v14, %v6329_v44  ;;  %v2505_v14 = vshll.u32 %v17846_v10, 16 }
 0x12d   : > { %15467 = vmatmul.mubr.msk.bf16.gmra.mrb[4].mxu1 %vm307_vm2, %v6024_v30  ;;  %v13692_v30 = vcombine.low %v18974_v40, %v18977_v39 }
 0x12e   : > { %15470 = vmatprep.mubr.msk.bf16.mxu1 %vm17999_vm1, %v22470_v53 }
 0x12f   : > { %15055 = vmatmul.mubr.msk.bf16.gmra.mrb[12].mxu0 %vm307_vm2, %v22485_v47  ;;  %v2453_v47 = vshrl.u32 %v17836_v61, 16  ;;  %v6332_v18 = vshrl.u32 %v13692_v30, 16  ;;  %v6335_v1 = vshll.u32 %v13692_v30, 16  ;;  %v6353_v30 = vshll.u32 %v13694_v9, 16  ;;  %v17852_v9 = vld [vmem:[%s18083_s16 + $0x70] sm:$0xff]  }
 0x130   : > { %15058 = vmatprep.mubr.msk.bf16.mxu0 %vm307_vm2, %v22486_v26  ;;  %v2461_v26 = vshrl.u32 %v17837_v32, 16 }
 0x131   : > { %v6334_v28 = vrot.slane %v6332_v18, 3  ;;  %v17848_v18 = vld [vmem:[%s18083_s16 + $0x58] sm:$0xff]  }
 0x135   : > { %15471 = vmatmul.mubr.msk.bf16.gmra.mrb[8].mxu1 %vm307_vm2, %v6032_v16  ;;  %v17840_v16 = vld [vmem:[%s18083_s16 + $0x30] sm:$0xff]  }
 0x136   : > { %15474 = vmatprep.mubr.msk.bf16.mxu1 %vm17999_vm1, %v22470_v53  ;;  %v2473_v13 = vshll.u32 %v17840_v16, 16  ;;  %v2477_v61 = vshrl.u32 %v17840_v16, 16  ;;  %v6355_v16 = vrot.slane %v6353_v30, 4  ;;  %v17854_v30 = vld [vmem:[%s18083_s16 + $0x78] sm:$0xff]  }
 0x137   : > { %15059 = vmatmul.mubr.msk.bf16.gmra.mrb[16].mxu0 %vm307_vm2, %v22487_v20  ;;  %v2459_v20 = vrot.slane %v2457_v0, 1  ;;  %v2495_v0 = vor.u32 %v2493_v58, %v2491_v15  ;;  %v19075_v58 = vld [vmem:[%s18083_s16 + $0xd0] sm:$0xf] }
 0x138   : > { %15062 = vmatprep.mubr.msk.bf16.mxu0 %vm307_vm2, %v13399_v12  ;;  %v2455_v12 = vor.u32 %v2453_v47, %v2451_v7  ;;  %v2485_v7 = vshrl.u32 %v17842_v11, 16 }
 0x139   : > { %v2463_v43 = vor.u32 %v2461_v26, %v2459_v20  ;;  %v19039_v26 = vld [vmem:[%s18083_s16 + $0xc0] sm:$0xf] }
 0x13a   : > { %v2487_v47 = vor.u32 %v2485_v7, %v2483_v56 }
 0x13d   : > { %15475 = vmatmul.mubr.msk.bf16.gmra.mrb[12].mxu1 %vm307_vm2, %v6040_v41  ;;  %v2467_v41 = vrot.slane %v2465_v6, 1  ;;  %v19042_v6 = vld [vmem:[%s18083_s16 + $0xc4] sm:$0xf] }
 0x13e   : > { %15478 = vmatprep.mubr.msk.bf16.mxu1 %vm17999_vm1, %v22470_v53  ;;  %v13695_v11 = vcombine.low %v19039_v26, %v19042_v6 }
 0x13f   : > { %15063 = vmatmul.mubr.msk.bf16.gmra.mrb[20].mxu0 %vm307_vm2, %v22488_v49  ;;  %v2460_v49 = vsel %vm1176_vm3, %v2455_v12, %v2459_v20  ;;  %v2468_v33 = vsel %vm1176_vm3, %v2463_v43, %v2467_v41  ;;  %v2492_v12 = vsel %vm1176_vm3, %v2487_v47, %v2491_v15  ;;  %v2501_v20 = vshrl.u32 %v17845_v46, 16 }
 0x140   : > { %15066 = vmatprep.mubr.msk.bf16.mxu0 %vm307_vm2, %v13401_v4  ;;  %v6337_v4 = vrot.slane %v6335_v1, 4  ;;  %v6352_v1 = vrot.slane %v6350_v8, 3 }
 0x142   : > { %v6338_v21 = vor.u32 %v6337_v4, %v6334_v28  ;;  %v2513_v28 = vshll.u32 %v17848_v18, 16  ;;  %v6356_v4 = vor.u32 %v6355_v16, %v6352_v1 }
 0x145   : > { %15479 = vmatmul.mubr.msk.bf16.gmra.mrb[16].mxu1 %vm307_vm2, %v6048_v51  ;;  %v2471_v51 = vor.u32 %v2469_v57, %v2467_v41  ;;  %v2509_v41 = vshrl.u32 %v17846_v10, 16  ;;  %v6359_v57 = vshrl.u32 %v13695_v11, 16  ;;  %v2537_v10 = vshll.u32 %v17852_v9, 16 }
 0x146   : > { %15482 = vmatprep.mubr.msk.bf16.mxu1 %vm17999_vm1, %v22470_v53 }
 0x147   : > { %15067 = vmatmul.mubr.msk.bf16.gmra.mrb[24].mxu0 %vm307_vm2, %v13402_v42  ;;  %v2475_v42 = vrot.slane %v2473_v13, 1  ;;  %v2507_v13 = vrot.slane %v2505_v14, 1  ;;  %v6361_v50 = vrot.slane %v6359_v57, 3  ;;  %v2541_v14 = vshrl.u32 %v17852_v9, 16 }
 0x148   : > { %15070 = vmatprep.mubr.msk.bf16.mxu0 %vm307_vm2, %v13403_v25  ;;  %v6341_v25 = vshrl.u32 %v13693_v24, 16  ;;  %v6362_v24 = vshll.u32 %v13695_v11, 16 }
 0x149   : > { %v2479_v62 = vor.u32 %v2477_v61, %v2475_v42  ;;  %v2476_v52 = vsel %vm1176_vm3, %v2471_v51, %v2475_v42  ;;  %v19060_v61 = vld [vmem:[%s18083_s16 + $0xcc] sm:$0xf]  ;;  %v2511_v22 = vor.u32 %v2509_v41, %v2507_v13 }
 0x14a   : > { %v6343_v32 = vrot.slane %v6341_v25, 3 }
 0x14c   : > { %v6347_v5 = vor.u32 %v6346_v34, %v6343_v32 }
 0x14d   : > { %15483 = vmatmul.mubr.msk.bf16.gmra.mrb[20].mxu1 %vm307_vm2, %v6056_v60  ;;  %v2484_v60 = vsel %vm1176_vm3, %v2479_v62, %v2483_v56  ;;  %v6364_v62 = vrot.slane %v6362_v24, 4  ;;  %v2517_v56 = vshrl.u32 %v17848_v18, 16 }
 0x14e   : > { %15488 = vmatprep.mubr.msk.bf16.mxu1 %vm17999_vm1, %v22470_v53  ;;  %v6357_v42 = vsel %vm695_vm4, %v6347_v5, %v6356_v4 }
 0x14f   : > { %15071 = vmatmul.mubr.msk.bf16.gmra.mrb[28].mxu0 %vm307_vm2, %v13404_v35  ;;  %v2497_v35 = vshll.u32 %v17845_v46, 16  ;;  %v6365_v7 = vor.u32 %v6364_v62, %v6361_v50  ;;  %v2549_v62 = vshrl.u32 %v17854_v30, 16 }
 0x150   : > { %15076 = vmatprep.mubr.msk.bf16.mxu0 %vm307_vm2, %v2452_v63 }
 0x151   : > { %v2499_v63 = vrot.slane %v2497_v35, 1  ;;  %v19078_v35 = vld [vmem:[%s18083_s16 + $0xd4] sm:$0xf] }
 0x153   : > { %v2500_v43 = vsel %vm1176_vm3, %v2495_v0, %v2499_v63  ;;  %v13697_v0 = vcombine.low %v19075_v58, %v19078_v35 }
 0x155   : > { %15489 = vmatmul.mubr.msk.bf16.vlgmr.msra.gmra.mrb[24].mxu1 %vm307_vm2, %v6330_v59  ;;  %v17849_v59 = vld [vmem:[%s18083_s16 + $0x60] sm:$0xff]   ;;  %v6380_v41 = vshll.u32 %v13697_v0, 16 }
 0x156   : > { %15492 = vmatprep.mubr.msk.bf16.mxu1 %vm17999_vm1, %v22470_v53  ;;  %15533 = vmatpush3.bf16.msra.mxu1 %v19011_v27  ;;  %v2521_v19 = vshll.u32 %v17849_v59, 16 }
 0x157   : > { %15077 = vmatmul.mubr.msk.bf16.vlgmr.msra.gmra.mrb[0].mxu0 %vm307_vm2, %v2460_v49  ;;  %15578 = vmatprep.subr.bf16.mxu1 %v22470_v53  ;;  %v2503_v49 = vor.u32 %v2501_v20, %v2499_v63  ;;  %v6366_v63 = vsel %vm695_vm4, %v6356_v4, %v6365_v7  ;;  %v2539_v20 = vrot.slane %v2537_v10, 1  ;;  %v19093_v4 = vld [vmem:[%s18083_s16 + $0xdc] sm:$0xf]  ;;  %v19121_v10 = vld [vmem:[%s18083_s16 + $0xe0] sm:$0xf] }
 0x158   : > { %15109 = vmatpush3.bf16.msra.mxu0 %v18831_v23  ;;  %15080 = vmatprep.mubr.msk.bf16.mxu0 %vm307_vm2, %v2468_v33  ;;  %v6339_v23 = vsel %vm695_vm4, %v6329_v44, %v6338_v21  ;;  %v6348_v44 = vsel %vm695_vm4, %v6338_v21, %v6347_v5  ;;  %v2515_v33 = vrot.slane %v2513_v28, 1  ;;  %v17851_v21 = vld [vmem:[%s18083_s16 + $0x68] sm:$0xff]   ;;  %v19090_v28 = vld [vmem:[%s18083_s16 + $0xd8] sm:$0xf] }
 0x159   : > { %17547 = vmatprep.subr.msk.bf16.mxu0 %vm511_vm0, %v13248_v17  ;;  %v19057_v17 = vld [vmem:[%s18083_s16 + $0xc8] sm:$0xf]  ;;  %v2508_v25 = vsel %vm1176_vm3, %v2503_v49, %v2507_v13  ;;  %v2529_v37 = vshll.u32 %v17851_v21, 16  ;;  %v2533_v1 = vshrl.u32 %v17851_v21, 16  ;;  %v2543_v49 = vor.u32 %v2541_v14, %v2539_v20  ;;  %v19103_v21 = vld [vmem:[%s18083_s16 + $0x1c] sm:$0xf] }
 0x15a   : > { %v13696_v51 = vcombine.low %v19057_v17, %v19060_v61  ;;  %v2516_v46 = vsel %vm1176_vm3, %v2511_v22, %v2515_v33  ;;  %v13698_v22 = vcombine.low %v19090_v28, %v19093_v4 }
 0x15b   : > { %v2531_v8 = vrot.slane %v2529_v37, 1 }
 0x15c   : > { %v6368_v32 = vshrl.u32 %v13696_v51, 16  ;;  %v6371_v34 = vshll.u32 %v13696_v51, 16 }
 0x15d   : > { %15493 = vmatmul.mubr.msk.bf16.gmra.mrb[28].mxu1 %vm307_vm2, %v6339_v23  ;;  %v2525_v23 = vshrl.u32 %v17849_v59, 16  ;;  %v2535_v13 = vor.u32 %v2533_v1, %v2531_v8  ;;  %v17857_v59 = vld [vmem:[%s18083_s16 + $0x88] sm:$0xff]  }
 0x15e   : > { %15496 = vmatprep.mubr.msk.bf16.mxu1 %vm17999_vm1, %v22470_v53  ;;  %v6370_v5 = vrot.slane %v6368_v32, 3  ;;  %v6373_v47 = vrot.slane %v6371_v34, 4  ;;  %v6386_v32 = vshrl.u32 %v13698_v22, 16 }
 0x15f   : > { %15081 = vmatmul.mubr.msk.bf16.gmra.mrb[4].mxu0 %vm307_vm2, %v2476_v52  ;;  %v2523_v52 = vrot.slane %v2521_v19, 1  ;;  %v2540_v50 = vsel %vm1176_vm3, %v2535_v13, %v2539_v20 }
 0x160   : > { %15084 = vmatprep.mubr.msk.bf16.mxu0 %vm307_vm2, %v2484_v60  ;;  %v2519_v60 = vor.u32 %v2517_v56, %v2515_v33  ;;  %v6374_v11 = vor.u32 %v6373_v47, %v6370_v5  ;;  %v2817_v33 = vld [vmem:[%s18083_s16 + $0x18] sm:$0x8]  ;;  %v19124_v5 = vld [vmem:[%s18083_s16 + $0xe4] sm:$0xf]  ;;  %v19127_v47 = vld [vmem:[%s18083_s16 + $0x2c] sm:$0xf] }
 0x161   : > { %v2527_v15 = vor.u32 %v2525_v23, %v2523_v52  ;;  %v13454_v37 = vcombine.low %v2817_v33, %v19103_v21  ;;  %v13699_v20 = vcombine.low %v19121_v10, %v19124_v5 }
 0x162   : > { %v2524_v18 = vsel %vm1176_vm3, %v2519_v60, %v2523_v52  ;;  %v6375_v19 = vsel %vm695_vm4, %v6365_v7, %v6374_v11  ;;  %v6389_v7 = vshll.u32 %v13698_v22, 16  ;;  %v17858_v60 = vld [vmem:[%s18083_s16 + $0x90] ss:$0 sps:$4 sm:$0x11]  }
 0x163   : > { %v2532_v16 = vsel %vm1176_vm3, %v2527_v15, %v2531_v8 }
 0x165   : > { %15497 = vmatmul.mubr.msk.bf16.gmra.mrb[32].mxu1 %vm307_vm2, %v6348_v44  ;;  %v2545_v44 = vshll.u32 %v17854_v30, 16 }
 0x166   : > { %15500 = vmatprep.mubr.msk.bf16.mxu1 %vm17999_vm1, %v22470_v53 }
 0x167   : > { %15085 = vmatmul.mubr.msk.bf16.gmra.mrb[8].mxu0 %vm307_vm2, %v2492_v12  ;;  %v17855_v12 = vld [vmem:[%s18083_s16 + $0x80] sm:$0xff]   ;;  %v2547_v57 = vrot.slane %v2545_v44, 1  ;;  %v6391_v44 = vrot.slane %v6389_v7, 4  ;;  %v19156_v7 = vld [vmem:[%s18083_s16 + $0x38] sm:$0xf] }
 0x168   : > { %15088 = vmatprep.mubr.msk.bf16.mxu0 %vm307_vm2, %v2500_v43  ;;  %v6377_v43 = vshrl.u32 %v13697_v0, 16  ;;  %v2553_v24 = vshll.u32 %v17855_v12, 16  ;;  %v2557_v56 = vshrl.u32 %v17855_v12, 16  ;;  %v2934_v0 = vshrl.u32 %v13454_v37, 16 }
 0x169   : > { %v2548_v23 = vsel %vm1176_vm3, %v2543_v49, %v2547_v57  ;;  %v2551_v15 = vor.u32 %v2549_v62, %v2547_v57  ;;  %v2569_v12 = vshll.u32 %v17858_v60, 16  ;;  %v2565_v57 = vshrl.u32 %v17857_v59, 16  ;;  %v19159_v60 = vld [vmem:[%s18083_s16 + $0x3c] sm:$0xf] }
 0x16a   : > { %v6379_v51 = vrot.slane %v6377_v43, 3  ;;  %v2555_v52 = vrot.slane %v2553_v24, 1  ;;  %v19133_v43 = vld [vmem:[%s18083_s16 + $0x30] sm:$0xf]  ;;  %v13456_v24 = vcombine.low %v18866_v48, %v19127_v47  ;;  %v2936_v22 = vrot.slane %v2934_v0, 3 }
 0x16b   : > { %v6398_v62 = vshll.u32 %v13699_v20, 16  ;;  %v19162_v0 = vld [vmem:[%s18083_s16 + $0x40] sm:$0xf] }
 0x16c   : > { %v2559_v8 = vor.u32 %v2557_v56, %v2555_v52  ;;  %v2556_v13 = vsel %vm1176_vm3, %v2551_v15, %v2555_v52 }
 0x16d   : > { %15501 = vmatmul.mubr.msk.bf16.gmra.mrb[36].mxu1 %vm307_vm2, %v6357_v42  ;;  %v19106_v42 = vld [vmem:[%s18083_s16 + $0x20] sm:$0xf] }
 0x16e   : > { %15504 = vmatprep.mubr.msk.bf16.mxu1 %vm17999_vm1, %v22470_v53  ;;  %v13455_v9 = vcombine.low %v19106_v42, %v18863_v54 }
 0x16f   : > { %15089 = vmatmul.mubr.msk.bf16.gmra.mrb[12].mxu0 %vm307_vm2, %v2508_v25  ;;  %v6382_v25 = vrot.slane %v6380_v41, 4  ;;  %v19136_v41 = vld [vmem:[%s18083_s16 + $0x34] sm:$0xf] }
 0x170   : > { %15092 = vmatprep.mubr.msk.bf16.mxu0 %vm307_vm2, %v2516_v46  ;;  %v2561_v46 = vshll.u32 %v17857_v59, 16  ;;  %v2945_v1 = vshll.u32 %v13455_v9, 16  ;;  %v2571_v59 = vrot.slane %v2569_v12, 1 }
 0x171   : > { %v6383_v34 = vor.u32 %v6382_v25, %v6379_v51  ;;  %v13457_v51 = vcombine.low %v19133_v43, %v19136_v41 }
 0x172   : > { %v2563_v30 = vrot.slane %v2561_v46, 1  ;;  %v2951_v46 = vshrl.u32 %v13456_v24, 16 }
 0x173   : > { %v6384_v14 = vsel %vm695_vm4, %v6374_v11, %v6383_v34  ;;  %v2960_v15 = vshrl.u32 %v13457_v51, 16 }
 0x174   : > { %v2564_v49 = vsel %vm1176_vm3, %v2559_v8, %v2563_v30  ;;  %v2567_v56 = vor.u32 %v2565_v57, %v2563_v30  ;;  %v2963_v8 = vshll.u32 %v13457_v51, 16 }
 0x175   : > { %15505 = vmatmul.mubr.msk.bf16.gmra.mrb[40].mxu1 %vm307_vm2, %v6366_v63  ;;  %v2937_v63 = vshll.u32 %v13454_v37, 16  ;;  %v19150_v37 = vld [vmem:[%s18083_s16 + $0xe8] sm:$0xf] }
 0x176   : > { %15508 = vmatprep.mubr.msk.bf16.mxu1 %vm17999_vm1, %v22470_v53  ;;  %v2965_v57 = vrot.slane %v2963_v8, 4 }
 0x177   : > { %15093 = vmatmul.mubr.msk.bf16.gmra.mrb[16].mxu0 %vm307_vm2, %v2524_v18  ;;  %v2942_v18 = vshrl.u32 %v13455_v9, 16  ;;  %v2939_v11 = vrot.slane %v2937_v63, 4  ;;  %v19153_v9 = vld [vmem:[%s18083_s16 + $0xec] sm:$0xf]  ;;  %v19165_v63 = vld [vmem:[%s18083_s16 + $0x44] sm:$0xf] }
 0x178   : > { %15096 = vmatprep.mubr.msk.bf16.mxu0 %vm307_vm2, %v2532_v16  ;;  %v6388_v16 = vrot.slane %v6386_v32, 3  ;;  %22489 = vst [vmem:[#allocation7_spill] sm:$0xff] %v19153_v9 }
 0x179   : > { %v2944_v33 = vrot.slane %v2942_v18, 3  ;;  %v2940_v52 = vor.u32 %v2939_v11, %v2936_v22 }
 0x17a   : > { %v6392_v25 = vor.u32 %v6391_v44, %v6388_v16  ;;  %v13700_v16 = vcombine.low %v19150_v37, %v19153_v9  ;;  %v2953_v44 = vrot.slane %v2951_v46, 3  ;;  %v19188_v46 = vld [vmem:[%s18083_s16 + $0x4c] sm:$0xf] }
 0x17b   : > { %v19246_v9 = vld [vmem:[%s18083_s16 + $0x6c] sm:$0xf] }
 0x17c   : > { %v6393_v30 = vsel %vm695_vm4, %v6383_v34, %v6392_v25  ;;  %v2962_v34 = vrot.slane %v2960_v15, 3  ;;  %v6404_v22 = vshrl.u32 %v13700_v16, 16  ;;  %v6407_v11 = vshll.u32 %v13700_v16, 16  ;;  %v19194_v15 = vld [vmem:[%s18083_s16 + $0x54] sm:$0xf] }
 0x17d   : > { %15509 = vmatmul.mubr.msk.bf16.gmra.mrb[0].mxu1 %vm307_vm2, %v6375_v19  ;;  %v2947_v19 = vrot.slane %v2945_v1, 4  ;;  %v6400_v1 = vrot.slane %v6398_v62, 4 }
 0x17e   : > { %15512 = vmatprep.mubr.msk.bf16.mxu1 %vm17999_vm1, %v22470_v53 }
 0x17f   : > { %15097 = vmatmul.mubr.msk.bf16.gmra.mrb[20].mxu0 %vm307_vm2, %v2540_v50  ;;  %v6395_v50 = vshrl.u32 %v13699_v20, 16  ;;  %v2948_v32 = vor.u32 %v2947_v19, %v2944_v33  ;;  %v13458_v20 = vcombine.low %v19156_v7, %v19159_v60 }
 0x180   : > { %15100 = vmatprep.mubr.msk.bf16.mxu0 %vm307_vm2, %v2548_v23  ;;  %v2954_v23 = vshll.u32 %v13456_v24, 16 }
 0x181   : > { %v6397_v18 = vrot.slane %v6395_v50, 3  ;;  %v2969_v19 = vshrl.u32 %v13458_v20, 16  ;;  %v2972_v51 = vshll.u32 %v13458_v20, 16 }
 0x182   : > { %v2956_v12 = vrot.slane %v2954_v23, 4  ;;  %v2966_v23 = vor.u32 %v2965_v57, %v2962_v34 }
 0x183   : > { %v6401_v24 = vor.u32 %v6400_v1, %v6397_v18  ;;  %v6409_v18 = vrot.slane %v6407_v11, 4 }
 0x184   : > { %v2957_v33 = vor.u32 %v2956_v12, %v2953_v44  ;;  %v2974_v44 = vrot.slane %v2972_v51, 4 }
 0x185   : > { %15513 = vmatmul.mubr.msk.bf16.gmra.mrb[4].mxu1 %vm307_vm2, %v6384_v14  ;;  %v2572_v14 = vsel %vm1176_vm3, %v2567_v56, %v2571_v59  ;;  %v19182_v59 = vld [vmem:[%s18083_s16 + $0xf0] sm:$0xf]  ;;  %v19185_v56 = vld [vmem:[%s18083_s16 + $0x48] sm:$0xf]  ;;  %v6402_v8 = vsel %vm695_vm4, %v6392_v25, %v6401_v24 }
 0x186   : > { %15516 = vmatprep.mubr.msk.bf16.mxu1 %vm17999_vm1, %v22470_v53  ;;  %22490 = vst [vmem:[#allocation8_spill] sm:$0xff] %v19182_v59  ;;  %v13701_v1 = vcombine.low %v19182_v59, %v19182_v59  ;;  %v2958_v16 = vsel %vm695_vm4, %v2948_v32, %v2957_v33  ;;  %v13460_v12 = vcombine.low %v19185_v56, %v19188_v46  ;;  %v19249_v59 = vld [vmem:[%s18083_s16 + $0x70] sm:$0xf] }
 0x187   : > { %15101 = vmatmul.mubr.msk.bf16.gmra.mrb[24].mxu0 %vm307_vm2, %v2556_v13  ;;  %v2949_v13 = vsel %vm695_vm4, %v2940_v52, %v2948_v32  ;;  %v19191_v52 = vld [vmem:[%s18083_s16 + $0x50] sm:$0xf]  ;;  %v2967_v34 = vsel %vm695_vm4, %v2957_v33, %v2966_v23 }
 0x188   : > { %15104 = vmatprep.mubr.msk.bf16.mxu0 %vm307_vm2, %v2564_v49  ;;  %v13459_v49 = vcombine.low %v19162_v0, %v19165_v63  ;;  %v6413_v32 = vshrl.u32 %v13701_v1, 16  ;;  %v6416_v57 = vshll.u32 %v13701_v1, 16  ;;  %v2987_v11 = vshrl.u32 %v13460_v12, 16  ;;  %v19213_v33 = vld [vmem:[%s22368_s2 + $0x10] sm:$0x3] }
 0x18a   : > { %v2978_v50 = vshrl.u32 %v13459_v49, 16  ;;  %v2981_v62 = vshll.u32 %v13459_v49, 16  ;;  %v13461_v49 = vcombine.low %v19191_v52, %v19194_v15 }
 0x18c   : > { %v2980_v20 = vrot.slane %v2978_v50, 3  ;;  %v2996_v50 = vshrl.u32 %v13461_v49, 16 }
 0x18d   : > { %15517 = vmatmul.mubr.msk.bf16.gmra.mrb[8].mxu1 %vm307_vm2, %v6393_v30  ;;  %v6406_v30 = vrot.slane %v6404_v22, 3 }
 0x18e   : > { %15520 = vmatprep.mubr.msk.bf16.mxu1 %vm17999_vm1, %v22470_v53 }
 0x18f   : > { %15105 = vmatmul.mubr.msk.bf16.gmra.mrb[28].mxu0 %vm307_vm2, %v2572_v14  ;;  %v2971_v14 = vrot.slane %v2969_v19, 3  ;;  %v6410_v25 = vor.u32 %v6409_v18, %v6406_v30  ;;  %v2990_v19 = vshll.u32 %v13460_v12, 16  ;;  %v19220_v30 = vld [vmem:[%s18083_s16 + $0x5c] sm:$0xf]  ;;  %v19228_v18 = vld [vmem:[%s18083_s16 + $0x64] sm:$0xf] }
 0x190   : > { %15110 = vmatprep.mubr.msk.bf16.mxu0 %vm307_vm2, %v2949_v13  ;;  %v2983_v13 = vrot.slane %v2981_v62, 4  ;;  %v2999_v62 = vshll.u32 %v13461_v49, 16  ;;  %v2989_v12 = vrot.slane %v2987_v11, 3 }
 0x191   : > { %v2975_v22 = vor.u32 %v2974_v44, %v2971_v14  ;;  %v6411_v1 = vsel %vm695_vm4, %v6401_v24, %v6410_v25  ;;  %v6418_v14 = vrot.slane %v6416_v57, 4 }
 0x192   : > { %v2984_v51 = vor.u32 %v2983_v13, %v2980_v20  ;;  %v2992_v20 = vrot.slane %v2990_v19, 4  ;;  %v3001_v55 = vrot.slane %v2999_v62, 4  ;;  %v19243_v62 = vld [vmem:[%s18083_s16 + $0x68] sm:$0xf] }
 0x193   : > { %v2976_v44 = vsel %vm695_vm4, %v2966_v23, %v2975_v22 }
 0x194   : > { %v2985_v49 = vsel %vm695_vm4, %v2975_v22, %v2984_v51 }
 0x195   : > { %15521 = vmatmul.mubr.msk.bf16.gmra.mrb[12].mxu1 %vm307_vm2, %v6402_v8  ;;  %v19217_v8 = vld [vmem:[%s18083_s16 + $0x58] sm:$0xf] }
 0x196   : > { %15524 = vmatprep.mubr.msk.bf16.mxu1 %vm17999_vm1, %v22470_v53  ;;  %v13462_v13 = vcombine.low %v19217_v8, %v19220_v30 }
 0x197   : > { %15111 = vmatmul.mubr.msk.bf16.vlgmr.msra.gmra.mrb[0].mxu0 %vm307_vm2, %v2958_v16  ;;  %v6415_v16 = vrot.slane %v6413_v32, 3  ;;  %v2993_v32 = vor.u32 %v2992_v20, %v2989_v12 }
 0x198   : > { %15143 = vmatpush3.bf16.msra.mxu0 %v19011_v27  ;;  %15114 = vmatprep.mubr.msk.bf16.mxu0 %vm307_vm2, %v2967_v34  ;;  %v19225_v27 = vld [vmem:[%s18083_s16 + $0x60] sm:$0xf]  ;;  %v2998_v34 = vrot.slane %v2996_v50, 3  ;;  %v3005_v57 = vshrl.u32 %v13462_v13, 16  ;;  %v3008_v22 = vshll.u32 %v13462_v13, 16 }
 0x199   : > { %17548 = vmatprep.subr.msk.bf16.mxu0 %vm511_vm0, %v19213_v33  ;;  %v13463_v24 = vcombine.low %v19225_v27, %v19228_v18  ;;  %v6419_v23 = vor.u32 %v6418_v14, %v6415_v16  ;;  %v2994_v14 = vsel %vm695_vm4, %v2984_v51, %v2993_v32 }
 0x19a   : > { %v3002_v11 = vor.u32 %v3001_v55, %v2998_v34  ;;  %v13464_v55 = vcombine.low %v19243_v62, %v19246_v9 }
 0x19b   : > { %v3014_v19 = vshrl.u32 %v13463_v24, 16  ;;  %v3017_v50 = vshll.u32 %v13463_v24, 16  ;;  %v6420_v16 = vsel %vm695_vm4, %v6410_v25, %v6419_v23 }
 0x19c   : > { %v3003_v12 = vsel %vm695_vm4, %v2993_v32, %v3002_v11  ;;  %v3023_v51 = vshrl.u32 %v13464_v55, 16  ;;  %v3026_v24 = vshll.u32 %v13464_v55, 16 }
 0x19d   : > { %15525 = vmatmul.mubr.msk.bf16.gmra.mrb[16].mxu1 %vm307_vm2, %v6411_v1  ;;  %v19252_v1 = vld [vmem:[%s18083_s16 + $0x74] sm:$0xf]  ;;  %v3016_v20 = vrot.slane %v3014_v19, 3  ;;  %v3019_v13 = vrot.slane %v3017_v50, 4  ;;  %v19270_v19 = vld [vmem:[%s18083_s16 + $0x7c] sm:$0xf] }
 0x19e   : > { %15528 = vmatprep.mubr.msk.bf16.mxu1 %vm17999_vm1, %v22470_v53  ;;  %22491 = vst [vmem:[#allocation9_spill] sm:$0xff] %v19252_v1  ;;  %v13465_v34 = vcombine.low %v19249_v59, %v19252_v1  ;;  %22492 = vst [vmem:[#allocation10_spill] sm:$0xff] %v19270_v19  ;;  %v19273_v50 = vld [vmem:[%s18083_s16 + $0x80] sm:$0xf] }
 0x19f   : > { %15115 = vmatmul.mubr.msk.bf16.gmra.mrb[4].mxu0 %vm307_vm2, %v2976_v44  ;;  %v3007_v44 = vrot.slane %v3005_v57, 3  ;;  %v3020_v23 = vor.u32 %v3019_v13, %v3016_v20 }
 0x1a0   : > { %15118 = vmatprep.mubr.msk.bf16.mxu0 %vm307_vm2, %v2985_v49  ;;  %v3010_v49 = vrot.slane %v3008_v22, 4  ;;  %v3032_v32 = vshrl.u32 %v13465_v34, 16  ;;  %v3035_v57 = vshll.u32 %v13465_v34, 16  ;;  %v19267_v22 = vld [vmem:[%s18083_s16 + $0x78] sm:$0xf] }
 0x1a2   : > { %v3011_v25 = vor.u32 %v3010_v49, %v3007_v44  ;;  %v3028_v44 = vrot.slane %v3026_v24, 4  ;;  %v13466_v49 = vcombine.low %v19267_v22, %v19270_v19  ;;  %v3034_v20 = vrot.slane %v3032_v32, 3 }
 0x1a3   : > { %v3037_v13 = vrot.slane %v3035_v57, 4  ;;  %v19296_v57 = vld [vmem:[%s18083_s16 + $0x88] sm:$0xf] }
 0x1a4   : > { %v3012_v1 = vsel %vm695_vm4, %v3002_v11, %v3011_v25  ;;  %v3021_v55 = vsel %vm695_vm4, %v3011_v25, %v3020_v23  ;;  %v3041_v11 = vshrl.u32 %v13466_v49, 16  ;;  %v3044_v25 = vshll.u32 %v13466_v49, 16 }
 0x1a5   : > { %15529 = vmatmul.mubr.msk.bf16.gmra.mrb[20].mxu1 %vm307_vm2, %v6420_v16  ;;  %v19276_v16 = vld [vmem:[%s18083_s16 + $0x84] sm:$0xf] }
 0x1a6   : > { %15534 = vmatprep.mubr.msk.bf16.mxu1 %vm17999_vm1, %v22470_v53  ;;  %22493 = vst [vmem:[#allocation11_spill] sm:$0xff] %v19276_v16  ;;  %v13467_v34 = vcombine.low %v19273_v50, %v19276_v16  ;;  %v19299_v16 = vld [vmem:[%s18083_s16 + $0x8c] sm:$0xf]  ;;  %v3046_v49 = vrot.slane %v3044_v25, 4 }
 0x1a7   : > { %15119 = vmatmul.mubr.msk.bf16.gmra.mrb[8].mxu0 %vm307_vm2, %v2994_v14  ;;  %v13713_v14 = vcombine.low %v18950_v3, %v18953_v2  ;;  %v19288_v3 = vsel %vm511_vm0, %v19213_v33, 0  ;;  %22494 = vst [vmem:[#allocation12_spill] sm:$0xff] %v19299_v16  ;;  %v19303_v33 = vld [vmem:[%s18083_s16 + $0x90] sm:$0xf] }
 0x1a8   : > { %15122 = vmatprep.mubr.msk.bf16.mxu0 %vm307_vm2, %v3003_v12  ;;  %v3025_v12 = vrot.slane %v3023_v51, 3  ;;  %v3038_v51 = vor.u32 %v3037_v13, %v3034_v20  ;;  %v3050_v24 = vshrl.u32 %v13467_v34, 16  ;;  %v3053_v32 = vshll.u32 %v13467_v34, 16 }
 0x1aa   : > { %v3029_v2 = vor.u32 %v3028_v44, %v3025_v12  ;;  %v3043_v44 = vrot.slane %v3041_v11, 3  ;;  %v3052_v13 = vrot.slane %v3050_v24, 3  ;;  %v3055_v34 = vrot.slane %v3053_v32, 4  ;;  %v19323_v24 = vld [vmem:[%s18083_s16 + $0x98] sm:$0xf] }
 0x1ab   : > { %v13715_v32 = vcombine.low %v18977_v39, %v18993_v45 }
 0x1ac   : > { %v3030_v12 = vsel %vm695_vm4, %v3020_v23, %v3029_v2  ;;  %v3039_v20 = vsel %vm695_vm4, %v3029_v2, %v3038_v51  ;;  %v3056_v11 = vor.u32 %v3055_v34, %v3052_v13 }
 0x1ad   : > { %15535 = vmatmul.mubr.msk.bf16.vlgmr.msra.gmra.mrb[24].mxu1 %vm307_vm2, %v13713_v14  ;;  %v13714_v14 = vcombine.low %v18956_v36, %v18974_v40  ;;  %v3047_v36 = vor.u32 %v3046_v49, %v3043_v44 }
 0x1ae   : > { %15538 = vmatprep.mubr.msk.bf16.mxu1 %vm17999_vm1, %v22470_v53  ;;  %15579 = vmatpush3.bf16.msra.mxu1 %v19288_v3 }
 0x1af   : > { %15123 = vmatmul.mubr.msk.bf16.gmra.mrb[12].mxu0 %vm307_vm2, %v3012_v1  ;;  %v19306_v1 = vld [vmem:[%s18083_s16 + $0x94] sm:$0xf]  ;;  %15930 = vmatprep.subr.bf16.mxu1 %v22470_v53 }
 0x1b0   : > { %15126 = vmatprep.mubr.msk.bf16.mxu0 %vm307_vm2, %v3021_v55  ;;  %22495 = vst [vmem:[#allocation13_spill] sm:$0xff] %v19306_v1  ;;  %v13468_v55 = vcombine.low %v19296_v57, %v19299_v16  ;;  %v13469_v19 = vcombine.low %v19303_v33, %v19306_v1  ;;  %v13470_v16 = vcombine.low %v19323_v24, %v19323_v24 }
 0x1b2   : > { %v3059_v40 = vshrl.u32 %v13468_v55, 16  ;;  %v3062_v23 = vshll.u32 %v13468_v55, 16  ;;  %v3068_v25 = vshrl.u32 %v13469_v19, 16  ;;  %v3071_v2 = vshll.u32 %v13469_v19, 16 }
 0x1b3   : > { %v3077_v45 = vshrl.u32 %v13470_v16, 16  ;;  %v3080_v19 = vshll.u32 %v13470_v16, 16  ;;  %v13716_v55 = vcombine.low %v18996_v31, %v19017_v38  ;;  %v13487_v38 = vcombine.low %v19103_v21, %v19106_v42 }
 0x1b4   : > { %v3061_v1 = vrot.slane %v3059_v40, 3  ;;  %v3070_v44 = vrot.slane %v3068_v25, 3  ;;  %v3073_v49 = vrot.slane %v3071_v2, 4  ;;  %v22496_v25 = vcombine.low %v18863_v54, %v18866_v48  ;;  %v14345_v54 = vld [vmem:[%s22367_s1 + $0x88] sm:$0xff]   ;;  %v14343_v48 = vld [vmem:[%s22367_s1 + $0x78] sm:$0xff]  }
 0x1b5   : > { %15539 = vmatmul.mubr.msk.bf16.gmra.mrb[28].mxu1 %vm307_vm2, %v13714_v14  ;;  %v3048_v14 = vsel %vm695_vm4, %v3038_v51, %v3047_v36  ;;  %v3079_v34 = vrot.slane %v3077_v45, 3  ;;  %v14183_v2 = vunpack.c.l.bf16 %v14345_v54 }
 0x1b6   : > { %15542 = vmatprep.mubr.msk.bf16.mxu1 %vm17999_vm1, %v22470_v53  ;;  %v3074_v51 = vor.u32 %v3073_v49, %v3070_v44  ;;  %v13719_v44 = vcombine.low %v19060_v61, %v19075_v58  ;;  %v13490_v49 = vcombine.low %v19136_v41, %v19156_v7  ;;  %v14346_v61 = vld [vmem:[%s22367_s1 + $0x90] sm:$0xff]  }
 0x1b7   : > { %15127 = vmatmul.mubr.msk.bf16.gmra.mrb[16].mxu0 %vm307_vm2, %v3030_v12  ;;  %v3064_v12 = vrot.slane %v3062_v23, 4  ;;  %v13718_v23 = vcombine.low %v19042_v6, %v19057_v17  ;;  %v14187_v41 = vunpack.c.l.bf16 %v14346_v61  ;;  %v14188_v7 = vunpack.c.h.bf16 %v14346_v61 }
 0x1b8   : > { %15130 = vmatprep.mubr.msk.bf16.mxu0 %vm307_vm2, %v3039_v20  ;;  %v3057_v20 = vsel %vm695_vm4, %v3047_v36, %v3056_v11  ;;  %v3082_v36 = vrot.slane %v3080_v19, 4 }
 0x1b9   : > { %v3065_v39 = vor.u32 %v3064_v12, %v3061_v1  ;;  %v13717_v1 = vcombine.low %v19020_v29, %v19039_v26  ;;  %v13489_v29 = vcombine.low %v19127_v47, %v19133_v43  ;;  %v14344_v26 = vld [vmem:[%s22367_s1 + $0x80] sm:$0xff]   ;;  %v18000_v47 = vmov 0   ;;  %v14347_v12 = vld [vmem:[%s22367_s1 + $0x98] sm:$0xff]  }
 0x1ba   : > { %v3083_v16 = vor.u32 %v3082_v36, %v3079_v34  ;;  %v14179_v21 = vunpack.c.l.bf16 %v14344_v26  ;;  %v14180_v42 = vunpack.c.h.bf16 %v14344_v26  ;;  %308 = vst.msk [vmem:[#allocation2] sm:$0xff] %vm307_vm2, %v18000_v47  ;;  %309 = vst.msk [vmem:[#allocation2 + $0x8] sm:$0xff] %vm307_vm2, %v18000_v47  ;;  %17582 = vset.pattern.permute.xlu1 %v18000_v47  ;;  %17571 = vset.pattern.permute.xlu0 %v18000_v47  ;;  %v14191_v45 = vunpack.c.l.bf16 %v14347_v12  ;;  %v19398_v34 = vld [vmem:[%s18083_s16 + $0x8c] sm:$0xf] }
 0x1bb   : > { %v3066_v13 = vsel %vm695_vm4, %v3056_v11, %v3065_v39  ;;  %v3075_v40 = vsel %vm695_vm4, %v3065_v39, %v3074_v51  ;;  %v14342_v11 = vld [vmem:[%s22367_s1 + $0x70] sm:$0xff]   ;;  %310 = vst.msk [vmem:[#allocation2 + $0xe8] sm:$0xff] %vm307_vm2, %v18000_v47  ;;  %311 = vst.msk [vmem:[#allocation2 + $0xf0] sm:$0xff] %vm307_vm2, %v18000_v47  ;;  %v13491_v39 = vcombine.low %v19159_v60, %v19162_v0  ;;  %v14192_v19 = vunpack.c.h.bf16 %v14347_v12  ;;  %v14349_v60 = vld [vmem:[%s22367_s1 + $0xa8] sm:$0xff]  }
 0x1bc   : > { %v3084_v31 = vsel %vm695_vm4, %v3074_v51, %v3083_v16  ;;  %v14171_v6 = vunpack.c.l.bf16 %v14342_v11  ;;  %v14172_v17 = vunpack.c.h.bf16 %v14342_v11  ;;  %v17583_v43 = vpack.i.bf16 %v14180_v42, %v14179_v21  ;;  %v14348_v0 = vld [vmem:[%s22367_s1 + $0xa0] sm:$0xff]   ;;  %v19431_v47 = vld [vmem:[%s18083_s16 + $0x94] sm:$0xf] }
 0x1bd   : > { %15543 = vmatmul.mubr.msk.bf16.gmra.mrb[32].mxu1 %vm307_vm2, %v13715_v32  ;;  %v14184_v32 = vunpack.c.h.bf16 %v14345_v54  ;;  %v17598_v36 = vpack.i.bf16 %v14192_v19, %v14191_v45  ;;  %v17593_v16 = vpack.i.bf16 %v14188_v7, %v14187_v41  ;;  %v13492_v26 = vcombine.low %v19165_v63, %v19185_v56 }
 0x1be   : > { %15546 = vmatprep.mubr.msk.bf16.mxu1 %vm17999_vm1, %v22470_v53  ;;  %17584 = vperm.xlu1 %17582, %v17583_v43   ;;  %v13493_v21 = vcombine.low %v19188_v46, %v19191_v52  ;;  %v14353_v46 = vld [vmem:[%s22367_s1 + $0xc8] sm:$0xff]   ;;  %v14352_v52 = vld [vmem:[%s22367_s1 + $0xc0] sm:$0xff]   ;;  %v13721_v12 = vcombine.low %v19093_v4, %v19121_v10 }
 0x1bf   : > { %15131 = vmatmul.mubr.msk.bf16.gmra.mrb[20].mxu0 %vm307_vm2, %v3048_v14  ;;  %v14175_v14 = vunpack.c.l.bf16 %v14343_v48  ;;  %v17588_v51 = vpack.i.bf16 %v14184_v32, %v14183_v2  ;;  %v14215_v54 = vunpack.c.l.bf16 %v14353_v46  ;;  %v14211_v2 = vunpack.c.l.bf16 %v14352_v52  ;;  %v14114_v4 = vld [vmem:[%s22367_s1] sm:$0xff]  }
 0x1c0   : > { %15134 = vmatprep.mubr.msk.bf16.mxu0 %vm307_vm2, %v3057_v20  ;;  %v14176_v20 = vunpack.c.h.bf16 %v14343_v48  ;;  %v14212_v32 = vunpack.c.h.bf16 %v14352_v52  ;;  %v22500_v52 = vld [vmem:[#allocation10_spill] sm:$0xff] }
 0x1c2   : > { %17589 = vperm.xlu1 %17582, %v17588_v51   ;;  %v19461_v51 = vld [vmem:[%s18083_s16 + $0x98] sm:$0xf] }
 0x1c5   : > { %15547 = vmatmul.mubr.msk.bf16.gmra.mrb[36].mxu1 %vm307_vm2, %v13716_v55  ;;  %v17577_v55 = vpack.i.bf16 %v14176_v20, %v14175_v14  ;;  %v14329_v14 = vld [vmem:[%s22367_s1 + $0x8] sm:$0xff]   ;;  %v13494_v20 = vcombine.low %v19194_v15, %v19217_v8  ;;  %v14115_v15 = vunpack.c.l.bf16 %v14114_v4  ;;  %v14116_v8 = vunpack.c.h.bf16 %v14114_v4 }
 0x1c6   : > { %15550 = vmatprep.mubr.msk.bf16.mxu1 %vm17999_vm1, %v22470_v53  ;;  %17599 = vperm.xlu1 %17582, %v17598_v36   ;;  %v14119_v45 = vunpack.c.l.bf16 %v14329_v14  ;;  %v14120_v19 = vunpack.c.h.bf16 %v14329_v14  ;;  %v13496_v36 = vcombine.low %v19228_v18, %v19243_v62  ;;  %v14333_v18 = vld [vmem:[%s22367_s1 + $0x28] sm:$0xff]  }
 0x1c7   : > { %15135 = vmatmul.mubr.msk.bf16.gmra.mrb[24].mxu0 %vm307_vm2, %v3066_v13  ;;  %v19395_v13 = vld [vmem:[%s18083_s16 + $0x88] sm:$0xf]  ;;  %v17633_v61 = vpack.i.bf16 %v14116_v8, %v14115_v15  ;;  %v22501_v8 = vld [vmem:[#allocation11_spill] sm:$0xff] }
 0x1c8   : > { %15138 = vmatprep.mubr.msk.bf16.mxu0 %vm307_vm2, %v3075_v40  ;;  %v19407_v58 = vcombine.low %v19395_v13, %v19398_v34  ;;  %v14199_v40 = vunpack.c.l.bf16 %v14349_v60 }
 0x1cd   : > { %15551 = vmatmul.mubr.msk.bf16.gmra.mrb[40].mxu1 %vm307_vm2, %v13717_v1  ;;  %v14200_v1 = vunpack.c.h.bf16 %v14349_v60  ;;  %v17902_v60 = vld [vmem:[%s18083_s16 + $0x9c] sm:$0xff]  }
 0x1ce   : > { %15554 = vmatprep.mubr.msk.bf16.mxu1 %vm17999_vm1, %v22470_v53 }
 0x1cf   : > { %15139 = vmatmul.mubr.msk.bf16.gmra.mrb[28].mxu0 %vm307_vm2, %v3084_v31  ;;  %v14195_v31 = vunpack.c.l.bf16 %v14348_v0 }
 0x1d0   : > { %15144 = vmatprep.mubr.msk.bf16.mxu0 %vm307_vm2, %v13487_v38  ;;  %v14196_v38 = vunpack.c.h.bf16 %v14348_v0  ;;  %v13722_v0 = vcombine.low %v19124_v5, %v19150_v37  ;;  %v17903_v5 = vld [vmem:[%s18083_s16 + $0xa4] sm:$0xff]  }
 0x1d5   : > { %15555 = vmatmul.mubr.msk.bf16.gmra.mrb[0].mxu1 %vm307_vm2, %v13718_v23  ;;  %v14351_v23 = vld [vmem:[%s22367_s1 + $0xb8] sm:$0xff]  }
 0x1d6   : > { %15558 = vmatprep.mubr.msk.bf16.mxu1 %vm17999_vm1, %v22470_v53  ;;  %v14207_v42 = vunpack.c.l.bf16 %v14351_v23  ;;  %v14208_v11 = vunpack.c.h.bf16 %v14351_v23  ;;  %v14330_v23 = vld [vmem:[%s22367_s1 + $0x10] sm:$0xff]  }
 0x1d7   : > { %15145 = vmatmul.mubr.msk.bf16.vlgmr.msra.gmra.mrb[0].mxu0 %vm307_vm2, %v22496_v25  ;;  %v17608_v25 = vpack.i.bf16 %v14200_v1, %v14199_v40  ;;  %v13497_v40 = vcombine.low %v19246_v9, %v19249_v59  ;;  %v6868_v1 = vshll.u32 %v17902_v60, 16  ;;  %v14123_v9 = vunpack.c.l.bf16 %v14330_v23 }
 0x1d8   : > { %15177 = vmatpush3.bf16.msra.mxu0 %v19288_v3  ;;  %15148 = vmatprep.mubr.msk.bf16.mxu0 %vm307_vm2, %v13489_v29  ;;  %v17572_v3 = vpack.i.bf16 %v14172_v17, %v14171_v6  ;;  %v13720_v29 = vcombine.low %v19078_v35, %v19090_v28  ;;  %v17603_v6 = vpack.i.bf16 %v14196_v38, %v14195_v31  ;;  %v19428_v17 = vld [vmem:[%s18083_s16 + $0x90] sm:$0xf]  ;;  %v19489_v31 = vld [vmem:[%s18083_s16 + $0xa0] sm:$0xf]  ;;  %v19492_v38 = vld [vmem:[%s18083_s16 + $0xa4] sm:$0xf]  ;;  %v14124_v59 = vunpack.c.h.bf16 %v14330_v23 }
 0x1d9   : > { %15210 = vmatprep.subr.bf16.mxu0 %v22470_v53  ;;  %v14350_v35 = vld [vmem:[%s22367_s1 + $0xb0] sm:$0xff]   ;;  %v19440_v28 = vcombine.low %v19428_v17, %v19431_v47  ;;  %v17618_v43 = vpack.i.bf16 %v14208_v11, %v14207_v42  ;;  %17609 = vperm.xlu1 %17582, %v17608_v25   ;;  %v19502_v37 = vcombine.low %v19489_v31, %v19492_v38  ;;  %v6870_v42 = vrot.slane %v6868_v1, 1  ;;  %v22497_v11 = vld [vmem:[#allocation8_spill] sm:$0xff]  ;;  %v22498_v25 = vld [vmem:[#allocation7_spill] sm:$0xff] }
 0x1da   : > { %17573 = vperm.xlu0 %17571, %v17572_v3   ;;  %v14203_v63 = vunpack.c.l.bf16 %v14350_v35  ;;  %v14204_v56 = vunpack.c.h.bf16 %v14350_v35  ;;  %v14216_v3 = vunpack.c.h.bf16 %v14353_v46  ;;  %v17643_v62 = vpack.i.bf16 %v14124_v59, %v14123_v9  ;;  %v22499_v35 = vld [vmem:[#allocation9_spill] sm:$0xff]  ;;  %v19552_v1 = vld [vmem:[%s18083_s16 + $0xb4] sm:$0xf] }
 0x1dc   : > { %v17613_v48 = vpack.i.bf16 %v14204_v56, %v14203_v63  ;;  %v13498_v63 = vcombine.low %v22499_v35, %v19267_v22  ;;  %v6873_v56 = vshll.u32 %v17903_v5, 16 }
 0x1dd   : > { %15559 = vmatmul.mubr.msk.bf16.gmra.mrb[4].mxu1 %vm307_vm2, %v13719_v44  ;;  %v13495_v44 = vcombine.low %v19220_v30, %v19225_v27  ;;  %17619 = vperm.xlu1 %17582, %v17618_v43   ;;  %v14331_v30 = vld [vmem:[%s22367_s1 + $0x18] sm:$0xff]   ;;  %v17638_v27 = vpack.i.bf16 %v14120_v19, %v14119_v45  ;;  %v13499_v43 = vcombine.low %v22500_v52, %v19273_v50 }
 0x1de   : > { %15562 = vmatprep.mubr.msk.bf16.mxu1 %vm17999_vm1, %v22470_v53  ;;  %17578 = vperm.xlu0 %17571, %v17577_v55   ;;  %v19464_v55 = vld [vmem:[%s18083_s16 + $0x9c] sm:$0xf]  ;;  %v14127_v41 = vunpack.c.l.bf16 %v14331_v30  ;;  %v14128_v7 = vunpack.c.h.bf16 %v14331_v30  ;;  %v6875_v22 = vrot.slane %v6873_v56, 1  ;;  %v13500_v30 = vcombine.low %v22501_v8, %v19296_v57  ;;  %v14334_v57 = vld [vmem:[%s22367_s1 + $0x30] sm:$0xff]  }
 0x1df   : > { %15149 = vmatmul.mubr.msk.bf16.gmra.mrb[4].mxu0 %vm307_vm2, %v13490_v49  ;;  %v17628_v49 = vpack.i.bf16 %v14216_v3, %v14215_v54  ;;  %v19473_v10 = vcombine.low %v19461_v51, %v19464_v55  ;;  %v17910_v54 = vld [vmem:[%s18083_s16 + $0x1c] sm:$0xff]   ;;  %v19518_v3 = vld [vmem:[%s18083_s16 + $0xa8] sm:$0xf]  ;;  %v14140_v9 = vunpack.c.h.bf16 %v14334_v57 }
 0x1e0   : > { %15152 = vmatprep.mubr.msk.bf16.mxu0 %vm307_vm2, %v13491_v39  ;;  %v17623_v39 = vpack.i.bf16 %v14212_v32, %v14211_v2  ;;  %v19521_v2 = vld [vmem:[%s18083_s16 + $0xac] sm:$0xf]  ;;  %v14332_v32 = vld [vmem:[%s22367_s1 + $0x20] sm:$0xff]  }
 0x1e1   : > { %17629 = vperm.xlu1 %17582, %v17628_v49   ;;  %v19530_v50 = vcombine.low %v19518_v3, %v19521_v2  ;;  %v14131_v14 = vunpack.c.l.bf16 %v14332_v32  ;;  %v14335_v49 = vld [vmem:[%s22367_s1 + $0x38] sm:$0xff]  }
 0x1e2   : > { %17594 = vperm.xlu0 %17571, %v17593_v16   ;;  %v17648_v16 = vpack.i.bf16 %v14128_v7, %v14127_v41  ;;  %v14143_v19 = vunpack.c.l.bf16 %v14335_v49  ;;  %v14144_v4 = vunpack.c.h.bf16 %v14335_v49  ;;  %v22502_v7 = vld [vmem:[#allocation12_spill] sm:$0xff] }
 0x1e3   : > { %v14336_v49 = vld [vmem:[%s22367_s1 + $0x40] sm:$0xff]  }
 0x1e5   : > { %15563 = vmatmul.mubr.msk.bf16.gmra.mrb[8].mxu1 %vm307_vm2, %v13720_v29  ;;  %17639 = vperm.xlu1 %17582, %v17638_v27   ;;  %v14135_v29 = vunpack.c.l.bf16 %v14333_v18  ;;  %v17668_v27 = vpack.i.bf16 %v14144_v4, %v14143_v19  ;;  %v14147_v19 = vunpack.c.l.bf16 %v14336_v49  ;;  %v14148_v4 = vunpack.c.h.bf16 %v14336_v49 }
 0x1e6   : > { %15566 = vmatprep.mubr.msk.bf16.mxu1 %vm17999_vm1, %v22470_v53  ;;  %17604 = vperm.xlu0 %17571, %v17603_v6   ;;  %v13723_v6 = vcombine.low %v22498_v25, %v22497_v11 }
 0x1e7   : > { %15153 = vmatmul.mubr.msk.bf16.gmra.mrb[8].mxu0 %vm307_vm2, %v13492_v26  ;;  %v14136_v26 = vunpack.c.h.bf16 %v14333_v18 }
 0x1e8   : > { %15156 = vmatprep.mubr.msk.bf16.mxu0 %vm307_vm2, %v13493_v21  ;;  %v6866_v21 = vshrl.u32 %v17902_v60, 16  ;;  %v13501_v60 = vcombine.low %v22502_v7, %v19303_v33  ;;  %v19560_v33 = vld [vmem:[%s18083_s16 + $0xb4] sm:$0xff]  }
 0x1e9   : > { %17649 = vperm.xlu1 %17582, %v17648_v16   ;;  %v17658_v46 = vpack.i.bf16 %v14136_v26, %v14135_v29  ;;  %v19549_v16 = vld [vmem:[%s18083_s16 + $0xb0] sm:$0xf]  ;;  %v14337_v26 = vld [vmem:[%s22367_s1 + $0x48] sm:$0xff]  }
 0x1ea   : > { %17614 = vperm.xlu0 %17571, %v17613_v48   ;;  %v6871_v48 = vor.u32 %v6870_v42, %v6866_v21  ;;  %v19564_v23 = vcombine.low %v19549_v16, %v19552_v1  ;;  %v17912_v29 = vld [vmem:[%s18083_s16 + $0x2c] sm:$0xff]   ;;  %v19574_v42 = vld [vmem:[%s18083_s16 + $0x34] sm:$0xff]   ;;  %v14151_v25 = vunpack.c.l.bf16 %v14337_v26 }
 0x1ec   : > { %v6876_v15 = vsel %vm1176_vm3, %v6871_v48, %v6875_v22  ;;  %v3721_v48 = vshll.u32 %v17912_v29, 16 }
 0x1ed   : > { %15567 = vmatmul.mubr.msk.bf16.gmra.mrb[12].mxu1 %vm307_vm2, %v13721_v12  ;;  %17659 = vperm.xlu1 %17582, %v17658_v46   ;;  %v14132_v12 = vunpack.c.h.bf16 %v14332_v32  ;;  %v6889_v46 = vshll.u32 %v19560_v33, 16 }
 0x1ee   : > { %15570 = vmatprep.mubr.msk.bf16.mxu1 %vm17999_vm1, %v22470_v53  ;;  %17624 = vperm.xlu0 %17571, %v17623_v39   ;;  %v3708_v39 = vshll.u32 %v17910_v54, 16  ;;  %v3723_v8 = vrot.slane %v3721_v48, 1 }
 0x1ef   : > { %15157 = vmatmul.mubr.msk.bf16.gmra.mrb[12].mxu0 %vm307_vm2, %v13494_v20  ;;  %v17906_v20 = vld [vmem:[%s18083_s16 + $0xac] sm:$0xff]   ;;  %v17653_v45 = vpack.i.bf16 %v14132_v12, %v14131_v14  ;;  %v3725_v12 = vshrl.u32 %v17912_v29, 16 }
 0x1f0   : > { %15160 = vmatprep.mubr.msk.bf16.mxu0 %vm307_vm2, %v13495_v44  ;;  %v19537_v44 = vld [vmem:[%s18083_s16 + $0x24] sm:$0xff]   ;;  %v6881_v41 = vshll.u32 %v17906_v20, 16  ;;  %v6885_v35 = vshrl.u32 %v17906_v20, 16  ;;  %v19587_v20 = vld [vmem:[%s18083_s16 + $0xbc] sm:$0xf] }
 0x1f1   : > { %17669 = vperm.xlu1 %17582, %v17668_v27   ;;  %v19604_v27 = vld [vmem:[%s18083_s16 + $0x44] sm:$0xff]  }
 0x1f2   : > { %17634 = vperm.xlu0 %17571, %v17633_v61   ;;  %v6877_v61 = vshrl.u32 %v17903_v5, 16  ;;  %v14139_v5 = vunpack.c.l.bf16 %v14334_v57  ;;  %v6883_v18 = vrot.slane %v6881_v41, 1  ;;  %v17673_v41 = vpack.i.bf16 %v14148_v4, %v14147_v19 }
 0x1f3   : > { %v6893_v57 = vshrl.u32 %v19560_v33, 16  ;;  %v3745_v29 = vshll.u32 %v19604_v27, 16  ;;  %v19622_v33 = vld [vmem:[%s18083_s16 + $0xc4] sm:$0xf] }
 0x1f4   : > { %v6879_v59 = vor.u32 %v6877_v61, %v6875_v22  ;;  %v17663_v11 = vpack.i.bf16 %v14140_v9, %v14139_v5  ;;  %v3729_v22 = vshll.u32 %v19574_v42, 16  ;;  %v6887_v14 = vor.u32 %v6885_v35, %v6883_v18  ;;  %v14339_v61 = vld [vmem:[%s22367_s1 + $0x58] sm:$0xff]   ;;  %v17918_v35 = vld [vmem:[%s18083_s16 + $0x4c] sm:$0xff]  }
 0x1f5   : > { %15571 = vmatmul.mubr.msk.bf16.gmra.mrb[16].mxu1 %vm307_vm2, %v13722_v0  ;;  %v3713_v0 = vshll.u32 %v19537_v44, 16  ;;  %v14159_v7 = vunpack.c.l.bf16 %v14339_v61 }
 0x1f6   : > { %15574 = vmatprep.mubr.msk.bf16.mxu1 %vm17999_vm1, %v22470_v53  ;;  %17644 = vperm.xlu0 %17571, %v17643_v62  }
 0x1f7   : > { %15161 = vmatmul.mubr.msk.bf16.gmra.mrb[16].mxu0 %vm307_vm2, %v13496_v36  ;;  %v3706_v36 = vshrl.u32 %v17910_v54, 16  ;;  %v3715_v62 = vrot.slane %v3713_v0, 1  ;;  %v3717_v54 = vshrl.u32 %v19537_v44, 16  ;;  %v6891_v44 = vrot.slane %v6889_v46, 1 }
 0x1f8   : > { %15164 = vmatprep.mubr.msk.bf16.mxu0 %vm307_vm2, %v13497_v40  ;;  %v3710_v40 = vrot.slane %v3708_v39, 1  ;;  %v17915_v39 = vld [vmem:[%s18083_s16 + $0x3c] sm:$0xff]   ;;  %v3727_v0 = vor.u32 %v3725_v12, %v3723_v8  ;;  %v17920_v12 = vld [vmem:[%s18083_s16 + $0x54] sm:$0xff]  }
 0x1f9   : > { %v3737_v5 = vshll.u32 %v17915_v39, 16 }
 0x1fa   : > { %17654 = vperm.xlu0 %17571, %v17653_v45   ;;  %v3711_v21 = vor.u32 %v3710_v40, %v3706_v36  ;;  %v3731_v36 = vrot.slane %v3729_v22, 1  ;;  %v6892_v40 = vsel %vm1176_vm3, %v6887_v14, %v6891_v44  ;;  %v14341_v22 = vld [vmem:[%s22367_s1 + $0x68] sm:$0xff]  }
 0x1fb   : > { %v14168_v19 = vunpack.c.h.bf16 %v14341_v22 }
 0x1fc   : > { %v3716_v32 = vsel %vm1176_vm3, %v3711_v21, %v3715_v62  ;;  %v3741_v21 = vshrl.u32 %v17915_v39, 16  ;;  %v14167_v39 = vunpack.c.l.bf16 %v14341_v22  ;;  %v3765_v22 = vshrl.u32 %v17920_v12, 16 }
 0x1fd   : > { %15575 = vmatmul.mubr.msk.bf16.gmra.mrb[20].mxu1 %vm307_vm2, %v13723_v6  ;;  %v14152_v6 = vunpack.c.h.bf16 %v14337_v26  ;;  %v19615_v26 = vld [vmem:[%s18083_s16 + $0xc4] sm:$0xff]  }
 0x1fe   : > { %15580 = vmatprep.mubr.msk.bf16.mxu1 %vm17999_vm1, %v22470_v53  ;;  %17664 = vperm.xlu0 %17571, %v17663_v11   ;;  %v3732_v11 = vsel %vm1176_vm3, %v3727_v0, %v3731_v36  ;;  %v3757_v0 = vshrl.u32 %v17918_v35, 16 }
 0x1ff   : > { %15165 = vmatmul.mubr.msk.bf16.gmra.mrb[20].mxu0 %vm307_vm2, %v13498_v63  ;;  %v22503_v63 = vld [vmem:[#allocation13_spill] sm:$0xff]  ;;  %v17678_v52 = vpack.i.bf16 %v14152_v6, %v14151_v25  ;;  %v19619_v25 = vld [vmem:[%s18083_s16 + $0xc0] sm:$0xf]  ;;  %v14338_v6 = vld [vmem:[%s22367_s1 + $0x50] sm:$0xff]  }
 0x200   : > { %15168 = vmatprep.mubr.msk.bf16.mxu0 %vm307_vm2, %v13499_v43  ;;  %v13502_v56 = vcombine.low %v22503_v63, %v19323_v24  ;;  %v6884_v43 = vsel %vm1176_vm3, %v6879_v59, %v6883_v18  ;;  %v19584_v24 = vld [vmem:[%s18083_s16 + $0xb8] sm:$0xf]  ;;  %v19632_v63 = vcombine.low %v19619_v25, %v19622_v33  ;;  %v14156_v46 = vunpack.c.h.bf16 %v14338_v6 }
 0x201   : > { %17679 = vperm.xlu1 %17582, %v17678_v52   ;;  %v19597_v45 = vcombine.low %v19584_v24, %v19587_v20  ;;  %v22504_v52 = vld [vmem:[#allocation3_spill] sm:$0xff] }
 0x202   : > { %17674 = vperm.xlu0 %17571, %v17673_v41  }
 0x205   : > { %15581 = vmatmul.mubr.msk.bf16.vlgmr.msra.gmra.mrb[24].mxu1 %vm307_vm2, %v6876_v15  ;;  %v3719_v15 = vor.u32 %v3717_v54, %v3715_v62  ;;  %v3733_v62 = vshrl.u32 %v19574_v42, 16  ;;  %v3739_v42 = vrot.slane %v3737_v5, 1  ;;  %v19652_v5 = vld [vmem:[%s18083_s16 + $0xcc] sm:$0xf] }
 0x206   : > { %15584 = vmatprep.mubr.msk.bf16.mxu1 %vm17999_vm1, %v22470_v53 }
 0x207   : > { %15169 = vmatmul.mubr.msk.bf16.gmra.mrb[24].mxu0 %vm307_vm2, %v13500_v30  ;;  %v17913_v30 = vld [vmem:[%s18083_s16 + $0xbc] sm:$0xff]   ;;  %v3724_v59 = vsel %vm1176_vm3, %v3719_v15, %v3723_v8  ;;  %v3735_v48 = vor.u32 %v3733_v62, %v3731_v36  ;;  %v3743_v14 = vor.u32 %v3741_v21, %v3739_v42  ;;  %v3753_v15 = vshll.u32 %v17918_v35, 16  ;;  %v17923_v35 = vld [vmem:[%s18083_s16 + $0x64] sm:$0xff]  }
 0x208   : > { %15172 = vmatprep.mubr.msk.bf16.mxu0 %vm307_vm2, %v13501_v60  ;;  %v14160_v60 = vunpack.c.h.bf16 %v14339_v61  ;;  %v6897_v18 = vshll.u32 %v17913_v30, 16  ;;  %v6901_v4 = vshrl.u32 %v17913_v30, 16  ;;  %v17698_v8 = vpack.i.bf16 %v14168_v19, %v14167_v39  ;;  %v19674_v39 = vld [vmem:[%s18083_s16 + $0xd0] sm:$0xf]  ;;  %v19677_v19 = vld [vmem:[%s18083_s16 + $0xd4] sm:$0xf] }
 0x209   : > { %v3740_v41 = vsel %vm1176_vm3, %v3735_v48, %v3739_v42  ;;  %v3761_v36 = vshll.u32 %v17920_v12, 16 }
 0x20a   : > { %v17688_v9 = vpack.i.bf16 %v14160_v60, %v14159_v7  ;;  %v6899_v54 = vrot.slane %v6897_v18, 1  ;;  %v3749_v7 = vshrl.u32 %v19604_v27, 16  ;;  %v3755_v27 = vrot.slane %v3753_v15, 1  ;;  %v17924_v15 = vld [vmem:[%s18083_s16 + $0x6c] sm:$0xff]  }
 0x20b   : > { %v3763_v42 = vrot.slane %v3761_v36, 1 }
 0x20c   : > { %17689 = vperm.xlu1 %17582, %v17688_v9   ;;  %v14340_v9 = vld [vmem:[%s22367_s1 + $0x60] sm:$0xff]  }
 0x20d   : > { %15585 = vmatmul.mubr.msk.bf16.gmra.mrb[28].mxu1 %vm307_vm2, %v6884_v43  ;;  %v6895_v43 = vor.u32 %v6893_v57, %v6891_v44  ;;  %v6905_v44 = vshll.u32 %v19615_v26, 16  ;;  %v19649_v57 = vld [vmem:[%s18083_s16 + $0xc8] sm:$0xf]  ;;  %v14163_v62 = vunpack.c.l.bf16 %v14340_v9 }
 0x20e   : > { %15588 = vmatprep.mubr.msk.bf16.mxu1 %vm17999_vm1, %v22470_v53  ;;  %v19662_v18 = vcombine.low %v19649_v57, %v19652_v5 }
 0x20f   : > { %15173 = vmatmul.mubr.msk.bf16.gmra.mrb[28].mxu0 %vm307_vm2, %v13502_v56  ;;  %v14155_v56 = vunpack.c.l.bf16 %v14338_v6  ;;  %v6900_v61 = vsel %vm1176_vm3, %v6895_v43, %v6899_v54  ;;  %v6907_v30 = vrot.slane %v6905_v44, 1  ;;  %v3759_v6 = vor.u32 %v3757_v0, %v3755_v27  ;;  %v17922_v44 = vld [vmem:[%s18083_s16 + $0xd4] sm:$0xff]  }
 0x210   : > { %15178 = vmatprep.mubr.msk.bf16.mxu0 %vm307_vm2, %v3716_v32  ;;  %v3747_v32 = vrot.slane %v3745_v29, 1  ;;  %17699 = vperm.xlu1 %17582, %v17698_v8   ;;  %v14164_v29 = vunpack.c.h.bf16 %v14340_v9  ;;  %v6921_v36 = vshll.u32 %v17922_v44, 16  ;;  %v3785_v9 = vshll.u32 %v17924_v15, 16 }
 0x211   : > { %v17683_v49 = vpack.i.bf16 %v14156_v46, %v14155_v56 }
 0x212   : > { %v3748_v60 = vsel %vm1176_vm3, %v3743_v14, %v3747_v32  ;;  %v3751_v21 = vor.u32 %v3749_v7, %v3747_v32  ;;  %v17693_v56 = vpack.i.bf16 %v14164_v29, %v14163_v62  ;;  %v3764_v32 = vsel %vm1176_vm3, %v3759_v6, %v3763_v42 }
 0x213   : > { %17684 = vperm.xlu0 %17571, %v17683_v49   ;;  %v3777_v49 = vshll.u32 %v17923_v35, 16  ;;  %v4732_v62 = vshrl.u32 %v19407_v58, 16 }
 0x214   : > { %v3756_v43 = vsel %vm1176_vm3, %v3751_v21, %v3755_v27  ;;  %v3789_v21 = vshrl.u32 %v17924_v15, 16 }
 0x215   : > { %15589 = vmatmul.mubr.msk.bf16.gmra.mrb[32].mxu1 %vm307_vm2, %v6892_v40  ;;  %v6903_v40 = vor.u32 %v6901_v4, %v6899_v54  ;;  %v6909_v54 = vshrl.u32 %v19615_v26, 16  ;;  %v19685_v26 = vcombine.low %v19674_v39, %v19677_v19  ;;  %v3779_v7 = vrot.slane %v3777_v49, 1 }
 0x216   : > { %15592 = vmatprep.mubr.msk.bf16.mxu1 %vm17999_vm1, %v22470_v53 }
 0x217   : > { %15179 = vmatmul.mubr.msk.bf16.vlgmr.msra.gmra.mrb[0].mxu0 %vm307_vm2, %v3724_v59  ;;  %v17921_v59 = vld [vmem:[%s18083_s16 + $0x5c] sm:$0xff]   ;;  %v6908_v46 = vsel %vm1176_vm3, %v6903_v40, %v6907_v30  ;;  %17694 = vperm.xlu0 %17571, %v17693_v56   ;;  %v6911_v12 = vor.u32 %v6909_v54, %v6907_v30  ;;  %v3781_v40 = vshrl.u32 %v17923_v35, 16  ;;  %v4735_v30 = vshll.u32 %v19407_v58, 16 }
 0x218   : > { %15211 = vmatpush3.bf16.msra.mxu0 %v22504_v52  ;;  %15182 = vmatprep.mubr.msk.bf16.mxu0 %vm307_vm2, %v3732_v11  ;;  %v17919_v11 = vld [vmem:[%s18083_s16 + $0xcc] sm:$0xff]   ;;  %v3769_v52 = vshll.u32 %v17921_v59, 16  ;;  %v3773_v14 = vshrl.u32 %v17921_v59, 16  ;;  %v3787_v56 = vrot.slane %v3785_v9, 1  ;;  %v17925_v58 = vld [vmem:[%s18083_s16 + $0xdc] sm:$0xff]   ;;  %v4741_v54 = vshrl.u32 %v19440_v28, 16 }
 0x219   : > { %15256 = vmatprep.subr.bf16.mxu0 %v22470_v53  ;;  %v6913_v48 = vshll.u32 %v17919_v11, 16  ;;  %v6917_v0 = vshrl.u32 %v17919_v11, 16  ;;  %v3783_v35 = vor.u32 %v3781_v40, %v3779_v7 }
 0x21a   : > { %v3771_v4 = vrot.slane %v3769_v52, 1  ;;  %v4734_v52 = vrot.slane %v4732_v62, 3  ;;  %v4743_v49 = vrot.slane %v4741_v54, 3  ;;  %v17928_v62 = vld [vmem:[%s18083_s16 + $0xe4] sm:$0xff]  }
 0x21b   : > { %v6915_v8 = vrot.slane %v6913_v48, 1  ;;  %v4744_v48 = vshll.u32 %v19440_v28, 16 }
 0x21d   : > { %15593 = vmatmul.mubr.msk.bf16.gmra.mrb[36].mxu1 %vm307_vm2, %v6900_v61  ;;  %v3767_v61 = vor.u32 %v3765_v22, %v3763_v42  ;;  %v6916_v27 = vsel %vm1176_vm3, %v6911_v12, %v6915_v8  ;;  %v6919_v11 = vor.u32 %v6917_v0, %v6915_v8  ;;  %v6923_v42 = vrot.slane %v6921_v36, 1 }
 0x21e   : > { %15596 = vmatprep.mubr.msk.bf16.mxu1 %vm17999_vm1, %v22470_v53  ;;  %v3791_v22 = vor.u32 %v3789_v21, %v3787_v56  ;;  %v3788_v12 = vsel %vm1176_vm3, %v3783_v35, %v3787_v56  ;;  %v6925_v8 = vshrl.u32 %v17922_v44, 16  ;;  %v4750_v21 = vshrl.u32 %v19473_v10, 16  ;;  %v17932_v56 = vld [vmem:[%s18083_s16 + $0x94] sm:$0xff]  }
 0x21f   : > { %15183 = vmatmul.mubr.msk.bf16.gmra.mrb[4].mxu0 %vm307_vm2, %v3740_v41  ;;  %v3775_v41 = vor.u32 %v3773_v14, %v3771_v4  ;;  %v3772_v59 = vsel %vm1176_vm3, %v3767_v61, %v3771_v4  ;;  %v17929_v14 = vld [vmem:[%s18083_s16 + $0x84] sm:$0xff]   ;;  %v4746_v4 = vrot.slane %v4744_v48, 4  ;;  %v6924_v15 = vsel %vm1176_vm3, %v6919_v11, %v6923_v42 }
 0x220   : > { %15186 = vmatprep.mubr.msk.bf16.mxu0 %vm307_vm2, %v3748_v60  ;;  %v17926_v60 = vld [vmem:[%s18083_s16 + $0x74] sm:$0xff]   ;;  %v3809_v9 = vshll.u32 %v17929_v14, 16  ;;  %v6927_v44 = vor.u32 %v6925_v8, %v6923_v42  ;;  %v6933_v42 = vshrl.u32 %v17925_v58, 16 }
 0x221   : > { %v3780_v29 = vsel %vm1176_vm3, %v3775_v41, %v3779_v7  ;;  %v3793_v6 = vshll.u32 %v17926_v60, 16  ;;  %v6929_v41 = vshll.u32 %v17925_v58, 16  ;;  %v3797_v7 = vshrl.u32 %v17926_v60, 16  ;;  %v17930_v60 = vld [vmem:[%s18083_s16 + $0x8c] sm:$0xff]  }
 0x222   : > { %v4747_v36 = vor.u32 %v4746_v4, %v4743_v49  ;;  %v3811_v35 = vrot.slane %v3809_v9, 1  ;;  %v3817_v54 = vshll.u32 %v17930_v60, 16  ;;  %v3813_v49 = vshrl.u32 %v17929_v14, 16 }
 0x224   : > { %v3815_v14 = vor.u32 %v3813_v49, %v3811_v35 }
 0x225   : > { %15597 = vmatmul.mubr.msk.bf16.gmra.mrb[40].mxu1 %vm307_vm2, %v6908_v46  ;;  %v17927_v46 = vld [vmem:[%s18083_s16 + $0x7c] sm:$0xff]  }
 0x226   : > { %15600 = vmatprep.mubr.msk.bf16.mxu1 %vm17999_vm1, %v22470_v53  ;;  %v3801_v61 = vshll.u32 %v17927_v46, 16  ;;  %v3805_v40 = vshrl.u32 %v17927_v46, 16  ;;  %v4752_v46 = vrot.slane %v4750_v21, 3 }
 0x227   : > { %15187 = vmatmul.mubr.msk.bf16.gmra.mrb[8].mxu0 %vm307_vm2, %v3756_v43  ;;  %v4737_v43 = vrot.slane %v4735_v30, 4  ;;  %v6931_v30 = vrot.slane %v6929_v41, 1  ;;  %v17931_v41 = vld [vmem:[%s18083_s16 + $0xec] sm:$0xff]  }
 0x228   : > { %15190 = vmatprep.mubr.msk.bf16.mxu0 %vm307_vm2, %v3764_v32  ;;  %v3795_v32 = vrot.slane %v3793_v6, 1  ;;  %v4753_v6 = vshll.u32 %v19473_v10, 16  ;;  %v3825_v10 = vshll.u32 %v17932_v56, 16 }
 0x229   : > { %v19708_v0 = vor.u32 %v4737_v43, %v4734_v52  ;;  %v6937_v43 = vshll.u32 %v17928_v62, 16  ;;  %v6932_v48 = vsel %vm1176_vm3, %v6927_v44, %v6931_v30  ;;  %v6935_v58 = vor.u32 %v6933_v42, %v6931_v30 }
 0x22a   : > { %v3796_v28 = vsel %vm1176_vm3, %v3791_v22, %v3795_v32  ;;  %v4755_v52 = vrot.slane %v4753_v6, 4  ;;  %v3827_v9 = vrot.slane %v3825_v10, 1  ;;  %v6941_v30 = vshrl.u32 %v17928_v62, 16 }
 0x22b   : > { %v6939_v8 = vrot.slane %v6937_v43, 1  ;;  %v3829_v6 = vshrl.u32 %v17932_v56, 16  ;;  %v17934_v43 = vld [vmem:[%s18083_s16 + $0xf4] ss:$0 sps:$4 sm:$0x11]  }
 0x22c   : > { %v6953_v10 = vshll.u32 %v17934_v43, 16 }
 0x22d   : > { %15601 = vmatmul.mubr.msk.bf16.gmra.mrb[0].mxu1 %vm307_vm2, %v6916_v27  ;;  %v19713_v27 = vsel %vm695_vm4, %v19708_v0, %v4747_v36  ;;  %v3831_v62 = vor.u32 %v3829_v6, %v3827_v9 }
 0x22e   : > { %15604 = vmatprep.mubr.msk.bf16.mxu1 %vm17999_vm1, %v22470_v53 }
 0x22f   : > { %15191 = vmatmul.mubr.msk.bf16.gmra.mrb[12].mxu0 %vm307_vm2, %v3772_v59  ;;  %v3803_v59 = vrot.slane %v3801_v61, 1  ;;  %v3819_v61 = vrot.slane %v3817_v54, 1  ;;  %v4768_v54 = vshrl.u32 %v19530_v50, 16 }
 0x230   : > { %15194 = vmatprep.mubr.msk.bf16.mxu0 %vm307_vm2, %v3780_v29  ;;  %v3799_v29 = vor.u32 %v3797_v7, %v3795_v32  ;;  %v4756_v32 = vor.u32 %v4755_v52, %v4752_v46  ;;  %v17933_v7 = vld [vmem:[%s18083_s16 + $0x9c] ss:$0 sps:$4 sm:$0x11]  }
 0x231   : > { %v3807_v11 = vor.u32 %v3805_v40, %v3803_v59  ;;  %v3820_v21 = vsel %vm1176_vm3, %v3815_v14, %v3819_v61  ;;  %v19766_v14 = vld [vmem:[%s18083_s16 + $0x84] sm:$0xf] }
 0x232   : > { %v3804_v22 = vsel %vm1176_vm3, %v3799_v29, %v3803_v59  ;;  %v6945_v29 = vshll.u32 %v17931_v41, 16 }
 0x233   : > { %v3812_v4 = vsel %vm1176_vm3, %v3807_v11, %v3811_v35  ;;  %v3833_v11 = vshll.u32 %v17933_v7, 16  ;;  %v4780_v7 = vshll.u32 %v19564_v23, 16 }
 0x234   : > { %v6947_v42 = vrot.slane %v6945_v29, 1 }
 0x235   : > { %15605 = vmatmul.mubr.msk.bf16.gmra.mrb[4].mxu1 %vm307_vm2, %v6924_v15  ;;  %v3821_v15 = vshrl.u32 %v17930_v60, 16  ;;  %v6940_v60 = vsel %vm1176_vm3, %v6935_v58, %v6939_v8  ;;  %v3835_v56 = vrot.slane %v3833_v11, 1 }
 0x236   : > { %15608 = vmatprep.mubr.msk.bf16.mxu1 %vm17999_vm1, %v22470_v53 }
 0x237   : > { %15195 = vmatmul.mubr.msk.bf16.gmra.mrb[16].mxu0 %vm307_vm2, %v3788_v12  ;;  %v19729_v12 = vsel %vm695_vm4, %v4747_v36, %v4756_v32  ;;  %v4762_v36 = vshll.u32 %v19502_v37, 16  ;;  %v3823_v40 = vor.u32 %v3821_v15, %v3819_v61  ;;  %v6949_v15 = vshrl.u32 %v17931_v41, 16 }
 0x238   : > { %15198 = vmatprep.mubr.msk.bf16.mxu0 %vm307_vm2, %v3796_v28  ;;  %v4759_v28 = vshrl.u32 %v19502_v37, 16  ;;  %v6943_v37 = vor.u32 %v6941_v30, %v6939_v8  ;;  %v6955_v61 = vrot.slane %v6953_v10, 1  ;;  %v4777_v41 = vshrl.u32 %v19564_v23, 16 }
 0x239   : > { %v4764_v59 = vrot.slane %v4762_v36, 4  ;;  %v3828_v35 = vsel %vm1176_vm3, %v3823_v40, %v3827_v9  ;;  %v4782_v36 = vrot.slane %v4780_v7, 4  ;;  %v13554_v40 = vcombine.low %v19766_v14, %v19395_v13 }
 0x23a   : > { %v4761_v44 = vrot.slane %v4759_v28, 3  ;;  %v4779_v28 = vrot.slane %v4777_v41, 3  ;;  %v13555_v13 = vcombine.low %v19398_v34, %v19428_v17  ;;  %v4786_v23 = vshrl.u32 %v19597_v45, 16 }
 0x23b   : > { %v4789_v30 = vshll.u32 %v19597_v45, 16  ;;  %v4795_v34 = vshrl.u32 %v19632_v63, 16  ;;  %v4798_v17 = vshll.u32 %v19632_v63, 16  ;;  %v13560_v41 = vcombine.low %v19552_v1, %v19584_v24 }
 0x23c   : > { %v4765_v46 = vor.u32 %v4764_v59, %v4761_v44  ;;  %v4783_v44 = vor.u32 %v4782_v36, %v4779_v28  ;;  %v4788_v29 = vrot.slane %v4786_v23, 3  ;;  %v13561_v28 = vcombine.low %v19587_v20, %v19619_v25  ;;  %v4477_v20 = vld [vmem:[%s18083_s16 + $0x80] sm:$0x8] }
 0x23d   : > { %15609 = vmatmul.mubr.msk.bf16.gmra.mrb[8].mxu1 %vm307_vm2, %v6932_v48  ;;  %v4771_v48 = vshll.u32 %v19530_v50, 16  ;;  %v6951_v50 = vor.u32 %v6949_v15, %v6947_v42  ;;  %v4800_v45 = vrot.slane %v4798_v17, 4  ;;  %v13563_v25 = vcombine.low %v19652_v5, %v19674_v39  ;;  %v13250_v39 = vld [vmem:[%s22371_s5 + $0x2] sm:$0x3] }
 0x23e   : > { %15612 = vmatprep.mubr.msk.bf16.mxu1 %vm17999_vm1, %v22470_v53  ;;  %v19744_v52 = vsel %vm695_vm4, %v4756_v32, %v4765_v46  ;;  %v6948_v32 = vsel %vm1176_vm3, %v6943_v37, %v6947_v42 }
 0x23f   : > { %15199 = vmatmul.mubr.msk.bf16.gmra.mrb[20].mxu0 %vm307_vm2, %v3804_v22  ;;  %v4770_v22 = vrot.slane %v4768_v54, 3  ;;  %v4773_v49 = vrot.slane %v4771_v48, 4  ;;  %v6956_v9 = vsel %vm1176_vm3, %v6951_v50, %v6955_v61  ;;  %v13558_v48 = vcombine.low %v19492_v38, %v19518_v3 }
 0x240   : > { %15202 = vmatprep.mubr.msk.bf16.mxu0 %vm307_vm2, %v3812_v4  ;;  %v3836_v4 = vsel %vm1176_vm3, %v3831_v62, %v3835_v56  ;;  %v13557_v62 = vcombine.low %v19464_v55, %v19489_v31  ;;  %v4813_v55 = vshrl.u32 %v19685_v26, 16  ;;  %v4816_v31 = vshll.u32 %v19685_v26, 16 }
 0x241   : > { %v4774_v58 = vor.u32 %v4773_v49, %v4770_v22  ;;  %v4499_v22 = vld [vmem:[%s18083_s16 + $0xd8] sm:$0xf]  ;;  %v13559_v38 = vcombine.low %v19521_v2, %v19549_v16  ;;  %v19836_v2 = vld [vmem:[#allocation2 + $0x8] sm:$0xff] }
 0x242   : > { %v4818_v49 = vrot.slane %v4816_v31, 4  ;;  %v22389_v16 = vshrl.u32 %v19836_v2, 16  ;;  %v22388_v7 = vshll.u32 %v19836_v2, 16 }
 0x243   : > { %v19757_v8 = vsel %vm695_vm4, %v4765_v46, %v4774_v58  ;;  %v19774_v59 = vsel %vm695_vm4, %v4774_v58, %v4783_v44  ;;  %v13556_v46 = vcombine.low %v19431_v47, %v19461_v51  ;;  %v4804_v47 = vshrl.u32 %v19662_v18, 16 }
 0x244   : > { %v4807_v51 = vshll.u32 %v19662_v18, 16  ;;  %v4815_v18 = vrot.slane %v4813_v55, 3  ;;  %v8052_v36 = vrot.slane %v22389_v16, 4  ;;  %v8053_v1 = vrot.slane %v22388_v7, 5 }
 0x245   : > { %15613 = vmatmul.mubr.msk.bf16.gmra.mrb[12].mxu1 %vm307_vm2, %v6940_v60  ;;  %v22505_v60 = vld [vmem:[#allocation5_spill] sm:$0xff]  ;;  %v4806_v63 = vrot.slane %v4804_v47, 3 }
 0x246   : > { %15616 = vmatprep.mubr.msk.bf16.mxu1 %vm17999_vm1, %v22470_v53  ;;  %v4809_v56 = vrot.slane %v4807_v51, 4  ;;  %v19851_v24 = vor.u32 %v8053_v1, %v8052_v36 }
 0x247   : > { %15203 = vmatmul.mubr.msk.bf16.gmra.mrb[24].mxu0 %vm307_vm2, %v3820_v21  ;;  %v4791_v21 = vrot.slane %v4789_v30, 4 }
 0x248   : > { %15206 = vmatprep.mubr.msk.bf16.mxu0 %vm307_vm2, %v3828_v35  ;;  %v4797_v35 = vrot.slane %v4795_v34, 3  ;;  %v4810_v43 = vor.u32 %v4809_v56, %v4806_v63 }
 0x249   : > { %v4792_v6 = vor.u32 %v4791_v21, %v4788_v29  ;;  %v14354_v21 = vld [vmem:[%s22367_s1 + $0xd0] sm:$0xff]  }
 0x24a   : > { %v4801_v37 = vor.u32 %v4800_v45, %v4797_v35 }
 0x24b   : > { %v19792_v11 = vsel %vm695_vm4, %v4783_v44, %v4792_v6 }
 0x24c   : > { %v19802_v42 = vsel %vm695_vm4, %v4792_v6, %v4801_v37  ;;  %v19812_v54 = vsel %vm695_vm4, %v4801_v37, %v4810_v43  ;;  %v14219_v6 = vunpack.c.l.bf16 %v14354_v21 }
 0x24d   : > { %15617 = vmatmul.mubr.msk.bf16.gmra.mrb[16].mxu1 %vm307_vm2, %v6948_v32  ;;  %v13587_v32 = vcombine.low %v4499_v22, %v4499_v22 }
 0x24e   : > { %15620 = vmatprep.mubr.msk.bf16.mxu1 %vm17999_vm1, %v22470_v53 }
 0x24f   : > { %15207 = vmatmul.mubr.msk.bf16.gmra.mrb[28].mxu0 %vm307_vm2, %v3836_v4  ;;  %v4819_v4 = vor.u32 %v4818_v49, %v4815_v18  ;;  %v4822_v3 = vshrl.u32 %v13587_v32, 16  ;;  %v4825_v10 = vshll.u32 %v13587_v32, 16  ;;  %v19957_v49 = vld [vmem:[%s22370_s4] ss:$0 sm:$0xff] }
 0x250   : > { %15212 = vmatprep.mubr.msk.bf16.mxu0 %vm17999_vm1, %v22470_v53 }
 0x251   : > { %v19823_v15 = vsel %vm695_vm4, %v4810_v43, %v4819_v4  ;;  %v4824_v58 = vrot.slane %v4822_v3, 3  ;;  %v4827_v26 = vrot.slane %v4825_v10, 4 }
 0x253   : > { %v4828_v50 = vor.u32 %v4827_v26, %v4824_v58 }
 0x255   : > { %15621 = vmatmul.mubr.msk.bf16.gmra.mrb[20].mxu1 %vm307_vm2, %v6956_v9  ;;  %v19831_v61 = vsel %vm695_vm4, %v4819_v4, %v4828_v50  ;;  %v13576_v9 = vcombine.low %v4477_v20, %v19766_v14  ;;  %v19875_v14 = vsel %vm511_vm0, %v13250_v39, 0 }
 0x256   : > { %15932 = vmatprep.mubr.msk.bf16.mxu1 %vm17999_vm1, %v22470_v53  ;;  %15931 = vmatpush3.bf16.msra.mxu1 %v19875_v14 }
 0x257   : > { %15213 = vmatmul.mubr.msk.bf16.vlgmr.msra.gmra.mrb[32].mxu0 %vm307_vm2, %v13554_v40  ;;  %v13562_v40 = vcombine.low %v19622_v33, %v19649_v57  ;;  %v4724_v44 = vshrl.u32 %v13576_v9, 16  ;;  %v13564_v33 = vcombine.low %v19677_v19, %v4499_v22  ;;  %v22506_v19 = vld [vmem:[#allocation4_spill] sm:$0xff]  ;;  %15976 = vmatprep.subr.bf16.mxu1 %v22470_v53 }
 0x258   : > { %15257 = vmatpush3.bf16.msra.mxu0 %v22505_v60  ;;  %15216 = vmatprep.mubr.msk.bf16.mxu0 %vm17999_vm1, %v22470_v53  ;;  %v4727_v60 = vshll.u32 %v13576_v9, 16 }
 0x259   : > { %15302 = vmatprep.subr.bf16.mxu0 %v22470_v53  ;;  %v4726_v57 = vrot.slane %v4724_v44, 3  ;;  %v19894_v30 = vpop.permute.xlu0 %17573 }
 0x25d   : > { %v19902_v29 = vpop.permute.xlu0 %17578 }
 0x25f   : > { %15217 = vmatmul.mubr.msk.bf16.gmra.mrb[36].mxu0 %vm307_vm2, %v13555_v13  ;;  %v4729_v13 = vrot.slane %v4727_v60, 4 }
 0x260   : > { %15220 = vmatprep.mubr.msk.bf16.mxu0 %vm17999_vm1, %v22470_v53 }
 0x261   : > { %v4730_v23 = vor.u32 %v4729_v13, %v4726_v57 }
 0x263   : > { %v4739_v5 = vsel %vm695_vm4, %v4730_v23, %v19708_v0  ;;  %v19892_v0 = vpop.permute.xlu1 %17584 }
 0x264   : > { %22507 = vst [vmem:[#allocation8_spill] sm:$0xff] %v19892_v0 }
 0x267   : > { %15221 = vmatmul.mubr.msk.bf16.gmra.mrb[40].mxu0 %vm307_vm2, %v13556_v46  ;;  %v14220_v46 = vunpack.c.h.bf16 %v14354_v21 }
 0x268   : > { %15224 = vmatprep.mubr.msk.bf16.mxu0 %vm17999_vm1, %v22470_v53 }
 0x269   : > { %v17703_v34 = vpack.i.bf16 %v14220_v46, %v14219_v6 }
 0x26b   : > { %17704 = vperm.xlu0 %17571, %v17703_v34  }
 0x26f   : > { %15225 = vmatmul.mubr.msk.bf16.gmra.mrb[44].mxu0 %vm307_vm2, %v13557_v62 }
 0x270   : > { %15228 = vmatprep.mubr.msk.bf16.mxu0 %vm17999_vm1, %v22470_v53 }
 0x277   : > { %15229 = vmatmul.mubr.msk.bf16.gmra.mrb[48].mxu0 %vm307_vm2, %v13558_v48 }
 0x278   : > { %15232 = vmatprep.mubr.msk.bf16.mxu0 %vm17999_vm1, %v22470_v53 }
 0x27f   : > { %15233 = vmatmul.mubr.msk.bf16.gmra.mrb[52].mxu0 %vm307_vm2, %v13559_v38 }
 0x280   : > { %15236 = vmatprep.mubr.msk.bf16.mxu0 %vm17999_vm1, %v22470_v53 }
 0x287   : > { %15237 = vmatmul.mubr.msk.bf16.gmra.mrb[56].mxu0 %vm307_vm2, %v13560_v41 }
 0x288   : > { %15240 = vmatprep.mubr.msk.bf16.mxu0 %vm17999_vm1, %v22470_v53 }
 0x28f   : > { %15241 = vmatmul.mubr.msk.bf16.gmra.mrb[60].mxu0 %vm307_vm2, %v13561_v28 }
 0x290   : > { %15244 = vmatprep.mubr.msk.bf16.mxu0 %vm17999_vm1, %v22470_v53 }
 0x297   : > { %15245 = vmatmul.mubr.msk.bf16.gmra.mrb[64].mxu0 %vm307_vm2, %v13562_v40 }
 0x298   : > { %15248 = vmatprep.mubr.msk.bf16.mxu0 %vm17999_vm1, %v22470_v53 }
 0x29f   : > { %15249 = vmatmul.mubr.msk.bf16.gmra.mrb[68].mxu0 %vm307_vm2, %v13563_v25 }
 0x2a0   : > { %15252 = vmatprep.mubr.msk.bf16.mxu0 %vm17999_vm1, %v22470_v53 }
 0x2a7   : > { %15253 = vmatmul.mubr.msk.bf16.gmra.mrb[72].mxu0 %vm307_vm2, %v13564_v33 }
 0x2a8   : > { %15258 = vmatprep.mubr.msk.bf16.mxu0 %vm17999_vm1, %v22470_v53 }
 0x2af   : > { %15259 = vmatmul.mubr.msk.bf16.vlgmr.msra.gmra.mrb[32].mxu0 %vm307_vm2, %v4739_v5 }
 0x2b0   : > { %15303 = vmatpush3.bf16.msra.mxu0 %v22506_v19  ;;  %15262 = vmatprep.mubr.msk.bf16.mxu0 %vm17999_vm1, %v22470_v53 }
 0x2b1   : > { %17549 = vmatprep.subr.msk.bf16.mxu0 %vm511_vm0, %v13250_v39 }
 0x2b7   : > { %15263 = vmatmul.mubr.msk.bf16.gmra.mrb[36].mxu0 %vm307_vm2, %v19713_v27  ;;  %v19900_v27 = vpop.permute.xlu1 %17589 }
 0x2b8   : > { %15266 = vmatprep.mubr.msk.bf16.mxu0 %vm17999_vm1, %v22470_v53  ;;  %22508 = vst [vmem:[#allocation7_spill] sm:$0xff] %v19900_v27 }
 0x2bf   : > { %15267 = vmatmul.mubr.msk.bf16.gmra.mrb[40].mxu0 %vm307_vm2, %v19729_v12  ;;  %v19908_v12 = vpop.permute.xlu1 %17599 }
 0x2c0   : > { %15270 = vmatprep.mubr.msk.bf16.mxu0 %vm17999_vm1, %v22470_v53  ;;  %22509 = vst [vmem:[#allocation9_spill] sm:$0xff] %v19908_v12 }
 0x2c3   : > { %v19915_v17 = vpop.permute.xlu1 %17609 }
 0x2c4   : > { %22511 = vst [vmem:[#allocation11_spill] sm:$0xff] %v19915_v17 }
 0x2c7   : > { %15271 = vmatmul.mubr.msk.bf16.gmra.mrb[44].mxu0 %vm307_vm2, %v19744_v52  ;;  %v19913_v52 = vpop.permute.xlu0 %17594  ;;  %v19927_v62 = vpop.permute.xlu1 %17619 }
 0x2c8   : > { %15274 = vmatprep.mubr.msk.bf16.mxu0 %vm17999_vm1, %v22470_v53  ;;  %22510 = vst [vmem:[#allocation10_spill] sm:$0xff] %v19913_v52  ;;  %22515 = vst [vmem:[#allocation5_spill] sm:$0xff] %v19927_v62 }
 0x2cb   : > { %v19937_v63 = vpop.permute.xlu1 %17629 }
 0x2cc   : > { %22518 = vst [vmem:[#allocation15_spill] sm:$0xff] %v19937_v63 }
 0x2cf   : > { %15275 = vmatmul.mubr.msk.bf16.gmra.mrb[48].mxu0 %vm307_vm2, %v19757_v8  ;;  %v19919_v8 = vpop.permute.xlu0 %17604  ;;  %v17640_v31 = vpop.permute.xlu1 %17639 }
 0x2d0   : > { %15278 = vmatprep.mubr.msk.bf16.mxu0 %vm17999_vm1, %v22470_v53  ;;  %22512 = vst [vmem:[#allocation12_spill] sm:$0xff] %v19919_v8  ;;  %v17642_v25 = vunpack.i.h.bf16 %v17640_v31  ;;  %v17641_v9 = vunpack.i.l.bf16 %v17640_v31 }
 0x2d3   : > { %v19929_v51 = vpop.permute.xlu0 %17614  ;;  %v17650_v23 = vpop.permute.xlu1 %17649 }
 0x2d4   : > { %22516 = vst [vmem:[#allocation4_spill] sm:$0xff] %v19929_v51 }
 0x2d7   : > { %15279 = vmatmul.mubr.msk.bf16.gmra.mrb[52].mxu0 %vm307_vm2, %v19774_v59  ;;  %v19939_v43 = vpop.permute.xlu0 %17624 }
 0x2d8   : > { %15282 = vmatprep.mubr.msk.bf16.mxu0 %vm17999_vm1, %v22470_v53  ;;  %v19923_v35 = vpop.f32.mrb[24].mxu1  ;;  %22519 = vst [vmem:[#allocation16_spill] sm:$0xff] %v19939_v43 }
 0x2d9   : > { %22513 = vst [vmem:[#allocation13_spill] sm:$0xff] %v19923_v35  ;;  %v15582_v45 = vpop.f32.mrb[25].mxu1 }
 0x2da   : > { %v19925_v37 = vpop.f32.mrb[26].mxu1 }
 0x2db   : > { %22514 = vst [vmem:[#allocation3_spill] sm:$0xff] %v19925_v37  ;;  %v15583_v47 = vpop.f32.mrb[27].mxu1  ;;  %v17635_v22 = vpop.permute.xlu0 %17634 }
 0x2dc   : > { %v17637_v33 = vunpack.i.h.bf16 %v17635_v22  ;;  %v17636_v57 = vunpack.i.l.bf16 %v17635_v22  ;;  %v19977_v47 = vld [vmem:[%s18083_s16 + $0x84] sm:$0xff]  }
 0x2df   : > { %15283 = vmatmul.mubr.msk.bf16.gmra.mrb[56].mxu0 %vm307_vm2, %v19792_v11  ;;  %v19948_v11 = vld [vmem:[%s22369_s3] ss:$0 sm:$0xff]  ;;  %v17645_v5 = vpop.permute.xlu0 %17644 }
 0x2e0   : > { %15286 = vmatprep.mubr.msk.bf16.mxu0 %vm17999_vm1, %v22470_v53  ;;  %v19935_v59 = vpop.f32.mrb[28].mxu1 }
 0x2e1   : > { %22517 = vst [vmem:[#allocation14_spill] sm:$0xff] %v19935_v59  ;;  %v15586_v56 = vpop.f32.mrb[29].mxu1 }
 0x2e2   : > { %v19941_v48 = vpop.f32.mrb[30].mxu1 }
 0x2e3   : > { %22520 = vst [vmem:[#allocation17_spill] sm:$0xff] %v19941_v48  ;;  %v15587_v55 = vpop.f32.mrb[31].mxu1 }
 0x2e7   : > { %15287 = vmatmul.mubr.msk.bf16.gmra.mrb[60].mxu0 %vm307_vm2, %v19802_v42 }
 0x2e8   : > { %15290 = vmatprep.mubr.msk.bf16.mxu0 %vm17999_vm1, %v22470_v53  ;;  %v19952_v18 = vpop.f32.mrb[32].mxu1 }
 0x2e9   : > { %22521 = vst [vmem:[#allocation18_spill] sm:$0xff] %v19952_v18  ;;  %v15590_v4 = vpop.f32.mrb[33].mxu1 }
 0x2ea   : > { %v15180_v32 = vpop.f32.mrb[0].mxu0  ;;  %v19960_v3 = vpop.f32.mrb[34].mxu1 }
 0x2eb   : > { %v4089_v42 = vmul.f32 %v15180_v32, %v19948_v11  ;;  %v3922_v38 = vpop.f32.mrb[1].mxu0  ;;  %22522 = vst [vmem:[#allocation19_spill] sm:$0xff] %v19960_v3  ;;  %v15591_v50 = vpop.f32.mrb[35].mxu1 }
 0x2ec   : > { %v4087_v10 = vmul.f32 %v19948_v11, %v3922_v38  ;;  %v15181_v58 = vpop.f32.mrb[2].mxu0 }
 0x2ed   : > { %v4127_v26 = vadd.f32 %v19957_v49, %v4089_v42  ;;  %v4090_v41 = vmul.f32 %v15181_v58, %v19948_v11  ;;  %v3925_v28 = vpop.f32.mrb[3].mxu0 }
 0x2ee   : > { %v4125_v36 = vadd.f32 %v19957_v49, %v4087_v10  ;;  %v4088_v1 = vmul.f32 %v19948_v11, %v3925_v28  ;;  %v17652_v28 = vunpack.i.h.bf16 %v17650_v23 }
 0x2ef   : > { %v4159_v40 = vmax.f32 %v4127_v26, 0.0  ;;  %v4128_v20 = vadd.f32 %v19957_v49, %v4090_v41  ;;  %15291 = vmatmul.mubr.msk.bf16.gmra.mrb[64].mxu0 %vm307_vm2, %v19812_v54 }
 0x2f0   : > { %v4157_v44 = vmax.f32 %v4125_v36, 0.0  ;;  %v4126_v60 = vadd.f32 %v19957_v49, %v4088_v1  ;;  %15294 = vmatprep.mubr.msk.bf16.mxu0 %vm17999_vm1, %v22470_v53  ;;  %v19973_v19 = vpop.f32.mrb[36].mxu1 }
 0x2f1   : > { %v4160_v13 = vmax.f32 %v4128_v20, 0.0  ;;  %22523 = vst [vmem:[#allocation20_spill] sm:$0xff] %v19973_v19  ;;  %v4415_v6 = vmul.f32 %v17641_v9, %v4159_v40  ;;  %v15594_v34 = vpop.f32.mrb[37].mxu1  ;;  %v17651_v40 = vunpack.i.l.bf16 %v17650_v23  ;;  %v5068_v20 = vshll.u32 %v19977_v47, 16  ;;  %v17655_v23 = vpop.permute.xlu0 %17654 }
 0x2f2   : > { %v4158_v39 = vmax.f32 %v4126_v60, 0.0  ;;  %v15184_v21 = vpop.f32.mrb[4].mxu0  ;;  %v4413_v56 = vmul.f32 %v17636_v57, %v4157_v44  ;;  %v19979_v31 = vpop.f32.mrb[38].mxu1  ;;  %v17647_v44 = vunpack.i.h.bf16 %v17645_v5  ;;  %v17646_v60 = vunpack.i.l.bf16 %v17645_v5 }
 0x2f3   : > { %v4416_v46 = vmul.f32 %v17642_v25, %v4160_v13  ;;  %v4093_v54 = vmul.f32 %v15184_v21, %v19948_v11  ;;  %v3938_v45 = vpop.f32.mrb[5].mxu0  ;;  %22524 = vst [vmem:[#allocation21_spill] sm:$0xff] %v19979_v31  ;;  %v15595_v38 = vpop.f32.mrb[39].mxu1 }
 0x2f4   : > { %v4414_v55 = vmul.f32 %v17637_v33, %v4158_v39  ;;  %v4091_v22 = vmul.f32 %v19948_v11, %v3938_v45  ;;  %v15185_v32 = vpop.f32.mrb[6].mxu0  ;;  %v19996_v33 = vld [vmem:[%s18083_s16 + $0x8c] sm:$0xff]   ;;  %v17660_v13 = vpop.permute.xlu1 %17659 }
 0x2f5   : > { %v4446_v4 = vpack.c.bf16 %v4416_v46, %v4415_v6  ;;  %v4131_v42 = vadd.f32 %v19957_v49, %v4093_v54  ;;  %v4094_v10 = vmul.f32 %v15185_v32, %v19948_v11  ;;  %v3941_v58 = vpop.f32.mrb[7].mxu0  ;;  %v5066_v6 = vshrl.u32 %v19977_v47, 16 }
 0x2f6   : > { %v4445_v26 = vpack.c.bf16 %v4414_v55, %v4413_v56  ;;  %v4129_v50 = vadd.f32 %v19957_v49, %v4091_v22  ;;  %v4092_v41 = vmul.f32 %v19948_v11, %v3941_v58  ;;  %v5070_v56 = vrot.slane %v5068_v20, 1  ;;  %v20011_v20 = vld [vmem:[%s18083_s16 + $0x94] sm:$0xff]  }
 0x2f7   : > { %4462 = vst.msk [vmem:[#allocation2 + $0x18] sm:$0xff] %vm307_vm2, %v4446_v4  ;;  %v4163_v36 = vmax.f32 %v4131_v42, 0.0  ;;  %v4132_v1 = vadd.f32 %v19957_v49, %v4094_v10  ;;  %15295 = vmatmul.mubr.msk.bf16.gmra.mrb[68].mxu0 %vm307_vm2, %v19823_v15  ;;  %v5073_v38 = vshll.u32 %v19996_v33, 16 }
 0x2f8   : > { %4461 = vst.msk [vmem:[#allocation2 + $0x10] sm:$0xff] %vm307_vm2, %v4445_v26  ;;  %v4161_v25 = vmax.f32 %v4129_v50, 0.0  ;;  %v4130_v9 = vadd.f32 %v19957_v49, %v4092_v41  ;;  %15298 = vmatprep.mubr.msk.bf16.mxu0 %vm17999_vm1, %v22470_v53  ;;  %v19998_v21 = vpop.f32.mrb[40].mxu1  ;;  %v17662_v41 = vunpack.i.h.bf16 %v17660_v13 }
 0x2f9   : > { %v4164_v57 = vmax.f32 %v4132_v1, 0.0  ;;  %22525 = vst [vmem:[#allocation22_spill] sm:$0xff] %v19998_v21  ;;  %v4419_v46 = vmul.f32 %v17651_v40, %v4163_v36  ;;  %v15598_v54 = vpop.f32.mrb[41].mxu1  ;;  %v17661_v40 = vunpack.i.l.bf16 %v17660_v13  ;;  %v5071_v13 = vor.u32 %v5070_v56, %v5066_v6 }
 0x2fa   : > { %v4162_v39 = vmax.f32 %v4130_v9, 0.0  ;;  %v15188_v15 = vpop.f32.mrb[8].mxu0  ;;  %v4417_v55 = vmul.f32 %v17646_v60, %v4161_v25  ;;  %v20002_v32 = vpop.f32.mrb[42].mxu1  ;;  %v17656_v60 = vunpack.i.l.bf16 %v17655_v23 }
 0x2fb   : > { %v4420_v34 = vmul.f32 %v17652_v28, %v4164_v57  ;;  %v4097_v45 = vmul.f32 %v15188_v15, %v19948_v11  ;;  %v3954_v5 = vpop.f32.mrb[9].mxu0  ;;  %22526 = vst [vmem:[#allocation23_spill] sm:$0xff] %v20002_v32  ;;  %v15599_v58 = vpop.f32.mrb[43].mxu1  ;;  %v5075_v15 = vrot.slane %v5073_v38, 1 }
 0x2fc   : > { %v4418_v22 = vmul.f32 %v17647_v44, %v4162_v39  ;;  %v4095_v4 = vmul.f32 %v19948_v11, %v3954_v5  ;;  %v15189_v42 = vpop.f32.mrb[10].mxu0  ;;  %v17657_v44 = vunpack.i.h.bf16 %v17655_v23  ;;  %v17665_v54 = vpop.permute.xlu0 %17664 }
 0x2fd   : > { %v4448_v10 = vpack.c.bf16 %v4420_v34, %v4419_v46  ;;  %v4135_v47 = vadd.f32 %v19957_v49, %v4097_v45  ;;  %v4098_v26 = vmul.f32 %v15189_v42, %v19948_v11  ;;  %v3957_v50 = vpop.f32.mrb[11].mxu0  ;;  %v17670_v34 = vpop.permute.xlu1 %17669  ;;  %v5077_v45 = vshrl.u32 %v19996_v33, 16 }
 0x2fe   : > { %v4447_v28 = vpack.c.bf16 %v4418_v22, %v4417_v55  ;;  %v4133_v36 = vadd.f32 %v19957_v49, %v4095_v4  ;;  %v4096_v1 = vmul.f32 %v19948_v11, %v3957_v50  ;;  %v5076_v33 = vsel %vm1176_vm3, %v5071_v13, %v5075_v15 }
 0x2ff   : > { %4464 = vst.msk [vmem:[#allocation2 + $0x28] sm:$0xff] %vm307_vm2, %v4448_v10  ;;  %v4167_v25 = vmax.f32 %v4135_v47, 0.0  ;;  %v4136_v9 = vadd.f32 %v19957_v49, %v4098_v26  ;;  %15299 = vmatmul.mubr.msk.bf16.gmra.mrb[72].mxu0 %vm307_vm2, %v19831_v61  ;;  %v5081_v61 = vshll.u32 %v20011_v20, 16 }
 0x300   : > { %4463 = vst.msk [vmem:[#allocation2 + $0x20] sm:$0xff] %vm307_vm2, %v4447_v28  ;;  %v4165_v57 = vmax.f32 %v4133_v36, 0.0  ;;  %v4134_v39 = vadd.f32 %v19957_v49, %v4096_v1  ;;  %15304 = vmatprep.mubr.msk.bf16.mxu0 %vm17999_vm1, %v22470_v53  ;;  %v20022_v23 = vpop.f32.mrb[0].mxu1 }
 0x301   : > { %v4168_v46 = vmax.f32 %v4136_v9, 0.0  ;;  %22527 = vst [vmem:[#allocation24_spill] sm:$0xff] %v20022_v23  ;;  %v4423_v22 = vmul.f32 %v17661_v40, %v4167_v25  ;;  %v15602_v42 = vpop.f32.mrb[1].mxu1  ;;  %v5079_v40 = vor.u32 %v5077_v45, %v5075_v15 }
 0x302   : > { %v4166_v5 = vmax.f32 %v4134_v39, 0.0  ;;  %v15192_v55 = vpop.f32.mrb[12].mxu0  ;;  %v4421_v58 = vmul.f32 %v17656_v60, %v4165_v57  ;;  %v20026_v56 = vpop.f32.mrb[2].mxu1  ;;  %v5083_v60 = vrot.slane %v5081_v61, 1  ;;  %v20037_v57 = vld [vmem:[%s22371_s5] sm:$0x3]  ;;  %v17666_v61 = vunpack.i.l.bf16 %v17665_v54 }
 0x303   : > { %v4424_v4 = vmul.f32 %v17662_v41, %v4168_v46  ;;  %v4101_v10 = vmul.f32 %v15192_v55, %v19948_v11  ;;  %v3970_v47 = vpop.f32.mrb[13].mxu0  ;;  %22528 = vst [vmem:[#allocation25_spill] sm:$0xff] %v20026_v56  ;;  %v15603_v36 = vpop.f32.mrb[3].mxu1  ;;  %v17672_v46 = vunpack.i.h.bf16 %v17670_v34  ;;  %v17667_v55 = vunpack.i.h.bf16 %v17665_v54 }
 0x304   : > { %v4422_v6 = vmul.f32 %v17657_v44, %v4166_v5  ;;  %v4099_v38 = vmul.f32 %v19948_v11, %v3970_v47  ;;  %v15193_v26 = vpop.f32.mrb[14].mxu0  ;;  %v17671_v5 = vunpack.i.l.bf16 %v17670_v34  ;;  %v17680_v42 = vpop.permute.xlu1 %17679 }
 0x305   : > { %v4450_v50 = vpack.c.bf16 %v4424_v4, %v4423_v22  ;;  %v4139_v28 = vadd.f32 %v19957_v49, %v4101_v10  ;;  %v4102_v1 = vmul.f32 %v15193_v26, %v19948_v11  ;;  %v3973_v41 = vpop.f32.mrb[15].mxu0  ;;  %v20047_v22 = vld [vmem:[%s18083_s16 + $0x9c] sm:$0xff]   ;;  %v17675_v10 = vpop.permute.xlu0 %17674 }
 0x306   : > { %v4449_v25 = vpack.c.bf16 %v4422_v6, %v4421_v58  ;;  %v4137_v9 = vadd.f32 %v19957_v49, %v4099_v38  ;;  %v4100_v44 = vmul.f32 %v19948_v11, %v3973_v41  ;;  %v5084_v6 = vsel %vm1176_vm3, %v5079_v40, %v5083_v60 }
 0x307   : > { %4466 = vst.msk [vmem:[#allocation2 + $0x38] sm:$0xff] %vm307_vm2, %v4450_v50  ;;  %v4171_v39 = vmax.f32 %v4139_v28, 0.0  ;;  %v4140_v13 = vadd.f32 %v19957_v49, %v4102_v1  ;;  %15305 = vmatmul.mubr.msk.bf16.vlgmr.msra.gmra.mrb[32].mxu0 %vm307_vm2, %v5076_v33 }
 0x308   : > { %4465 = vst.msk [vmem:[#allocation2 + $0x30] sm:$0xff] %vm307_vm2, %v4449_v25  ;;  %v4169_v15 = vmax.f32 %v4137_v9, 0.0  ;;  %v4138_v45 = vadd.f32 %v19957_v49, %v4100_v44  ;;  %15308 = vmatprep.mubr.msk.bf16.mxu0 %vm17999_vm1, %v22470_v53  ;;  %15625 = vmatpush3.bf16.msra.mxu0 %v19875_v14  ;;  %v20052_v47 = vpop.f32.mrb[4].mxu1  ;;  %v5085_v14 = vshrl.u32 %v20011_v20, 16  ;;  %v5089_v9 = vshll.u32 %v20047_v22, 16 }
 0x309   : > { %v4172_v4 = vmax.f32 %v4140_v13, 0.0  ;;  %17550 = vmatprep.subr.msk.bf16.mxu0 %vm511_vm0, %v20037_v57  ;;  %22529 = vst [vmem:[#allocation26_spill] sm:$0xff] %v20052_v47  ;;  %v4427_v54 = vmul.f32 %v17671_v5, %v4171_v39  ;;  %v15606_v26 = vpop.f32.mrb[5].mxu1  ;;  %v17682_v5 = vunpack.i.h.bf16 %v17680_v42 }
 0x30a   : > { %v4170_v34 = vmax.f32 %v4138_v45, 0.0  ;;  %v15196_v58 = vpop.f32.mrb[16].mxu0  ;;  %v4425_v28 = vmul.f32 %v17666_v61, %v4169_v15  ;;  %v20057_v1 = vpop.f32.mrb[6].mxu1 }
 0x30b   : > { %v4428_v38 = vmul.f32 %v17672_v46, %v4172_v4  ;;  %v4105_v33 = vmul.f32 %v15196_v58, %v19948_v11  ;;  %v3986_v50 = vpop.f32.mrb[17].mxu0  ;;  %22530 = vst [vmem:[#allocation27_spill] sm:$0xff] %v20057_v1  ;;  %v15607_v39 = vpop.f32.mrb[7].mxu1  ;;  %v17676_v58 = vunpack.i.l.bf16 %v17675_v10 }
 0x30c   : > { %v4426_v36 = vmul.f32 %v17667_v55, %v4170_v34  ;;  %v4103_v41 = vmul.f32 %v19948_v11, %v3986_v50  ;;  %v15197_v25 = vpop.f32.mrb[18].mxu0  ;;  %v17681_v55 = vunpack.i.l.bf16 %v17680_v42  ;;  %v17677_v34 = vunpack.i.h.bf16 %v17675_v10 }
 0x30d   : > { %v4452_v44 = vpack.c.bf16 %v4428_v38, %v4427_v54  ;;  %v4143_v40 = vadd.f32 %v19957_v49, %v4105_v33  ;;  %v4106_v13 = vmul.f32 %v15197_v25, %v19948_v11  ;;  %v3989_v46 = vpop.f32.mrb[19].mxu0  ;;  %v20069_v54 = vld [vmem:[%s18083_s16 + $0xa4] sm:$0xff]   ;;  %v5087_v42 = vor.u32 %v5085_v14, %v5083_v60 }
 0x30e   : > { %v4451_v45 = vpack.c.bf16 %v4426_v36, %v4425_v28  ;;  %v4141_v20 = vadd.f32 %v19957_v49, %v4103_v41  ;;  %v4104_v15 = vmul.f32 %v19948_v11, %v3989_v46  ;;  %v5091_v33 = vrot.slane %v5089_v9, 1  ;;  %v17690_v28 = vpop.permute.xlu1 %17689  ;;  %v17685_v36 = vpop.permute.xlu0 %17684 }
 0x30f   : > { %4468 = vst.msk [vmem:[#allocation2 + $0x48] sm:$0xff] %vm307_vm2, %v4452_v44  ;;  %v4175_v61 = vmax.f32 %v4143_v40, 0.0  ;;  %v4144_v4 = vadd.f32 %v19957_v49, %v4106_v13  ;;  %15309 = vmatmul.mubr.msk.bf16.gmra.mrb[36].mxu0 %vm307_vm2, %v5084_v6  ;;  %v5093_v6 = vshrl.u32 %v20047_v22, 16 }
 0x310   : > { %4467 = vst.msk [vmem:[#allocation2 + $0x40] sm:$0xff] %vm307_vm2, %v4451_v45  ;;  %v4173_v38 = vmax.f32 %v4141_v20, 0.0  ;;  %v4142_v26 = vadd.f32 %v19957_v49, %v4104_v15  ;;  %15312 = vmatprep.mubr.msk.bf16.mxu0 %vm17999_vm1, %v22470_v53  ;;  %v20075_v25 = vpop.f32.mrb[8].mxu1  ;;  %v5097_v45 = vshll.u32 %v20069_v54, 16 }
 0x311   : > { %v4176_v50 = vmax.f32 %v4144_v4, 0.0  ;;  %22531 = vst [vmem:[#allocation28_spill] sm:$0xff] %v20075_v25  ;;  %v4431_v44 = vmul.f32 %v17681_v55, %v4175_v61  ;;  %v15610_v39 = vpop.f32.mrb[9].mxu1  ;;  %v5092_v4 = vsel %vm1176_vm3, %v5087_v42, %v5091_v33  ;;  %v5095_v42 = vor.u32 %v5093_v6, %v5091_v33 }
 0x312   : > { %v4174_v41 = vmax.f32 %v4142_v26, 0.0  ;;  %v15200_v10 = vpop.f32.mrb[20].mxu0  ;;  %v4429_v20 = vmul.f32 %v17676_v58, %v4173_v38  ;;  %v20080_v14 = vpop.f32.mrb[10].mxu1  ;;  %v17691_v58 = vunpack.i.l.bf16 %v17690_v28 }
 0x313   : > { %v4432_v40 = vmul.f32 %v17682_v5, %v4176_v50  ;;  %v4109_v13 = vmul.f32 %v15200_v10, %v19948_v11  ;;  %v4002_v46 = vpop.f32.mrb[21].mxu0  ;;  %22532 = vst [vmem:[#allocation29_spill] sm:$0xff] %v20080_v14  ;;  %v15611_v55 = vpop.f32.mrb[11].mxu1  ;;  %v17692_v50 = vunpack.i.h.bf16 %v17690_v28 }
 0x314   : > { %v4430_v60 = vmul.f32 %v17677_v34, %v4174_v41  ;;  %v4107_v9 = vmul.f32 %v19948_v11, %v4002_v46  ;;  %v15201_v15 = vpop.f32.mrb[22].mxu0  ;;  %v17687_v46 = vunpack.i.h.bf16 %v17685_v36 }
 0x315   : > { %v4454_v26 = vpack.c.bf16 %v4432_v40, %v4431_v44  ;;  %v4147_v22 = vadd.f32 %v19957_v49, %v4109_v13  ;;  %v4110_v5 = vmul.f32 %v15201_v15, %v19948_v11  ;;  %v4005_v61 = vpop.f32.mrb[23].mxu0  ;;  %v5099_v44 = vrot.slane %v5097_v45, 1 }
 0x316   : > { %v4453_v10 = vpack.c.bf16 %v4430_v60, %v4429_v20  ;;  %v4145_v39 = vadd.f32 %v19957_v49, %v4107_v9  ;;  %v4108_v34 = vmul.f32 %v19948_v11, %v4005_v61  ;;  %v17686_v20 = vunpack.i.l.bf16 %v17685_v36  ;;  %v17700_v60 = vpop.permute.xlu1 %17699  ;;  %v17695_v9 = vpop.permute.xlu0 %17694 }
 0x317   : > { %4470 = vst.msk [vmem:[#allocation2 + $0x58] sm:$0xff] %vm307_vm2, %v4454_v26  ;;  %v4179_v38 = vmax.f32 %v4147_v22, 0.0  ;;  %v4148_v41 = vadd.f32 %v19957_v49, %v4110_v5  ;;  %15313 = vmatmul.mubr.msk.bf16.gmra.mrb[40].mxu0 %vm307_vm2, %v5092_v4  ;;  %v5100_v5 = vsel %vm1176_vm3, %v5095_v42, %v5099_v44 }
 0x318   : > { %4469 = vst.msk [vmem:[#allocation2 + $0x50] sm:$0xff] %vm307_vm2, %v4453_v10  ;;  %v4177_v40 = vmax.f32 %v4145_v39, 0.0  ;;  %v4146_v13 = vadd.f32 %v19957_v49, %v4108_v34  ;;  %15316 = vmatprep.mubr.msk.bf16.mxu0 %vm17999_vm1, %v22470_v53  ;;  %v20095_v26 = vpop.f32.mrb[12].mxu1 }
 0x319   : > { %v4180_v28 = vmax.f32 %v4148_v41, 0.0  ;;  %22533 = vst [vmem:[#allocation30_spill] sm:$0xff] %v20095_v26  ;;  %v4435_v4 = vmul.f32 %v17691_v58, %v4179_v38  ;;  %v15614_v6 = vpop.f32.mrb[13].mxu1  ;;  %v5101_v41 = vshrl.u32 %v20069_v54, 16 }
 0x31a   : > { %v4178_v15 = vmax.f32 %v4146_v13, 0.0  ;;  %v15204_v22 = vpop.f32.mrb[24].mxu0  ;;  %v4433_v61 = vmul.f32 %v17686_v20, %v4177_v40  ;;  %v20099_v10 = vpop.f32.mrb[14].mxu1  ;;  %v17702_v40 = vunpack.i.h.bf16 %v17700_v60 }
 0x31b   : > { %v4436_v33 = vmul.f32 %v17692_v50, %v4180_v28  ;;  %v4113_v45 = vmul.f32 %v15204_v22, %v19948_v11  ;;  %v4018_v55 = vpop.f32.mrb[25].mxu0  ;;  %22534 = vst [vmem:[#allocation31_spill] sm:$0xff] %v20099_v10  ;;  %v15615_v58 = vpop.f32.mrb[15].mxu1 }
 0x31c   : > { %v4434_v36 = vmul.f32 %v17687_v46, %v4178_v15  ;;  %v4111_v39 = vmul.f32 %v19948_v11, %v4018_v55  ;;  %v15205_v34 = vpop.f32.mrb[26].mxu0  ;;  %v20107_v46 = vld [vmem:[#allocation2] sm:$0xf0]  ;;  %v17701_v15 = vunpack.i.l.bf16 %v17700_v60  ;;  %v5103_v55 = vor.u32 %v5101_v41, %v5099_v44 }
 0x31d   : > { %v4456_v13 = vpack.c.bf16 %v4436_v33, %v4435_v4  ;;  %v4151_v7 = vadd.f32 %v19957_v49, %v4113_v45  ;;  %v4114_v50 = vmul.f32 %v15205_v34, %v19948_v11  ;;  %v4021_v38 = vpop.f32.mrb[27].mxu0  ;;  %v17696_v4 = vunpack.i.l.bf16 %v17695_v9 }
 0x31e   : > { %v4455_v28 = vpack.c.bf16 %v4434_v36, %v4433_v61  ;;  %v4149_v22 = vadd.f32 %v19957_v49, %v4111_v39  ;;  %v4112_v42 = vmul.f32 %v19948_v11, %v4021_v38  ;;  %v17697_v45 = vunpack.i.h.bf16 %v17695_v9 }
 0x31f   : > { %4472 = vst.msk [vmem:[#allocation2 + $0x68] sm:$0xff] %vm307_vm2, %v4456_v13  ;;  %v4183_v20 = vmax.f32 %v4151_v7, 0.0  ;;  %v4152_v54 = vadd.f32 %v19957_v49, %v4114_v50  ;;  %15317 = vmatmul.mubr.msk.bf16.gmra.mrb[44].mxu0 %vm307_vm2, %v5100_v5  ;;  %v7433_v36 = vrot.slane %v20107_v46, 4  ;;  %v17580_v7 = vunpack.i.l.bf16 %v19902_v29 }
 0x320   : > { %4471 = vst.msk [vmem:[#allocation2 + $0x60] sm:$0xff] %vm307_vm2, %v4455_v28  ;;  %v4181_v33 = vmax.f32 %v4149_v22, 0.0  ;;  %v4150_v6 = vadd.f32 %v19957_v49, %v4112_v42  ;;  %15320 = vmatprep.mubr.msk.bf16.mxu0 %vm17999_vm1, %v22470_v53  ;;  %v20118_v60 = vpop.f32.mrb[16].mxu1  ;;  %v7434_v5 = vrot.slane %v19836_v2, 4 }
 0x321   : > { %v4184_v61 = vmax.f32 %v4152_v54, 0.0  ;;  %22535 = vst [vmem:[#allocation32_spill] sm:$0xff] %v20118_v60  ;;  %v4439_v13 = vmul.f32 %v17701_v15, %v4183_v20  ;;  %v15618_v50 = vpop.f32.mrb[17].mxu1  ;;  %v22537_v54 = vld [vmem:[#allocation6_spill] sm:$0xff] }
 0x322   : > { %v4182_v39 = vmax.f32 %v4150_v6, 0.0  ;;  %v15208_v34 = vpop.f32.mrb[28].mxu0  ;;  %v4437_v28 = vmul.f32 %v17696_v4, %v4181_v33  ;;  %v20122_v41 = vpop.f32.mrb[18].mxu1  ;;  %v5108_v6 = vsel %vm1176_vm3, %v5103_v55, %v22537_v54  ;;  %v17575_v4 = vunpack.i.l.bf16 %v19894_v30 }
 0x323   : > { %v4440_v58 = vmul.f32 %v17702_v40, %v4184_v61  ;;  %v4117_v9 = vmul.f32 %v15208_v34, %v19948_v11  ;;  %v4034_v38 = vpop.f32.mrb[29].mxu0  ;;  %22536 = vst [vmem:[#allocation33_spill] sm:$0xff] %v20122_v41  ;;  %v15619_v20 = vpop.f32.mrb[19].mxu1  ;;  %v7435_v61 = vsel %vm7432_vm5, %v7433_v36, %v7434_v5  ;;  %v17581_v34 = vunpack.i.h.bf16 %v19902_v29 }
 0x324   : > { %v4438_v44 = vmul.f32 %v17697_v45, %v4182_v39  ;;  %v4115_v22 = vmul.f32 %v19948_v11, %v4034_v38  ;;  %v15209_v42 = vpop.f32.mrb[30].mxu0  ;;  %v17576_v36 = vunpack.i.h.bf16 %v19894_v30  ;;  %v7402_v20 = vld [vmem:[#allocation2 + $0x28] sm:$0xff] }
 0x325   : > { %v4458_v16 = vpack.c.bf16 %v4440_v58, %v4439_v13  ;;  %v4155_v8 = vadd.f32 %v19957_v49, %v4117_v9  ;;  %v4118_v40 = vmul.f32 %v15209_v42, %v19948_v11  ;;  %v4037_v15 = vpop.f32.mrb[31].mxu0  ;;  %v20137_v58 = vld [vmem:[#allocation2 + $0x10] sm:$0xff] }
 0x326   : > { %v4457_v33 = vpack.c.bf16 %v4438_v44, %v4437_v28  ;;  %v4153_v45 = vadd.f32 %v19957_v49, %v4115_v22  ;;  %v4116_v39 = vmul.f32 %v19948_v11, %v4037_v15  ;;  %v20143_v11 = vld [vmem:[#allocation2 + $0x18] sm:$0xff]  ;;  %v7436_v44 = vrot.slane %v20137_v58, 4  ;;  %v20219_v21 = vld [vmem:[#allocation2 + $0x68] sm:$0xff] }
 0x327   : > { %4474 = vst.msk [vmem:[#allocation2 + $0x78] sm:$0xff] %vm307_vm2, %v4458_v16  ;;  %v4187_v55 = vmax.f32 %v4155_v8, 0.0  ;;  %v4156_v13 = vadd.f32 %v19957_v49, %v4118_v40  ;;  %15321 = vmatmul.mubr.msk.bf16.gmra.mrb[48].mxu0 %vm307_vm2, %v5108_v6  ;;  %v7438_v30 = vrot.slane %v20143_v11, 4 }
 0x328   : > { %4473 = vst.msk [vmem:[#allocation2 + $0x70] sm:$0xff] %vm307_vm2, %v4457_v33  ;;  %v4185_v50 = vmax.f32 %v4153_v45, 0.0  ;;  %v4154_v9 = vadd.f32 %v19957_v49, %v4116_v39  ;;  %15626 = vmatprep.mubr.msk.bf16.mxu0 %vm307_vm2, %v7435_v61  ;;  %v20145_v28 = vpop.f32.mrb[20].mxu1  ;;  %v7401_v49 = vld [vmem:[#allocation2 + $0x20] sm:$0xff]  ;;  %v7442_v39 = vrot.slane %v7402_v20, 4 }
 0x329   : > { %v4443_v29 = vmul.f32 %v17580_v7, %v4187_v55  ;;  %v4188_v16 = vmax.f32 %v4156_v13, 0.0  ;;  %22538 = vst [vmem:[#allocation6_spill] sm:$0xff] %v20145_v28  ;;  %v15622_v42 = vpop.f32.mrb[21].mxu1  ;;  %v20153_v7 = vsel %vm511_vm0, %v20037_v57, 0  ;;  %v7439_v33 = vsel %vm7432_vm5, %v7436_v44, %v7438_v30  ;;  %v20161_v55 = vld [vmem:[#allocation2 + $0x38] sm:$0xff]  ;;  %v20166_v13 = vld [vmem:[#allocation2 + $0x40] sm:$0xff] }
 0x32a   : > { %v4441_v8 = vmul.f32 %v17575_v4, %v4185_v50  ;;  %v4186_v38 = vmax.f32 %v4154_v9, 0.0  ;;  %v20149_v6 = vpop.f32.mrb[22].mxu1  ;;  %v7437_v4 = vsel %vm7432_vm5, %v7434_v5, %v7436_v44  ;;  %v7440_v45 = vrot.slane %v7401_v49, 4 }
 0x32b   : > { %v4444_v22 = vmul.f32 %v17581_v34, %v4188_v16  ;;  %22539 = vst [vmem:[#allocation34_spill] sm:$0xff] %v20149_v6  ;;  %v15623_v15 = vpop.f32.mrb[23].mxu1  ;;  %v7403_v34 = vld [vmem:[#allocation2 + $0x30] sm:$0xff]  ;;  %v20164_v57 = vshrl.u32 %v7401_v49, 16  ;;  %v20170_v50 = vshll.u32 %v7401_v49, 16  ;;  %v20182_v44 = vshll.u32 %v7402_v20, 16 }
 0x32c   : > { %v4442_v54 = vmul.f32 %v17576_v36, %v4186_v38  ;;  %v7444_v5 = vrot.slane %v7403_v34, 4  ;;  %v20168_v36 = vld [vmem:[#allocation2 + $0x48] sm:$0xff]  ;;  %v7441_v9 = vsel %vm7432_vm5, %v7438_v30, %v7440_v45  ;;  %v20180_v38 = vshrl.u32 %v7402_v20, 16  ;;  %v20192_v49 = vld [vmem:[#allocation2 + $0x50] sm:$0xff] }
 0x32d   : > { %v4460_v40 = vpack.c.bf16 %v4444_v22, %v4443_v29  ;;  %v7443_v29 = vsel %vm7432_vm5, %v7440_v45, %v7442_v39  ;;  %v20184_v22 = vshrl.u32 %v7403_v34, 16  ;;  %v20186_v42 = vshll.u32 %v7403_v34, 16 }
 0x32e   : > { %v4459_v61 = vpack.c.bf16 %v4442_v54, %v4441_v8  ;;  %v20178_v8 = vld [vmem:[%s22371_s5 + $0x4] sm:$0x3]  ;;  %v8064_v15 = vrot.slane %v20164_v57, 4  ;;  %v20206_v45 = vshll.u32 %v20161_v55, 16  ;;  %v20209_v34 = vshrl.u32 %v20166_v13, 16  ;;  %v20231_v52 = vld [vmem:[#allocation2 + $0x78] sm:$0xff] }
 0x32f   : > { %4476 = vst.msk [vmem:[#allocation2 + $0x88] sm:$0xff] %vm307_vm2, %v4460_v40  ;;  %15627 = vmatmul.mubr.msk.bf16.vlgmr.msra.gmra.mrb[76].mxu0 %vm307_vm2, %v7437_v4  ;;  %v20195_v40 = vshrl.u32 %v20161_v55, 16  ;;  %v20201_v4 = vld [vmem:[#allocation2 + $0x58] sm:$0xff]  ;;  %v8065_v54 = vrot.slane %v20170_v50, 5  ;;  %v20222_v12 = vshll.u32 %v20166_v13, 16  ;;  %v20225_v31 = vshrl.u32 %v20168_v36, 16 }
 0x330   : > { %4475 = vst.msk [vmem:[#allocation2 + $0x80] sm:$0xff] %vm307_vm2, %v4459_v61  ;;  %15630 = vmatprep.mubr.msk.bf16.mxu0 %vm307_vm2, %v7439_v33  ;;  %15659 = vmatpush3.bf16.msra.mxu0 %v20153_v7  ;;  %v7445_v61 = vsel %vm7432_vm5, %v7442_v39, %v7444_v5  ;;  %v20203_v33 = vld [vmem:[#allocation2 + $0x60] sm:$0xff]  ;;  %v22540_v39 = vrot.slane %v20161_v55, 4  ;;  %v20229_v19 = vld [vmem:[#allocation2 + $0x70] sm:$0xff]  ;;  %v20234_v16 = vshll.u32 %v20168_v36, 16  ;;  %v8077_v18 = vrot.slane %v20206_v45, 5 }
 0x331   : > { %17551 = vmatprep.subr.msk.bf16.mxu0 %vm511_vm0, %v20178_v8  ;;  %v20245_v27 = vor.u32 %v8065_v54, %v8064_v15  ;;  %v8069_v54 = vrot.slane %v20182_v44, 5  ;;  %v8076_v35 = vrot.slane %v20195_v40, 4  ;;  %v8080_v3 = vrot.slane %v20209_v34, 4 }
 0x332   : > { %v7447_v32 = vsel %vm7432_vm5, %v7444_v5, %v22540_v39  ;;  %v20237_v5 = vshrl.u32 %v20192_v49, 16  ;;  %v20240_v39 = vshll.u32 %v20192_v49, 16  ;;  %v8081_v0 = vrot.slane %v20222_v12, 5 }
 0x333   : > { %22541 = vst [vmem:[#allocation35_spill] sm:$0xff] %v20245_v27  ;;  %v8084_v6 = vrot.slane %v20225_v31, 4  ;;  %v8085_v28 = vrot.slane %v20234_v16, 5  ;;  %v22545_v15 = vshrl.u32 %v20201_v4, 16  ;;  %v22554_v10 = vshrl.u32 %v20229_v19, 16 }
 0x334   : > { %v8088_v63 = vrot.slane %v20237_v5, 4  ;;  %v22555_v26 = vshll.u32 %v20229_v19, 16  ;;  %v7728_v62 = vrot.slane %v20182_v44, 4 }
 0x335   : > { %v8092_v41 = vrot.slane %v22545_v15, 4  ;;  %v22552_v15 = vshrl.u32 %v20219_v21, 16 }
 0x336   : > { %v20198_v20 = vld [vmem:[#allocation2 + $0x88] sm:$0xff] }
 0x337   : > { %15631 = vmatmul.mubr.msk.bf16.gmra.mrb[80].mxu0 %vm307_vm2, %v7441_v9  ;;  %v20213_v30 = vld [vmem:[#allocation2 + $0x80] sm:$0xf0]  ;;  %v22542_v48 = vrot.slane %v20198_v20, 4 }
 0x338   : > { %15634 = vmatprep.mubr.msk.bf16.mxu0 %vm307_vm2, %v7443_v29  ;;  %v10800_v9 = vrot.slane %v20213_v30, 4  ;;  %v8068_v29 = vrot.slane %v20180_v38, 4  ;;  %v11243_v17 = vshll.u32 %v20213_v30, 16 }
 0x33a   : > { %v10802_v59 = vsel %vm7432_vm5, %v10800_v9, %v22542_v48  ;;  %v8072_v48 = vrot.slane %v20184_v22, 4  ;;  %v8073_v9 = vrot.slane %v20186_v42, 5 }
 0x33b   : > { %15933 = vmatmul.mubr.msk.bf16.vlgmr.msra.gmra.mrb[44].mxu1 %vm307_vm2, %v10802_v59  ;;  %v8070_v59 = vor.u32 %v8069_v54, %v8068_v29  ;;  %v8078_v29 = vor.u32 %v8077_v18, %v8076_v35  ;;  %v8082_v54 = vor.u32 %v8081_v0, %v8080_v3  ;;  %v22548_v0 = vshll.u32 %v20201_v4, 16 }
 0x33c   : > { %15977 = vmatpush3.bf16.msra.mxu1 %v20153_v7  ;;  %15936 = vmatprep.mubr.msk.bf16.mxu1 %vm17999_vm1, %v22470_v53  ;;  %v8074_v37 = vor.u32 %v8073_v9, %v8072_v48  ;;  %v8086_v48 = vor.u32 %v8085_v28, %v8084_v6  ;;  %v8089_v9 = vrot.slane %v20240_v39, 5  ;;  %v22549_v18 = vshrl.u32 %v20203_v33, 16 }
 0x33d   : > { %16022 = vmatprep.subr.bf16.mxu1 %v22470_v53  ;;  %v20275_v7 = vsel %vm8043_vm6, %v20245_v27, %v8070_v59  ;;  %v20289_v60 = vsel %vm8043_vm6, %v8078_v29, %v8082_v54  ;;  %v8093_v35 = vrot.slane %v22548_v0, 5  ;;  %v22551_v6 = vshll.u32 %v20203_v33, 16 }
 0x33e   : > { %22543 = vst [vmem:[#allocation36_spill] sm:$0xff] %v20275_v7  ;;  %v20280_v53 = vsel %vm8043_vm6, %v8070_v59, %v8074_v37  ;;  %22547 = vst [vmem:[#allocation39_spill] sm:$0xff] %v20289_v60  ;;  %v8096_v3 = vrot.slane %v22549_v18, 4  ;;  %v8090_v28 = vor.u32 %v8089_v9, %v8088_v63  ;;  %v8104_v0 = vrot.slane %v22554_v10, 4 }
 0x33f   : > { %15635 = vmatmul.mubr.msk.bf16.gmra.mrb[84].mxu0 %vm307_vm2, %v7445_v61  ;;  %22544 = vst [vmem:[#allocation37_spill] sm:$0xff] %v20280_v53  ;;  %v20286_v61 = vsel %vm8043_vm6, %v8074_v37, %v8078_v29  ;;  %v8097_v59 = vrot.slane %v22551_v6, 5  ;;  %v8100_v37 = vrot.slane %v22552_v15, 4  ;;  %v8094_v43 = vor.u32 %v8093_v35, %v8092_v41 }
 0x340   : > { %15638 = vmatprep.mubr.msk.bf16.mxu0 %vm307_vm2, %v7447_v32  ;;  %22546 = vst [vmem:[#allocation38_spill] sm:$0xff] %v20286_v61  ;;  %v20296_v32 = vsel %vm8043_vm6, %v8082_v54, %v8086_v48  ;;  %v22553_v29 = vshll.u32 %v20219_v21, 16  ;;  %v8105_v18 = vrot.slane %v22555_v26, 5  ;;  %v20309_v54 = vsel %vm8043_vm6, %v8086_v48, %v8090_v28 }
 0x341   : > { %22550 = vst [vmem:[#allocation40_spill] sm:$0xff] %v20296_v32  ;;  %22556 = vst [vmem:[#allocation41_spill] sm:$0xff] %v20309_v54  ;;  %v8098_v63 = vor.u32 %v8097_v59, %v8096_v3  ;;  %v22557_v9 = vshrl.u32 %v20231_v52, 16  ;;  %v22558_v32 = vshll.u32 %v20231_v52, 16  ;;  %v20316_v41 = vsel %vm8043_vm6, %v8090_v28, %v8094_v43 }
 0x342   : > { %v8101_v60 = vrot.slane %v22553_v29, 5  ;;  %22559 = vst [vmem:[#allocation42_spill] sm:$0xff] %v20316_v41  ;;  %v8106_v29 = vor.u32 %v8105_v18, %v8104_v0  ;;  %v22560_v10 = vrot.slane %v20166_v13, 4  ;;  %v22561_v61 = vrot.slane %v20161_v55, 4 }
 0x343   : > { %v8108_v6 = vrot.slane %v22557_v9, 4  ;;  %v8109_v15 = vrot.slane %v22558_v32, 5  ;;  %v20324_v48 = vsel %vm8043_vm6, %v8094_v43, %v8098_v63  ;;  %v22564_v32 = vrot.slane %v20168_v36, 4 }
 0x344   : > { %v8102_v35 = vor.u32 %v8101_v60, %v8100_v37  ;;  %v7449_v26 = vsel %vm7432_vm5, %v22561_v61, %v22560_v10  ;;  %22562 = vst [vmem:[#allocation43_spill] sm:$0xff] %v20324_v48  ;;  %v22565_v28 = vmov %v22560_v10  ;;  %v8406_v61 = vrot.slane %v20164_v57, 7  ;;  %v8379_v48 = vld [vmem:[#allocation2 + $0x78] sm:$0xff] }
 0x345   : > { %v20326_v3 = vor.u32 %v8109_v15, %v8108_v6  ;;  %v7451_v60 = vsel %vm7432_vm5, %v22565_v28, %v22564_v32  ;;  %v8414_v37 = vrot.slane %v20180_v38, 7  ;;  %v8422_v13 = vrot.slane %v20184_v22, 7 }
 0x346   : > { %v20335_v59 = vsel %vm8043_vm6, %v8098_v63, %v8102_v35  ;;  %v20338_v55 = vsel %vm8043_vm6, %v8102_v35, %v8106_v29  ;;  %v8430_v0 = vrot.slane %v20195_v40, 7  ;;  %v7452_v18 = vrot.slane %v20192_v49, 4 }
 0x347   : > { %22563 = vst [vmem:[#allocation44_spill] sm:$0xff] %v20326_v3  ;;  %15639 = vmatmul.mubr.msk.bf16.gmra.mrb[88].mxu0 %vm307_vm2, %v7449_v26  ;;  %22566 = vst [vmem:[#allocation45_spill] sm:$0xff] %v20335_v59  ;;  %v20343_v43 = vsel %vm8043_vm6, %v8106_v29, %v20326_v3  ;;  %v20351_v63 = vor.u32 %v8406_v61, %v20170_v50  ;;  %v8438_v9 = vrot.slane %v20209_v34, 7  ;;  %v7454_v6 = vrot.slane %v20201_v4, 4 }
 0x348   : > { %22567 = vst [vmem:[#allocation46_spill] sm:$0xff] %v20338_v55  ;;  %15642 = vmatprep.mubr.msk.bf16.mxu0 %vm307_vm2, %v7451_v60  ;;  %22568 = vst [vmem:[#allocation47_spill] sm:$0xff] %v20343_v43  ;;  %v8417_v15 = vor.u32 %v8414_v37, %v20182_v44  ;;  %v8425_v35 = vor.u32 %v8422_v13, %v20186_v42  ;;  %v8433_v29 = vor.u32 %v8430_v0, %v20206_v45 }
 0x349   : > { %22569 = vst [vmem:[#allocation48_spill] sm:$0xff] %v20351_v63  ;;  %v8441_v10 = vor.u32 %v8438_v9, %v20222_v12  ;;  %v8446_v26 = vrot.slane %v20225_v31, 7  ;;  %v22399_v60 = vrot.slane %v20237_v5, 7  ;;  %v22573_v63 = vrot.slane %v20168_v36, 4  ;;  %v7397_v36 = vld [vmem:[#allocation2] sm:$0xf8] }
 0x34a   : > { %v20361_v49 = vsel %vm8382_vm7, %v8406_v61, %v8417_v15  ;;  %v20364_v32 = vsel %vm8382_vm7, %v8414_v37, %v8425_v35  ;;  %v20367_v28 = vsel %vm8382_vm7, %v8422_v13, %v8433_v29  ;;  %v7455_v61 = vsel %vm7432_vm5, %v7452_v18, %v7454_v6 }
 0x34b   : > { %22570 = vst [vmem:[#allocation49_spill] sm:$0xff] %v20361_v49  ;;  %22571 = vst [vmem:[#allocation50_spill] sm:$0xff] %v20364_v32  ;;  %v7453_v3 = vsel %vm7432_vm5, %v22573_v63, %v7452_v18  ;;  %v20374_v43 = vsel %vm8382_vm7, %v8430_v0, %v8441_v10  ;;  %v8449_v55 = vor.u32 %v8446_v26, %v20234_v16  ;;  %v7456_v0 = vrot.slane %v20203_v33, 4  ;;  %v8376_v32 = vld [vmem:[#allocation2 + $0x60] sm:$0xff] }
 0x34c   : > { %22572 = vst [vmem:[#allocation51_spill] sm:$0xff] %v20367_v28  ;;  %22574 = vst [vmem:[#allocation52_spill] sm:$0xff] %v20374_v43  ;;  %v8457_v37 = vor.u32 %v22399_v60, %v20240_v39  ;;  %v7458_v15 = vrot.slane %v20219_v21, 4  ;;  %v7682_v35 = vshll.u32 %v7397_v36, 16  ;;  %v20396_v10 = vshrl.u32 %v20137_v58, 16  ;;  %v8375_v43 = vld [vmem:[#allocation2 + $0x58] sm:$0xff] }
 0x34d   : > { %v20384_v13 = vsel %vm8382_vm7, %v8438_v9, %v8449_v55  ;;  %v7457_v18 = vsel %vm7432_vm5, %v7454_v6, %v7456_v0  ;;  %v7460_v6 = vrot.slane %v20229_v19, 4  ;;  %v20425_v59 = vshll.u32 %v8375_v43, 16 }
 0x34e   : > { %22575 = vst [vmem:[#allocation53_spill] sm:$0xff] %v20384_v13  ;;  %v20387_v63 = vsel %vm8382_vm7, %v8446_v26, %v8457_v37  ;;  %v7459_v29 = vsel %vm7432_vm5, %v7456_v0, %v7458_v15  ;;  %v7684_v9 = vrot.slane %v7682_v35, 4  ;;  %v20399_v26 = vshll.u32 %v20137_v58, 16 }
 0x34f   : > { %15643 = vmatmul.mubr.msk.bf16.gmra.mrb[92].mxu0 %vm307_vm2, %v7453_v3  ;;  %22576 = vst [vmem:[#allocation54_spill] sm:$0xff] %v20387_v63  ;;  %v7679_v3 = vshrl.u32 %v7397_v36, 16  ;;  %v20405_v37 = vshll.u32 %v20143_v11, 16  ;;  %v22577_v36 = vshrl.u32 %v19836_v2, 16  ;;  %v7698_v60 = vrot.slane %v20396_v10, 3 }
 0x350   : > { %15646 = vmatprep.mubr.msk.bf16.mxu0 %vm307_vm2, %v7455_v61  ;;  %v20402_v61 = vshrl.u32 %v20143_v11, 16  ;;  %v7701_v63 = vrot.slane %v20399_v26, 4  ;;  %v7461_v28 = vsel %vm7432_vm5, %v7458_v15, %v7460_v6  ;;  %v20429_v15 = vshll.u32 %v8376_v32, 16 }
 0x351   : > { %v7681_v55 = vrot.slane %v7679_v3, 3  ;;  %v7689_v0 = vrot.slane %v22577_v36, 3  ;;  %v22578_v3 = vshll.u32 %v19836_v2, 16  ;;  %v7710_v13 = vrot.slane %v20405_v37, 4  ;;  %v8377_v2 = vld [vmem:[#allocation2 + $0x68] sm:$0xff] }
 0x352   : > { %v7707_v11 = vrot.slane %v20402_v61, 3  ;;  %v7702_v41 = vor.u32 %v7701_v63, %v7698_v60  ;;  %v20440_v60 = vshrl.u32 %v8375_v43, 16  ;;  %v20444_v63 = vshrl.u32 %v8376_v32, 16 }
 0x353   : > { %v7692_v35 = vrot.slane %v22578_v3, 4  ;;  %v7685_v58 = vor.u32 %v7684_v9, %v7681_v55  ;;  %v8378_v9 = vld [vmem:[#allocation2 + $0x70] sm:$0xff]  ;;  %v20451_v14 = vshrl.u32 %v8379_v48, 16  ;;  %v11240_v27 = vshrl.u32 %v20213_v30, 16 }
 0x354   : > { %v20427_v54 = vor.u32 %v7710_v13, %v7707_v11  ;;  %v20436_v53 = vshll.u32 %v8378_v9, 16  ;;  %v20442_v13 = vshll.u32 %v8379_v48, 16  ;;  %v20446_v11 = vshrl.u32 %v8377_v2, 16 }
 0x355   : > { %v7693_v36 = vor.u32 %v7692_v35, %v7689_v0  ;;  %v20431_v0 = vshll.u32 %v8377_v2, 16  ;;  %v7725_v35 = vrot.slane %v20180_v38, 3  ;;  %v22402_v38 = vrot.slane %v20425_v59, 1 }
 0x356   : > { %v9110_v51 = vrot.slane %v20442_v13, 1  ;;  %v7712_v30 = vsel %vm695_vm4, %v7702_v41, %v20427_v54 }
 0x357   : > { %15647 = vmatmul.mubr.msk.bf16.gmra.mrb[96].mxu0 %vm307_vm2, %v7457_v18  ;;  %v7462_v18 = vrot.slane %v20231_v52, 4  ;;  %v7694_v49 = vsel %vm695_vm4, %v7685_v58, %v7693_v36  ;;  %v9094_v44 = vrot.slane %v20431_v0, 1  ;;  %v9082_v2 = vor.u32 %v22402_v38, %v20440_v60 }
 0x358   : > { %15650 = vmatprep.mubr.msk.bf16.mxu0 %vm307_vm2, %v7459_v29  ;;  %v20413_v29 = vld [vmem:[#allocation2 + $0x80] sm:$0xf]  ;;  %v9114_v23 = vor.u32 %v9110_v51, %v20451_v14 }
 0x359   : > { %v7463_v3 = vsel %vm7432_vm5, %v7460_v6, %v7462_v18  ;;  %v7464_v55 = vrot.slane %v20413_v29, 4  ;;  %v7719_v6 = vrot.slane %v20170_v50, 4  ;;  %v8381_v50 = vld [vmem:[#allocation2 + $0x88] sm:$0xff]  ;;  %v9098_v7 = vor.u32 %v9094_v44, %v20446_v11 }
 0x35a   : > { %v20464_v48 = vshll.u32 %v8381_v50, 16 }
 0x35b   : > { %v7465_v58 = vsel %vm7432_vm5, %v7462_v18, %v7464_v55  ;;  %v9086_v18 = vrot.slane %v20429_v15, 1  ;;  %v9102_v55 = vrot.slane %v20436_v53, 1 }
 0x35d   : > { %v20473_v32 = vsel %vm1176_vm3, %v9082_v2, %v9086_v18  ;;  %v20483_v47 = vsel %vm1176_vm3, %v9098_v7, %v9102_v55  ;;  %v9126_v7 = vrot.slane %v20464_v48, 1 }
 0x35e   : > { %22579 = vst [vmem:[#allocation55_spill] sm:$0xff] %v20473_v32  ;;  %22581 = vst [vmem:[#allocation57_spill] sm:$0xff] %v20483_v47  ;;  %v22584_v32 = vshll.u32 %v20198_v20, 16 }
 0x35f   : > { %15651 = vmatmul.mubr.msk.bf16.gmra.mrb[100].mxu0 %vm307_vm2, %v7461_v28  ;;  %v7716_v28 = vrot.slane %v20164_v57, 3  ;;  %v20448_v57 = vshrl.u32 %v8378_v9, 16  ;;  %v9090_v9 = vor.u32 %v9086_v18, %v20444_v63  ;;  %v22583_v18 = vshrl.u32 %v20198_v20, 16 }
 0x360   : > { %15654 = vmatprep.mubr.msk.bf16.mxu0 %vm307_vm2, %v7463_v3  ;;  %v8380_v3 = vld [vmem:[#allocation2 + $0x80] sm:$0xff]  ;;  %v11248_v56 = vrot.slane %v22584_v32, 5 }
 0x361   : > { %v20453_v25 = vshll.u32 %v8380_v3, 16  ;;  %v20470_v43 = vshrl.u32 %v8380_v3, 16  ;;  %v9106_v38 = vor.u32 %v9102_v55, %v20448_v57  ;;  %v20480_v1 = vsel %vm1176_vm3, %v9090_v9, %v9094_v44 }
 0x362   : > { %22580 = vst [vmem:[#allocation56_spill] sm:$0xff] %v20480_v1  ;;  %v11242_v3 = vrot.slane %v11240_v27, 4  ;;  %v11247_v2 = vrot.slane %v22583_v18, 4  ;;  %v7703_v55 = vsel %vm695_vm4, %v7693_v36, %v7702_v41  ;;  %v20501_v27 = vsel %vm511_vm0, %v20178_v8, 0 }
 0x363   : > { %v9118_v44 = vrot.slane %v20453_v25, 1  ;;  %22585 = vst [vmem:[#allocation59_spill] sm:$0xff] %v20501_v27  ;;  %v7734_v36 = vrot.slane %v20184_v22, 3  ;;  %v7737_v18 = vrot.slane %v20186_v42, 4  ;;  %v7743_v41 = vrot.slane %v20195_v40, 3 }
 0x364   : > { %v7746_v8 = vrot.slane %v20206_v45, 4  ;;  %v7752_v22 = vrot.slane %v20209_v34, 3  ;;  %v7755_v42 = vrot.slane %v20222_v12, 4  ;;  %v7764_v34 = vrot.slane %v20234_v16, 4 }
 0x365   : > { %v7738_v40 = vor.u32 %v7737_v18, %v7734_v36  ;;  %v9471_v12 = vrot.slane %v20440_v60, 3  ;;  %v9489_v16 = vrot.slane %v20446_v11, 3  ;;  %v9492_v36 = vrot.slane %v20431_v0, 4 }
 0x366   : > { %v7747_v45 = vor.u32 %v7746_v8, %v7743_v41  ;;  %v9501_v18 = vrot.slane %v20436_v53, 4 }
 0x367   : > { %15655 = vmatmul.mubr.msk.bf16.gmra.mrb[104].mxu0 %vm307_vm2, %v7465_v58  ;;  %v20477_v58 = vshrl.u32 %v8381_v50, 16  ;;  %v11245_v50 = vrot.slane %v11243_v17, 5  ;;  %v20506_v17 = vsel %vm1176_vm3, %v9114_v23, %v9118_v44 }
 0x368   : > { %15660 = vmatprep.mubr.msk.bf16.mxu0 %vm307_vm2, %v7694_v49  ;;  %v20487_v49 = vsel %vm1176_vm3, %v9106_v38, %v9110_v51  ;;  %v20503_v38 = vor.u32 %v11248_v56, %v11247_v2  ;;  %22586 = vst [vmem:[#allocation60_spill] sm:$0xff] %v20506_v17  ;;  %v9122_v51 = vor.u32 %v9118_v44, %v20470_v43  ;;  %v7770_v44 = vrot.slane %v20237_v5, 3 }
 0x369   : > { %22582 = vst [vmem:[#allocation58_spill] sm:$0xff] %v20487_v49  ;;  %v11246_v9 = vor.u32 %v11245_v50, %v11242_v3  ;;  %v20510_v32 = vor.u32 %v9126_v7, %v20477_v58  ;;  %v7720_v56 = vor.u32 %v7719_v6, %v7716_v28  ;;  %v7729_v3 = vor.u32 %v7728_v62, %v7725_v35  ;;  %v20534_v6 = vld [vmem:[%s22371_s5 + $0x6] sm:$0x3] }
 0x36a   : > { %v20522_v2 = vsel %vm1176_vm3, %v9122_v51, %v9126_v7  ;;  %v7756_v35 = vor.u32 %v7755_v42, %v7752_v22  ;;  %v7761_v50 = vrot.slane %v20225_v31, 3  ;;  %v9474_v7 = vrot.slane %v20425_v59, 4 }
 0x36b   : > { %22587 = vst [vmem:[#allocation61_spill] sm:$0xff] %v20510_v32  ;;  %v20519_v23 = vsel %vm8043_vm6, %v11246_v9, %v20503_v38  ;;  %22589 = vst [vmem:[#allocation63_spill] sm:$0xff] %v20522_v2  ;;  %v7721_v62 = vsel %vm695_vm4, %v20427_v54, %v7720_v56  ;;  %v7730_v28 = vsel %vm695_vm4, %v7720_v56, %v7729_v3  ;;  %v7773_v54 = vrot.slane %v20240_v39, 4  ;;  %v8991_v32 = vld [vmem:[#allocation2 + $0x30] sm:$0xff] }
 0x36c   : > { %22588 = vst [vmem:[#allocation62_spill] sm:$0xff] %v20519_v23  ;;  %v7748_v9 = vsel %vm695_vm4, %v7738_v40, %v7747_v45  ;;  %v9483_v31 = vrot.slane %v20429_v15, 4  ;;  %v20550_v51 = vor.u32 %v9474_v7, %v9471_v12  ;;  %v9498_v39 = vrot.slane %v20448_v57, 3  ;;  %v8990_v7 = vld [vmem:[#allocation2 + $0x28] sm:$0xff] }
 0x36d   : > { %v7765_v41 = vor.u32 %v7764_v34, %v7761_v50  ;;  %v9507_v56 = vrot.slane %v20451_v14, 3  ;;  %v20559_v22 = vsel %vm695_vm4, %v7747_v45, %v7756_v35  ;;  %v20561_v42 = vor.u32 %v7773_v54, %v7770_v44  ;;  %v8993_v45 = vld [vmem:[#allocation2 + $0x40] sm:$0xff] }
 0x36e   : > { %22590 = vst [vmem:[#allocation64_spill] sm:$0xff] %v20550_v51  ;;  %v9502_v12 = vor.u32 %v9501_v18, %v9498_v39  ;;  %v9516_v34 = vrot.slane %v20470_v43, 3  ;;  %v9816_v2 = vrot.slane %v8991_v32, 4 }
 0x36f   : > { %15661 = vmatmul.mubr.msk.bf16.vlgmr.msra.gmra.mrb[76].mxu0 %vm307_vm2, %v7703_v55  ;;  %v9480_v55 = vrot.slane %v20444_v63, 3  ;;  %v7766_v39 = vsel %vm695_vm4, %v7756_v35, %v7765_v41  ;;  %v20592_v17 = vsel %vm695_vm4, %v7765_v41, %v20561_v42 }
 0x370   : > { %15664 = vmatprep.mubr.msk.bf16.mxu0 %vm307_vm2, %v7712_v30  ;;  %15693 = vmatpush3.bf16.msra.mxu0 %v20501_v27  ;;  %v7739_v30 = vsel %vm695_vm4, %v7729_v3, %v7738_v40  ;;  %v9510_v3 = vrot.slane %v20442_v13, 4  ;;  %v20563_v40 = vld [vmem:[#allocation2 + $0x20] sm:$0xff] }
 0x371   : > { %17552 = vmatprep.subr.msk.bf16.mxu0 %vm511_vm0, %v20534_v6  ;;  %v9484_v8 = vor.u32 %v9483_v31, %v9480_v55  ;;  %22591 = vst [vmem:[#allocation65_spill] sm:$0xff] %v20563_v40  ;;  %v9519_v55 = vrot.slane %v20453_v25, 4  ;;  %v8992_v31 = vld [vmem:[#allocation2 + $0x38] sm:$0xff] }
 0x372   : > { %v9511_v50 = vor.u32 %v9510_v3, %v9507_v56  ;;  %v22407_v3 = vrot.slane %v20563_v40, 4 }
 0x373   : > { %v9520_v56 = vor.u32 %v9519_v55, %v9516_v34  ;;  %v9820_v34 = vrot.slane %v8993_v45, 4 }
 0x374   : > { %v20581_v18 = vsel %vm695_vm4, %v9502_v12, %v9511_v50 }
 0x375   : > { %22595 = vst [vmem:[#allocation69_spill] sm:$0xff] %v20581_v18  ;;  %v20595_v35 = vsel %vm695_vm4, %v9511_v50, %v9520_v56 }
 0x376   : > { %22599 = vst [vmem:[#allocation72_spill] sm:$0xff] %v20595_v35  ;;  %v20656_v35 = vshll.u32 %v8992_v31, 16 }
 0x377   : > { %15665 = vmatmul.mubr.msk.bf16.gmra.mrb[80].mxu0 %vm307_vm2, %v7721_v62  ;;  %v9493_v62 = vor.u32 %v9492_v36, %v9489_v16  ;;  %v9525_v16 = vrot.slane %v20477_v58, 3  ;;  %v9528_v36 = vrot.slane %v20464_v48, 4 }
 0x378   : > { %15668 = vmatprep.mubr.msk.bf16.mxu0 %vm307_vm2, %v7730_v28  ;;  %v20567_v28 = vsel %vm695_vm4, %v20550_v51, %v9484_v8  ;;  %22618 = vst [vmem:[#allocation87_spill] sm:$0xff] %v20656_v35  ;;  %v10110_v49 = vrot.slane %v20656_v35, 5 }
 0x379   : > { %22592 = vst [vmem:[#allocation66_spill] sm:$0xff] %v20567_v28  ;;  %v20572_v44 = vsel %vm695_vm4, %v9484_v8, %v9493_v62  ;;  %v20575_v54 = vsel %vm695_vm4, %v9493_v62, %v9502_v12  ;;  %v22596_v28 = vshrl.u32 %v20201_v4, 16  ;;  %v8994_v8 = vld [vmem:[#allocation2 + $0x48] sm:$0xff]  ;;  %v20588_v62 = vor.u32 %v9528_v36, %v9525_v16 }
 0x37a   : > { %22593 = vst [vmem:[#allocation67_spill] sm:$0xff] %v20572_v44  ;;  %22594 = vst [vmem:[#allocation68_spill] sm:$0xff] %v20575_v54  ;;  %v20586_v44 = vld [vmem:[#allocation2 + $0x50] sm:$0xff]  ;;  %v9814_v54 = vrot.slane %v8990_v7, 4  ;;  %v9818_v12 = vrot.slane %v8992_v31, 4 }
 0x37b   : > { %v7779_v51 = vrot.slane %v22596_v28, 3  ;;  %22597 = vst [vmem:[#allocation70_spill] sm:$0xff] %v20586_v44  ;;  %22598 = vst [vmem:[#allocation71_spill] sm:$0xff] %v20588_v62  ;;  %v22600_v28 = vshll.u32 %v20201_v4, 16  ;;  %v20602_v16 = vsel %vm695_vm4, %v9520_v56, %v20588_v62  ;;  %v22409_v56 = vrot.slane %v20586_v44, 4 }
 0x37c   : > { %22601 = vst [vmem:[#allocation73_spill] sm:$0xff] %v20602_v16  ;;  %v20607_v36 = vsel %vm7432_vm5, %v22407_v3, %v9814_v54  ;;  %v20610_v41 = vsel %vm7432_vm5, %v9814_v54, %v9816_v2  ;;  %v20614_v50 = vsel %vm7432_vm5, %v9816_v2, %v9818_v12  ;;  %v20617_v4 = vsel %vm7432_vm5, %v9818_v12, %v9820_v34 }
 0x37d   : > { %v7782_v55 = vrot.slane %v22600_v28, 4  ;;  %22602 = vst [vmem:[#allocation74_spill] sm:$0xff] %v20607_v36  ;;  %22603 = vst [vmem:[#allocation75_spill] sm:$0xff] %v20610_v41  ;;  %v22606_v28 = vshrl.u32 %v20203_v33, 16  ;;  %v20625_v3 = vshll.u32 %v20563_v40, 16  ;;  %v20628_v54 = vshrl.u32 %v20563_v40, 16 }
 0x37e   : > { %22604 = vst [vmem:[#allocation76_spill] sm:$0xff] %v20614_v50  ;;  %22605 = vst [vmem:[#allocation77_spill] sm:$0xff] %v20617_v4  ;;  %v20632_v2 = vshll.u32 %v8990_v7, 16  ;;  %v20634_v50 = vshrl.u32 %v8991_v32, 16  ;;  %v22614_v4 = vshll.u32 %v20203_v33, 16  ;;  %v22615_v36 = vshrl.u32 %v20219_v21, 16 }
 0x37f   : > { %15669 = vmatmul.mubr.msk.bf16.gmra.mrb[84].mxu0 %vm307_vm2, %v7739_v30  ;;  %v9822_v30 = vrot.slane %v8994_v8, 4  ;;  %v20622_v62 = vrot.slane %v22606_v28, 3  ;;  %22607 = vst [vmem:[#allocation78_spill] sm:$0xff] %v20625_v3  ;;  %22608 = vst [vmem:[#allocation79_spill] sm:$0xff] %v20628_v54  ;;  %v20654_v16 = vshrl.u32 %v8992_v31, 16  ;;  %v10097_v33 = vrot.slane %v20628_v54, 4 }
 0x380   : > { %15672 = vmatprep.mubr.msk.bf16.mxu0 %vm307_vm2, %v7748_v9  ;;  %v20630_v9 = vshrl.u32 %v8990_v7, 16  ;;  %22610 = vst [vmem:[#allocation81_spill] sm:$0xff] %v20632_v2  ;;  %22611 = vst [vmem:[#allocation82_spill] sm:$0xff] %v20634_v50  ;;  %v20646_v41 = vrot.slane %v22614_v4, 4  ;;  %v20650_v40 = vrot.slane %v22615_v36, 3  ;;  %v20652_v7 = vshll.u32 %v8991_v32, 16 }
 0x381   : > { %v20637_v12 = vsel %vm7432_vm5, %v9820_v34, %v9822_v30  ;;  %v20642_v28 = vsel %vm7432_vm5, %v9822_v30, %v22409_v56  ;;  %22617 = vst [vmem:[#allocation86_spill] sm:$0xff] %v20654_v16  ;;  %v20658_v34 = vshll.u32 %v8993_v45, 16  ;;  %v20662_v30 = vshll.u32 %v8994_v8, 16 }
 0x382   : > { %22609 = vst [vmem:[#allocation80_spill] sm:$0xff] %v20630_v9  ;;  %22612 = vst [vmem:[#allocation83_spill] sm:$0xff] %v20637_v12  ;;  %v20660_v12 = vshrl.u32 %v8993_v45, 16  ;;  %v20664_v56 = vshrl.u32 %v8994_v8, 16  ;;  %v10098_v4 = vrot.slane %v20625_v3, 5  ;;  %v10101_v36 = vrot.slane %v20630_v9, 4 }
 0x383   : > { %22613 = vst [vmem:[#allocation84_spill] sm:$0xff] %v20642_v28  ;;  %22616 = vst [vmem:[#allocation85_spill] sm:$0xff] %v20652_v7  ;;  %v20669_v32 = vor.u32 %v7782_v55, %v7779_v51  ;;  %v20672_v28 = vshrl.u32 %v20586_v44, 16  ;;  %v10102_v31 = vrot.slane %v20632_v2, 5  ;;  %v10105_v45 = vrot.slane %v20634_v50, 4  ;;  %v22678_v2 = vld [vmem:[#allocation3_spill] sm:$0xff] }
 0x384   : > { %22619 = vst [vmem:[#allocation88_spill] sm:$0xff] %v20658_v34  ;;  %22620 = vst [vmem:[#allocation89_spill] sm:$0xff] %v20660_v12  ;;  %v20679_v8 = vshll.u32 %v20586_v44, 16  ;;  %v20681_v18 = vor.u32 %v10098_v4, %v10097_v33  ;;  %v10106_v23 = vrot.slane %v20652_v7, 5  ;;  %v10109_v51 = vrot.slane %v20654_v16, 4 }
 0x385   : > { %22621 = vst [vmem:[#allocation90_spill] sm:$0xff] %v20662_v30  ;;  %22622 = vst [vmem:[#allocation91_spill] sm:$0xff] %v20664_v56  ;;  %v10103_v55 = vor.u32 %v10102_v31, %v10101_v36  ;;  %v10113_v47 = vrot.slane %v20660_v12, 4  ;;  %v10114_v1 = vrot.slane %v20658_v34, 5  ;;  %v10117_v33 = vrot.slane %v20664_v56, 4 }
 0x386   : > { %22623 = vst [vmem:[#allocation92_spill] sm:$0xff] %v20672_v28  ;;  %22624 = vst [vmem:[#allocation93_spill] sm:$0xff] %v20679_v8  ;;  %v10107_v44 = vor.u32 %v10106_v23, %v10105_v45  ;;  %v10118_v4 = vrot.slane %v20662_v30, 5  ;;  %v10121_v31 = vrot.slane %v20672_v28, 4  ;;  %v7784_v12 = vsel %vm695_vm4, %v20561_v42, %v20669_v32 }
 0x387   : > { %15673 = vmatmul.mubr.msk.bf16.gmra.mrb[88].mxu0 %vm307_vm2, %v20559_v22  ;;  %22625 = vst [vmem:[#allocation94_spill] sm:$0xff] %v20681_v18  ;;  %v22626_v22 = vshll.u32 %v20219_v21, 16  ;;  %v20695_v16 = vsel %vm8043_vm6, %v20681_v18, %v10103_v55  ;;  %v10115_v36 = vor.u32 %v10114_v1, %v10113_v47  ;;  %v10122_v45 = vrot.slane %v20679_v8, 5 }
 0x388   : > { %15676 = vmatprep.mubr.msk.bf16.mxu0 %vm307_vm2, %v7766_v39  ;;  %22627 = vst [vmem:[#allocation95_spill] sm:$0xff] %v20695_v16  ;;  %v10111_v39 = vor.u32 %v10110_v49, %v10109_v51  ;;  %v20702_v21 = vsel %vm8043_vm6, %v10103_v55, %v10107_v44  ;;  %v10119_v23 = vor.u32 %v10118_v4, %v10117_v33  ;;  %v10125_v47 = vrot.slane %v20440_v60, 4 }
 0x389   : > { %v7800_v9 = vrot.slane %v22626_v22, 4  ;;  %22628 = vst [vmem:[#allocation96_spill] sm:$0xff] %v20702_v21  ;;  %v10126_v1 = vrot.slane %v20425_v59, 5  ;;  %v10123_v42 = vor.u32 %v10122_v45, %v10121_v31  ;;  %v10129_v51 = vrot.slane %v20444_v63, 4 }
 0x38a   : > { %v20706_v22 = vsel %vm8043_vm6, %v10107_v44, %v10111_v39  ;;  %v20709_v18 = vsel %vm8043_vm6, %v10111_v39, %v10115_v36  ;;  %v20714_v49 = vsel %vm8043_vm6, %v10115_v36, %v10119_v23  ;;  %v10130_v55 = vrot.slane %v20429_v15, 5 }
 0x38b   : > { %22629 = vst [vmem:[#allocation97_spill] sm:$0xff] %v20706_v22  ;;  %22630 = vst [vmem:[#allocation98_spill] sm:$0xff] %v20709_v18  ;;  %v10127_v33 = vor.u32 %v10126_v1, %v10125_v47  ;;  %v10133_v4 = vrot.slane %v20446_v11, 4  ;;  %v10134_v44 = vrot.slane %v20431_v0, 5  ;;  %v10137_v39 = vrot.slane %v20448_v57, 4 }
 0x38c   : > { %22631 = vst [vmem:[#allocation99_spill] sm:$0xff] %v20714_v49  ;;  %v20724_v18 = vsel %vm8043_vm6, %v10119_v23, %v10123_v42  ;;  %v10131_v36 = vor.u32 %v10130_v55, %v10129_v51  ;;  %v10138_v31 = vrot.slane %v20436_v53, 5  ;;  %v10141_v45 = vrot.slane %v20451_v14, 4 }
 0x38d   : > { %22632 = vst [vmem:[#allocation100_spill] sm:$0xff] %v20724_v18  ;;  %v20730_v47 = vsel %vm8043_vm6, %v10123_v42, %v10127_v33  ;;  %v10135_v1 = vor.u32 %v10134_v44, %v10133_v4  ;;  %v10142_v49 = vrot.slane %v20442_v13, 5  ;;  %v10145_v22 = vrot.slane %v20470_v43, 4 }
 0x38e   : > { %22633 = vst [vmem:[#allocation101_spill] sm:$0xff] %v20730_v47  ;;  %v10139_v23 = vor.u32 %v10138_v31, %v10137_v39  ;;  %v10146_v51 = vrot.slane %v20453_v25, 5  ;;  %v10149_v55 = vrot.slane %v20477_v58, 4  ;;  %v7792_v18 = vor.u32 %v20646_v41, %v20622_v62 }
 0x38f   : > { %15677 = vmatmul.mubr.msk.bf16.gmra.mrb[92].mxu0 %vm307_vm2, %v20592_v17  ;;  %v20735_v17 = vsel %vm8043_vm6, %v10127_v33, %v10131_v36  ;;  %v10143_v42 = vor.u32 %v10142_v49, %v10141_v45  ;;  %v10150_v4 = vrot.slane %v20464_v48, 5  ;;  %v7801_v44 = vor.u32 %v7800_v9, %v20650_v40 }
 0x390   : > { %15680 = vmatprep.mubr.msk.bf16.mxu0 %vm307_vm2, %v7784_v12  ;;  %22634 = vst [vmem:[#allocation102_spill] sm:$0xff] %v20735_v17  ;;  %v20742_v12 = vsel %vm8043_vm6, %v10131_v36, %v10135_v1  ;;  %v20747_v47 = vsel %vm8043_vm6, %v10135_v1, %v10139_v23  ;;  %v10147_v33 = vor.u32 %v10146_v51, %v10145_v22  ;;  %v22639_v41 = vshrl.u32 %v20229_v19, 16 }
 0x391   : > { %22635 = vst [vmem:[#allocation103_spill] sm:$0xff] %v20742_v12  ;;  %22636 = vst [vmem:[#allocation104_spill] sm:$0xff] %v20747_v47  ;;  %v20750_v39 = vsel %vm8043_vm6, %v10139_v23, %v10143_v42  ;;  %v20752_v31 = vor.u32 %v10150_v4, %v10149_v55  ;;  %v7793_v62 = vsel %vm695_vm4, %v20669_v32, %v7792_v18  ;;  %v22640_v40 = vshll.u32 %v20229_v19, 16 }
 0x392   : > { %22637 = vst [vmem:[#allocation105_spill] sm:$0xff] %v20750_v39  ;;  %v20755_v17 = vsel %vm8043_vm6, %v10143_v42, %v10147_v33  ;;  %v7806_v49 = vrot.slane %v22639_v41, 3  ;;  %v7802_v36 = vsel %vm695_vm4, %v7792_v18, %v7801_v44  ;;  %v22642_v45 = vshrl.u32 %v20231_v52, 16 }
 0x393   : > { %22638 = vst [vmem:[#allocation106_spill] sm:$0xff] %v20755_v17  ;;  %v7809_v9 = vrot.slane %v22640_v40, 4  ;;  %v20765_v22 = vsel %vm8043_vm6, %v10147_v33, %v20752_v31  ;;  %v22643_v23 = vshll.u32 %v20231_v52, 16  ;;  %v8045_v51 = vshrl.u32 %v20107_v46, 16 }
 0x394   : > { %22641 = vst [vmem:[#allocation107_spill] sm:$0xff] %v20765_v22  ;;  %v7815_v1 = vrot.slane %v22642_v45, 3  ;;  %v8048_v19 = vshll.u32 %v20107_v46, 16  ;;  %v7822_v42 = vshrl.u32 %v20413_v29, 16  ;;  %v7825_v4 = vshll.u32 %v20413_v29, 16 }
 0x395   : > { %v7818_v32 = vrot.slane %v22643_v23, 4  ;;  %v7810_v55 = vor.u32 %v7809_v9, %v7806_v49  ;;  %v8056_v9 = vrot.slane %v20396_v10, 4  ;;  %v8061_v23 = vrot.slane %v20405_v37, 5 }
 0x396   : > { %v8050_v18 = vrot.slane %v8048_v19, 5  ;;  %v7824_v40 = vrot.slane %v7822_v42, 3  ;;  %v7827_v45 = vrot.slane %v7825_v4, 4  ;;  %v22644_v19 = vld [vmem:[#allocation24_spill] sm:$0xff] }
 0x397   : > { %15681 = vmatmul.mubr.msk.bf16.gmra.mrb[96].mxu0 %vm307_vm2, %v7793_v62  ;;  %v7819_v33 = vor.u32 %v7818_v32, %v7815_v1  ;;  %v8047_v62 = vrot.slane %v8045_v51, 4  ;;  %v7811_v41 = vsel %vm695_vm4, %v7801_v44, %v7810_v55  ;;  %v8057_v1 = vrot.slane %v20399_v26, 5 }
 0x398   : > { %15684 = vmatprep.mubr.msk.bf16.mxu0 %vm307_vm2, %v7802_v36  ;;  %v7828_v46 = vor.u32 %v7827_v45, %v7824_v40  ;;  %v8060_v44 = vrot.slane %v20402_v61, 4 }
 0x399   : > { %v7820_v52 = vsel %vm695_vm4, %v7810_v55, %v7819_v33  ;;  %v8051_v36 = vor.u32 %v8050_v18, %v8047_v62  ;;  %v8058_v51 = vor.u32 %v8057_v1, %v8056_v9  ;;  %v20814_v9 = vld [vmem:[%s22370_s4] ss:$0 sm:$0xff] }
 0x39a   : > { %v7829_v29 = vsel %vm695_vm4, %v7819_v33, %v7828_v46  ;;  %v8062_v4 = vor.u32 %v8061_v23, %v8060_v44  ;;  %v20795_v33 = vld [vmem:[%s22369_s3] ss:$0 sm:$0xff]  ;;  %v20808_v46 = vld [vmem:[%s22371_s5 + $0x8] sm:$0x3] }
 0x39b   : > { %v8055_v49 = vsel %vm8043_vm6, %v8051_v36, %v19851_v24  ;;  %v8059_v36 = vsel %vm8043_vm6, %v19851_v24, %v8058_v51 }
 0x39c   : > { %v8063_v24 = vsel %vm8043_vm6, %v8058_v51, %v8062_v4 }
 0x39f   : > { %15685 = vmatmul.mubr.msk.bf16.gmra.mrb[100].mxu0 %vm307_vm2, %v7811_v41  ;;  %v22645_v41 = vld [vmem:[#allocation25_spill] sm:$0xff] }
 0x3a0   : > { %15688 = vmatprep.mubr.msk.bf16.mxu0 %vm307_vm2, %v7820_v52  ;;  %v20801_v52 = vsel %vm511_vm0, %v20534_v6, 0 }
 0x3a1   : > { %22646 = vst [vmem:[#allocation24_spill] sm:$0xff] %v20801_v52 }
 0x3a7   : > { %15689 = vmatmul.mubr.msk.bf16.gmra.mrb[104].mxu0 %vm307_vm2, %v7829_v29 }
 0x3a8   : > { %15694 = vmatprep.mubr.msk.bf16.mxu0 %vm307_vm2, %v8055_v49  ;;  %v22647_v49 = vld [vmem:[#allocation11_spill] sm:$0xff] }
 0x3a9   : > { %v17611_v29 = vunpack.i.l.bf16 %v22647_v49  ;;  %v17612_v44 = vunpack.i.h.bf16 %v22647_v49  ;;  %v22650_v49 = vld [vmem:[#allocation35_spill] sm:$0xff] }
 0x3aa   : > { %v4937_v32 = vpop.f32.mrb[52].mxu0 }
 0x3ab   : > { %v16356_v55 = vadd.f32 %v22644_v19, %v4937_v32  ;;  %v15280_v42 = vpop.f32.mrb[53].mxu0 }
 0x3ac   : > { %v4940_v62 = vpop.f32.mrb[54].mxu0 }
 0x3ad   : > { %v7143_v18 = vmul.f32 %v20795_v33, %v16356_v55  ;;  %v16357_v40 = vadd.f32 %v22645_v41, %v4940_v62  ;;  %v15281_v45 = vpop.f32.mrb[55].mxu0  ;;  %v22648_v62 = vld [vmem:[#allocation26_spill] sm:$0xff] }
 0x3af   : > { %v7165_v1 = vadd.f32 %v20814_v9, %v7143_v18  ;;  %v7144_v6 = vmul.f32 %v20795_v33, %v16357_v40  ;;  %15695 = vmatmul.mubr.msk.bf16.vlgmr.msra.gmra.mrb[76].mxu0 %vm307_vm2, %v8059_v36  ;;  %v22649_v36 = vld [vmem:[#allocation27_spill] sm:$0xff] }
 0x3b0   : > { %15698 = vmatprep.mubr.msk.bf16.mxu0 %vm307_vm2, %v8063_v24  ;;  %15727 = vmatpush3.bf16.msra.mxu0 %v20801_v52  ;;  %v22664_v52 = vld [vmem:[#allocation33_spill] sm:$0xff] }
 0x3b1   : > { %v7187_v23 = vmax.f32 %v7165_v1, 0.0  ;;  %v7166_v32 = vadd.f32 %v20814_v9, %v7144_v6  ;;  %17553 = vmatprep.subr.msk.bf16.mxu0 %vm511_vm0, %v20808_v46  ;;  %v8067_v1 = vsel %vm8043_vm6, %v8062_v4, %v22650_v49  ;;  %v22651_v6 = vld [vmem:[#allocation4_spill] sm:$0xff]  ;;  %v22655_v49 = vld [vmem:[#allocation5_spill] sm:$0xff] }
 0x3b2   : > { %v4945_v19 = vpop.f32.mrb[56].mxu0  ;;  %v17616_v17 = vunpack.i.l.bf16 %v22651_v6 }
 0x3b3   : > { %v7363_v55 = vmul.f32 %v17611_v29, %v7187_v23  ;;  %v7188_v42 = vmax.f32 %v7166_v32, 0.0  ;;  %v16358_v18 = vadd.f32 %v22648_v62, %v4945_v19  ;;  %v15284_v41 = vpop.f32.mrb[57].mxu0  ;;  %v22652_v23 = vld [vmem:[#allocation36_spill] sm:$0xff] }
 0x3b4   : > { %v4948_v40 = vpop.f32.mrb[58].mxu0 }
 0x3b5   : > { %v7364_v51 = vmul.f32 %v17612_v44, %v7188_v42  ;;  %v7145_v45 = vmul.f32 %v20795_v33, %v16358_v18  ;;  %v16359_v24 = vadd.f32 %v22649_v36, %v4948_v40  ;;  %v15285_v22 = vpop.f32.mrb[59].mxu0  ;;  %v17617_v44 = vunpack.i.h.bf16 %v22651_v6 }
 0x3b7   : > { %v7380_v39 = vpack.c.bf16 %v7364_v51, %v7363_v55  ;;  %v7167_v47 = vadd.f32 %v20814_v9, %v7145_v45  ;;  %v7146_v29 = vmul.f32 %v20795_v33, %v16359_v24  ;;  %15699 = vmatmul.mubr.msk.bf16.gmra.mrb[80].mxu0 %vm307_vm2, %v8067_v1  ;;  %v22653_v55 = vld [vmem:[#allocation28_spill] sm:$0xff]  ;;  %v22654_v45 = vld [vmem:[#allocation29_spill] sm:$0xff]  ;;  %v17621_v1 = vunpack.i.l.bf16 %v22655_v49 }
 0x3b8   : > { %15702 = vmatprep.mubr.msk.bf16.mxu0 %vm307_vm2, %v22652_v23 }
 0x3b9   : > { %7391 = vst.msk [vmem:[#allocation2 + $0xb8] sm:$0xff] %vm307_vm2, %v7380_v39  ;;  %v7189_v22 = vmax.f32 %v7167_v47, 0.0  ;;  %v7168_v32 = vadd.f32 %v20814_v9, %v7146_v29  ;;  %v22656_v29 = vld [vmem:[#allocation37_spill] sm:$0xff] }
 0x3ba   : > { %v4953_v4 = vpop.f32.mrb[60].mxu0 }
 0x3bb   : > { %v7365_v19 = vmul.f32 %v17616_v17, %v7189_v22  ;;  %v7190_v42 = vmax.f32 %v7168_v32, 0.0  ;;  %v16360_v62 = vadd.f32 %v22653_v55, %v4953_v4  ;;  %v15288_v18 = vpop.f32.mrb[61].mxu0  ;;  %v22657_v17 = vld [vmem:[#allocation38_spill] sm:$0xff] }
 0x3bc   : > { %v4956_v41 = vpop.f32.mrb[62].mxu0  ;;  %v22658_v18 = vld [vmem:[#allocation30_spill] sm:$0xff] }
 0x3bd   : > { %v7366_v40 = vmul.f32 %v17617_v44, %v7190_v42  ;;  %v7147_v51 = vmul.f32 %v20795_v33, %v16360_v62  ;;  %v16361_v36 = vadd.f32 %v22654_v45, %v4956_v41  ;;  %v15289_v24 = vpop.f32.mrb[63].mxu0  ;;  %v17622_v44 = vunpack.i.h.bf16 %v22655_v49 }
 0x3bf   : > { %v7381_v6 = vpack.c.bf16 %v7366_v40, %v7365_v19  ;;  %v7169_v47 = vadd.f32 %v20814_v9, %v7147_v51  ;;  %v7148_v39 = vmul.f32 %v20795_v33, %v16361_v36  ;;  %15703 = vmatmul.mubr.msk.bf16.gmra.mrb[84].mxu0 %vm307_vm2, %v22656_v29 }
 0x3c0   : > { %15706 = vmatprep.mubr.msk.bf16.mxu0 %vm307_vm2, %v22657_v17  ;;  %v20850_v23 = vld [vmem:[#allocation2 + $0xb8] sm:$0xff]  ;;  %v22660_v17 = vld [vmem:[#allocation16_spill] sm:$0xff] }
 0x3c1   : > { %7392 = vst.msk [vmem:[#allocation2 + $0xc0] sm:$0xff] %vm307_vm2, %v7381_v6  ;;  %v7191_v22 = vmax.f32 %v7169_v47, 0.0  ;;  %v7170_v32 = vadd.f32 %v20814_v9, %v7148_v39  ;;  %v11040_v4 = vshrl.u32 %v20850_v23, 16  ;;  %v11043_v42 = vshll.u32 %v20850_v23, 16  ;;  %v22659_v6 = vld [vmem:[#allocation31_spill] sm:$0xff] }
 0x3c2   : > { %v4961_v19 = vpop.f32.mrb[64].mxu0  ;;  %v17626_v12 = vunpack.i.l.bf16 %v22660_v17 }
 0x3c3   : > { %v7367_v55 = vmul.f32 %v17621_v1, %v7191_v22  ;;  %v7192_v62 = vmax.f32 %v7170_v32, 0.0  ;;  %v16362_v41 = vadd.f32 %v22658_v18, %v4961_v19  ;;  %v15292_v40 = vpop.f32.mrb[65].mxu0  ;;  %v11271_v45 = vrot.slane %v11040_v4, 4  ;;  %v22661_v32 = vld [vmem:[#allocation39_spill] sm:$0xff]  ;;  %v22662_v19 = vld [vmem:[#allocation40_spill] sm:$0xff] }
 0x3c4   : > { %v4964_v51 = vpop.f32.mrb[66].mxu0  ;;  %v11272_v36 = vrot.slane %v11043_v42, 5 }
 0x3c5   : > { %v7368_v24 = vmul.f32 %v17622_v44, %v7192_v62  ;;  %v7149_v49 = vmul.f32 %v20795_v33, %v16362_v41  ;;  %v16363_v47 = vadd.f32 %v22659_v6, %v4964_v51  ;;  %v15293_v29 = vpop.f32.mrb[67].mxu0  ;;  %v17627_v62 = vunpack.i.h.bf16 %v22660_v17  ;;  %v22663_v6 = vld [vmem:[#allocation32_spill] sm:$0xff] }
 0x3c6   : > { %v20860_v39 = vor.u32 %v11272_v36, %v11271_v45  ;;  %v11042_v51 = vrot.slane %v11040_v4, 3  ;;  %v11045_v45 = vrot.slane %v11043_v42, 4 }
 0x3c7   : > { %v7382_v21 = vpack.c.bf16 %v7368_v24, %v7367_v55  ;;  %v7171_v1 = vadd.f32 %v20814_v9, %v7149_v49  ;;  %v7150_v22 = vmul.f32 %v20795_v33, %v16363_v47  ;;  %15707 = vmatmul.mubr.msk.bf16.gmra.mrb[88].mxu0 %vm307_vm2, %v22661_v32 }
 0x3c8   : > { %15710 = vmatprep.mubr.msk.bf16.mxu0 %vm307_vm2, %v22662_v19  ;;  %v20869_v44 = vld [vmem:[#allocation2 + $0xc0] sm:$0xff]  ;;  %v20879_v4 = vor.u32 %v11045_v45, %v11042_v51 }
 0x3c9   : > { %7393 = vst.msk [vmem:[#allocation2 + $0xc8] sm:$0xff] %vm307_vm2, %v7382_v21  ;;  %v7193_v18 = vmax.f32 %v7171_v1, 0.0  ;;  %v7172_v41 = vadd.f32 %v20814_v9, %v7150_v22  ;;  %v11049_v55 = vshrl.u32 %v20869_v44, 16  ;;  %v11052_v36 = vshll.u32 %v20869_v44, 16 }
 0x3ca   : > { %v4969_v40 = vpop.f32.mrb[68].mxu0 }
 0x3cb   : > { %v7369_v24 = vmul.f32 %v17626_v12, %v7193_v18  ;;  %v7194_v49 = vmax.f32 %v7172_v41, 0.0  ;;  %v16364_v47 = vadd.f32 %v22663_v6, %v4969_v40  ;;  %v15296_v29 = vpop.f32.mrb[69].mxu0  ;;  %v11051_v19 = vrot.slane %v11049_v55, 3  ;;  %v22665_v12 = vld [vmem:[#allocation15_spill] sm:$0xff] }
 0x3cc   : > { %v4972_v32 = vpop.f32.mrb[70].mxu0  ;;  %v11054_v17 = vrot.slane %v11052_v36, 4  ;;  %v11275_v16 = vrot.slane %v11049_v55, 4  ;;  %v11276_v21 = vrot.slane %v11052_v36, 5  ;;  %v17631_v18 = vunpack.i.l.bf16 %v22665_v12  ;;  %v22666_v29 = vld [vmem:[#allocation41_spill] sm:$0xff] }
 0x3cd   : > { %v7370_v1 = vmul.f32 %v17627_v62, %v7194_v49  ;;  %v7151_v22 = vmul.f32 %v20795_v33, %v16364_v47  ;;  %v16365_v56 = vadd.f32 %v22664_v52, %v4972_v32  ;;  %v15297_v28 = vpop.f32.mrb[71].mxu0  ;;  %v22667_v62 = vld [vmem:[#allocation42_spill] sm:$0xff]  ;;  %v17632_v52 = vunpack.i.h.bf16 %v22665_v12 }
 0x3ce   : > { %v11055_v42 = vor.u32 %v11054_v17, %v11051_v19  ;;  %v11277_v8 = vor.u32 %v11276_v21, %v11275_v16  ;;  %v22670_v32 = vld [vmem:[#allocation6_spill] sm:$0xff] }
 0x3cf   : > { %v7383_v41 = vpack.c.bf16 %v7370_v1, %v7369_v24  ;;  %v7173_v40 = vadd.f32 %v20814_v9, %v7151_v22  ;;  %v7152_v6 = vmul.f32 %v20795_v33, %v16365_v56  ;;  %15711 = vmatmul.mubr.msk.bf16.gmra.mrb[92].mxu0 %vm307_vm2, %v22666_v29 }
 0x3d0   : > { %15714 = vmatprep.mubr.msk.bf16.mxu0 %vm307_vm2, %v22667_v62  ;;  %v20888_v55 = vld [vmem:[#allocation2 + $0xc8] sm:$0xff]  ;;  %v20892_v28 = vsel %vm695_vm4, %v20879_v4, %v11055_v42  ;;  %v20896_v16 = vsel %vm8043_vm6, %v20860_v39, %v11277_v8 }
 0x3d1   : > { %22668 = vst [vmem:[#allocation25_spill] sm:$0xff] %v20892_v28  ;;  %22669 = vst [vmem:[#allocation11_spill] sm:$0xff] %v20896_v16  ;;  %v7195_v56 = vmax.f32 %v7173_v40, 0.0  ;;  %v7174_v51 = vadd.f32 %v20814_v9, %v7152_v6  ;;  %v11058_v45 = vshrl.u32 %v20888_v55, 16  ;;  %v11061_v24 = vshll.u32 %v20888_v55, 16  ;;  %v22671_v40 = vld [vmem:[#allocation34_spill] sm:$0xff] }
 0x3d2   : > { %7394 = vst.msk [vmem:[#allocation2 + $0xd0] sm:$0xff] %vm307_vm2, %v7383_v41  ;;  %v4977_v36 = vpop.f32.mrb[72].mxu0 }
 0x3d3   : > { %v7371_v49 = vmul.f32 %v17631_v18, %v7195_v56  ;;  %v7196_v47 = vmax.f32 %v7174_v51, 0.0  ;;  %v16366_v19 = vadd.f32 %v22670_v32, %v4977_v36  ;;  %v15300_v17 = vpop.f32.mrb[73].mxu0  ;;  %v11060_v1 = vrot.slane %v11058_v45, 3  ;;  %v22672_v51 = vld [vmem:[#allocation43_spill] sm:$0xff]  ;;  %v8042_v36 = vld [vmem:[#allocation2 + $0x80] sm:$0x1f] }
 0x3d4   : > { %v4980_v21 = vpop.f32.mrb[74].mxu0  ;;  %v11063_v22 = vrot.slane %v11061_v24, 4  ;;  %v11279_v29 = vrot.slane %v11058_v45, 4  ;;  %v11280_v12 = vrot.slane %v11061_v24, 5  ;;  %v8365_v32 = vld [vmem:[#allocation2 + $0x8] sm:$0x80]  ;;  %v17705_v45 = vpop.permute.xlu0 %17704 }
 0x3d5   : > { %v7372_v62 = vmul.f32 %v17632_v52, %v7196_v47  ;;  %v7153_v41 = vmul.f32 %v20795_v33, %v16366_v19  ;;  %v16367_v6 = vadd.f32 %v22671_v40, %v4980_v21  ;;  %v15301_v16 = vpop.f32.mrb[75].mxu0  ;;  %v22673_v24 = vld [vmem:[#allocation45_spill] sm:$0xff]  ;;  %v22676_v47 = vld [vmem:[#allocation8_spill] sm:$0xff]  ;;  %v17706_v40 = vunpack.i.l.bf16 %v17705_v45 }
 0x3d6   : > { %v11064_v30 = vor.u32 %v11063_v22, %v11060_v1  ;;  %v11281_v28 = vor.u32 %v11280_v12, %v11279_v29  ;;  %v17586_v19 = vunpack.i.l.bf16 %v22676_v47  ;;  %v8113_v29 = vshrl.u32 %v8042_v36, 16 }
 0x3d7   : > { %v7384_v34 = vpack.c.bf16 %v7372_v62, %v7371_v49  ;;  %v7175_v18 = vadd.f32 %v20814_v9, %v7153_v41  ;;  %v7154_v56 = vmul.f32 %v20795_v33, %v16367_v6  ;;  %15715 = vmatmul.mubr.msk.bf16.gmra.mrb[96].mxu0 %vm307_vm2, %v22672_v51  ;;  %v8116_v12 = vshll.u32 %v8042_v36, 16 }
 0x3d8   : > { %15718 = vmatprep.mubr.msk.bf16.mxu0 %vm307_vm2, %v22673_v24  ;;  %v20915_v16 = vsel %vm695_vm4, %v11055_v42, %v11064_v30  ;;  %v20918_v49 = vsel %vm8043_vm6, %v11277_v8, %v11281_v28  ;;  %v8384_v62 = vshrl.u32 %v8365_v32, 16  ;;  %v17707_v42 = vunpack.i.h.bf16 %v17705_v45  ;;  %v22677_v8 = vld [vmem:[#allocation13_spill] sm:$0xff] }
 0x3d9   : > { %v20912_v52 = vld [vmem:[#allocation2 + $0xd0] sm:$0xff]  ;;  %22674 = vst [vmem:[#allocation26_spill] sm:$0xff] %v20915_v16  ;;  %22675 = vst [vmem:[#allocation27_spill] sm:$0xff] %v20918_v49  ;;  %v7176_v17 = vadd.f32 %v20814_v9, %v7154_v56  ;;  %v7197_v21 = vmax.f32 %v7175_v18, 0.0  ;;  %v8115_v54 = vrot.slane %v8113_v29, 4  ;;  %v8118_v3 = vrot.slane %v8116_v12, 5 }
 0x3da   : > { %7395 = vst.msk [vmem:[#allocation2 + $0xd8] sm:$0xff] %vm307_vm2, %v7384_v34  ;;  %v11067_v1 = vshrl.u32 %v20912_v52, 16  ;;  %v5224_v22 = vpop.f32.mrb[32].mxu0  ;;  %v11070_v41 = vshll.u32 %v20912_v52, 16 }
 0x3db   : > { %v7198_v6 = vmax.f32 %v7176_v17, 0.0  ;;  %v16346_v51 = vadd.f32 %v22677_v8, %v5224_v22  ;;  %v15306_v24 = vpop.f32.mrb[33].mxu0  ;;  %v7373_v18 = vmul.f32 %v17706_v40, %v7197_v21  ;;  %v8390_v21 = vrot.slane %v20396_v10, 7 }
 0x3dc   : > { %v5227_v49 = vpop.f32.mrb[34].mxu0  ;;  %v11069_v16 = vrot.slane %v11067_v1, 3  ;;  %v11072_v34 = vrot.slane %v11070_v41, 4  ;;  %v11283_v35 = vrot.slane %v11067_v1, 4  ;;  %v11284_v56 = vrot.slane %v11070_v41, 5  ;;  %v22679_v24 = vld [vmem:[#allocation46_spill] sm:$0xff] }
 0x3dd   : > { %v7374_v50 = vmul.f32 %v17707_v42, %v7198_v6  ;;  %v7133_v7 = vmul.f32 %v20795_v33, %v16346_v51  ;;  %v16347_v36 = vadd.f32 %v22678_v2, %v5227_v49  ;;  %v15307_v32 = vpop.f32.mrb[35].mxu0  ;;  %v22680_v1 = vld [vmem:[#allocation47_spill] sm:$0xff]  ;;  %v8119_v12 = vor.u32 %v8118_v3, %v8115_v54  ;;  %v22681_v6 = vld [vmem:[#allocation14_spill] sm:$0xff]  ;;  %v22683_v3 = vld [vmem:[#allocation44_spill] sm:$0xff] }
 0x3de   : > { %v11073_v27 = vor.u32 %v11072_v34, %v11069_v16  ;;  %v20928_v45 = vor.u32 %v11284_v56, %v11283_v35  ;;  %v8386_v41 = vrot.slane %v8384_v62, 7  ;;  %v8393_v34 = vor.u32 %v8390_v21, %v20399_v26 }
 0x3df   : > { %v7385_v17 = vpack.c.bf16 %v7374_v50, %v7373_v18  ;;  %v7155_v22 = vadd.f32 %v20814_v9, %v7133_v7  ;;  %v7134_v8 = vmul.f32 %v20795_v33, %v16347_v36  ;;  %15719 = vmatmul.mubr.msk.bf16.gmra.mrb[100].mxu0 %vm307_vm2, %v22679_v24  ;;  %v17587_v50 = vunpack.i.h.bf16 %v22676_v47 }
 0x3e0   : > { %15722 = vmatprep.mubr.msk.bf16.mxu0 %vm307_vm2, %v22680_v1  ;;  %v20940_v49 = vsel %vm695_vm4, %v11064_v30, %v11073_v27  ;;  %v20944_v35 = vsel %vm8043_vm6, %v11281_v28, %v20928_v45  ;;  %v8120_v54 = vsel %vm8043_vm6, %v22683_v3, %v8119_v12 }
 0x3e1   : > { %v20937_v2 = vld [vmem:[#allocation2 + $0xd8] sm:$0xf]  ;;  %7396 = vst.msk [vmem:[#allocation2 + $0xe0] sm:$0xff] %vm307_vm2, %v7385_v17  ;;  %v7177_v7 = vmax.f32 %v7155_v22, 0.0  ;;  %v7156_v16 = vadd.f32 %v20814_v9, %v7134_v8  ;;  %v22682_v17 = vld [vmem:[#allocation17_spill] sm:$0xff] }
 0x3e2   : > { %v11076_v10 = vshrl.u32 %v20937_v2, 16  ;;  %v5232_v29 = vpop.f32.mrb[36].mxu0  ;;  %v11079_v42 = vshll.u32 %v20937_v2, 16 }
 0x3e3   : > { %v7353_v30 = vmul.f32 %v17586_v19, %v7177_v7  ;;  %v7178_v40 = vmax.f32 %v7156_v16, 0.0  ;;  %v16348_v51 = vadd.f32 %v22681_v6, %v5232_v29  ;;  %v15310_v28 = vpop.f32.mrb[37].mxu0  ;;  %v8398_v19 = vrot.slane %v20402_v61, 7  ;;  %v22684_v16 = vld [vmem:[#allocation7_spill] sm:$0xff] }
 0x3e4   : > { %v5235_v47 = vpop.f32.mrb[38].mxu0  ;;  %v11078_v56 = vrot.slane %v11076_v10, 3  ;;  %v11081_v18 = vrot.slane %v11079_v42, 4  ;;  %v17591_v10 = vunpack.i.l.bf16 %v22684_v16 }
 0x3e5   : > { %v7354_v36 = vmul.f32 %v17587_v50, %v7178_v40  ;;  %v7135_v32 = vmul.f32 %v20795_v33, %v16348_v51  ;;  %v16349_v22 = vadd.f32 %v22682_v17, %v5235_v47  ;;  %v15311_v8 = vpop.f32.mrb[39].mxu0  ;;  %v8394_v50 = vsel %vm8382_vm7, %v8386_v41, %v8393_v34  ;;  %v22685_v41 = vld [vmem:[#allocation18_spill] sm:$0xff]  ;;  %v20982_v17 = vld [vmem:[%s22371_s5 + $0xa] sm:$0x3] }
 0x3e6   : > { %v11082_v62 = vor.u32 %v11081_v18, %v11078_v56  ;;  %v8401_v42 = vor.u32 %v8398_v19, %v20405_v37  ;;  %v22686_v56 = vld [vmem:[#allocation19_spill] sm:$0xff] }
 0x3e7   : > { %v7375_v24 = vpack.c.bf16 %v7354_v36, %v7353_v30  ;;  %v7157_v1 = vadd.f32 %v20814_v9, %v7135_v32  ;;  %v7136_v26 = vmul.f32 %v20795_v33, %v16349_v22  ;;  %15723 = vmatmul.mubr.msk.bf16.gmra.mrb[104].mxu0 %vm307_vm2, %v8120_v54  ;;  %v17592_v30 = vunpack.i.h.bf16 %v22684_v16  ;;  %v22687_v54 = vld [vmem:[#allocation48_spill] sm:$0xff] }
 0x3e8   : > { %15728 = vmatprep.mubr.msk.bf16.mxu0 %vm307_vm2, %v8394_v50  ;;  %v20964_v7 = vsel %vm695_vm4, %v11073_v27, %v11082_v62  ;;  %v20976_v32 = vsel %vm511_vm0, %v20808_v46, 0  ;;  %v8402_v37 = vsel %vm8382_vm7, %v8390_v21, %v8401_v42  ;;  %v8410_v62 = vsel %vm8382_vm7, %v8398_v19, %v22687_v54 }
 0x3e9   : > { %7386 = vst.msk [vmem:[#allocation2 + $0x90] sm:$0xff] %vm307_vm2, %v7375_v24  ;;  %v7179_v61 = vmax.f32 %v7157_v1, 0.0  ;;  %v7158_v29 = vadd.f32 %v20814_v9, %v7136_v26  ;;  %v22688_v24 = vld [vmem:[#allocation10_spill] sm:$0xff] }
 0x3ea   : > { %v5240_v12 = vpop.f32.mrb[40].mxu0  ;;  %v17596_v46 = vunpack.i.l.bf16 %v22688_v24 }
 0x3eb   : > { %v7355_v40 = vmul.f32 %v17591_v10, %v7179_v61  ;;  %v7180_v6 = vmax.f32 %v7158_v29, 0.0  ;;  %v16350_v51 = vadd.f32 %v22685_v41, %v5240_v12  ;;  %v15314_v28 = vpop.f32.mrb[41].mxu0  ;;  %v17597_v10 = vunpack.i.h.bf16 %v22688_v24  ;;  %v22691_v41 = vld [vmem:[#allocation20_spill] sm:$0xff] }
 0x3ec   : > { %v5243_v34 = vpop.f32.mrb[42].mxu0  ;;  %v22689_v61 = vshrl.u32 %v20198_v20, 16  ;;  %v22690_v12 = vshll.u32 %v20198_v20, 16  ;;  %v22694_v24 = vmov 0.0  }
 0x3ed   : > { %v7356_v27 = vmul.f32 %v17592_v30, %v7180_v6  ;;  %v7137_v47 = vmul.f32 %v20795_v33, %v16350_v51  ;;  %v16351_v18 = vadd.f32 %v22686_v56, %v5243_v34  ;;  %v15315_v36 = vpop.f32.mrb[43].mxu0  ;;  %v22692_v34 = vrot.slane %v20198_v20, 4 }
 0x3ee   : > { %v10988_v29 = vrot.slane %v22689_v61, 3  ;;  %v10991_v42 = vrot.slane %v22690_v12, 4  ;;  %v22697_v12 = vld [vmem:[#allocation50_spill] sm:$0xff] }
 0x3ef   : > { %v7376_v22 = vpack.c.bf16 %v7356_v27, %v7355_v40  ;;  %v7159_v8 = vadd.f32 %v20814_v9, %v7137_v47  ;;  %v7138_v3 = vmul.f32 %v20795_v33, %v16351_v18  ;;  %15729 = vmatmul.mubr.msk.bf16.vlgmr.msra.gmra.mrb[76].mxu0 %vm307_vm2, %v8402_v37 }
 0x3f0   : > { %15732 = vmatprep.mubr.msk.bf16.mxu0 %vm307_vm2, %v8410_v62  ;;  %v10777_v21 = vld [vmem:[#allocation2 + $0x90] sm:$0xff]  ;;  %15761 = vmatpush3.bf16.msra.mxu0 %v20976_v32 }
 0x3f1   : > { %7387 = vst.msk [vmem:[#allocation2 + $0x98] sm:$0xff] %vm307_vm2, %v7376_v22  ;;  %v7181_v1 = vmax.f32 %v7159_v8, 0.0  ;;  %v7160_v26 = vadd.f32 %v20814_v9, %v7138_v3  ;;  %v10803_v50 = vrot.slane %v10777_v21, 4  ;;  %v10995_v16 = vshrl.u32 %v10777_v21, 16  ;;  %17554 = vmatprep.subr.msk.bf16.mxu0 %vm511_vm0, %v20982_v17  ;;  %v22693_v3 = vld [vmem:[#allocation21_spill] sm:$0xff] }
 0x3f2   : > { %v5248_v19 = vpop.f32.mrb[44].mxu0  ;;  %v10998_v30 = vshll.u32 %v10777_v21, 16 }
 0x3f3   : > { %v7357_v40 = vmul.f32 %v17596_v46, %v7181_v1  ;;  %v7182_v6 = vmax.f32 %v7160_v26, 0.0  ;;  %v16352_v51 = vadd.f32 %v22691_v41, %v5248_v19  ;;  %v15318_v28 = vpop.f32.mrb[45].mxu0  ;;  %v10804_v27 = vsel %vm7432_vm5, %v22692_v34, %v10803_v50 }
 0x3f4   : > { %v5251_v47 = vpop.f32.mrb[46].mxu0  ;;  %15937 = vmatmul.mubr.msk.bf16.gmra.mrb[48].mxu1 %vm307_vm2, %v10804_v27  ;;  %v10997_v56 = vrot.slane %v10995_v16, 3  ;;  %v11000_v18 = vrot.slane %v10998_v30, 4  ;;  %v11251_v36 = vrot.slane %v10995_v16, 4  ;;  %v11252_v37 = vrot.slane %v10998_v30, 5  ;;  %v22695_v16 = vld [vmem:[#allocation49_spill] sm:$0xff] }
 0x3f5   : > { %v7358_v22 = vmul.f32 %v17597_v10, %v7182_v6  ;;  %v7139_v8 = vmul.f32 %v20795_v33, %v16352_v51  ;;  %v16353_v54 = vadd.f32 %v22693_v3, %v5251_v47  ;;  %v15319_v62 = vpop.f32.mrb[47].mxu0  ;;  %15940 = vmatprep.mubr.msk.bf16.mxu1 %vm17999_vm1, %v22694_v24  ;;  %v21010_v46 = vor.u32 %v10991_v42, %v10988_v29  ;;  %v22696_v10 = vld [vmem:[#allocation9_spill] sm:$0xff] }
 0x3f6   : > { %v11001_v20 = vor.u32 %v11000_v18, %v10997_v56  ;;  %v11253_v21 = vor.u32 %v11252_v37, %v11251_v36  ;;  %v17601_v61 = vunpack.i.l.bf16 %v22696_v10  ;;  %v17602_v28 = vunpack.i.h.bf16 %v22696_v10  ;;  %v22698_v18 = vld [vmem:[#allocation22_spill] sm:$0xff] }
 0x3f7   : > { %v7377_v1 = vpack.c.bf16 %v7358_v22, %v7357_v40  ;;  %v7161_v26 = vadd.f32 %v20814_v9, %v7139_v8  ;;  %v7140_v19 = vmul.f32 %v20795_v33, %v16353_v54  ;;  %15733 = vmatmul.mubr.msk.bf16.gmra.mrb[80].mxu0 %vm307_vm2, %v22695_v16 }
 0x3f8   : > { %15736 = vmatprep.mubr.msk.bf16.mxu0 %vm307_vm2, %v22697_v12  ;;  %v10778_v30 = vld [vmem:[#allocation2 + $0x98] sm:$0xff]  ;;  %v21021_v29 = vsel %vm695_vm4, %v21010_v46, %v11001_v20  ;;  %v21025_v42 = vsel %vm8043_vm6, %v20503_v38, %v11253_v21 }
 0x3f9   : > { %7388 = vst.msk [vmem:[#allocation2 + $0xa0] sm:$0xff] %vm307_vm2, %v7377_v1  ;;  %v7183_v40 = vmax.f32 %v7161_v26, 0.0  ;;  %v7162_v6 = vadd.f32 %v20814_v9, %v7140_v19  ;;  %v10805_v41 = vrot.slane %v10778_v30, 4  ;;  %v11004_v51 = vshrl.u32 %v10778_v30, 16  ;;  %v22699_v19 = vld [vmem:[#allocation23_spill] sm:$0xff] }
 0x3fa   : > { %v5256_v34 = vpop.f32.mrb[48].mxu0  ;;  %v11007_v27 = vshll.u32 %v10778_v30, 16 }
 0x3fb   : > { %v7359_v47 = vmul.f32 %v17601_v61, %v7183_v40  ;;  %v7184_v56 = vmax.f32 %v7162_v6, 0.0  ;;  %v16354_v36 = vadd.f32 %v22698_v18, %v5256_v34  ;;  %v15322_v37 = vpop.f32.mrb[49].mxu0  ;;  %v10806_v22 = vsel %vm7432_vm5, %v10803_v50, %v10805_v41  ;;  %v22700_v6 = vld [vmem:[#allocation51_spill] sm:$0xff]  ;;  %v22702_v34 = vld [vmem:[#allocation52_spill] sm:$0xff] }
 0x3fc   : > { %v5259_v38 = vpop.f32.mrb[50].mxu0  ;;  %15941 = vmatmul.mubr.msk.bf16.gmra.mrb[52].mxu1 %vm307_vm2, %v10806_v22  ;;  %v11006_v8 = vrot.slane %v11004_v51, 3  ;;  %v11009_v3 = vrot.slane %v11007_v27, 4  ;;  %v11255_v54 = vrot.slane %v11004_v51, 4  ;;  %v11256_v62 = vrot.slane %v11007_v27, 5  ;;  %v22701_v51 = vld [vmem:[#allocation12_spill] sm:$0xff] }
 0x3fd   : > { %v7360_v1 = vmul.f32 %v17602_v28, %v7184_v56  ;;  %v7141_v26 = vmul.f32 %v20795_v33, %v16354_v36  ;;  %v16355_v16 = vadd.f32 %v22699_v19, %v5259_v38  ;;  %v15323_v10 = vpop.f32.mrb[51].mxu0  ;;  %15944 = vmatprep.mubr.msk.bf16.mxu1 %vm17999_vm1, %v22694_v24  ;;  %v17606_v28 = vunpack.i.l.bf16 %v22701_v51 }
 0x3fe   : > { %v11010_v61 = vor.u32 %v11009_v3, %v11006_v8  ;;  %v11257_v12 = vor.u32 %v11256_v62, %v11255_v54  ;;  %v17607_v22 = vunpack.i.h.bf16 %v22701_v51  ;;  %v21053_v8 = vld [vmem:[#allocation2 + $0x90] sm:$0xff]  ;;  %v8470_v10 = vrot.slane %v20444_v63, 7  ;;  %v21070_v51 = vld [vmem:[#allocation2 + $0x98] sm:$0xff] }
 0x3ff   : > { %v7378_v30 = vpack.c.bf16 %v7360_v1, %v7359_v47  ;;  %v7163_v50 = vadd.f32 %v20814_v9, %v7141_v26  ;;  %v7142_v40 = vmul.f32 %v20795_v33, %v16355_v16  ;;  %15737 = vmatmul.mubr.msk.bf16.gmra.mrb[84].mxu0 %vm307_vm2, %v22700_v6  ;;  %v21061_v16 = vshrl.u32 %v21053_v8, 16  ;;  %v22703_v6 = vld [vmem:[#allocation53_spill] sm:$0xff] }
 0x400   : > { %15740 = vmatprep.mubr.msk.bf16.mxu0 %vm307_vm2, %v22702_v34  ;;  %v10779_v27 = vld [vmem:[#allocation2 + $0xa0] sm:$0xff]  ;;  %v21045_v56 = vsel %vm695_vm4, %v11001_v20, %v11010_v61  ;;  %v21048_v18 = vsel %vm8043_vm6, %v11253_v21, %v11257_v12  ;;  %v8462_v21 = vrot.slane %v20440_v60, 7  ;;  %v22445_v60 = vrot.slane %v20446_v11, 7 }
 0x401   : > { %7389 = vst.msk [vmem:[#allocation2 + $0xa8] sm:$0xff] %vm307_vm2, %v7378_v30  ;;  %v7185_v47 = vmax.f32 %v7163_v50, 0.0  ;;  %v7164_v33 = vadd.f32 %v20814_v9, %v7142_v40  ;;  %v10807_v36 = vrot.slane %v10779_v27, 4  ;;  %v11013_v37 = vshrl.u32 %v10779_v27, 16 }
 0x402   : > { %v11016_v38 = vshll.u32 %v10779_v27, 16  ;;  %v8465_v27 = vor.u32 %v20425_v59, %v8462_v21  ;;  %v22443_v63 = vrot.slane %v20448_v57, 7 }
 0x403   : > { %v7361_v3 = vmul.f32 %v17606_v28, %v7185_v47  ;;  %v7186_v54 = vmax.f32 %v7164_v33, 0.0  ;;  %v10808_v20 = vsel %vm7432_vm5, %v10805_v41, %v10807_v36  ;;  %v11015_v62 = vrot.slane %v11013_v37, 3  ;;  %v22704_v28 = vld [vmem:[#allocation54_spill] sm:$0xff] }
 0x404   : > { %15945 = vmatmul.mubr.msk.bf16.gmra.mrb[56].mxu1 %vm307_vm2, %v10808_v20  ;;  %v11018_v1 = vrot.slane %v11016_v38, 4  ;;  %v11259_v26 = vrot.slane %v11013_v37, 4  ;;  %v11260_v19 = vrot.slane %v11016_v38, 5  ;;  %v21065_v41 = vshll.u32 %v21053_v8, 16 }
 0x405   : > { %v7362_v9 = vmul.f32 %v17607_v22, %v7186_v54  ;;  %15948 = vmatprep.mubr.msk.bf16.mxu1 %vm17999_vm1, %v22694_v24  ;;  %v8473_v54 = vor.u32 %v20429_v15, %v8470_v10  ;;  %v22442_v20 = vshll.u32 %v21070_v51, 16  ;;  %v8481_v15 = vor.u32 %v20431_v0, %v22445_v60 }
 0x406   : > { %v11019_v30 = vor.u32 %v11018_v1, %v11015_v62  ;;  %v11261_v50 = vor.u32 %v11260_v19, %v11259_v26  ;;  %v10154_v62 = vrot.slane %v21065_v41, 5  ;;  %v11934_v0 = vrot.slane %v21065_v41, 1 }
 0x407   : > { %v7379_v40 = vpack.c.bf16 %v7362_v9, %v7361_v3  ;;  %15741 = vmatmul.mubr.msk.bf16.gmra.mrb[88].mxu0 %vm307_vm2, %v22703_v6  ;;  %v10153_v3 = vrot.slane %v21061_v16, 4  ;;  %v22706_v9 = vrot.slane %v20237_v5, 7 }
 0x408   : > { %15744 = vmatprep.mubr.msk.bf16.mxu0 %vm307_vm2, %v22704_v28  ;;  %v10780_v34 = vld [vmem:[#allocation2 + $0xa8] sm:$0xff]  ;;  %v21077_v47 = vsel %vm695_vm4, %v11010_v61, %v11019_v30  ;;  %v21080_v33 = vsel %vm8043_vm6, %v11257_v12, %v11261_v50  ;;  %v21088_v12 = vld [vmem:[#allocation2 + $0xa0] sm:$0xff] }
 0x409   : > { %7390 = vst.msk [vmem:[#allocation2 + $0xb0] sm:$0xff] %vm307_vm2, %v7379_v40  ;;  %v10809_v37 = vrot.slane %v10780_v34, 4  ;;  %v11022_v22 = vshrl.u32 %v10780_v34, 16  ;;  %v11025_v38 = vshll.u32 %v10780_v34, 16  ;;  %22705 = vst [vmem:[#allocation35_spill] sm:$0xff] %v21088_v12  ;;  %v8466_v40 = vsel %vm8382_vm7, %v22706_v9, %v8465_v27 }
 0x40a   : > { %v22444_v34 = vshrl.u32 %v21070_v51, 16  ;;  %v21106_v27 = vshll.u32 %v21088_v12, 16  ;;  %v8482_v9 = vsel %vm8382_vm7, %v8470_v10, %v8481_v15 }
 0x40b   : > { %v10810_v1 = vsel %vm7432_vm5, %v10807_v36, %v10809_v37  ;;  %v11024_v61 = vrot.slane %v11022_v22, 3  ;;  %v11027_v26 = vrot.slane %v11025_v38, 4  ;;  %v11263_v19 = vrot.slane %v11022_v22, 4 }
 0x40c   : > { %15949 = vmatmul.mubr.msk.bf16.gmra.mrb[60].mxu1 %vm307_vm2, %v10810_v1  ;;  %v11264_v6 = vrot.slane %v11025_v38, 5  ;;  %v8489_v36 = vor.u32 %v20436_v53, %v22443_v63  ;;  %v21103_v22 = vor.u32 %v10154_v62, %v10153_v3  ;;  %v21108_v1 = vld [vmem:[#allocation2 + $0xa8] sm:$0xff]  ;;  %v11939_v38 = vrot.slane %v22442_v20, 1  ;;  %v21119_v62 = vld [vmem:[#allocation2 + $0xe0] sm:$0xff] }
 0x40d   : > { %15952 = vmatprep.mubr.msk.bf16.mxu1 %vm17999_vm1, %v22694_v24  ;;  %v11028_v28 = vor.u32 %v11027_v26, %v11024_v61  ;;  %22708 = vst [vmem:[#allocation36_spill] sm:$0xff] %v21108_v1  ;;  %v8474_v53 = vsel %vm8382_vm7, %v8462_v21, %v8473_v54  ;;  %v11935_v21 = vor.u32 %v11934_v0, %v21061_v16  ;;  %v21135_v63 = vshll.u32 %v21108_v1, 16 }
 0x40e   : > { %22707 = vst [vmem:[#allocation4_spill] sm:$0xff] %v21103_v22  ;;  %v11265_v5 = vor.u32 %v11264_v6, %v11263_v19  ;;  %v21124_v26 = vsel %vm8043_vm6, %v20752_v31, %v21103_v22  ;;  %v11947_v15 = vrot.slane %v21106_v27, 1 }
 0x40f   : > { %15745 = vmatmul.mubr.msk.bf16.gmra.mrb[92].mxu0 %vm307_vm2, %v8466_v40  ;;  %v21117_v3 = vsel %vm695_vm4, %v11019_v30, %v11028_v28  ;;  %22709 = vst [vmem:[#allocation28_spill] sm:$0xff] %v21124_v26  ;;  %v11943_v30 = vor.u32 %v11939_v38, %v22444_v34  ;;  %v22712_v26 = vshll.u32 %v21119_v62, 16 }
 0x410   : > { %15748 = vmatprep.mubr.msk.bf16.mxu0 %vm307_vm2, %v8474_v53  ;;  %v10781_v19 = vld [vmem:[#allocation2 + $0xb0] sm:$0xff]  ;;  %v21129_v40 = vsel %vm8043_vm6, %v11261_v50, %v11265_v5  ;;  %v21142_v50 = vsel %vm1176_vm3, %v11935_v21, %v11939_v38  ;;  %v21151_v53 = vshrl.u32 %v21108_v1, 16  ;;  %v22449_v1 = vshrl.u32 %v21119_v62, 16 }
 0x411   : > { %v10811_v54 = vrot.slane %v10781_v19, 4  ;;  %v11031_v6 = vshrl.u32 %v10781_v19, 16  ;;  %v11034_v20 = vshll.u32 %v10781_v19, 16  ;;  %v21137_v31 = vld [vmem:[#allocation2 + $0xb0] sm:$0xff]  ;;  %22710 = vst [vmem:[#allocation29_spill] sm:$0xff] %v21142_v50  ;;  %v21147_v19 = vshrl.u32 %v21088_v12, 16 }
 0x412   : > { %v21154_v10 = vshll.u32 %v21137_v31, 16  ;;  %v11955_v50 = vrot.slane %v21135_v63, 1  ;;  %v21169_v12 = vrot.slane %v22712_v26, 1 }
 0x413   : > { %v10812_v0 = vsel %vm7432_vm5, %v10809_v37, %v10811_v54  ;;  %v11033_v34 = vrot.slane %v11031_v6, 3  ;;  %v11036_v61 = vrot.slane %v11034_v20, 4  ;;  %v11267_v60 = vrot.slane %v11031_v6, 4 }
 0x414   : > { %15953 = vmatmul.mubr.msk.bf16.gmra.mrb[64].mxu1 %vm307_vm2, %v10812_v0  ;;  %v11268_v22 = vrot.slane %v11034_v20, 5  ;;  %v21159_v37 = vsel %vm1176_vm3, %v11943_v30, %v11947_v15  ;;  %v11951_v21 = vor.u32 %v11947_v15, %v21147_v19  ;;  %v22711_v6 = vrot.slane %v20446_v11, 7 }
 0x415   : > { %15956 = vmatprep.mubr.msk.bf16.mxu1 %vm17999_vm1, %v22694_v24  ;;  %v11037_v38 = vor.u32 %v11036_v61, %v11033_v34  ;;  %v11963_v26 = vrot.slane %v21154_v10, 1  ;;  %v22714_v30 = vrot.slane %v20451_v14, 7  ;;  %v12229_v15 = vrot.slane %v21151_v53, 3 }
 0x416   : > { %v8490_v20 = vsel %vm8382_vm7, %v22711_v6, %v8489_v36  ;;  %v11269_v0 = vor.u32 %v11268_v22, %v11267_v60  ;;  %v21180_v11 = vsel %vm1176_vm3, %v11951_v21, %v11955_v50  ;;  %v11959_v60 = vor.u32 %v11955_v50, %v21151_v53 }
 0x417   : > { %15749 = vmatmul.mubr.msk.bf16.gmra.mrb[96].mxu0 %vm307_vm2, %v8482_v9  ;;  %v21173_v34 = vsel %vm695_vm4, %v11028_v28, %v11037_v38  ;;  %v21177_v61 = vsel %vm695_vm4, %v11037_v38, %v20879_v4  ;;  %v21192_v28 = vshrl.u32 %v21137_v31, 16  ;;  %v10813_v4 = vrot.slane %v20850_v23, 4 }
 0x418   : > { %15752 = vmatprep.mubr.msk.bf16.mxu0 %vm307_vm2, %v8490_v20  ;;  %v21185_v36 = vsel %vm8043_vm6, %v11265_v5, %v11269_v0  ;;  %v21189_v22 = vsel %vm8043_vm6, %v11269_v0, %v20860_v39  ;;  %v21199_v9 = vor.u32 %v21169_v12, %v22449_v1  ;;  %v8497_v5 = vor.u32 %v20442_v13, %v22714_v30 }
 0x419   : > { %v12220_v50 = vrot.slane %v21147_v19, 3  ;;  %v12223_v39 = vrot.slane %v21106_v27, 4  ;;  %v10814_v38 = vsel %vm7432_vm5, %v10811_v54, %v10813_v4  ;;  %v22715_v23 = vrot.slane %v20470_v43, 7 }
 0x41a   : > { %22713 = vst [vmem:[#allocation5_spill] sm:$0xff] %v21199_v9  ;;  %v21212_v6 = vsel %vm1176_vm3, %v11959_v60, %v11963_v26  ;;  %v21215_v20 = vor.u32 %v11963_v26, %v21192_v28  ;;  %v12232_v0 = vrot.slane %v21135_v63, 4  ;;  %v12238_v30 = vrot.slane %v21192_v28, 3 }
 0x41b   : > { %v8505_v21 = vor.u32 %v20453_v25, %v22715_v23  ;;  %v21218_v13 = vor.u32 %v12223_v39, %v12220_v50  ;;  %v12241_v54 = vrot.slane %v21154_v10, 4  ;;  %v22717_v25 = vrot.slane %v20448_v57, 7 }
 0x41c   : > { %15957 = vmatmul.mubr.msk.bf16.gmra.mrb[68].mxu1 %vm307_vm2, %v10814_v38  ;;  %v8510_v26 = vrot.slane %v20477_v58, 7  ;;  %v12233_v23 = vor.u32 %v12232_v0, %v12229_v15  ;;  %v22718_v50 = vrot.slane %v20451_v14, 7  ;;  %v10815_v38 = vrot.slane %v20869_v44, 4  ;;  %v21247_v15 = vld [vmem:[#allocation2 + $0xe0] sm:$0xff]  ;;  %v12492_v44 = vld [vmem:[#allocation2 + $0x98] sm:$0xf0] }
 0x41d   : > { %22716 = vst [vmem:[#allocation37_spill] sm:$0xff] %v21218_v13  ;;  %15960 = vmatprep.mubr.msk.bf16.mxu1 %vm17999_vm1, %v22694_v24  ;;  %v8498_v60 = vsel %vm8382_vm7, %v22717_v25, %v8497_v5  ;;  %v21234_v1 = vor.u32 %v12241_v54, %v12238_v30  ;;  %22722 = vst [vmem:[#allocation16_spill] sm:$0xff] %v21247_v15  ;;  %v22724_v0 = vrot.slane %v20470_v43, 7  ;;  %v10817_v54 = vrot.slane %v20888_v55, 4 }
 0x41e   : > { %v8506_v39 = vsel %vm8382_vm7, %v22718_v50, %v8505_v21  ;;  %v21239_v57 = vsel %vm695_vm4, %v21218_v13, %v12233_v23  ;;  %v8513_v5 = vor.u32 %v20464_v48, %v8510_v26  ;;  %v10816_v14 = vsel %vm7432_vm5, %v10813_v4, %v10815_v38  ;;  %v21249_v21 = vld [vmem:[#allocation2 + $0xe8] sm:$0xff]  ;;  %v17965_v50 = vld [vmem:[#allocation2 + $0x10] sm:$0xff] }
 0x41f   : > { %15753 = vmatmul.mubr.msk.bf16.gmra.mrb[100].mxu0 %vm307_vm2, %v8498_v60  ;;  %22719 = vst [vmem:[#allocation38_spill] sm:$0xff] %v21234_v1  ;;  %22720 = vst [vmem:[#allocation30_spill] sm:$0xff] %v21239_v57  ;;  %v21243_v58 = vsel %vm695_vm4, %v12233_v23, %v21234_v1  ;;  %v22452_v48 = vrot.slane %v21247_v15, 4  ;;  %v22451_v4 = vrot.slane %v21249_v21, 4  ;;  %v12706_v25 = vshrl.u32 %v12492_v44, 16 }
 0x420   : > { %15756 = vmatprep.mubr.msk.bf16.mxu0 %vm307_vm2, %v8506_v39  ;;  %22721 = vst [vmem:[#allocation31_spill] sm:$0xff] %v21243_v58  ;;  %22723 = vst [vmem:[#allocation39_spill] sm:$0xff] %v21249_v21  ;;  %v8514_v30 = vsel %vm8382_vm7, %v22724_v0, %v8513_v5  ;;  %v12709_v60 = vshll.u32 %v12492_v44, 16  ;;  %v12713_v26 = vrot.slane %v21147_v19, 4  ;;  %v12714_v23 = vrot.slane %v21106_v27, 5 }
 0x421   : > { %v21269_v43 = vsel %vm7432_vm5, %v22452_v48, %v22451_v4  ;;  %v12717_v55 = vrot.slane %v21151_v53, 4  ;;  %v12708_v39 = vrot.slane %v12706_v25, 4  ;;  %v12718_v44 = vrot.slane %v21135_v63, 5 }
 0x422   : > { %22725 = vst [vmem:[#allocation40_spill] sm:$0xff] %v21269_v43  ;;  %v12711_v5 = vrot.slane %v12709_v60, 5  ;;  %v12721_v0 = vrot.slane %v21192_v28, 4  ;;  %v22456_v58 = vshrl.u32 %v21247_v15, 16  ;;  %v22455_v4 = vshll.u32 %v21247_v15, 16  ;;  %v22745_v15 = vld [vmem:[#allocation90_spill] sm:$0xff] }
 0x423   : > { %v12719_v48 = vor.u32 %v12718_v44, %v12717_v55  ;;  %v21285_v25 = vsel %vm511_vm0, %v20982_v17, 0  ;;  %v22453_v60 = vshrl.u32 %v21249_v21, 16  ;;  %v17966_v17 = vld [vmem:[#allocation2 + $0x18] sm:$0xff]  ;;  %v17967_v44 = vld [vmem:[#allocation2 + $0x20] sm:$0xff]  ;;  %v9062_v57 = vrot.slane %v22745_v15, 1 }
 0x424   : > { %15961 = vmatmul.mubr.msk.bf16.gmra.mrb[72].mxu1 %vm307_vm2, %v10816_v14  ;;  %v12715_v14 = vor.u32 %v12714_v23, %v12713_v26  ;;  %v12712_v1 = vor.u32 %v12711_v5, %v12708_v39  ;;  %v21295_v23 = vld [vmem:[%s22371_s5 + $0xc] sm:$0x3]  ;;  %v10819_v5 = vrot.slane %v20912_v52, 4 }
 0x425   : > { %15964 = vmatprep.mubr.msk.bf16.mxu1 %vm17999_vm1, %v22694_v24 }
 0x426   : > { %v21290_v26 = vsel %vm8043_vm6, %v12712_v1, %v12715_v14  ;;  %v21298_v55 = vsel %vm8043_vm6, %v12715_v14, %v12719_v48  ;;  %v12745_v1 = vrot.slane %v22456_v58, 4  ;;  %v12746_v14 = vrot.slane %v22455_v4, 5  ;;  %v17970_v4 = vld [vmem:[#allocation2 + $0x38] sm:$0xff]  ;;  %v17971_v58 = vld [vmem:[#allocation2 + $0x40] sm:$0xff] }
 0x427   : > { %15757 = vmatmul.mubr.msk.bf16.gmra.mrb[104].mxu0 %vm307_vm2, %v8514_v30  ;;  %v12722_v30 = vrot.slane %v21154_v10, 5  ;;  %22727 = vst [vmem:[#allocation33_spill] sm:$0xff] %v21290_v26  ;;  %22728 = vst [vmem:[#allocation15_spill] sm:$0xff] %v21298_v55  ;;  %v22742_v55 = vld [vmem:[#allocation89_spill] sm:$0xff] }
 0x428   : > { %15762 = vmatprep.mubr.msk.bf16.mxu0 %vm307_vm2, %v17965_v50  ;;  %v10818_v50 = vsel %vm7432_vm5, %v10815_v38, %v10817_v54  ;;  %v22454_v38 = vshll.u32 %v21249_v21, 16 }
 0x429   : > { %v21279_v43 = vor.u32 %v12722_v30, %v12721_v0  ;;  %v21318_v0 = vor.u32 %v12746_v14, %v12745_v1  ;;  %v10820_v30 = vsel %vm7432_vm5, %v10817_v54, %v10819_v5  ;;  %v10821_v1 = vrot.slane %v20937_v2, 4 }
 0x42a   : > { %v12750_v52 = vrot.slane %v22454_v38, 5 }
 0x42b   : > { %22726 = vst [vmem:[#allocation32_spill] sm:$0xff] %v21279_v43  ;;  %v21302_v39 = vsel %vm8043_vm6, %v12719_v48, %v21279_v43  ;;  %v12749_v48 = vrot.slane %v22453_v60, 4  ;;  %22730 = vst [vmem:[#allocation42_spill] sm:$0xff] %v21318_v0  ;;  %v17968_v60 = vld [vmem:[#allocation2 + $0x28] sm:$0xff]  ;;  %v22741_v43 = vld [vmem:[#allocation88_spill] sm:$0xff] }
 0x42c   : > { %15965 = vmatmul.mubr.msk.bf16.gmra.mrb[76].mxu1 %vm307_vm2, %v10818_v50  ;;  %22729 = vst [vmem:[#allocation41_spill] sm:$0xff] %v21302_v39  ;;  %v9054_v39 = vrot.slane %v22741_v43, 1 }
 0x42d   : > { %15968 = vmatprep.mubr.msk.bf16.mxu1 %vm17999_vm1, %v22694_v24  ;;  %v21321_v50 = vor.u32 %v12750_v52, %v12749_v48  ;;  %v17969_v48 = vld [vmem:[#allocation2 + $0x30] sm:$0xff]  ;;  %v10822_v52 = vsel %vm7432_vm5, %v10819_v5, %v10821_v1  ;;  %v22733_v5 = vld [vmem:[#allocation59_spill] sm:$0xff] }
 0x42e   : > { %v8987_v1 = vld [vmem:[#allocation2 + $0x10] sm:$0xff]  ;;  %v9058_v26 = vor.u32 %v22742_v55, %v9054_v39 }
 0x42f   : > { %15763 = vmatmul.mubr.msk.bf16.vlgmr.msra.gmra.mrb[76].mxu0 %vm307_vm2, %v17966_v17  ;;  %22731 = vst [vmem:[#allocation6_spill] sm:$0xff] %v21321_v50  ;;  %v10775_v17 = vld [vmem:[#allocation2 + $0x80] sm:$0xf8] }
 0x430   : > { %15766 = vmatprep.mubr.msk.bf16.mxu0 %vm307_vm2, %v17967_v44  ;;  %15795 = vmatpush3.bf16.msra.mxu0 %v21285_v25  ;;  %v21329_v44 = vsel %vm8043_vm6, %v21318_v0, %v21321_v50  ;;  %v10978_v14 = vshrl.u32 %v10775_v17, 16  ;;  %v10981_v54 = vshll.u32 %v10775_v17, 16  ;;  %v17972_v17 = vld [vmem:[#allocation2 + $0x48] sm:$0xff]  ;;  %v22740_v0 = vld [vmem:[#allocation87_spill] sm:$0xff] }
 0x431   : > { %17555 = vmatprep.subr.msk.bf16.mxu0 %vm511_vm0, %v21295_v23  ;;  %22732 = vst [vmem:[#allocation34_spill] sm:$0xff] %v21329_v44  ;;  %v21404_v44 = vsel %vm511_vm0, %v21295_v23, 0  ;;  %v22738_v23 = vld [vmem:[#allocation82_spill] sm:$0xff] }
 0x432   : > { %v10983_v38 = vrot.slane %v10981_v54, 4  ;;  %v21377_v54 = vld [vmem:[#allocation2 + $0x78] sm:$0xff] }
 0x434   : > { %15969 = vmatmul.mubr.msk.bf16.gmra.mrb[80].mxu1 %vm307_vm2, %v10820_v30  ;;  %v10980_v30 = vrot.slane %v10978_v14, 3  ;;  %v9007_v14 = vshll.u32 %v8987_v1, 16 }
 0x435   : > { %15972 = vmatprep.mubr.msk.bf16.mxu1 %vm17999_vm1, %v22694_v24 }
 0x437   : > { %15767 = vmatmul.mubr.msk.bf16.gmra.mrb[80].mxu0 %vm307_vm2, %v17968_v60  ;;  %v10984_v60 = vor.u32 %v10983_v38, %v10980_v30  ;;  %v21369_v38 = vld [vmem:[#allocation2 + $0x70] sm:$0xff]  ;;  %v9005_v30 = vshrl.u32 %v8987_v1, 16 }
 0x438   : > { %15770 = vmatprep.mubr.msk.bf16.mxu0 %vm307_vm2, %v17969_v48  ;;  %v9009_v48 = vrot.slane %v9007_v14, 1 }
 0x439   : > { %v10993_v2 = vsel %vm695_vm4, %v10984_v60, %v21010_v46  ;;  %v21353_v46 = vld [vmem:[#allocation2 + $0x58] sm:$0xff] }
 0x43c   : > { %15973 = vmatmul.mubr.msk.bf16.gmra.mrb[84].mxu1 %vm307_vm2, %v10822_v52  ;;  %v21381_v52 = vld [vmem:[#allocation2 + $0x80] sm:$0xff] }
 0x43d   : > { %15978 = vmatprep.mubr.msk.bf16.mxu1 %vm17999_vm1, %v22694_v24 }
 0x43f   : > { %15771 = vmatmul.mubr.msk.bf16.gmra.mrb[84].mxu0 %vm307_vm2, %v17970_v4  ;;  %v17973_v4 = vld [vmem:[#allocation2 + $0x50] sm:$0xff] }
 0x440   : > { %15774 = vmatprep.mubr.msk.bf16.mxu0 %vm307_vm2, %v17971_v58  ;;  %v21357_v58 = vld [vmem:[#allocation2 + $0x60] sm:$0xff] }
 0x444   : > { %15979 = vmatmul.mubr.msk.bf16.vlgmr.msra.gmra.mrb[44].mxu1 %vm307_vm2, %v10993_v2  ;;  %v9010_v2 = vor.u32 %v9009_v48, %v9005_v30  ;;  %v22735_v48 = vld [vmem:[#allocation79_spill] sm:$0xff] }
 0x445   : > { %16023 = vmatpush3.bf16.msra.mxu1 %v22733_v5  ;;  %15982 = vmatprep.mubr.msk.bf16.mxu1 %vm17999_vm1, %v22694_v24  ;;  %v21389_v5 = vld [vmem:[#allocation2 + $0x88] sm:$0xff] }
 0x446   : > { %16068 = vmatprep.subr.bf16.mxu1 %v22694_v24 }
 0x447   : > { %15775 = vmatmul.mubr.msk.bf16.gmra.mrb[88].mxu0 %vm307_vm2, %v17972_v17 }
 0x448   : > { %15778 = vmatprep.mubr.msk.bf16.mxu0 %vm307_vm2, %v17973_v4  ;;  %v22734_v4 = vld [vmem:[#allocation78_spill] sm:$0xff] }
 0x449   : > { %v9022_v14 = vrot.slane %v22734_v4, 1 }
 0x44b   : > { %v9026_v30 = vor.u32 %v22735_v48, %v9022_v14 }
 0x44c   : > { %15983 = vmatmul.mubr.msk.bf16.gmra.mrb[48].mxu1 %vm307_vm2, %v21021_v29  ;;  %v21365_v29 = vld [vmem:[#allocation2 + $0x68] sm:$0xff] }
 0x44d   : > { %15986 = vmatprep.mubr.msk.bf16.mxu1 %vm17999_vm1, %v22694_v24 }
 0x44f   : > { %15779 = vmatmul.mubr.msk.bf16.gmra.mrb[92].mxu0 %vm307_vm2, %v21353_v46 }
 0x450   : > { %15782 = vmatprep.mubr.msk.bf16.mxu0 %vm307_vm2, %v21357_v58 }
 0x454   : > { %15987 = vmatmul.mubr.msk.bf16.gmra.mrb[52].mxu1 %vm307_vm2, %v21045_v56  ;;  %v8988_v56 = vld [vmem:[#allocation2 + $0x18] sm:$0xff] }
 0x455   : > { %15990 = vmatprep.mubr.msk.bf16.mxu1 %vm17999_vm1, %v22694_v24  ;;  %v9012_v60 = vshll.u32 %v8988_v56, 16  ;;  %v9016_v1 = vshrl.u32 %v8988_v56, 16  ;;  %v21410_v56 = vld [vmem:[%s22371_s5 + $0xe] sm:$0x3] }
 0x457   : > { %15783 = vmatmul.mubr.msk.bf16.gmra.mrb[96].mxu0 %vm307_vm2, %v21365_v29 }
 0x458   : > { %15786 = vmatprep.mubr.msk.bf16.mxu0 %vm307_vm2, %v21369_v38 }
 0x45c   : > { %15991 = vmatmul.mubr.msk.bf16.gmra.mrb[56].mxu1 %vm307_vm2, %v21077_v47  ;;  %v9014_v47 = vrot.slane %v9012_v60, 1 }
 0x45d   : > { %15994 = vmatprep.mubr.msk.bf16.mxu1 %vm17999_vm1, %v22694_v24 }
 0x45e   : > { %v9015_v17 = vsel %vm1176_vm3, %v9010_v2, %v9014_v47  ;;  %v9018_v50 = vor.u32 %v9016_v1, %v9014_v47  ;;  %v22737_v47 = vld [vmem:[#allocation85_spill] sm:$0xff] }
 0x45f   : > { %15787 = vmatmul.mubr.msk.bf16.gmra.mrb[100].mxu0 %vm307_vm2, %v21377_v54 }
 0x460   : > { %15790 = vmatprep.mubr.msk.bf16.mxu0 %vm307_vm2, %v21381_v52  ;;  %v9023_v2 = vsel %vm1176_vm3, %v9018_v50, %v9022_v14  ;;  %v22739_v14 = vld [vmem:[#allocation80_spill] sm:$0xff] }
 0x464   : > { %15995 = vmatmul.mubr.msk.bf16.gmra.mrb[60].mxu1 %vm307_vm2, %v21117_v3  ;;  %v22736_v3 = vld [vmem:[#allocation81_spill] sm:$0xff] }
 0x465   : > { %15998 = vmatprep.mubr.msk.bf16.mxu1 %vm17999_vm1, %v22694_v24  ;;  %v9030_v60 = vrot.slane %v22736_v3, 1 }
 0x467   : > { %15791 = vmatmul.mubr.msk.bf16.gmra.mrb[104].mxu0 %vm307_vm2, %v21389_v5  ;;  %v9034_v1 = vor.u32 %v22739_v14, %v9030_v60 }
 0x468   : > { %15796 = vmatprep.mubr.msk.bf16.mxu0 %vm307_vm2, %v9015_v17  ;;  %v9038_v17 = vrot.slane %v22737_v47, 1 }
 0x46a   : > { %v9042_v50 = vor.u32 %v22738_v23, %v9038_v17 }
 0x46c   : > { %15999 = vmatmul.mubr.msk.bf16.gmra.mrb[64].mxu1 %vm307_vm2, %v21173_v34  ;;  %v9031_v34 = vsel %vm1176_vm3, %v9026_v30, %v9030_v60  ;;  %v9039_v30 = vsel %vm1176_vm3, %v9034_v1, %v9038_v17  ;;  %v22744_v60 = vld [vmem:[#allocation86_spill] sm:$0xff]  ;;  %v22746_v1 = vld [vmem:[#allocation93_spill] sm:$0xff] }
 0x46d   : > { %16002 = vmatprep.mubr.msk.bf16.mxu1 %vm17999_vm1, %v22694_v24 }
 0x46f   : > { %15797 = vmatmul.mubr.msk.bf16.vlgmr.msra.gmra.mrb[76].mxu0 %vm307_vm2, %v9023_v2  ;;  %v9046_v2 = vrot.slane %v22740_v0, 1 }
 0x470   : > { %15800 = vmatprep.mubr.msk.bf16.mxu0 %vm307_vm2, %v9031_v34  ;;  %15829 = vmatpush3.bf16.msra.mxu0 %v21404_v44 }
 0x471   : > { %17556 = vmatprep.subr.msk.bf16.mxu0 %vm511_vm0, %v21410_v56  ;;  %v9047_v34 = vsel %vm1176_vm3, %v9042_v50, %v9046_v2  ;;  %v9050_v21 = vor.u32 %v22744_v60, %v9046_v2  ;;  %v9063_v50 = vsel %vm1176_vm3, %v9058_v26, %v9062_v57  ;;  %v22749_v2 = vld [vmem:[#allocation91_spill] sm:$0xff]  ;;  %v22750_v26 = vrot.slane %v20425_v59, 1  ;;  %v22753_v59 = vld [vmem:[#allocation57_spill] sm:$0xff] }
 0x472   : > { %v9066_v9 = vor.u32 %v22749_v2, %v9062_v57  ;;  %v22751_v57 = vld [vmem:[#allocation55_spill] sm:$0xff] }
 0x473   : > { %v9055_v17 = vsel %vm1176_vm3, %v9050_v21, %v9054_v39 }
 0x474   : > { %16003 = vmatmul.mubr.msk.bf16.gmra.mrb[68].mxu1 %vm307_vm2, %v21177_v61  ;;  %v22743_v61 = vld [vmem:[#allocation25_spill] sm:$0xff] }
 0x475   : > { %16006 = vmatprep.mubr.msk.bf16.mxu1 %vm17999_vm1, %v22694_v24 }
 0x477   : > { %15801 = vmatmul.mubr.msk.bf16.gmra.mrb[80].mxu0 %vm307_vm2, %v9039_v30  ;;  %v9070_v30 = vrot.slane %v22746_v1, 1 }
 0x478   : > { %15804 = vmatprep.mubr.msk.bf16.mxu0 %vm307_vm2, %v9047_v34  ;;  %v22747_v34 = vld [vmem:[#allocation92_spill] sm:$0xff] }
 0x479   : > { %v9074_v13 = vor.u32 %v22747_v34, %v9070_v30  ;;  %v9071_v21 = vsel %vm1176_vm3, %v9066_v9, %v9070_v30  ;;  %v22754_v9 = vld [vmem:[#allocation58_spill] sm:$0xff]  ;;  %v22756_v30 = vld [vmem:[#allocation24_spill] sm:$0xff] }
 0x47b   : > { %v9079_v39 = vsel %vm1176_vm3, %v9074_v13, %v22750_v26  ;;  %v9003_v13 = vld [vmem:[#allocation2 + $0x90] sm:$0x1]  ;;  %v22757_v26 = vld [vmem:[#allocation60_spill] sm:$0xff] }
 0x47c   : > { %16007 = vmatmul.mubr.msk.bf16.gmra.mrb[72].mxu1 %vm307_vm2, %v22743_v61  ;;  %v22748_v61 = vld [vmem:[#allocation26_spill] sm:$0xff] }
 0x47d   : > { %16010 = vmatprep.mubr.msk.bf16.mxu1 %vm17999_vm1, %v22694_v24 }
 0x47f   : > { %15805 = vmatmul.mubr.msk.bf16.gmra.mrb[84].mxu0 %vm307_vm2, %v9055_v17  ;;  %v22752_v17 = vld [vmem:[#allocation56_spill] sm:$0xff] }
 0x480   : > { %15808 = vmatprep.mubr.msk.bf16.mxu0 %vm307_vm2, %v9063_v50  ;;  %v22755_v50 = vld [vmem:[#allocation62_spill] sm:$0xff] }
 0x484   : > { %16011 = vmatmul.mubr.msk.bf16.gmra.mrb[76].mxu1 %vm307_vm2, %v22748_v61 }
 0x485   : > { %16014 = vmatprep.mubr.msk.bf16.mxu1 %vm17999_vm1, %v22694_v24 }
 0x487   : > { %15809 = vmatmul.mubr.msk.bf16.gmra.mrb[88].mxu0 %vm307_vm2, %v9071_v21  ;;  %v9132_v21 = vshll.u32 %v9003_v13, 16  ;;  %v22759_v13 = vld [vmem:[#allocation61_spill] sm:$0xff] }
 0x488   : > { %15812 = vmatprep.mubr.msk.bf16.mxu0 %vm307_vm2, %v9079_v39  ;;  %v9408_v39 = vrot.slane %v22735_v48, 3  ;;  %v9417_v48 = vrot.slane %v22739_v14, 3 }
 0x48c   : > { %16015 = vmatmul.mubr.msk.bf16.gmra.mrb[80].mxu1 %vm307_vm2, %v20940_v49  ;;  %v9380_v49 = vld [vmem:[#allocation2 + $0x18] sm:$0xf8] }
 0x48d   : > { %16018 = vmatprep.mubr.msk.bf16.mxu1 %vm17999_vm1, %v22694_v24  ;;  %v9401_v61 = vshll.u32 %v9380_v49, 16 }
 0x48f   : > { %15813 = vmatmul.mubr.msk.bf16.gmra.mrb[92].mxu0 %vm307_vm2, %v22751_v57  ;;  %v9411_v57 = vrot.slane %v22734_v4, 4  ;;  %v9420_v4 = vrot.slane %v22736_v3, 4  ;;  %v21502_v3 = vsel %vm511_vm0, %v21410_v56, 0  ;;  %v9447_v56 = vrot.slane %v22741_v43, 4 }
 0x490   : > { %15816 = vmatprep.mubr.msk.bf16.mxu0 %vm307_vm2, %v22752_v17  ;;  %v22758_v17 = vld [vmem:[#allocation63_spill] sm:$0xff]  ;;  %v9456_v43 = vrot.slane %v22745_v15, 4 }
 0x494   : > { %16019 = vmatmul.mubr.msk.bf16.gmra.mrb[84].mxu1 %vm307_vm2, %v20964_v7  ;;  %v9398_v7 = vshrl.u32 %v9380_v49, 16 }
 0x495   : > { %16024 = vmatprep.mubr.msk.bf16.mxu1 %vm17999_vm1, %v22694_v24 }
 0x497   : > { %15817 = vmatmul.mubr.msk.bf16.gmra.mrb[96].mxu0 %vm307_vm2, %v22753_v59  ;;  %v9400_v59 = vrot.slane %v9398_v7, 3 }
 0x498   : > { %15820 = vmatprep.mubr.msk.bf16.mxu0 %vm307_vm2, %v22754_v9  ;;  %v9403_v9 = vrot.slane %v9401_v61, 4  ;;  %v9426_v61 = vrot.slane %v22738_v23, 3  ;;  %v9435_v23 = vrot.slane %v22744_v60, 3 }
 0x49a   : > { %v9404_v49 = vor.u32 %v9403_v9, %v9400_v59 }
 0x49c   : > { %16025 = vmatmul.mubr.msk.bf16.vlgmr.msra.gmra.mrb[44].mxu1 %vm307_vm2, %v22755_v50  ;;  %v9134_v50 = vrot.slane %v9132_v21, 1  ;;  %v9429_v21 = vrot.slane %v22737_v47, 4  ;;  %v9438_v47 = vrot.slane %v22740_v0, 4 }
 0x49d   : > { %16069 = vmatpush3.bf16.msra.mxu1 %v22756_v30  ;;  %16028 = vmatprep.mubr.msk.bf16.mxu1 %vm17999_vm1, %v22694_v24  ;;  %v9412_v30 = vor.u32 %v9411_v57, %v9408_v39  ;;  %v21510_v57 = vld [vmem:[%s22371_s5 + $0x10] sm:$0x3] }
 0x49e   : > { %16114 = vmatprep.subr.bf16.mxu1 %v22694_v24  ;;  %v9430_v39 = vor.u32 %v9429_v21, %v9426_v61  ;;  %v9439_v0 = vor.u32 %v9438_v47, %v9435_v23  ;;  %v22766_v61 = vld [vmem:[#allocation72_spill] sm:$0xff]  ;;  %v11238_v23 = vld [vmem:[#allocation2 + $0xd8] sm:$0x1f] }
 0x49f   : > { %15821 = vmatmul.mubr.msk.bf16.gmra.mrb[100].mxu0 %vm307_vm2, %v22757_v26  ;;  %v9135_v26 = vsel %vm1176_vm3, %v22759_v13, %v9134_v50  ;;  %v9413_v7 = vsel %vm695_vm4, %v9404_v49, %v9412_v30  ;;  %v9462_v50 = vrot.slane %v22747_v34, 3  ;;  %v22761_v34 = vld [vmem:[#allocation66_spill] sm:$0xff]  ;;  %v22762_v13 = vld [vmem:[#allocation67_spill] sm:$0xff] }
 0x4a0   : > { %15824 = vmatprep.mubr.msk.bf16.mxu0 %vm307_vm2, %v22758_v17  ;;  %v9444_v17 = vrot.slane %v22742_v55, 3  ;;  %v9440_v59 = vsel %vm695_vm4, %v9430_v39, %v9439_v0  ;;  %v9453_v55 = vrot.slane %v22749_v2, 3 }
 0x4a2   : > { %v9448_v60 = vor.u32 %v9447_v56, %v9444_v17  ;;  %v22768_v17 = vld [vmem:[#allocation73_spill] sm:$0xff]  ;;  %v22769_v56 = vld [vmem:[#allocation71_spill] sm:$0xff] }
 0x4a4   : > { %16029 = vmatmul.mubr.msk.bf16.gmra.mrb[48].mxu1 %vm307_vm2, %v21025_v42  ;;  %v9421_v42 = vor.u32 %v9420_v4, %v9417_v48  ;;  %v9449_v9 = vsel %vm695_vm4, %v9439_v0, %v9448_v60  ;;  %v22765_v48 = vld [vmem:[#allocation69_spill] sm:$0xff]  ;;  %v9537_v4 = vrot.slane %v21065_v41, 4 }
 0x4a5   : > { %16032 = vmatprep.mubr.msk.bf16.mxu1 %vm17999_vm1, %v22694_v24 }
 0x4a6   : > { %v9422_v14 = vsel %vm695_vm4, %v9412_v30, %v9421_v42  ;;  %v9465_v30 = vrot.slane %v22746_v1, 4  ;;  %v22760_v1 = vld [vmem:[#allocation64_spill] sm:$0xff] }
 0x4a7   : > { %15825 = vmatmul.mubr.msk.bf16.gmra.mrb[104].mxu0 %vm307_vm2, %v9135_v26  ;;  %v22764_v26 = vld [vmem:[#allocation11_spill] sm:$0xff] }
 0x4a8   : > { %15830 = vmatprep.mubr.msk.bf16.mxu0 %vm307_vm2, %v9413_v7  ;;  %v9466_v49 = vor.u32 %v9465_v30, %v9462_v50  ;;  %v21565_v7 = vld [vmem:[#allocation2 + $0x98] sm:$0xf] }
 0x4a9   : > { %v9541_v21 = vshrl.u32 %v21565_v7, 16 }
 0x4ab   : > { %v9543_v47 = vrot.slane %v9541_v21, 3 }
 0x4ac   : > { %16033 = vmatmul.mubr.msk.bf16.gmra.mrb[52].mxu1 %vm307_vm2, %v21048_v18  ;;  %v9431_v18 = vsel %vm695_vm4, %v9421_v42, %v9430_v39  ;;  %v9544_v42 = vshll.u32 %v21565_v7, 16 }
 0x4ad   : > { %16036 = vmatprep.mubr.msk.bf16.mxu1 %vm17999_vm1, %v22694_v24 }
 0x4af   : > { %15831 = vmatmul.mubr.msk.bf16.vlgmr.msra.gmra.mrb[76].mxu0 %vm307_vm2, %v9422_v14  ;;  %v22767_v14 = vld [vmem:[#allocation27_spill] sm:$0xff] }
 0x4b0   : > { %15834 = vmatprep.mubr.msk.bf16.mxu0 %vm307_vm2, %v9431_v18  ;;  %15863 = vmatpush3.bf16.msra.mxu0 %v21502_v3  ;;  %v9546_v18 = vrot.slane %v9544_v42, 4  ;;  %v22777_v42 = vld [vmem:[#allocation77_spill] sm:$0xff] }
 0x4b1   : > { %17557 = vmatprep.subr.msk.bf16.mxu0 %vm511_vm0, %v21510_v57 }
 0x4b4   : > { %16037 = vmatmul.mubr.msk.bf16.gmra.mrb[56].mxu1 %vm307_vm2, %v21080_v33  ;;  %v9457_v33 = vor.u32 %v9456_v43, %v9453_v55  ;;  %v9547_v55 = vor.u32 %v9546_v18, %v9543_v47  ;;  %v21580_v43 = vld [vmem:[#allocation2 + $0x18] sm:$0xf0]  ;;  %v22779_v47 = vld [vmem:[#allocation84_spill] sm:$0xff]  ;;  %v9826_v18 = vrot.slane %v21353_v46, 4 }
 0x4b5   : > { %16040 = vmatprep.mubr.msk.bf16.mxu1 %vm17999_vm1, %v22694_v24  ;;  %v9811_v30 = vrot.slane %v21580_v43, 4 }
 0x4b6   : > { %v9458_v15 = vsel %vm695_vm4, %v9448_v60, %v9457_v33  ;;  %v9467_v2 = vsel %vm695_vm4, %v9457_v33, %v9466_v49  ;;  %v11288_v60 = vshrl.u32 %v11238_v23, 16 }
 0x4b7   : > { %15835 = vmatmul.mubr.msk.bf16.gmra.mrb[80].mxu0 %vm307_vm2, %v9440_v59  ;;  %v11291_v59 = vshll.u32 %v11238_v23, 16 }
 0x4b8   : > { %15838 = vmatprep.mubr.msk.bf16.mxu0 %vm307_vm2, %v9449_v9  ;;  %v11290_v9 = vrot.slane %v11288_v60, 4 }
 0x4b9   : > { %v11293_v50 = vrot.slane %v11291_v59, 5 }
 0x4bc   : > { %16041 = vmatmul.mubr.msk.bf16.gmra.mrb[60].mxu1 %vm307_vm2, %v21129_v40  ;;  %v9476_v40 = vsel %vm695_vm4, %v9466_v49, %v22760_v1  ;;  %v22770_v49 = vld [vmem:[#allocation65_spill] sm:$0xff]  ;;  %v11294_v1 = vor.u32 %v11293_v50, %v11290_v9  ;;  %v11523_v9 = vrot.slane %v21192_v28, 7  ;;  %v9834_v28 = vrot.slane %v21377_v54, 4 }
 0x4bd   : > { %16044 = vmatprep.mubr.msk.bf16.mxu1 %vm17999_vm1, %v22694_v24 }
 0x4bf   : > { %15839 = vmatmul.mubr.msk.bf16.gmra.mrb[84].mxu0 %vm307_vm2, %v9458_v15  ;;  %v22771_v15 = vrot.slane %v22770_v49, 4  ;;  %v9836_v49 = vrot.slane %v21381_v52, 4 }
 0x4c0   : > { %15842 = vmatprep.mubr.msk.bf16.mxu0 %vm307_vm2, %v9467_v2 }
 0x4c1   : > { %v9813_v2 = vsel %vm7432_vm5, %v9811_v30, %v22771_v15  ;;  %v21655_v30 = vld [vmem:[#allocation2 + $0xb8] sm:$0xff]  ;;  %v21668_v15 = vld [vmem:[#allocation2 + $0xc0] sm:$0xff] }
 0x4c2   : > { %v21677_v54 = vshll.u32 %v21655_v30, 16  ;;  %v21680_v52 = vshrl.u32 %v21668_v15, 16 }
 0x4c4   : > { %16045 = vmatmul.mubr.msk.bf16.gmra.mrb[64].mxu1 %vm307_vm2, %v21185_v36  ;;  %v22763_v36 = vld [vmem:[#allocation68_spill] sm:$0xff] }
 0x4c5   : > { %16048 = vmatprep.mubr.msk.bf16.mxu1 %vm17999_vm1, %v22694_v24 }
 0x4c7   : > { %15843 = vmatmul.mubr.msk.bf16.gmra.mrb[88].mxu0 %vm307_vm2, %v9476_v40  ;;  %v11472_v40 = vld [vmem:[#allocation2 + $0x88] sm:$0x80] }
 0x4c8   : > { %15846 = vmatprep.mubr.msk.bf16.mxu0 %vm307_vm2, %v22761_v34  ;;  %v11491_v34 = vrot.slane %v21061_v16, 7 }
 0x4cc   : > { %16049 = vmatmul.mubr.msk.bf16.gmra.mrb[68].mxu1 %vm307_vm2, %v21189_v22  ;;  %v9534_v22 = vrot.slane %v21061_v16, 3 }
 0x4cd   : > { %16052 = vmatprep.mubr.msk.bf16.mxu1 %vm17999_vm1, %v22694_v24 }
 0x4ce   : > { %v9538_v39 = vor.u32 %v9537_v4, %v9534_v22  ;;  %v22773_v22 = vld [vmem:[#allocation75_spill] sm:$0xff]  ;;  %v22774_v4 = vshrl.u32 %v21070_v51, 16 }
 0x4cf   : > { %15847 = vmatmul.mubr.msk.bf16.gmra.mrb[92].mxu0 %vm307_vm2, %v22762_v13  ;;  %v11485_v13 = vshrl.u32 %v11472_v40, 16 }
 0x4d0   : > { %15850 = vmatprep.mubr.msk.bf16.mxu0 %vm307_vm2, %v22763_v36  ;;  %v9539_v0 = vsel %vm695_vm4, %v22769_v56, %v9538_v39  ;;  %v9548_v33 = vsel %vm695_vm4, %v9538_v39, %v9547_v55  ;;  %v21601_v36 = vsel %vm511_vm0, %v21510_v57, 0  ;;  %v22776_v57 = vshll.u32 %v21070_v51, 16 }
 0x4d1   : > { %v9828_v56 = vrot.slane %v21357_v58, 4  ;;  %v9830_v58 = vrot.slane %v21365_v29, 4  ;;  %v9832_v55 = vrot.slane %v21369_v38, 4  ;;  %v11526_v29 = vor.u32 %v21154_v10, %v11523_v9 }
 0x4d2   : > { %v21662_v38 = vshrl.u32 %v21655_v30, 16 }
 0x4d3   : > { %v9829_v59 = vsel %vm7432_vm5, %v9826_v18, %v9828_v56  ;;  %v9831_v50 = vsel %vm7432_vm5, %v9828_v56, %v9830_v58 }
 0x4d4   : > { %16053 = vmatmul.mubr.msk.bf16.gmra.mrb[72].mxu1 %vm307_vm2, %v22764_v26  ;;  %v22772_v26 = vld [vmem:[#allocation74_spill] sm:$0xff]  ;;  %v11531_v10 = vrot.slane %v21662_v38, 7 }
 0x4d5   : > { %16056 = vmatprep.mubr.msk.bf16.mxu1 %vm17999_vm1, %v22694_v24 }
 0x4d6   : > { %v11534_v40 = vor.u32 %v21677_v54, %v11531_v10 }
 0x4d7   : > { %15851 = vmatmul.mubr.msk.bf16.gmra.mrb[96].mxu0 %vm307_vm2, %v22765_v48  ;;  %v11494_v48 = vor.u32 %v11491_v34, %v21065_v41  ;;  %v22775_v41 = vld [vmem:[#allocation76_spill] sm:$0xff] }
 0x4d8   : > { %15854 = vmatprep.mubr.msk.bf16.mxu0 %vm307_vm2, %v22766_v61  ;;  %v11499_v61 = vrot.slane %v22774_v4, 7 }
 0x4da   : > { %v11502_v21 = vor.u32 %v22776_v57, %v11499_v61 }
 0x4dc   : > { %16057 = vmatmul.mubr.msk.bf16.gmra.mrb[76].mxu1 %vm307_vm2, %v22767_v14  ;;  %v11503_v39 = vsel %vm8382_vm7, %v11491_v34, %v11502_v21  ;;  %v11507_v14 = vrot.slane %v21147_v19, 7  ;;  %v11515_v19 = vrot.slane %v21151_v53, 7  ;;  %v11535_v34 = vsel %vm8382_vm7, %v11523_v9, %v11534_v40  ;;  %v22790_v40 = vld [vmem:[#allocation100_spill] sm:$0xff] }
 0x4dd   : > { %16060 = vmatprep.mubr.msk.bf16.mxu1 %vm17999_vm1, %v22694_v24  ;;  %v9842_v21 = vrot.slane %v21565_v7, 4  ;;  %v22782_v7 = vld [vmem:[#allocation94_spill] sm:$0xff] }
 0x4de   : > { %v11510_v23 = vor.u32 %v21106_v27, %v11507_v14  ;;  %v11518_v46 = vor.u32 %v21135_v63, %v11515_v19  ;;  %v9833_v63 = vsel %vm7432_vm5, %v9830_v58, %v9832_v55  ;;  %v22784_v58 = vld [vmem:[#allocation96_spill] sm:$0xff] }
 0x4df   : > { %15855 = vmatmul.mubr.msk.bf16.gmra.mrb[100].mxu0 %vm307_vm2, %v22768_v17 }
 0x4e0   : > { %15858 = vmatprep.mubr.msk.bf16.mxu0 %vm307_vm2, %v9539_v0  ;;  %v11511_v17 = vsel %vm8382_vm7, %v11499_v61, %v11510_v23  ;;  %v22780_v0 = vld [vmem:[#allocation70_spill] sm:$0xff]  ;;  %v11519_v53 = vsel %vm8382_vm7, %v11507_v14, %v11518_v46 }
 0x4e1   : > { %v22781_v60 = vrot.slane %v22780_v0, 4  ;;  %v21729_v0 = vld [vmem:[#allocation2 + $0xd8] sm:$0xff] }
 0x4e2   : > { %v21740_v46 = vshrl.u32 %v21729_v0, 16  ;;  %v21750_v9 = vshll.u32 %v21729_v0, 16 }
 0x4e3   : > { %v9827_v27 = vsel %vm7432_vm5, %v22781_v60, %v9826_v18 }
 0x4e4   : > { %16061 = vmatmul.mubr.msk.bf16.gmra.mrb[80].mxu1 %vm307_vm2, %v20944_v35  ;;  %v11295_v35 = vsel %vm8043_vm6, %v20928_v45, %v11294_v1  ;;  %v11487_v45 = vrot.slane %v11485_v13, 7  ;;  %v9837_v1 = vsel %vm7432_vm5, %v9834_v28, %v9836_v49  ;;  %v9840_v13 = vrot.slane %v21053_v8, 4 }
 0x4e5   : > { %16064 = vmatprep.mubr.msk.bf16.mxu1 %vm17999_vm1, %v22694_v24 }
 0x4e6   : > { %v11495_v16 = vsel %vm8382_vm7, %v11487_v45, %v11494_v48  ;;  %v21689_v48 = vld [vmem:[#allocation2 + $0xc8] sm:$0xff]  ;;  %v10090_v45 = vshrl.u32 %v21580_v43, 16  ;;  %v9843_v23 = vsel %vm7432_vm5, %v9840_v13, %v9842_v21 }
 0x4e7   : > { %15859 = vmatmul.mubr.msk.bf16.gmra.mrb[104].mxu0 %vm307_vm2, %v9548_v33  ;;  %v11527_v33 = vsel %vm8382_vm7, %v11515_v19, %v11526_v29  ;;  %v21703_v61 = vshrl.u32 %v21689_v48, 16  ;;  %v22786_v29 = vld [vmem:[#allocation98_spill] sm:$0xff] }
 0x4e8   : > { %15864 = vmatprep.mubr.msk.bf16.mxu0 %vm307_vm2, %v9813_v2  ;;  %v9835_v2 = vsel %vm7432_vm5, %v9832_v55, %v9834_v28  ;;  %v11563_v55 = vrot.slane %v21740_v46, 7 }
 0x4ec   : > { %16065 = vmatmul.mubr.msk.bf16.gmra.mrb[84].mxu1 %vm307_vm2, %v11295_v35  ;;  %v9838_v35 = vrot.slane %v21389_v5, 4  ;;  %v10093_v5 = vshll.u32 %v21580_v43, 16  ;;  %v11547_v43 = vrot.slane %v21703_v61, 7 }
 0x4ed   : > { %16070 = vmatprep.mubr.msk.bf16.mxu1 %vm17999_vm1, %v22694_v24 }
 0x4ee   : > { %v9841_v8 = vsel %vm7432_vm5, %v9838_v35, %v9840_v13  ;;  %v10095_v57 = vrot.slane %v10093_v5, 5  ;;  %v22792_v13 = vld [vmem:[#allocation102_spill] sm:$0xff]  ;;  %v22794_v5 = vld [vmem:[#allocation104_spill] sm:$0xff] }
 0x4ef   : > { %15865 = vmatmul.mubr.msk.bf16.vlgmr.msra.gmra.mrb[76].mxu0 %vm307_vm2, %v22772_v26  ;;  %v11539_v26 = vrot.slane %v21680_v52, 7 }
 0x4f0   : > { %15868 = vmatprep.mubr.msk.bf16.mxu0 %vm307_vm2, %v22773_v22  ;;  %15897 = vmatpush3.bf16.msra.mxu0 %v21601_v36  ;;  %v21694_v22 = vshll.u32 %v21668_v15, 16 }
 0x4f2   : > { %v11542_v4 = vor.u32 %v21694_v22, %v11539_v26 }
 0x4f4   : > { %16071 = vmatmul.mubr.msk.bf16.vlgmr.msra.gmra.mrb[44].mxu1 %vm307_vm2, %v11495_v16  ;;  %v9839_v16 = vsel %vm7432_vm5, %v9836_v49, %v9838_v35 }
 0x4f5   : > { %16115 = vmatpush3.bf16.msra.mxu1 %v20976_v32  ;;  %16074 = vmatprep.mubr.msk.bf16.mxu1 %vm17999_vm1, %v22694_v24  ;;  %v22778_v32 = vld [vmem:[#allocation83_spill] sm:$0xff] }
 0x4f6   : > { %16160 = vmatprep.subr.bf16.mxu1 %v22694_v24 }
 0x4f7   : > { %15869 = vmatmul.mubr.msk.bf16.gmra.mrb[80].mxu0 %vm307_vm2, %v22775_v41  ;;  %v10092_v41 = vrot.slane %v10090_v45, 4  ;;  %v22793_v45 = vld [vmem:[#allocation103_spill] sm:$0xff] }
 0x4f8   : > { %15872 = vmatprep.mubr.msk.bf16.mxu0 %vm307_vm2, %v22777_v42  ;;  %v11543_v42 = vsel %vm8382_vm7, %v11531_v10, %v11542_v4  ;;  %v22788_v10 = vld [vmem:[#allocation99_spill] sm:$0xff] }
 0x4f9   : > { %v10096_v14 = vor.u32 %v10095_v57, %v10092_v41  ;;  %v22797_v57 = vld [vmem:[#allocation35_spill] sm:$0xff] }
 0x4fc   : > { %16075 = vmatmul.mubr.msk.bf16.gmra.mrb[48].mxu1 %vm307_vm2, %v11503_v39  ;;  %v21710_v39 = vld [vmem:[#allocation2 + $0xd0] sm:$0xff] }
 0x4fd   : > { %16078 = vmatprep.mubr.msk.bf16.mxu1 %vm17999_vm1, %v22694_v24  ;;  %v21734_v60 = vshll.u32 %v21710_v39, 16 }
 0x4ff   : > { %15873 = vmatmul.mubr.msk.bf16.gmra.mrb[84].mxu0 %vm307_vm2, %v22778_v32  ;;  %v21715_v32 = vshll.u32 %v21689_v48, 16 }
 0x500   : > { %15876 = vmatprep.mubr.msk.bf16.mxu0 %vm307_vm2, %v22779_v47  ;;  %v10100_v47 = vsel %vm8043_vm6, %v10096_v14, %v22782_v7  ;;  %v22801_v7 = vld [vmem:[#allocation4_spill] sm:$0xff] }
 0x501   : > { %v11550_v18 = vor.u32 %v21715_v32, %v11547_v43 }
 0x503   : > { %v11551_v56 = vsel %vm8382_vm7, %v11539_v26, %v11550_v18  ;;  %v17981_v26 = vld [vmem:[#allocation2 + $0x90] sm:$0xff]  ;;  %v11995_v18 = vrot.slane %v21734_v60, 1 }
 0x504   : > { %16079 = vmatmul.mubr.msk.bf16.gmra.mrb[52].mxu1 %vm307_vm2, %v11511_v17  ;;  %v21723_v17 = vshrl.u32 %v21710_v39, 16 }
 0x505   : > { %16082 = vmatprep.mubr.msk.bf16.mxu1 %vm17999_vm1, %v22694_v24 }
 0x506   : > { %v11555_v19 = vrot.slane %v21723_v17, 7 }
 0x507   : > { %15877 = vmatmul.mubr.msk.bf16.gmra.mrb[88].mxu0 %vm307_vm2, %v9827_v27  ;;  %v22783_v27 = vld [vmem:[#allocation95_spill] sm:$0xff] }
 0x508   : > { %15880 = vmatprep.mubr.msk.bf16.mxu0 %vm307_vm2, %v9829_v59  ;;  %v11558_v59 = vor.u32 %v21734_v60, %v11555_v19 }
 0x50c   : > { %16083 = vmatmul.mubr.msk.bf16.gmra.mrb[56].mxu1 %vm307_vm2, %v11519_v53  ;;  %v11559_v53 = vsel %vm8382_vm7, %v11547_v43, %v11558_v59  ;;  %v22799_v43 = vld [vmem:[#allocation28_spill] sm:$0xff]  ;;  %v11999_v59 = vor.u32 %v11995_v18, %v21723_v17 }
 0x50d   : > { %16086 = vmatprep.mubr.msk.bf16.mxu1 %vm17999_vm1, %v22694_v24 }
 0x50f   : > { %15881 = vmatmul.mubr.msk.bf16.gmra.mrb[92].mxu0 %vm307_vm2, %v9831_v50  ;;  %v22785_v50 = vld [vmem:[#allocation97_spill] sm:$0xff] }
 0x510   : > { %15884 = vmatprep.mubr.msk.bf16.mxu0 %vm307_vm2, %v9833_v63  ;;  %v11566_v63 = vor.u32 %v21750_v9, %v11563_v55 }
 0x512   : > { %v11567_v28 = vsel %vm8382_vm7, %v11555_v19, %v11566_v63 }
 0x514   : > { %16087 = vmatmul.mubr.msk.bf16.gmra.mrb[60].mxu1 %vm307_vm2, %v11527_v33  ;;  %v22787_v33 = vshrl.u32 %v21119_v62, 16 }
 0x515   : > { %16090 = vmatprep.mubr.msk.bf16.mxu1 %vm17999_vm1, %v22694_v24 }
 0x516   : > { %v11571_v49 = vrot.slane %v22787_v33, 7 }
 0x517   : > { %15885 = vmatmul.mubr.msk.bf16.gmra.mrb[96].mxu0 %vm307_vm2, %v9835_v2  ;;  %v22789_v2 = vshll.u32 %v21119_v62, 16 }
 0x518   : > { %15888 = vmatprep.mubr.msk.bf16.mxu0 %vm307_vm2, %v9837_v1 }
 0x519   : > { %v11574_v1 = vor.u32 %v22789_v2, %v11571_v49 }
 0x51b   : > { %v11575_v35 = vsel %vm8382_vm7, %v11563_v55, %v11574_v1 }
 0x51c   : > { %16091 = vmatmul.mubr.msk.bf16.gmra.mrb[64].mxu1 %vm307_vm2, %v11535_v34  ;;  %v22791_v34 = vld [vmem:[#allocation101_spill] sm:$0xff] }
 0x51d   : > { %16094 = vmatprep.mubr.msk.bf16.mxu1 %vm17999_vm1, %v22694_v24 }
 0x51f   : > { %15889 = vmatmul.mubr.msk.bf16.gmra.mrb[100].mxu0 %vm307_vm2, %v9839_v16  ;;  %v22795_v16 = vld [vmem:[#allocation105_spill] sm:$0xff] }
 0x520   : > { %15892 = vmatprep.mubr.msk.bf16.mxu0 %vm307_vm2, %v9841_v8  ;;  %v22796_v8 = vld [vmem:[#allocation106_spill] sm:$0xff] }
 0x524   : > { %16095 = vmatmul.mubr.msk.bf16.gmra.mrb[68].mxu1 %vm307_vm2, %v11543_v42  ;;  %v22798_v42 = vld [vmem:[#allocation107_spill] sm:$0xff] }
 0x525   : > { %16098 = vmatprep.mubr.msk.bf16.mxu1 %vm17999_vm1, %v22694_v24 }
 0x527   : > { %15893 = vmatmul.mubr.msk.bf16.gmra.mrb[104].mxu0 %vm307_vm2, %v9843_v23  ;;  %v22800_v23 = vld [vmem:[#allocation36_spill] sm:$0xff] }
 0x528   : > { %15898 = vmatprep.mubr.msk.bf16.mxu0 %vm307_vm2, %v10100_v47 }
 0x52c   : > { %16099 = vmatmul.mubr.msk.bf16.gmra.mrb[72].mxu1 %vm307_vm2, %v11551_v56 }
 0x52d   : > { %16102 = vmatprep.mubr.msk.bf16.mxu1 %vm17999_vm1, %v22694_v24 }
 0x52f   : > { %15899 = vmatmul.mubr.msk.bf16.vlgmr.msra.gmra.mrb[76].mxu0 %vm307_vm2, %v22783_v27  ;;  %v12003_v27 = vrot.slane %v21750_v9, 1 }
 0x530   : > { %15902 = vmatprep.mubr.msk.bf16.mxu0 %vm307_vm2, %v22784_v58 }
 0x531   : > { %v12004_v58 = vsel %vm1176_vm3, %v11999_v59, %v12003_v27  ;;  %v12007_v55 = vor.u32 %v12003_v27, %v21740_v46 }
 0x534   : > { %16103 = vmatmul.mubr.msk.bf16.gmra.mrb[76].mxu1 %vm307_vm2, %v11559_v53  ;;  %v11928_v53 = vld [vmem:[#allocation2 + $0xe8] sm:$0x1] }
 0x535   : > { %16106 = vmatprep.mubr.msk.bf16.mxu1 %vm17999_vm1, %v22694_v24  ;;  %v12017_v63 = vshll.u32 %v11928_v53, 16 }
 0x537   : > { %15903 = vmatmul.mubr.msk.bf16.gmra.mrb[80].mxu0 %vm307_vm2, %v22785_v50  ;;  %v12012_v50 = vsel %vm1176_vm3, %v12007_v55, %v21169_v12 }
 0x538   : > { %15906 = vmatprep.mubr.msk.bf16.mxu0 %vm307_vm2, %v22786_v29  ;;  %v12197_v29 = vld [vmem:[#allocation2 + $0x98] sm:$0xf8] }
 0x539   : > { %v12210_v33 = vshrl.u32 %v12197_v29, 16  ;;  %v12213_v49 = vshll.u32 %v12197_v29, 16 }
 0x53b   : > { %v12212_v12 = vrot.slane %v12210_v33, 3  ;;  %v12215_v1 = vrot.slane %v12213_v49, 4 }
 0x53c   : > { %16107 = vmatmul.mubr.msk.bf16.gmra.mrb[80].mxu1 %vm307_vm2, %v11567_v28  ;;  %v12019_v28 = vrot.slane %v12017_v63, 1 }
 0x53d   : > { %16110 = vmatprep.mubr.msk.bf16.mxu1 %vm17999_vm1, %v22694_v24 }
 0x53f   : > { %15907 = vmatmul.mubr.msk.bf16.gmra.mrb[84].mxu0 %vm307_vm2, %v22788_v10  ;;  %v22803_v10 = vld [vmem:[#allocation5_spill] sm:$0xff] }
 0x540   : > { %15910 = vmatprep.mubr.msk.bf16.mxu0 %vm307_vm2, %v22790_v40  ;;  %v12020_v2 = vsel %vm1176_vm3, %v22803_v10, %v12019_v28  ;;  %v12216_v40 = vor.u32 %v12215_v1, %v12212_v12  ;;  %v22806_v12 = vld [vmem:[#allocation31_spill] sm:$0xff] }
 0x544   : > { %16111 = vmatmul.mubr.msk.bf16.gmra.mrb[84].mxu1 %vm307_vm2, %v11575_v35  ;;  %v22804_v35 = vld [vmem:[#allocation37_spill] sm:$0xff] }
 0x545   : > { %16116 = vmatprep.mubr.msk.bf16.mxu1 %vm17999_vm1, %v22694_v24 }
 0x547   : > { %15911 = vmatmul.mubr.msk.bf16.gmra.mrb[88].mxu0 %vm307_vm2, %v22791_v34  ;;  %v12225_v34 = vsel %vm695_vm4, %v12216_v40, %v22804_v35 }
 0x548   : > { %15914 = vmatprep.mubr.msk.bf16.mxu0 %vm307_vm2, %v22792_v13  ;;  %v21906_v13 = vld [vmem:[%s22372_s6] ss:$0 sm:$0xff] }
 0x54c   : > { %16117 = vmatmul.mubr.msk.bf16.vlgmr.msra.gmra.mrb[44].mxu1 %vm307_vm2, %v17981_v26  ;;  %v14356_v26 = vld [vmem:[%s18083_s16 + $0x18] sm:$0xff]  }
 0x54d   : > { %16161 = vmatpush3.bf16.msra.mxu1 %v21285_v25  ;;  %16120 = vmatprep.mubr.msk.bf16.mxu1 %vm17999_vm1, %v22694_v24  ;;  %v10088_v25 = vld [vmem:[#allocation2 + $0x98] sm:$0x1f] }
 0x54e   : > { %16206 = vmatprep.subr.bf16.mxu1 %v22694_v24  ;;  %v10158_v4 = vshrl.u32 %v10088_v25, 16  ;;  %v10161_v41 = vshll.u32 %v10088_v25, 16  ;;  %v14227_v25 = vunpack.c.l.bf16 %v14356_v26 }
 0x54f   : > { %15915 = vmatmul.mubr.msk.bf16.gmra.mrb[92].mxu0 %vm307_vm2, %v22793_v45  ;;  %v14355_v45 = vld [vmem:[%s18083_s16 + $0x10] sm:$0xff]  }
 0x550   : > { %15918 = vmatprep.mubr.msk.bf16.mxu0 %vm307_vm2, %v22794_v5  ;;  %v10160_v21 = vrot.slane %v10158_v4, 4  ;;  %v21913_v5 = vld [vmem:[%s22373_s7] ss:$0 sm:$0xff] }
 0x554   : > { %16121 = vmatmul.mubr.msk.bf16.gmra.mrb[48].mxu1 %vm307_vm2, %v21070_v51  ;;  %v10163_v51 = vrot.slane %v10161_v41, 5  ;;  %v14223_v41 = vunpack.c.l.bf16 %v14355_v45 }
 0x555   : > { %16124 = vmatprep.mubr.msk.bf16.mxu1 %vm17999_vm1, %v22694_v24 }
 0x556   : > { %v10164_v14 = vor.u32 %v10163_v51, %v10160_v21  ;;  %v22805_v21 = vld [vmem:[#allocation30_spill] sm:$0xff] }
 0x557   : > { %15919 = vmatmul.mubr.msk.bf16.gmra.mrb[96].mxu0 %vm307_vm2, %v22795_v16 }
 0x558   : > { %15922 = vmatprep.mubr.msk.bf16.mxu0 %vm307_vm2, %v22796_v8  ;;  %v10165_v47 = vsel %vm8043_vm6, %v22801_v7, %v10164_v14 }
 0x55c   : > { %16125 = vmatmul.mubr.msk.bf16.gmra.mrb[52].mxu1 %vm307_vm2, %v22797_v57 }
 0x55d   : > { %16128 = vmatprep.mubr.msk.bf16.mxu1 %vm17999_vm1, %v22694_v24 }
 0x55f   : > { %15923 = vmatmul.mubr.msk.bf16.gmra.mrb[100].mxu0 %vm307_vm2, %v22798_v42 }
 0x560   : > { %15926 = vmatprep.mubr.msk.bf16.mxu0 %vm307_vm2, %v22799_v43  ;;  %v14228_v43 = vunpack.c.h.bf16 %v14356_v26 }
 0x564   : > { %16129 = vmatmul.mubr.msk.bf16.gmra.mrb[56].mxu1 %vm307_vm2, %v22800_v23 }
 0x565   : > { %16132 = vmatprep.mubr.msk.bf16.mxu1 %vm17999_vm1, %v22694_v24 }
 0x567   : > { %15927 = vmatmul.mubr.msk.bf16.gmra.mrb[104].mxu0 %vm307_vm2, %v10165_v47  ;;  %v14224_v47 = vunpack.c.h.bf16 %v14355_v45 }
 0x56c   : > { %16133 = vmatmul.mubr.msk.bf16.gmra.mrb[60].mxu1 %vm307_vm2, %v21137_v31  ;;  %v22802_v31 = vld [vmem:[#allocation29_spill] sm:$0xff] }
 0x56d   : > { %16136 = vmatprep.mubr.msk.bf16.mxu1 %vm17999_vm1, %v22694_v24 }
 0x574   : > { %16137 = vmatmul.mubr.msk.bf16.gmra.mrb[64].mxu1 %vm307_vm2, %v21655_v30 }
 0x575   : > { %16140 = vmatprep.mubr.msk.bf16.mxu1 %vm17999_vm1, %v22694_v24 }
 0x57c   : > { %16141 = vmatmul.mubr.msk.bf16.gmra.mrb[68].mxu1 %vm307_vm2, %v21668_v15 }
 0x57d   : > { %16144 = vmatprep.mubr.msk.bf16.mxu1 %vm17999_vm1, %v22694_v24 }
 0x584   : > { %16145 = vmatmul.mubr.msk.bf16.gmra.mrb[72].mxu1 %vm307_vm2, %v21689_v48 }
 0x585   : > { %16148 = vmatprep.mubr.msk.bf16.mxu1 %vm17999_vm1, %v22694_v24 }
 0x58c   : > { %16149 = vmatmul.mubr.msk.bf16.gmra.mrb[76].mxu1 %vm307_vm2, %v21710_v39 }
 0x58d   : > { %16152 = vmatprep.mubr.msk.bf16.mxu1 %vm17999_vm1, %v22694_v24 }
 0x594   : > { %16153 = vmatmul.mubr.msk.bf16.gmra.mrb[80].mxu1 %vm307_vm2, %v21729_v0 }
 0x595   : > { %16156 = vmatprep.mubr.msk.bf16.mxu1 %vm17999_vm1, %v22694_v24 }
 0x59c   : > { %16157 = vmatmul.mubr.msk.bf16.gmra.mrb[84].mxu1 %vm307_vm2, %v21119_v62  ;;  %v11971_v62 = vrot.slane %v21677_v54, 1 }
 0x59d   : > { %16162 = vmatprep.mubr.msk.bf16.mxu1 %vm17999_vm1, %v22694_v24 }
 0x5a4   : > { %16163 = vmatmul.mubr.msk.bf16.vlgmr.msra.gmra.mrb[44].mxu1 %vm307_vm2, %v22802_v31 }
 0x5a5   : > { %16207 = vmatpush3.bf16.msra.mxu1 %v21404_v44  ;;  %16166 = vmatprep.mubr.msk.bf16.mxu1 %vm17999_vm1, %v22694_v24  ;;  %v11975_v44 = vor.u32 %v11971_v62, %v21662_v38 }
 0x5a6   : > { %16252 = vmatprep.subr.bf16.mxu1 %v22694_v24 }
 0x5ac   : > { %16167 = vmatmul.mubr.msk.bf16.gmra.mrb[48].mxu1 %vm307_vm2, %v21159_v37  ;;  %v11972_v37 = vsel %vm1176_vm3, %v21215_v20, %v11971_v62 }
 0x5ad   : > { %16170 = vmatprep.mubr.msk.bf16.mxu1 %vm17999_vm1, %v22694_v24 }
 0x5b4   : > { %16171 = vmatmul.mubr.msk.bf16.gmra.mrb[52].mxu1 %vm307_vm2, %v21180_v11  ;;  %v11979_v11 = vrot.slane %v21694_v22, 1 }
 0x5b5   : > { %16174 = vmatprep.mubr.msk.bf16.mxu1 %vm17999_vm1, %v22694_v24 }
 0x5b6   : > { %v11980_v30 = vsel %vm1176_vm3, %v11975_v44, %v11979_v11  ;;  %v11983_v20 = vor.u32 %v11979_v11, %v21680_v52  ;;  %v14358_v44 = vld [vmem:[%s18083_s16 + $0x28] sm:$0xff]  }
 0x5b7   : > { %v14235_v63 = vunpack.c.l.bf16 %v14358_v44 }
 0x5bc   : > { %16175 = vmatmul.mubr.msk.bf16.gmra.mrb[56].mxu1 %vm307_vm2, %v21212_v6  ;;  %v11987_v6 = vrot.slane %v21715_v32, 1 }
 0x5bd   : > { %16178 = vmatprep.mubr.msk.bf16.mxu1 %vm17999_vm1, %v22694_v24 }
 0x5be   : > { %v11988_v15 = vsel %vm1176_vm3, %v11983_v20, %v11987_v6  ;;  %v11991_v56 = vor.u32 %v11987_v6, %v21703_v61 }
 0x5c0   : > { %v11996_v19 = vsel %vm1176_vm3, %v11991_v56, %v11995_v18  ;;  %v12250_v18 = vrot.slane %v21677_v54, 4  ;;  %v12256_v56 = vrot.slane %v21680_v52, 3 }
 0x5c4   : > { %16179 = vmatmul.mubr.msk.bf16.gmra.mrb[60].mxu1 %vm307_vm2, %v11972_v37 }
 0x5c5   : > { %16182 = vmatprep.mubr.msk.bf16.mxu1 %vm17999_vm1, %v22694_v24 }
 0x5cc   : > { %16183 = vmatmul.mubr.msk.bf16.gmra.mrb[64].mxu1 %vm307_vm2, %v11980_v30  ;;  %v12247_v30 = vrot.slane %v21662_v38, 3 }
 0x5cd   : > { %16186 = vmatprep.mubr.msk.bf16.mxu1 %vm17999_vm1, %v22694_v24 }
 0x5d4   : > { %16187 = vmatmul.mubr.msk.bf16.gmra.mrb[68].mxu1 %vm307_vm2, %v11988_v15  ;;  %v14357_v15 = vld [vmem:[%s18083_s16 + $0x20] sm:$0xff]  }
 0x5d5   : > { %16190 = vmatprep.mubr.msk.bf16.mxu1 %vm17999_vm1, %v22694_v24  ;;  %v14231_v10 = vunpack.c.l.bf16 %v14357_v15 }
 0x5dc   : > { %16191 = vmatmul.mubr.msk.bf16.gmra.mrb[72].mxu1 %vm307_vm2, %v11996_v19 }
 0x5dd   : > { %16194 = vmatprep.mubr.msk.bf16.mxu1 %vm17999_vm1, %v22694_v24 }
 0x5e4   : > { %16195 = vmatmul.mubr.msk.bf16.gmra.mrb[76].mxu1 %vm307_vm2, %v12004_v58  ;;  %v12259_v58 = vrot.slane %v21694_v22, 4 }
 0x5e5   : > { %16198 = vmatprep.mubr.msk.bf16.mxu1 %vm17999_vm1, %v22694_v24 }
 0x5ec   : > { %16199 = vmatmul.mubr.msk.bf16.gmra.mrb[80].mxu1 %vm307_vm2, %v12012_v50 }
 0x5ed   : > { %16202 = vmatprep.mubr.msk.bf16.mxu1 %vm17999_vm1, %v22694_v24 }
 0x5f4   : > { %16203 = vmatmul.mubr.msk.bf16.gmra.mrb[84].mxu1 %vm307_vm2, %v12020_v2 }
 0x5f5   : > { %16208 = vmatprep.mubr.msk.bf16.mxu1 %vm17999_vm1, %v22694_v24 }
 0x5fc   : > { %16209 = vmatmul.mubr.msk.bf16.vlgmr.msra.gmra.mrb[44].mxu1 %vm307_vm2, %v12225_v34  ;;  %v14236_v34 = vunpack.c.h.bf16 %v14358_v44  ;;  %v12268_v44 = vrot.slane %v21715_v32, 4 }
 0x5fd   : > { %16253 = vmatpush3.bf16.msra.mxu1 %v21502_v3  ;;  %16212 = vmatprep.mubr.msk.bf16.mxu1 %vm17999_vm1, %v22694_v24 }
 0x5fe   : > { %16298 = vmatprep.subr.bf16.mxu1 %v22694_v24 }
 0x602   : > { %v15900_v16 = vpop.f32.mrb[76].mxu0 }
 0x603   : > { %v10418_v3 = vmul.f32 %v15900_v16, %v21906_v13  ;;  %v10251_v8 = vpop.f32.mrb[77].mxu0 }
 0x604   : > { %v10416_v4 = vmul.f32 %v21906_v13, %v10251_v8  ;;  %v15901_v57 = vpop.f32.mrb[78].mxu0  ;;  %16213 = vmatmul.mubr.msk.bf16.gmra.mrb[48].mxu1 %vm307_vm2, %v22805_v21  ;;  %v14360_v21 = vld [vmem:[%s18083_s16 + $0x38] sm:$0xff]  }
 0x605   : > { %v10456_v51 = vadd.f32 %v21913_v5, %v10418_v3  ;;  %v10419_v42 = vmul.f32 %v15901_v57, %v21906_v13  ;;  %v10254_v14 = vpop.f32.mrb[79].mxu0  ;;  %16216 = vmatprep.mubr.msk.bf16.mxu1 %vm17999_vm1, %v22694_v24 }
 0x606   : > { %v10454_v23 = vadd.f32 %v21913_v5, %v10416_v4  ;;  %v10417_v7 = vmul.f32 %v21906_v13, %v10254_v14  ;;  %v14359_v14 = vld [vmem:[%s18083_s16 + $0x30] sm:$0xff]  }
 0x607   : > { %v10552_v31 = vadd.f32 %v14227_v25, %v10456_v51  ;;  %v10457_v62 = vadd.f32 %v21913_v5, %v10419_v42  ;;  %v14232_v25 = vunpack.c.h.bf16 %v14357_v15  ;;  %v12251_v51 = vor.u32 %v12250_v18, %v12247_v30 }
 0x608   : > { %v10550_v37 = vadd.f32 %v14223_v41, %v10454_v23  ;;  %v10455_v11 = vadd.f32 %v21913_v5, %v10417_v7  ;;  %v21961_v23 = vor.u32 %v12259_v58, %v12256_v56  ;;  %v12265_v7 = vrot.slane %v21703_v61, 3 }
 0x609   : > { %v10584_v6 = vmax.f32 %v10552_v31, 0.0  ;;  %v10553_v20 = vadd.f32 %v14228_v43, %v10457_v62  ;;  %v14243_v15 = vunpack.c.l.bf16 %v14360_v21 }
 0x60a   : > { %v10582_v19 = vmax.f32 %v10550_v37, 0.0  ;;  %v10551_v27 = vadd.f32 %v14224_v47, %v10455_v11  ;;  %v15904_v59 = vpop.f32.mrb[80].mxu0  ;;  %v22807_v37 = vld [vmem:[#allocation38_spill] sm:$0xff] }
 0x60b   : > { %v14061_v53 = vpack.c.bf16 %v10584_v6, %v10584_v6  ;;  %v10585_v55 = vmax.f32 %v10553_v20, 0.0  ;;  %v10422_v50 = vmul.f32 %v15904_v59, %v21906_v13  ;;  %v10267_v29 = vpop.f32.mrb[81].mxu0  ;;  %v12252_v11 = vsel %vm695_vm4, %v22807_v37, %v12251_v51 }
 0x60c   : > { %v14059_v28 = vpack.c.bf16 %v10582_v19, %v10582_v19  ;;  %v10583_v33 = vmax.f32 %v10551_v27, 0.0  ;;  %v10420_v49 = vmul.f32 %v21906_v13, %v10267_v29  ;;  %v15905_v2 = vpop.f32.mrb[82].mxu0  ;;  %16217 = vmatmul.mubr.msk.bf16.gmra.mrb[52].mxu1 %vm307_vm2, %v22806_v12  ;;  %v14239_v59 = vunpack.c.l.bf16 %v14359_v14 }
 0x60d   : > { %10745 = vst.msk [vmem:[%s21936_s20 + $0x8] sm:$0xf] %vm10742_vm8, %v14061_v53  ;;  %v14062_v1 = vpack.c.bf16 %v10585_v55, %v10585_v55  ;;  %v10460_v40 = vadd.f32 %v21913_v5, %v10422_v50  ;;  %v10423_v35 = vmul.f32 %v15905_v2, %v21906_v13  ;;  %v10270_v26 = vpop.f32.mrb[83].mxu0  ;;  %16220 = vmatprep.mubr.msk.bf16.mxu1 %vm17999_vm1, %v22694_v24 }
 0x60e   : > { %10743 = vst.msk [vmem:[%s21936_s20] sm:$0xf] %vm10742_vm8, %v14059_v28  ;;  %v14060_v45 = vpack.c.bf16 %v10583_v33, %v10583_v33  ;;  %v10458_v16 = vadd.f32 %v21913_v5, %v10420_v49  ;;  %v10421_v3 = vmul.f32 %v21906_v13, %v10270_v26 }
 0x60f   : > { %10746 = vst.msk [vmem:[%s21936_s20 + $0xc] sm:$0xf] %vm10742_vm8, %v14062_v1  ;;  %v10556_v8 = vadd.f32 %v14235_v63, %v10460_v40  ;;  %v10461_v4 = vadd.f32 %v21913_v5, %v10423_v35  ;;  %v14244_v63 = vunpack.c.h.bf16 %v14360_v21  ;;  %v14362_v35 = vld [vmem:[%s18083_s16 + $0x48] sm:$0xff]  }
 0x610   : > { %10744 = vst.msk [vmem:[%s21936_s20 + $0x4] sm:$0xf] %vm10742_vm8, %v14060_v45  ;;  %v10554_v41 = vadd.f32 %v14231_v10, %v10458_v16  ;;  %v10459_v57 = vadd.f32 %v21913_v5, %v10421_v3  ;;  %v14240_v10 = vunpack.c.h.bf16 %v14359_v14  ;;  %v14361_v45 = vld [vmem:[%s18083_s16 + $0x40] sm:$0xff]   ;;  %v12261_v16 = vsel %vm695_vm4, %v12251_v51, %v21961_v23 }
 0x611   : > { %v10588_v42 = vmax.f32 %v10556_v8, 0.0  ;;  %v10557_v43 = vadd.f32 %v14236_v34, %v10461_v4  ;;  %v12274_v3 = vrot.slane %v21723_v17, 3  ;;  %v14251_v14 = vunpack.c.l.bf16 %v14362_v35 }
 0x612   : > { %v10586_v47 = vmax.f32 %v10554_v41, 0.0  ;;  %v10555_v31 = vadd.f32 %v14232_v25, %v10459_v57  ;;  %v15908_v62 = vpop.f32.mrb[84].mxu0  ;;  %v21991_v41 = vor.u32 %v12268_v44, %v12265_v7  ;;  %v12277_v57 = vrot.slane %v21734_v60, 4 }
 0x613   : > { %v14065_v6 = vpack.c.bf16 %v10588_v42, %v10588_v42  ;;  %v10589_v20 = vmax.f32 %v10557_v43, 0.0  ;;  %v10426_v30 = vmul.f32 %v15908_v62, %v21906_v13  ;;  %v10283_v18 = vpop.f32.mrb[85].mxu0  ;;  %v14247_v37 = vunpack.c.l.bf16 %v14361_v45 }
 0x614   : > { %v14063_v56 = vpack.c.bf16 %v10586_v47, %v10586_v47  ;;  %v10587_v19 = vmax.f32 %v10555_v31, 0.0  ;;  %v10424_v27 = vmul.f32 %v21906_v13, %v10283_v18  ;;  %v15909_v58 = vpop.f32.mrb[86].mxu0  ;;  %16221 = vmatmul.mubr.msk.bf16.gmra.mrb[56].mxu1 %vm307_vm2, %v12252_v11 }
 0x615   : > { %10749 = vst.msk [vmem:[%s21936_s20 + $0x18] sm:$0xf] %vm10742_vm8, %v14065_v6  ;;  %v14066_v53 = vpack.c.bf16 %v10589_v20, %v10589_v20  ;;  %v10464_v55 = vadd.f32 %v21913_v5, %v10426_v30  ;;  %v10427_v50 = vmul.f32 %v15909_v58, %v21906_v13  ;;  %v10286_v29 = vpop.f32.mrb[87].mxu0  ;;  %16224 = vmatprep.mubr.msk.bf16.mxu1 %vm17999_vm1, %v22694_v24  ;;  %v14252_v20 = vunpack.c.h.bf16 %v14362_v35 }
 0x616   : > { %10747 = vst.msk [vmem:[%s21936_s20 + $0x10] sm:$0xf] %vm10742_vm8, %v14063_v56  ;;  %v14064_v28 = vpack.c.bf16 %v10587_v19, %v10587_v19  ;;  %v10462_v33 = vadd.f32 %v21913_v5, %v10424_v27  ;;  %v10425_v49 = vmul.f32 %v21906_v13, %v10286_v29  ;;  %v14248_v19 = vunpack.c.h.bf16 %v14361_v45  ;;  %v14363_v29 = vld [vmem:[%s18083_s16 + $0x50] sm:$0xff]  }
 0x617   : > { %10750 = vst.msk [vmem:[%s21936_s20 + $0x1c] sm:$0xf] %vm10742_vm8, %v14066_v53  ;;  %v10560_v2 = vadd.f32 %v14243_v15, %v10464_v55  ;;  %v10465_v12 = vadd.f32 %v21913_v5, %v10427_v50  ;;  %v14364_v55 = vld [vmem:[%s18083_s16 + $0x58] sm:$0xff]  }
 0x618   : > { %10748 = vst.msk [vmem:[%s21936_s20 + $0x14] sm:$0xf] %vm10742_vm8, %v14064_v28  ;;  %v10558_v1 = vadd.f32 %v14239_v59, %v10462_v33  ;;  %v10463_v40 = vadd.f32 %v21913_v5, %v10425_v49  ;;  %v12283_v28 = vrot.slane %v21740_v46, 3  ;;  %v12286_v33 = vrot.slane %v21750_v9, 4 }
 0x619   : > { %v10592_v34 = vmax.f32 %v10560_v2, 0.0  ;;  %v10561_v26 = vadd.f32 %v14244_v63, %v10465_v12  ;;  %v12270_v12 = vsel %vm695_vm4, %v21961_v23, %v21991_v41 }
 0x61a   : > { %v10590_v25 = vmax.f32 %v10558_v1, 0.0  ;;  %v10559_v8 = vadd.f32 %v14240_v10, %v10463_v40  ;;  %v15912_v4 = vpop.f32.mrb[88].mxu0  ;;  %v22020_v1 = vor.u32 %v12277_v57, %v12274_v3 }
 0x61b   : > { %v14069_v21 = vpack.c.bf16 %v10592_v34, %v10592_v34  ;;  %v10593_v42 = vmax.f32 %v10561_v26, 0.0  ;;  %v10430_v43 = vmul.f32 %v15912_v4, %v21906_v13  ;;  %v10299_v47 = vpop.f32.mrb[89].mxu0  ;;  %v14259_v26 = vunpack.c.l.bf16 %v14364_v55 }
 0x61c   : > { %v14067_v31 = vpack.c.bf16 %v10590_v25, %v10590_v25  ;;  %v10591_v62 = vmax.f32 %v10559_v8, 0.0  ;;  %v10428_v51 = vmul.f32 %v21906_v13, %v10299_v47  ;;  %v15913_v11 = vpop.f32.mrb[90].mxu0  ;;  %16225 = vmatmul.mubr.msk.bf16.gmra.mrb[60].mxu1 %vm307_vm2, %v12261_v16  ;;  %v14255_v4 = vunpack.c.l.bf16 %v14363_v29 }
 0x61d   : > { %10753 = vst.msk [vmem:[%s21936_s20 + $0x28] sm:$0xf] %vm10742_vm8, %v14069_v21  ;;  %v14070_v7 = vpack.c.bf16 %v10593_v42, %v10593_v42  ;;  %v10468_v44 = vadd.f32 %v21913_v5, %v10430_v43  ;;  %v10431_v6 = vmul.f32 %v15913_v11, %v21906_v13  ;;  %v10302_v30 = vpop.f32.mrb[91].mxu0  ;;  %16228 = vmatprep.mubr.msk.bf16.mxu1 %vm17999_vm1, %v22694_v24  ;;  %v14260_v42 = vunpack.c.h.bf16 %v14364_v55 }
 0x61e   : > { %10751 = vst.msk [vmem:[%s21936_s20 + $0x20] sm:$0xf] %vm10742_vm8, %v14067_v31  ;;  %v14068_v15 = vpack.c.bf16 %v10591_v62, %v10591_v62  ;;  %v10466_v18 = vadd.f32 %v21913_v5, %v10428_v51  ;;  %v10429_v56 = vmul.f32 %v21906_v13, %v10302_v30  ;;  %v14256_v62 = vunpack.c.h.bf16 %v14363_v29  ;;  %v14365_v30 = vld [vmem:[%s18083_s16 + $0x60] sm:$0xff]  }
 0x61f   : > { %10754 = vst.msk [vmem:[%s21936_s20 + $0x2c] sm:$0xf] %vm10742_vm8, %v14070_v7  ;;  %v10564_v27 = vadd.f32 %v14251_v14, %v10468_v44  ;;  %v10469_v59 = vadd.f32 %v21913_v5, %v10431_v6  ;;  %v14366_v44 = vld [vmem:[%s18083_s16 + $0x68] sm:$0xff]  }
 0x620   : > { %10752 = vst.msk [vmem:[%s21936_s20 + $0x24] sm:$0xf] %vm10742_vm8, %v14068_v15  ;;  %v10562_v58 = vadd.f32 %v14247_v37, %v10466_v18  ;;  %v10467_v53 = vadd.f32 %v21913_v5, %v10429_v56  ;;  %v12279_v15 = vsel %vm695_vm4, %v21991_v41, %v22020_v1  ;;  %v22046_v18 = vor.u32 %v12286_v33, %v12283_v28 }
 0x621   : > { %v10596_v50 = vmax.f32 %v10564_v27, 0.0  ;;  %v10565_v63 = vadd.f32 %v14252_v20, %v10469_v59  ;;  %v22808_v59 = vld [vmem:[#allocation16_spill] sm:$0xff] }
 0x622   : > { %v10594_v49 = vmax.f32 %v10562_v58, 0.0  ;;  %v10563_v10 = vadd.f32 %v14248_v19, %v10467_v53  ;;  %v15916_v2 = vpop.f32.mrb[92].mxu0  ;;  %v22809_v58 = vshrl.u32 %v22808_v59, 16  ;;  %v22810_v55 = vshll.u32 %v22808_v59, 16 }
 0x623   : > { %v14073_v40 = vpack.c.bf16 %v10596_v50, %v10596_v50  ;;  %v10597_v35 = vmax.f32 %v10565_v63, 0.0  ;;  %v10434_v34 = vmul.f32 %v15916_v2, %v21906_v13  ;;  %v10315_v45 = vpop.f32.mrb[93].mxu0 }
 0x624   : > { %v14071_v16 = vpack.c.bf16 %v10594_v49, %v10594_v49  ;;  %v10595_v25 = vmax.f32 %v10563_v10, 0.0  ;;  %v10432_v8 = vmul.f32 %v21906_v13, %v10315_v45  ;;  %v15917_v21 = vpop.f32.mrb[94].mxu0  ;;  %16229 = vmatmul.mubr.msk.bf16.gmra.mrb[64].mxu1 %vm307_vm2, %v12270_v12  ;;  %v12292_v53 = vrot.slane %v22809_v58, 3 }
 0x625   : > { %10757 = vst.msk [vmem:[%s21936_s20 + $0x38] sm:$0xf] %vm10742_vm8, %v14073_v40  ;;  %v14074_v23 = vpack.c.bf16 %v10597_v35, %v10597_v35  ;;  %v10472_v3 = vadd.f32 %v21913_v5, %v10434_v34  ;;  %v10435_v57 = vmul.f32 %v15917_v21, %v21906_v13  ;;  %v10318_v43 = vpop.f32.mrb[95].mxu0  ;;  %16232 = vmatprep.mubr.msk.bf16.mxu1 %vm17999_vm1, %v22694_v24  ;;  %v12295_v50 = vrot.slane %v22810_v55, 4 }
 0x626   : > { %10755 = vst.msk [vmem:[%s21936_s20 + $0x30] sm:$0xf] %vm10742_vm8, %v14071_v16  ;;  %v14072_v14 = vpack.c.bf16 %v10595_v25, %v10595_v25  ;;  %v10470_v47 = vadd.f32 %v21913_v5, %v10432_v8  ;;  %v10433_v31 = vmul.f32 %v21906_v13, %v10318_v43  ;;  %v14267_v10 = vunpack.c.l.bf16 %v14366_v44  ;;  %v14368_v43 = vld [vmem:[%s18083_s16 + $0x78] sm:$0xff]  }
 0x627   : > { %10758 = vst.msk [vmem:[%s21936_s20 + $0x3c] sm:$0xf] %vm10742_vm8, %v14074_v23  ;;  %v10568_v51 = vadd.f32 %v14259_v26, %v10472_v3  ;;  %v10473_v37 = vadd.f32 %v21913_v5, %v10435_v57  ;;  %v14263_v12 = vunpack.c.l.bf16 %v14365_v30  ;;  %v14268_v45 = vunpack.c.h.bf16 %v14366_v44 }
 0x628   : > { %10756 = vst.msk [vmem:[%s21936_s20 + $0x34] sm:$0xf] %vm10742_vm8, %v14072_v14  ;;  %v10566_v11 = vadd.f32 %v14255_v4, %v10470_v47  ;;  %v10471_v7 = vadd.f32 %v21913_v5, %v10433_v31  ;;  %v14264_v21 = vunpack.c.h.bf16 %v14365_v30  ;;  %v14367_v31 = vld [vmem:[%s18083_s16 + $0x70] sm:$0xff]   ;;  %v14275_v30 = vunpack.c.l.bf16 %v14368_v43 }
 0x629   : > { %v10600_v6 = vmax.f32 %v10568_v51, 0.0  ;;  %v10569_v20 = vadd.f32 %v14260_v42, %v10473_v37  ;;  %v14271_v58 = vunpack.c.l.bf16 %v14367_v31 }
 0x62a   : > { %v10598_v56 = vmax.f32 %v10566_v11, 0.0  ;;  %v10567_v19 = vadd.f32 %v14256_v62, %v10471_v7  ;;  %v15920_v27 = vpop.f32.mrb[96].mxu0  ;;  %v12288_v11 = vsel %vm695_vm4, %v22020_v1, %v22046_v18  ;;  %v22076_v7 = vor.u32 %v12295_v50, %v12292_v53 }
 0x62b   : > { %v14077_v63 = vpack.c.bf16 %v10600_v6, %v10600_v6  ;;  %v10601_v29 = vmax.f32 %v10569_v20, 0.0  ;;  %v10438_v49 = vmul.f32 %v15920_v27, %v21906_v13  ;;  %v10331_v2 = vpop.f32.mrb[97].mxu0 }
 0x62c   : > { %v14075_v41 = vpack.c.bf16 %v10598_v56, %v10598_v56  ;;  %v10599_v28 = vmax.f32 %v10567_v19, 0.0  ;;  %v10436_v33 = vmul.f32 %v21906_v13, %v10331_v2  ;;  %v15921_v40 = vpop.f32.mrb[98].mxu0  ;;  %16233 = vmatmul.mubr.msk.bf16.gmra.mrb[68].mxu1 %vm307_vm2, %v12279_v15 }
 0x62d   : > { %10761 = vst.msk [vmem:[%s21936_s20 + $0x48] sm:$0xf] %vm10742_vm8, %v14077_v63  ;;  %v14078_v35 = vpack.c.bf16 %v10601_v29, %v10601_v29  ;;  %v10476_v34 = vadd.f32 %v21913_v5, %v10438_v49  ;;  %v10439_v26 = vmul.f32 %v15921_v40, %v21906_v13  ;;  %v10334_v16 = vpop.f32.mrb[99].mxu0  ;;  %16236 = vmatprep.mubr.msk.bf16.mxu1 %vm17999_vm1, %v22694_v24  ;;  %v14276_v63 = vunpack.c.h.bf16 %v14368_v43  ;;  %v14369_v40 = vld [vmem:[%s18083_s16 + $0x80] sm:$0xff]  }
 0x62e   : > { %10759 = vst.msk [vmem:[%s21936_s20 + $0x40] sm:$0xf] %vm10742_vm8, %v14075_v41  ;;  %v14076_v25 = vpack.c.bf16 %v10599_v28, %v10599_v28  ;;  %v10474_v8 = vadd.f32 %v21913_v5, %v10436_v33  ;;  %v10437_v4 = vmul.f32 %v21906_v13, %v10334_v16  ;;  %v14272_v41 = vunpack.c.h.bf16 %v14367_v31 }
 0x62f   : > { %10762 = vst.msk [vmem:[%s21936_s20 + $0x4c] sm:$0xf] %vm10742_vm8, %v14078_v35  ;;  %v10572_v23 = vadd.f32 %v14267_v10, %v10476_v34  ;;  %v10477_v3 = vadd.f32 %v21913_v5, %v10439_v26  ;;  %v22811_v26 = vld [vmem:[#allocation39_spill] sm:$0xff] }
 0x630   : > { %10760 = vst.msk [vmem:[%s21936_s20 + $0x44] sm:$0xf] %vm10742_vm8, %v14076_v25  ;;  %v10570_v57 = vadd.f32 %v14263_v12, %v10474_v8  ;;  %v10475_v42 = vadd.f32 %v21913_v5, %v10437_v4  ;;  %v14370_v12 = vld [vmem:[%s18083_s16 + $0x88] sm:$0xff]   ;;  %v12297_v4 = vsel %vm695_vm4, %v22046_v18, %v22076_v7 }
 0x631   : > { %v10604_v14 = vmax.f32 %v10572_v23, 0.0  ;;  %v10573_v47 = vadd.f32 %v14268_v45, %v10477_v3  ;;  %v22812_v45 = vshrl.u32 %v22811_v26, 16  ;;  %v22106_v3 = vld [vmem:[#allocation2 + $0xf0] sm:$0xf] }
 0x632   : > { %v10602_v62 = vmax.f32 %v10570_v57, 0.0  ;;  %v10571_v51 = vadd.f32 %v14264_v21, %v10475_v42  ;;  %v15924_v37 = vpop.f32.mrb[100].mxu0  ;;  %v22813_v21 = vshll.u32 %v22811_v26, 16 }
 0x633   : > { %v14081_v44 = vpack.c.bf16 %v10604_v14, %v10604_v14  ;;  %v10605_v6 = vmax.f32 %v10573_v47, 0.0  ;;  %v10442_v20 = vmul.f32 %v15924_v37, %v21906_v13  ;;  %v10347_v15 = vpop.f32.mrb[101].mxu0  ;;  %v12301_v16 = vrot.slane %v22812_v45, 3 }
 0x634   : > { %v14079_v56 = vpack.c.bf16 %v10602_v62, %v10602_v62  ;;  %v10603_v19 = vmax.f32 %v10571_v51, 0.0  ;;  %v10440_v27 = vmul.f32 %v21906_v13, %v10347_v15  ;;  %v15925_v55 = vpop.f32.mrb[102].mxu0  ;;  %16237 = vmatmul.mubr.msk.bf16.gmra.mrb[72].mxu1 %vm307_vm2, %v12288_v11  ;;  %v12304_v23 = vrot.slane %v22813_v21, 4 }
 0x635   : > { %10765 = vst.msk [vmem:[%s21936_s20 + $0x58] sm:$0xf] %vm10742_vm8, %v14081_v44  ;;  %v14082_v1 = vpack.c.bf16 %v10605_v6, %v10605_v6  ;;  %v10480_v53 = vadd.f32 %v21913_v5, %v10442_v20  ;;  %v10443_v50 = vmul.f32 %v15925_v55, %v21906_v13  ;;  %v10350_v29 = vpop.f32.mrb[103].mxu0  ;;  %16240 = vmatprep.mubr.msk.bf16.mxu1 %vm17999_vm1, %v22694_v24  ;;  %v14283_v14 = vunpack.c.l.bf16 %v14370_v12 }
 0x636   : > { %10763 = vst.msk [vmem:[%s21936_s20 + $0x50] sm:$0xf] %vm10742_vm8, %v14079_v56  ;;  %v14080_v49 = vpack.c.bf16 %v10603_v19, %v10603_v19  ;;  %v10478_v10 = vadd.f32 %v21913_v5, %v10440_v27  ;;  %v10441_v2 = vmul.f32 %v21906_v13, %v10350_v29  ;;  %v14279_v47 = vunpack.c.l.bf16 %v14369_v40 }
 0x637   : > { %10766 = vst.msk [vmem:[%s21936_s20 + $0x5c] sm:$0xf] %vm10742_vm8, %v14082_v1  ;;  %v10576_v28 = vadd.f32 %v14275_v30, %v10480_v53  ;;  %v10481_v33 = vadd.f32 %v21913_v5, %v10443_v50  ;;  %v14284_v11 = vunpack.c.h.bf16 %v14370_v12  ;;  %v12308_v30 = vshrl.u32 %v22106_v3, 16 }
 0x638   : > { %10764 = vst.msk [vmem:[%s21936_s20 + $0x54] sm:$0xf] %vm10742_vm8, %v14080_v49  ;;  %v10574_v35 = vadd.f32 %v14271_v58, %v10478_v10  ;;  %v10479_v34 = vadd.f32 %v21913_v5, %v10441_v2  ;;  %v12311_v58 = vshll.u32 %v22106_v3, 16  ;;  %v14280_v50 = vunpack.c.h.bf16 %v14369_v40 }
 0x639   : > { %v10608_v25 = vmax.f32 %v10576_v28, 0.0  ;;  %v10577_v8 = vadd.f32 %v14276_v63, %v10481_v33  ;;  %v12305_v49 = vor.u32 %v12304_v23, %v12301_v16  ;;  %v12310_v33 = vrot.slane %v12308_v30, 3 }
 0x63a   : > { %v10606_v57 = vmax.f32 %v10574_v35, 0.0  ;;  %v10575_v42 = vadd.f32 %v14272_v41, %v10479_v34  ;;  %v15928_v43 = vpop.f32.mrb[104].mxu0  ;;  %v12313_v12 = vrot.slane %v12311_v58, 4 }
 0x63b   : > { %v14085_v31 = vpack.c.bf16 %v10608_v25, %v10608_v25  ;;  %v10609_v62 = vmax.f32 %v10577_v8, 0.0  ;;  %v10446_v51 = vmul.f32 %v15928_v43, %v21906_v13  ;;  %v10363_v37 = vpop.f32.mrb[105].mxu0  ;;  %v12306_v16 = vsel %vm695_vm4, %v22076_v7, %v12305_v49  ;;  %v17983_v43 = vld [vmem:[#allocation2 + $0x98] sm:$0xf0] }
 0x63c   : > { %v14083_v44 = vpack.c.bf16 %v10606_v57, %v10606_v57  ;;  %v10607_v18 = vmax.f32 %v10575_v42, 0.0  ;;  %v10444_v6 = vmul.f32 %v21906_v13, %v10363_v37  ;;  %v15929_v20 = vpop.f32.mrb[106].mxu0  ;;  %16241 = vmatmul.mubr.msk.bf16.gmra.mrb[76].mxu1 %vm307_vm2, %v12297_v4  ;;  %v12314_v21 = vor.u32 %v12313_v12, %v12310_v33  ;;  %v17982_v57 = vld [vmem:[#allocation2 + $0xa0] sm:$0xff]  ;;  %v17985_v37 = vld [vmem:[#allocation2 + $0xb0] sm:$0xff] }
 0x63d   : > { %10769 = vst.msk [vmem:[%s21936_s20 + $0x68] sm:$0xf] %vm10742_vm8, %v14085_v31  ;;  %v14086_v15 = vpack.c.bf16 %v10609_v62, %v10609_v62  ;;  %v10484_v56 = vadd.f32 %v21913_v5, %v10446_v51  ;;  %v10447_v19 = vmul.f32 %v15929_v20, %v21906_v13  ;;  %v10366_v27 = vpop.f32.mrb[107].mxu0  ;;  %16244 = vmatprep.mubr.msk.bf16.mxu1 %vm17999_vm1, %v22694_v24  ;;  %v12506_v42 = vrot.slane %v17982_v57, 4  ;;  %v17984_v31 = vld [vmem:[#allocation2 + $0xa8] sm:$0xff]  ;;  %v17987_v20 = vld [vmem:[#allocation2 + $0xc0] sm:$0xff] }
 0x63e   : > { %10767 = vst.msk [vmem:[%s21936_s20 + $0x60] sm:$0xf] %vm10742_vm8, %v14083_v44  ;;  %v14084_v55 = vpack.c.bf16 %v10607_v18, %v10607_v18  ;;  %v10482_v1 = vadd.f32 %v21913_v5, %v10444_v6  ;;  %v10445_v53 = vmul.f32 %v21906_v13, %v10366_v27  ;;  %v12315_v7 = vsel %vm695_vm4, %v12305_v49, %v12314_v21 }
 0x63f   : > { %10770 = vst.msk [vmem:[%s21936_s20 + $0x6c] sm:$0xf] %vm10742_vm8, %v14086_v15  ;;  %v10580_v63 = vadd.f32 %v14283_v14, %v10484_v56  ;;  %v10485_v29 = vadd.f32 %v21913_v5, %v10447_v19  ;;  %v12505_v14 = vrot.slane %v17983_v43, 4  ;;  %v12508_v62 = vrot.slane %v17984_v31, 4 }
 0x640   : > { %10768 = vst.msk [vmem:[%s21936_s20 + $0x64] sm:$0xf] %vm10742_vm8, %v14084_v55  ;;  %v10578_v10 = vadd.f32 %v14279_v47, %v10482_v1  ;;  %v10483_v2 = vadd.f32 %v21913_v5, %v10445_v53  ;;  %v12514_v30 = vrot.slane %v17987_v20, 4  ;;  %v12516_v56 = vrot.slane %v21689_v48, 4  ;;  %v22815_v53 = vld [vmem:[#allocation40_spill] sm:$0xff]  ;;  %v14372_v20 = vld [vmem:[%s18083_s16 + $0x98] sm:$0xff]  }
 0x641   : > { %v10612_v41 = vmax.f32 %v10580_v63, 0.0  ;;  %v10581_v28 = vadd.f32 %v14284_v11, %v10485_v29  ;;  %v12507_v47 = vsel %vm7432_vm5, %v12505_v14, %v12506_v42  ;;  %v12509_v51 = vsel %vm7432_vm5, %v12506_v42, %v12508_v62  ;;  %v22818_v29 = vld [vmem:[#allocation15_spill] sm:$0xff]  ;;  %v22823_v42 = vld [vmem:[#allocation6_spill] sm:$0xff] }
 0x642   : > { %v10610_v40 = vmax.f32 %v10578_v10, 0.0  ;;  %v10579_v35 = vadd.f32 %v14280_v50, %v10483_v2  ;;  %v12510_v11 = vrot.slane %v17985_v37, 4  ;;  %v12517_v19 = vsel %vm7432_vm5, %v12514_v30, %v12516_v56  ;;  %v22820_v2 = vld [vmem:[#allocation32_spill] sm:$0xff]  ;;  %v14371_v14 = vld [vmem:[%s18083_s16 + $0x90] sm:$0xff]  }
 0x643   : > { %v14089_v34 = vpack.c.bf16 %v10612_v41, %v10612_v41  ;;  %v10613_v45 = vmax.f32 %v10581_v28, 0.0  ;;  %v12518_v27 = vrot.slane %v21710_v39, 4  ;;  %v12520_v55 = vrot.slane %v21729_v0, 4 }
 0x644   : > { %v14087_v25 = vpack.c.bf16 %v10610_v40, %v10610_v40  ;;  %v10611_v8 = vmax.f32 %v10579_v35, 0.0  ;;  %16245 = vmatmul.mubr.msk.bf16.gmra.mrb[80].mxu1 %vm307_vm2, %v12306_v16  ;;  %v12511_v44 = vsel %vm7432_vm5, %v12508_v62, %v12510_v11  ;;  %v22814_v1 = vrot.slane %v22808_v59, 4  ;;  %v22817_v59 = vld [vmem:[#allocation33_spill] sm:$0xff] }
 0x645   : > { %10773 = vst.msk [vmem:[%s21936_s20 + $0x78] sm:$0xf] %vm10742_vm8, %v14089_v34  ;;  %v14090_v4 = vpack.c.bf16 %v10613_v45, %v10613_v45  ;;  %16248 = vmatprep.mubr.msk.bf16.mxu1 %vm17999_vm1, %v22694_v24  ;;  %v12519_v58 = vsel %vm7432_vm5, %v12516_v56, %v12518_v27  ;;  %v12521_v48 = vsel %vm7432_vm5, %v12518_v27, %v12520_v55  ;;  %v12526_v0 = vrot.slane %v22106_v3, 4 }
 0x646   : > { %10771 = vst.msk [vmem:[%s21936_s20 + $0x70] sm:$0xf] %vm10742_vm8, %v14087_v25  ;;  %v14088_v23 = vpack.c.bf16 %v10611_v8, %v10611_v8  ;;  %v12523_v39 = vsel %vm7432_vm5, %v12520_v55, %v22814_v1  ;;  %v22816_v50 = vrot.slane %v22811_v26, 4  ;;  %v22819_v26 = vld [vmem:[#allocation41_spill] sm:$0xff]  ;;  %v12725_v3 = vrot.slane %v21662_v38, 4  ;;  %v22821_v8 = vld [vmem:[#allocation42_spill] sm:$0xff] }
 0x647   : > { %10774 = vst.msk [vmem:[%s21936_s20 + $0x7c] sm:$0xf] %vm10742_vm8, %v14090_v4  ;;  %v12726_v49 = vrot.slane %v21677_v54, 5  ;;  %v12729_v28 = vrot.slane %v21680_v52, 4  ;;  %v12730_v33 = vrot.slane %v21694_v22, 5  ;;  %v12733_v38 = vrot.slane %v21703_v61, 4 }
 0x648   : > { %10772 = vst.msk [vmem:[%s21936_s20 + $0x74] sm:$0xf] %vm10742_vm8, %v14088_v23  ;;  %v12527_v63 = vsel %vm7432_vm5, %v22816_v50, %v12526_v0  ;;  %v12734_v54 = vrot.slane %v21715_v32, 5  ;;  %v12737_v35 = vrot.slane %v21723_v17, 4  ;;  %v12738_v34 = vrot.slane %v21734_v60, 5 }
 0x649   : > { %v12727_v10 = vor.u32 %v12726_v49, %v12725_v3  ;;  %v12731_v12 = vor.u32 %v12730_v33, %v12729_v28  ;;  %v12741_v45 = vrot.slane %v21740_v46, 4  ;;  %v12742_v16 = vrot.slane %v21750_v9, 5  ;;  %v12704_v25 = vld [vmem:[#allocation2 + $0xf0] sm:$0x1f] }
 0x64a   : > { %v12735_v52 = vor.u32 %v12734_v54, %v12733_v38  ;;  %v12739_v61 = vor.u32 %v12738_v34, %v12737_v35  ;;  %v12754_v9 = vshrl.u32 %v12704_v25, 16  ;;  %v12757_v4 = vshll.u32 %v12704_v25, 16 }
 0x64b   : > { %v12728_v41 = vsel %vm8043_vm6, %v22820_v2, %v12727_v10  ;;  %v12732_v40 = vsel %vm8043_vm6, %v12727_v10, %v12731_v12  ;;  %v12743_v17 = vor.u32 %v12742_v16, %v12741_v45  ;;  %v14287_v62 = vunpack.c.l.bf16 %v14371_v14 }
 0x64c   : > { %16249 = vmatmul.mubr.msk.bf16.gmra.mrb[84].mxu1 %vm307_vm2, %v12315_v7  ;;  %v12736_v22 = vsel %vm8043_vm6, %v12731_v12, %v12735_v52  ;;  %v12740_v32 = vsel %vm8043_vm6, %v12735_v52, %v12739_v61  ;;  %v12756_v21 = vrot.slane %v12754_v9, 4  ;;  %v12759_v23 = vrot.slane %v12757_v4, 5  ;;  %v22822_v7 = vld [vmem:[#allocation34_spill] sm:$0xff] }
 0x64d   : > { %16254 = vmatprep.mubr.msk.bf16.mxu1 %vm17999_vm1, %v22694_v24  ;;  %v12744_v60 = vsel %vm8043_vm6, %v12739_v61, %v12743_v17  ;;  %v12748_v46 = vsel %vm8043_vm6, %v12743_v17, %v22821_v8  ;;  %v14291_v55 = vunpack.c.l.bf16 %v14372_v20  ;;  %v14292_v50 = vunpack.c.h.bf16 %v14372_v20 }
 0x64e   : > { %v12760_v57 = vor.u32 %v12759_v23, %v12756_v21 }
 0x650   : > { %v12761_v43 = vsel %vm8043_vm6, %v22823_v42, %v12760_v57 }
 0x654   : > { %16255 = vmatmul.mubr.msk.bf16.vlgmr.msra.gmra.mrb[44].mxu1 %vm307_vm2, %v12507_v47 }
 0x655   : > { %16299 = vmatpush3.bf16.msra.mxu1 %v21601_v36  ;;  %16258 = vmatprep.mubr.msk.bf16.mxu1 %vm17999_vm1, %v22694_v24  ;;  %v17986_v36 = vld [vmem:[#allocation2 + $0xb8] sm:$0xff] }
 0x656   : > { %v12512_v18 = vrot.slane %v17986_v36, 4 }
 0x658   : > { %v12513_v6 = vsel %vm7432_vm5, %v12510_v11, %v12512_v18  ;;  %v12515_v15 = vsel %vm7432_vm5, %v12512_v18, %v12514_v30 }
 0x65c   : > { %16259 = vmatmul.mubr.msk.bf16.gmra.mrb[48].mxu1 %vm307_vm2, %v12509_v51 }
 0x65d   : > { %16262 = vmatprep.mubr.msk.bf16.mxu1 %vm17999_vm1, %v22694_v24 }
 0x664   : > { %16263 = vmatmul.mubr.msk.bf16.gmra.mrb[52].mxu1 %vm307_vm2, %v12511_v44 }
 0x665   : > { %16266 = vmatprep.mubr.msk.bf16.mxu1 %vm17999_vm1, %v22694_v24 }
 0x66c   : > { %16267 = vmatmul.mubr.msk.bf16.gmra.mrb[56].mxu1 %vm307_vm2, %v12513_v6 }
 0x66d   : > { %16270 = vmatprep.mubr.msk.bf16.mxu1 %vm17999_vm1, %v22694_v24 }
 0x674   : > { %16271 = vmatmul.mubr.msk.bf16.gmra.mrb[60].mxu1 %vm307_vm2, %v12515_v15 }
 0x675   : > { %16274 = vmatprep.mubr.msk.bf16.mxu1 %vm17999_vm1, %v22694_v24 }
 0x67c   : > { %16275 = vmatmul.mubr.msk.bf16.gmra.mrb[64].mxu1 %vm307_vm2, %v12517_v19 }
 0x67d   : > { %16278 = vmatprep.mubr.msk.bf16.mxu1 %vm17999_vm1, %v22694_v24 }
 0x684   : > { %16279 = vmatmul.mubr.msk.bf16.gmra.mrb[68].mxu1 %vm307_vm2, %v12519_v58 }
 0x685   : > { %16282 = vmatprep.mubr.msk.bf16.mxu1 %vm17999_vm1, %v22694_v24 }
 0x68c   : > { %16283 = vmatmul.mubr.msk.bf16.gmra.mrb[72].mxu1 %vm307_vm2, %v12521_v48 }
 0x68d   : > { %16286 = vmatprep.mubr.msk.bf16.mxu1 %vm17999_vm1, %v22694_v24 }
 0x694   : > { %16287 = vmatmul.mubr.msk.bf16.gmra.mrb[76].mxu1 %vm307_vm2, %v12523_v39 }
 0x695   : > { %16290 = vmatprep.mubr.msk.bf16.mxu1 %vm17999_vm1, %v22694_v24 }
 0x69c   : > { %16291 = vmatmul.mubr.msk.bf16.gmra.mrb[80].mxu1 %vm307_vm2, %v22815_v53 }
 0x69d   : > { %16294 = vmatprep.mubr.msk.bf16.mxu1 %vm17999_vm1, %v22694_v24 }
 0x6a4   : > { %16295 = vmatmul.mubr.msk.bf16.gmra.mrb[84].mxu1 %vm307_vm2, %v12527_v63 }
 0x6a5   : > { %16300 = vmatprep.mubr.msk.bf16.mxu1 %vm17999_vm1, %v22694_v24 }
 0x6ac   : > { %16301 = vmatmul.mubr.msk.bf16.vlgmr.msra.gmra.mrb[44].mxu1 %vm307_vm2, %v22817_v59 }
 0x6ad   : > { %16304 = vmatprep.mubr.msk.bf16.mxu1 %vm17999_vm1, %v22694_v24 }
 0x6b4   : > { %16305 = vmatmul.mubr.msk.bf16.gmra.mrb[48].mxu1 %vm307_vm2, %v22818_v29 }
 0x6b5   : > { %16308 = vmatprep.mubr.msk.bf16.mxu1 %vm17999_vm1, %v22694_v24 }
 0x6bc   : > { %16309 = vmatmul.mubr.msk.bf16.gmra.mrb[52].mxu1 %vm307_vm2, %v22819_v26  ;;  %v14373_v26 = vld [vmem:[%s18083_s16 + $0xa0] sm:$0xff]  }
 0x6bd   : > { %16312 = vmatprep.mubr.msk.bf16.mxu1 %vm17999_vm1, %v22694_v24  ;;  %v14295_v33 = vunpack.c.l.bf16 %v14373_v26 }
 0x6c4   : > { %16313 = vmatmul.mubr.msk.bf16.gmra.mrb[56].mxu1 %vm307_vm2, %v12728_v41 }
 0x6c5   : > { %16316 = vmatprep.mubr.msk.bf16.mxu1 %vm17999_vm1, %v22694_v24 }
 0x6cc   : > { %16317 = vmatmul.mubr.msk.bf16.gmra.mrb[60].mxu1 %vm307_vm2, %v12732_v40 }
 0x6cd   : > { %16320 = vmatprep.mubr.msk.bf16.mxu1 %vm17999_vm1, %v22694_v24 }
 0x6d4   : > { %16321 = vmatmul.mubr.msk.bf16.gmra.mrb[64].mxu1 %vm307_vm2, %v12736_v22  ;;  %v14296_v22 = vunpack.c.h.bf16 %v14373_v26 }
 0x6d5   : > { %16324 = vmatprep.mubr.msk.bf16.mxu1 %vm17999_vm1, %v22694_v24 }
 0x6dc   : > { %16325 = vmatmul.mubr.msk.bf16.gmra.mrb[68].mxu1 %vm307_vm2, %v12740_v32  ;;  %v14374_v32 = vld [vmem:[%s18083_s16 + $0xa8] sm:$0xff]  }
 0x6dd   : > { %16328 = vmatprep.mubr.msk.bf16.mxu1 %vm17999_vm1, %v22694_v24  ;;  %v14300_v57 = vunpack.c.h.bf16 %v14374_v32 }
 0x6e4   : > { %16329 = vmatmul.mubr.msk.bf16.gmra.mrb[72].mxu1 %vm307_vm2, %v12744_v60 }
 0x6e5   : > { %16332 = vmatprep.mubr.msk.bf16.mxu1 %vm17999_vm1, %v22694_v24 }
 0x6ec   : > { %16333 = vmatmul.mubr.msk.bf16.gmra.mrb[76].mxu1 %vm307_vm2, %v12748_v46  ;;  %v14299_v46 = vunpack.c.l.bf16 %v14374_v32 }
 0x6ed   : > { %16336 = vmatprep.mubr.msk.bf16.mxu1 %vm17999_vm1, %v22694_v24 }
 0x6f4   : > { %16337 = vmatmul.mubr.msk.bf16.gmra.mrb[80].mxu1 %vm307_vm2, %v22822_v7 }
 0x6f5   : > { %16340 = vmatprep.mubr.msk.bf16.mxu1 %vm17999_vm1, %v22694_v24  ;;  %v14288_v24 = vunpack.c.h.bf16 %v14371_v14 }
 0x6fc   : > { %16341 = vmatmul.mubr.msk.bf16.gmra.mrb[84].mxu1 %vm307_vm2, %v12761_v43 }
 0x77f   : > { %v12829_v47 = vpop.f32.mrb[44].mxu1 }
 0x780   : > { %v12938_v31 = vmul.f32 %v21906_v13, %v12829_v47  ;;  %v16302_v51 = vpop.f32.mrb[45].mxu1  ;;  %v14375_v47 = vld [vmem:[%s18083_s16 + $0xb0] sm:$0xff]  }
 0x781   : > { %v12832_v37 = vpop.f32.mrb[46].mxu1 }
 0x782   : > { %v12960_v11 = vadd.f32 %v21913_v5, %v12938_v31  ;;  %v12939_v44 = vmul.f32 %v21906_v13, %v12832_v37  ;;  %v16303_v36 = vpop.f32.mrb[47].mxu1 }
 0x784   : > { %v13026_v18 = vadd.f32 %v14287_v62, %v12960_v11  ;;  %v12961_v6 = vadd.f32 %v21913_v5, %v12939_v44 }
 0x786   : > { %v13048_v30 = vmax.f32 %v13026_v18, 0.0  ;;  %v13027_v15 = vadd.f32 %v14288_v24, %v12961_v6  ;;  %v14303_v24 = vunpack.c.l.bf16 %v14375_v47 }
 0x787   : > { %v12837_v56 = vpop.f32.mrb[48].mxu1 }
 0x788   : > { %v14091_v19 = vpack.c.bf16 %v13048_v30, %v13048_v30  ;;  %v13049_v27 = vmax.f32 %v13027_v15, 0.0  ;;  %v12940_v58 = vmul.f32 %v21906_v13, %v12837_v56  ;;  %v16306_v48 = vpop.f32.mrb[49].mxu1  ;;  %v14304_v15 = vunpack.c.h.bf16 %v14375_v47 }
 0x789   : > { %v12840_v1 = vpop.f32.mrb[50].mxu1 }
 0x78a   : > { %13158 = vst.msk [vmem:[%s21936_s20 + $0x80] sm:$0xf] %vm10742_vm8, %v14091_v19  ;;  %v14092_v39 = vpack.c.bf16 %v13049_v27, %v13049_v27  ;;  %v12962_v53 = vadd.f32 %v21913_v5, %v12940_v58  ;;  %v12941_v0 = vmul.f32 %v21906_v13, %v12840_v1  ;;  %v16307_v63 = vpop.f32.mrb[51].mxu1  ;;  %v14376_v58 = vld [vmem:[%s18083_s16 + $0xb8] sm:$0xff]  }
 0x78c   : > { %13159 = vst.msk [vmem:[%s21936_s20 + $0x84] sm:$0xf] %vm10742_vm8, %v14092_v39  ;;  %v13028_v59 = vadd.f32 %v14291_v55, %v12962_v53  ;;  %v12963_v29 = vadd.f32 %v21913_v5, %v12941_v0 }
 0x78e   : > { %v13050_v3 = vmax.f32 %v13028_v59, 0.0  ;;  %v13029_v49 = vadd.f32 %v14292_v50, %v12963_v29  ;;  %v14307_v50 = vunpack.c.l.bf16 %v14376_v58  ;;  %v22307_v29 = vld [vmem:[%s22373_s7] ss:$0 sm:$0xff] }
 0x78f   : > { %v12845_v10 = vpop.f32.mrb[52].mxu1 }
 0x790   : > { %v14093_v2 = vpack.c.bf16 %v13050_v3, %v13050_v3  ;;  %v13051_v41 = vmax.f32 %v13029_v49, 0.0  ;;  %v12942_v28 = vmul.f32 %v21906_v13, %v12845_v10  ;;  %v16310_v12 = vpop.f32.mrb[53].mxu1  ;;  %v14308_v49 = vunpack.c.h.bf16 %v14376_v58 }
 0x791   : > { %v12848_v40 = vpop.f32.mrb[54].mxu1 }
 0x792   : > { %13160 = vst.msk [vmem:[%s21936_s20 + $0x88] sm:$0xf] %vm10742_vm8, %v14093_v2  ;;  %v14094_v38 = vpack.c.bf16 %v13051_v41, %v13051_v41  ;;  %v12964_v54 = vadd.f32 %v21913_v5, %v12942_v28  ;;  %v12943_v52 = vmul.f32 %v21906_v13, %v12848_v40  ;;  %v16311_v35 = vpop.f32.mrb[55].mxu1  ;;  %v14377_v28 = vld [vmem:[%s18083_s16 + $0xc0] sm:$0xff]  }
 0x794   : > { %13161 = vst.msk [vmem:[%s21936_s20 + $0x8c] sm:$0xf] %vm10742_vm8, %v14094_v38  ;;  %v13030_v34 = vadd.f32 %v14295_v33, %v12964_v54  ;;  %v12965_v61 = vadd.f32 %v21913_v5, %v12943_v52 }
 0x796   : > { %v13052_v45 = vmax.f32 %v13030_v34, 0.0  ;;  %v13031_v16 = vadd.f32 %v14296_v22, %v12965_v61  ;;  %v14311_v22 = vunpack.c.l.bf16 %v14377_v28 }
 0x797   : > { %v12853_v17 = vpop.f32.mrb[56].mxu1 }
 0x798   : > { %v14095_v60 = vpack.c.bf16 %v13052_v45, %v13052_v45  ;;  %v13053_v25 = vmax.f32 %v13031_v16, 0.0  ;;  %v12944_v8 = vmul.f32 %v21906_v13, %v12853_v17  ;;  %v16314_v9 = vpop.f32.mrb[57].mxu1  ;;  %v14312_v16 = vunpack.c.h.bf16 %v14377_v28 }
 0x799   : > { %v12856_v4 = vpop.f32.mrb[58].mxu1 }
 0x79a   : > { %13162 = vst.msk [vmem:[%s21936_s20 + $0x90] sm:$0xf] %vm10742_vm8, %v14095_v60  ;;  %v14096_v21 = vpack.c.bf16 %v13053_v25, %v13053_v25  ;;  %v12966_v23 = vadd.f32 %v21913_v5, %v12944_v8  ;;  %v12945_v7 = vmul.f32 %v21906_v13, %v12856_v4  ;;  %v16315_v42 = vpop.f32.mrb[59].mxu1  ;;  %v14378_v8 = vld [vmem:[%s18083_s16 + $0xc8] sm:$0xff]  }
 0x79c   : > { %13163 = vst.msk [vmem:[%s21936_s20 + $0x94] sm:$0xf] %vm10742_vm8, %v14096_v21  ;;  %v13032_v43 = vadd.f32 %v14299_v46, %v12966_v23  ;;  %v12967_v14 = vadd.f32 %v21913_v5, %v12945_v7 }
 0x79e   : > { %v13054_v31 = vmax.f32 %v13032_v43, 0.0  ;;  %v13033_v62 = vadd.f32 %v14300_v57, %v12967_v14  ;;  %v14315_v57 = vunpack.c.l.bf16 %v14378_v8 }
 0x79f   : > { %v12861_v51 = vpop.f32.mrb[60].mxu1 }
 0x7a0   : > { %v14097_v37 = vpack.c.bf16 %v13054_v31, %v13054_v31  ;;  %v13055_v11 = vmax.f32 %v13033_v62, 0.0  ;;  %v12946_v44 = vmul.f32 %v21906_v13, %v12861_v51  ;;  %v16318_v36 = vpop.f32.mrb[61].mxu1  ;;  %v14316_v62 = vunpack.c.h.bf16 %v14378_v8 }
 0x7a1   : > { %v12864_v18 = vpop.f32.mrb[62].mxu1 }
 0x7a2   : > { %13164 = vst.msk [vmem:[%s21936_s20 + $0x98] sm:$0xf] %vm10742_vm8, %v14097_v37  ;;  %v14098_v6 = vpack.c.bf16 %v13055_v11, %v13055_v11  ;;  %v12968_v20 = vadd.f32 %v21913_v5, %v12946_v44  ;;  %v12947_v30 = vmul.f32 %v21906_v13, %v12864_v18  ;;  %v16319_v56 = vpop.f32.mrb[63].mxu1  ;;  %v22299_v13 = vld [vmem:[%s22372_s6] ss:$0 sm:$0xff]  ;;  %v14379_v44 = vld [vmem:[%s18083_s16 + $0xd0] sm:$0xff]  }
 0x7a4   : > { %13165 = vst.msk [vmem:[%s21936_s20 + $0x9c] sm:$0xf] %vm10742_vm8, %v14098_v6  ;;  %v13034_v19 = vadd.f32 %v14303_v24, %v12968_v20  ;;  %v12969_v27 = vadd.f32 %v21913_v5, %v12947_v30 }
 0x7a6   : > { %v13056_v55 = vmax.f32 %v13034_v19, 0.0  ;;  %v13035_v48 = vadd.f32 %v14304_v15, %v12969_v27  ;;  %v14319_v15 = vunpack.c.l.bf16 %v14379_v44 }
 0x7a7   : > { %v12869_v1 = vpop.f32.mrb[64].mxu1 }
 0x7a8   : > { %v14099_v39 = vpack.c.bf16 %v13056_v55, %v13056_v55  ;;  %v13057_v53 = vmax.f32 %v13035_v48, 0.0  ;;  %v12948_v0 = vmul.f32 %v22299_v13, %v12869_v1  ;;  %v16322_v63 = vpop.f32.mrb[65].mxu1  ;;  %v14320_v48 = vunpack.c.h.bf16 %v14379_v44 }
 0x7a9   : > { %v12872_v59 = vpop.f32.mrb[66].mxu1 }
 0x7aa   : > { %13166 = vst.msk [vmem:[%s21936_s20 + $0xa0] sm:$0xf] %vm10742_vm8, %v14099_v39  ;;  %v14100_v5 = vpack.c.bf16 %v13057_v53, %v13057_v53  ;;  %v12970_v26 = vadd.f32 %v22307_v29, %v12948_v0  ;;  %v12949_v3 = vmul.f32 %v22299_v13, %v12872_v59  ;;  %v16323_v10 = vpop.f32.mrb[67].mxu1  ;;  %v14380_v0 = vld [vmem:[%s18083_s16 + $0xd8] sm:$0xff]  }
 0x7ac   : > { %13167 = vst.msk [vmem:[%s21936_s20 + $0xa4] sm:$0xf] %vm10742_vm8, %v14100_v5  ;;  %v13036_v2 = vadd.f32 %v14307_v50, %v12970_v26  ;;  %v12971_v41 = vadd.f32 %v22307_v29, %v12949_v3 }
 0x7ae   : > { %v13058_v33 = vmax.f32 %v13036_v2, 0.0  ;;  %v13037_v12 = vadd.f32 %v14308_v49, %v12971_v41  ;;  %v14323_v49 = vunpack.c.l.bf16 %v14380_v0 }
 0x7af   : > { %v12877_v40 = vpop.f32.mrb[68].mxu1 }
 0x7b0   : > { %v14101_v38 = vpack.c.bf16 %v13058_v33, %v13058_v33  ;;  %v13059_v54 = vmax.f32 %v13037_v12, 0.0  ;;  %v12950_v52 = vmul.f32 %v22299_v13, %v12877_v40  ;;  %v16326_v35 = vpop.f32.mrb[69].mxu1  ;;  %v14324_v12 = vunpack.c.h.bf16 %v14380_v0 }
 0x7b1   : > { %v12880_v34 = vpop.f32.mrb[70].mxu1 }
 0x7b2   : > { %13168 = vst.msk [vmem:[%s21936_s20 + $0xa8] sm:$0xf] %vm10742_vm8, %v14101_v38  ;;  %v14102_v61 = vpack.c.bf16 %v13059_v54, %v13059_v54  ;;  %v12972_v32 = vadd.f32 %v22307_v29, %v12950_v52  ;;  %v12951_v45 = vmul.f32 %v22299_v13, %v12880_v34  ;;  %v16327_v17 = vpop.f32.mrb[71].mxu1  ;;  %v14381_v52 = vld [vmem:[%s18083_s16 + $0xe0] sm:$0xff]  }
 0x7b4   : > { %13169 = vst.msk [vmem:[%s21936_s20 + $0xac] sm:$0xf] %vm10742_vm8, %v14102_v61  ;;  %v13038_v60 = vadd.f32 %v14311_v22, %v12972_v32  ;;  %v12973_v25 = vadd.f32 %v22307_v29, %v12951_v45 }
 0x7b6   : > { %v13060_v46 = vmax.f32 %v13038_v60, 0.0  ;;  %v13039_v9 = vadd.f32 %v14312_v16, %v12973_v25  ;;  %v14327_v16 = vunpack.c.l.bf16 %v14381_v52 }
 0x7b7   : > { %v12885_v4 = vpop.f32.mrb[72].mxu1 }
 0x7b8   : > { %v14103_v21 = vpack.c.bf16 %v13060_v46, %v13060_v46  ;;  %v13061_v23 = vmax.f32 %v13039_v9, 0.0  ;;  %v12952_v7 = vmul.f32 %v22299_v13, %v12885_v4  ;;  %v16330_v42 = vpop.f32.mrb[73].mxu1  ;;  %v14328_v9 = vunpack.c.h.bf16 %v14381_v52 }
 0x7b9   : > { %v12888_v43 = vpop.f32.mrb[74].mxu1 }
 0x7ba   : > { %13170 = vst.msk [vmem:[%s21936_s20 + $0xb0] sm:$0xf] %vm10742_vm8, %v14103_v21  ;;  %v14104_v14 = vpack.c.bf16 %v13061_v23, %v13061_v23  ;;  %v12974_v47 = vadd.f32 %v22307_v29, %v12952_v7  ;;  %v12953_v31 = vmul.f32 %v22299_v13, %v12888_v43  ;;  %v16331_v51 = vpop.f32.mrb[75].mxu1 }
 0x7bc   : > { %13171 = vst.msk [vmem:[%s21936_s20 + $0xb4] sm:$0xf] %vm10742_vm8, %v14104_v14  ;;  %v13040_v37 = vadd.f32 %v14315_v57, %v12974_v47  ;;  %v12975_v11 = vadd.f32 %v22307_v29, %v12953_v31 }
 0x7be   : > { %v13062_v24 = vmax.f32 %v13040_v37, 0.0  ;;  %v13041_v36 = vadd.f32 %v14316_v62, %v12975_v11 }
 0x7bf   : > { %v12893_v18 = vpop.f32.mrb[76].mxu1 }
 0x7c0   : > { %v14105_v6 = vpack.c.bf16 %v13062_v24, %v13062_v24  ;;  %v13063_v20 = vmax.f32 %v13041_v36, 0.0  ;;  %v12954_v30 = vmul.f32 %v22299_v13, %v12893_v18  ;;  %v16334_v56 = vpop.f32.mrb[77].mxu1 }
 0x7c1   : > { %v12896_v19 = vpop.f32.mrb[78].mxu1 }
 0x7c2   : > { %13172 = vst.msk [vmem:[%s21936_s20 + $0xb8] sm:$0xf] %vm10742_vm8, %v14105_v6  ;;  %v14106_v27 = vpack.c.bf16 %v13063_v20, %v13063_v20  ;;  %v12976_v58 = vadd.f32 %v22307_v29, %v12954_v30  ;;  %v12955_v55 = vmul.f32 %v22299_v13, %v12896_v19  ;;  %v16335_v1 = vpop.f32.mrb[79].mxu1 }
 0x7c4   : > { %13173 = vst.msk [vmem:[%s21936_s20 + $0xbc] sm:$0xf] %vm10742_vm8, %v14106_v27  ;;  %v13042_v39 = vadd.f32 %v14319_v15, %v12976_v58  ;;  %v12977_v53 = vadd.f32 %v22307_v29, %v12955_v55 }
 0x7c6   : > { %v13064_v50 = vmax.f32 %v13042_v39, 0.0  ;;  %v13043_v63 = vadd.f32 %v14320_v48, %v12977_v53 }
 0x7c7   : > { %v12901_v59 = vpop.f32.mrb[80].mxu1 }
 0x7c8   : > { %v14107_v5 = vpack.c.bf16 %v13064_v50, %v13064_v50  ;;  %v13065_v26 = vmax.f32 %v13043_v63, 0.0  ;;  %v12956_v3 = vmul.f32 %v22299_v13, %v12901_v59  ;;  %v16338_v10 = vpop.f32.mrb[81].mxu1 }
 0x7c9   : > { %v12904_v2 = vpop.f32.mrb[82].mxu1 }
 0x7ca   : > { %13174 = vst.msk [vmem:[%s21936_s20 + $0xc0] sm:$0xf] %vm10742_vm8, %v14107_v5  ;;  %v14108_v41 = vpack.c.bf16 %v13065_v26, %v13065_v26  ;;  %v12978_v28 = vadd.f32 %v22307_v29, %v12956_v3  ;;  %v12957_v33 = vmul.f32 %v22299_v13, %v12904_v2  ;;  %v16339_v40 = vpop.f32.mrb[83].mxu1 }
 0x7cc   : > { %13175 = vst.msk [vmem:[%s21936_s20 + $0xc4] sm:$0xf] %vm10742_vm8, %v14108_v41  ;;  %v13044_v38 = vadd.f32 %v14323_v49, %v12978_v28  ;;  %v12979_v54 = vadd.f32 %v22307_v29, %v12957_v33 }
 0x7ce   : > { %v13066_v22 = vmax.f32 %v13044_v38, 0.0  ;;  %v13045_v35 = vadd.f32 %v14324_v12, %v12979_v54 }
 0x7cf   : > { %v12909_v34 = vpop.f32.mrb[84].mxu1 }
 0x7d0   : > { %v14109_v61 = vpack.c.bf16 %v13066_v22, %v13066_v22  ;;  %v13067_v32 = vmax.f32 %v13045_v35, 0.0  ;;  %v12958_v45 = vmul.f32 %v22299_v13, %v12909_v34  ;;  %v16342_v17 = vpop.f32.mrb[85].mxu1 }
 0x7d1   : > { %v12912_v60 = vpop.f32.mrb[86].mxu1 }
 0x7d2   : > { %13176 = vst.msk [vmem:[%s21936_s20 + $0xc8] sm:$0xf] %vm10742_vm8, %v14109_v61  ;;  %v14110_v25 = vpack.c.bf16 %v13067_v32, %v13067_v32  ;;  %v12980_v8 = vadd.f32 %v22307_v29, %v12958_v45  ;;  %v12959_v46 = vmul.f32 %v22299_v13, %v12912_v60  ;;  %v16343_v4 = vpop.f32.mrb[87].mxu1 }
 0x7d4   : > { %13177 = vst.msk [vmem:[%s21936_s20 + $0xcc] sm:$0xf] %vm10742_vm8, %v14110_v25  ;;  %v13046_v21 = vadd.f32 %v14327_v16, %v12980_v8  ;;  %v12981_v23 = vadd.f32 %v22307_v29, %v12959_v46 }
 0x7d6   : > { %v13068_v7 = vmax.f32 %v13046_v21, 0.0  ;;  %v13047_v57 = vadd.f32 %v14328_v9, %v12981_v23 }
 0x7d8   : > { %v14111_v42 = vpack.c.bf16 %v13068_v7, %v13068_v7  ;;  %v13069_v43 = vmax.f32 %v13047_v57, 0.0 }
 0x7da   : > { %13178 = vst.msk [vmem:[%s21936_s20 + $0xd0] sm:$0xf] %vm10742_vm8, %v14111_v42  ;;  %v14112_v14 = vpack.c.bf16 %v13069_v43, %v13069_v43 }
 0x7dc   : > { %13179 = vst.msk [vmem:[%s21936_s20 + $0xd4] sm:$0xf] %vm10742_vm8, %v14112_v14 }
 0x7dd PF: > { %s18_s27 = sadd.s32 1, %s17996_s27  }
 0x7de   : > { %p15_p4 = scmp.ge.s32.totalorder %s18_s27, 4  }
 0x7e0   :  { %17 = sbr.rel (!%p15_p4) target bundleno = 1 (0x1), region = 98 }

</bundles_post_ra>
